<compile_context>
chip_gen: v7x
topology: tpu7x:2x2x1
jax: 0.10.0
libtpu: 0.0.40
codegen_flags: <defaults>
</compile_context>

<pallas_src>
import jax
import jax.numpy as jnp
from jax.experimental import pallas as pl
from jax.experimental.pallas import tpu as pltpu

NUM_INPUT = 9216
HIDDEN = 300
HIDDEN_PAD = 384          # 300 padded to a multiple of 128 lanes


def _mlp_kernel(x_ref, w1_ref, b1_ref, w2_ref, b2_ref, w3_ref, b3_ref, o_ref):
    """One batch-tile grid step of the fused MLP (all weights VMEM-resident)."""
    # fc1: bf16 x bf16 -> f32 accumulate on the MXU. x cast happens in-kernel.
    h1 = jnp.dot(x_ref[...].astype(jnp.bfloat16), w1_ref[...],
                 preferred_element_type=jnp.float32)
    h1 = jnp.maximum(h1 + b1_ref[...], 0.0)

    # fc2 + ReLU (W2 resident, bf16 weights, f32 accumulate).
    h2 = jnp.dot(h1.astype(jnp.bfloat16), w2_ref[...],
                 preferred_element_type=jnp.float32)
    h2 = jnp.maximum(h2 + b2_ref[...], 0.0)

    # fc3: output width is 1 -> skip the MXU; VPU multiply + cross-lane (XLU) sum.
    out = jnp.sum(h2 * w3_ref[...], axis=-1, keepdims=True) + b3_ref[...]
    o_ref[...] = out.astype(o_ref.dtype)


def net_forward(x, params, *, tb=128):
    """x: (B, NUM_INPUT) float32. params: prepared (transposed/padded/bf16) weights."""
    B = x.shape[0]

    # Batch tile: multiple of 8 sublanes, capped at `tb`; pad B up to a multiple.
    if B < tb:
        tb = 8 * ((B + 7) // 8)
    B_pad = tb * pl.cdiv(B, tb)
    if B_pad != B:
        x = jnp.pad(x, ((0, B_pad - B), (0, 0)))
    x = x.astype(jnp.float32)

    w1t, b1, w2t, b2, w3r, b3 = (params["w1t"], params["b1"], params["w2t"],
                                 params["b2"], params["w3r"], params["b3"])

    out = pl.pallas_call(
        _mlp_kernel,
        out_shape=jax.ShapeDtypeStruct((B_pad, 1), jnp.float32),
        grid_spec=pltpu.PrefetchScalarGridSpec(
            num_scalar_prefetch=0,
            grid=(B_pad // tb,),
            in_specs=[
                pl.BlockSpec((tb, NUM_INPUT), lambda b: (b, 0)),          # x tile (streamed)
                pl.BlockSpec((NUM_INPUT, HIDDEN_PAD), lambda b: (0, 0)),  # W1 (resident)
                pl.BlockSpec((1, HIDDEN_PAD), lambda b: (0, 0)),          # b1 (resident)
                pl.BlockSpec((HIDDEN_PAD, HIDDEN_PAD), lambda b: (0, 0)), # W2 (resident)
                pl.BlockSpec((1, HIDDEN_PAD), lambda b: (0, 0)),          # b2 (resident)
                pl.BlockSpec((1, HIDDEN_PAD), lambda b: (0, 0)),          # w3 row (resident)
                pl.BlockSpec((1, 1), lambda b: (0, 0)),                   # b3 (resident)
            ],
            out_specs=pl.BlockSpec((tb, 1), lambda b: (b, 0)),
        ),
        compiler_params=pltpu.CompilerParams(
            dimension_semantics=("parallel",),   # batch tiles split across TCs (v7x)
            vmem_limit_bytes=40 << 20,           # ~27 MiB footprint; fits v7x (64 MiB)
        ),
    )(x, w1t, b1, w2t, b2, w3r, b3)

    return out[:B]


def init_params(key):
    """Torch-layout f32 params: nn.Linear weight (out, in), bias (out,)."""
    ks = jax.random.split(key, 6)

    def uniform(k, shape, fan_in):
        bound = 1.0 / jnp.sqrt(jnp.float32(fan_in))
        return jax.random.uniform(k, shape, jnp.float32, -bound, bound)

    return {
        "w1": uniform(ks[0], (HIDDEN, NUM_INPUT), NUM_INPUT),
        "b1": uniform(ks[1], (HIDDEN,), NUM_INPUT),
        "w2": uniform(ks[2], (HIDDEN, HIDDEN), HIDDEN),
        "b2": uniform(ks[3], (HIDDEN,), HIDDEN),
        "w3": uniform(ks[4], (1, HIDDEN), HIDDEN),
        "b3": uniform(ks[5], (1,), HIDDEN),
    }


def prepare_params(p):
    """Transpose to (in, out), zero-pad hidden 300->384, cast matmul weights to bf16."""
    ph = HIDDEN_PAD - HIDDEN
    return {
        "w1t": jnp.pad(p["w1"].T, ((0, 0), (0, ph))).astype(jnp.bfloat16),   # (9216, 384)
        "w2t": jnp.pad(p["w2"].T, ((0, ph), (0, ph))).astype(jnp.bfloat16),  # (384, 384)
        "w3r": jnp.pad(p["w3"], ((0, 0), (0, ph))).astype(jnp.float32),      # (1, 384)
        "b1":  jnp.pad(p["b1"], (0, ph)).reshape(1, HIDDEN_PAD).astype(jnp.float32),
        "b2":  jnp.pad(p["b2"], (0, ph)).reshape(1, HIDDEN_PAD).astype(jnp.float32),
        "b3":  p["b3"].reshape(1, 1).astype(jnp.float32),
    }


if __name__ == "__main__":
    key = jax.random.PRNGKey(0)
    k_params, k_x = jax.random.split(key)

    params = prepare_params(init_params(k_params))

    B = 8  # small test batch (serving should use >=128 to fill a batch tile)
    x = jax.random.normal(k_x, (B, NUM_INPUT), jnp.float32)

    out = jax.block_until_ready(net_forward(x, params))
    assert out.shape == (B, 1)

    # Pure-JAX reference mirroring the kernel's bf16-weight / f32-accumulate math.
    xb = x.astype(jnp.bfloat16).astype(jnp.float32)
    w1 = params["w1t"].astype(jnp.float32)
    w2 = params["w2t"].astype(jnp.float32)
    h1 = jnp.maximum(xb @ w1 + params["b1"], 0.0)
    h1 = h1.astype(jnp.bfloat16).astype(jnp.float32)
    h2 = jnp.maximum(h1 @ w2 + params["b2"], 0.0)
    ref = jnp.sum(h2 * params["w3r"], axis=-1, keepdims=True) + params["b3"]

    assert jnp.allclose(out, ref, atol=5e-3, rtol=5e-3), float(
        jnp.max(jnp.abs(out - ref)))

    print("KERNEL_OK")
</pallas_src>

<mosaic_0001>
module attributes {stable_mosaic.version = 11 : i64} {
  func.func @_mlp_kernel(%arg0: i32, %arg1: memref<8x9216xf32, #tpu.memory_space<vmem>>, %arg2: memref<9216x384xbf16, #tpu.memory_space<vmem>>, %arg3: memref<1x384xf32, #tpu.memory_space<vmem>>, %arg4: memref<384x384xbf16, #tpu.memory_space<vmem>>, %arg5: memref<1x384xf32, #tpu.memory_space<vmem>>, %arg6: memref<1x384xf32, #tpu.memory_space<vmem>>, %arg7: memref<1x1xf32, #tpu.memory_space<vmem>>, %arg8: memref<8x1xf32, #tpu.memory_space<vmem>>) attributes {dimension_semantics = [#tpu.dimension_semantics<parallel>], iteration_bounds = array<i64: 1>, scalar_prefetch = 0 : i64, scratch_operands = 0 : i64, tpu.core_type = #tpu.core_type<tc>, window_params = [{transform_indices = @transform_0, window_bounds = array<i64: 8, 9216>}, {pipeline_mode = #tpu.pipeline_mode<synchronous>, transform_indices = @transform_1, window_bounds = array<i64: 9216, 384>}, {pipeline_mode = #tpu.pipeline_mode<synchronous>, transform_indices = @transform_2, window_bounds = array<i64: 1, 384>}, {pipeline_mode = #tpu.pipeline_mode<synchronous>, transform_indices = @transform_3, window_bounds = array<i64: 384, 384>}, {pipeline_mode = #tpu.pipeline_mode<synchronous>, transform_indices = @transform_4, window_bounds = array<i64: 1, 384>}, {pipeline_mode = #tpu.pipeline_mode<synchronous>, transform_indices = @transform_5, window_bounds = array<i64: 1, 384>}, {pipeline_mode = #tpu.pipeline_mode<synchronous>, transform_indices = @transform_6, window_bounds = array<i64: 1, 1>}, {transform_indices = @transform_7, window_bounds = array<i64: 8, 1>}]} {
    %c0 = arith.constant 0 : index
    %c0_0 = arith.constant 0 : index
    %0 = vector.load %arg1[%c0, %c0_0] : memref<8x9216xf32, #tpu.memory_space<vmem>>, vector<8x9216xf32>
    %1 = arith.truncf %0 : vector<8x9216xf32> to vector<8x9216xbf16>
    %c0_1 = arith.constant 0 : index
    %c0_2 = arith.constant 0 : index
    %2 = vector.load %arg2[%c0_1, %c0_2] : memref<9216x384xbf16, #tpu.memory_space<vmem>>, vector<9216x384xbf16>
    %cst = arith.constant dense<0.000000e+00> : vector<8x384xf32>
    %3 = tpu.matmul %1, %2, %cst {dimension_numbers = #tpu.dot_dimension_numbers<[1], [0], [0], [1], [0, 0, 1, 1], [], []>} : vector<8x9216xbf16>, vector<9216x384xbf16>, vector<8x384xf32> -> vector<8x384xf32>
    %c0_3 = arith.constant 0 : index
    %c0_4 = arith.constant 0 : index
    %4 = vector.load %arg3[%c0_3, %c0_4] : memref<1x384xf32, #tpu.memory_space<vmem>>, vector<1x384xf32>
    %5 = vector.broadcast %4 : vector<1x384xf32> to vector<8x384xf32>
    %6 = arith.addf %3, %5 : vector<8x384xf32>
    %cst_5 = arith.constant 0.000000e+00 : f32
    %7 = vector.broadcast %cst_5 : f32 to vector<8x384xf32>
    %8 = arith.maximumf %6, %7 : vector<8x384xf32>
    %9 = arith.truncf %8 : vector<8x384xf32> to vector<8x384xbf16>
    %c0_6 = arith.constant 0 : index
    %c0_7 = arith.constant 0 : index
    %10 = vector.load %arg4[%c0_6, %c0_7] : memref<384x384xbf16, #tpu.memory_space<vmem>>, vector<384x384xbf16>
    %cst_8 = arith.constant dense<0.000000e+00> : vector<8x384xf32>
    %11 = tpu.matmul %9, %10, %cst_8 {dimension_numbers = #tpu.dot_dimension_numbers<[1], [0], [0], [1], [0, 0, 1, 1], [], []>} : vector<8x384xbf16>, vector<384x384xbf16>, vector<8x384xf32> -> vector<8x384xf32>
    %c0_9 = arith.constant 0 : index
    %c0_10 = arith.constant 0 : index
    %12 = vector.load %arg5[%c0_9, %c0_10] : memref<1x384xf32, #tpu.memory_space<vmem>>, vector<1x384xf32>
    %13 = vector.broadcast %12 : vector<1x384xf32> to vector<8x384xf32>
    %14 = arith.addf %11, %13 : vector<8x384xf32>
    %cst_11 = arith.constant 0.000000e+00 : f32
    %15 = vector.broadcast %cst_11 : f32 to vector<8x384xf32>
    %16 = arith.maximumf %14, %15 : vector<8x384xf32>
    %c0_12 = arith.constant 0 : index
    %c0_13 = arith.constant 0 : index
    %17 = vector.load %arg6[%c0_12, %c0_13] : memref<1x384xf32, #tpu.memory_space<vmem>>, vector<1x384xf32>
    %18 = vector.broadcast %17 : vector<1x384xf32> to vector<8x384xf32>
    %19 = arith.mulf %16, %18 : vector<8x384xf32>
    %cst_14 = arith.constant dense<0.000000e+00> : vector<8xf32>
    %20 = vector.multi_reduction <add>, %19, %cst_14 [1] : vector<8x384xf32> to vector<8xf32>
    %21 = vector.shape_cast %20 : vector<8xf32> to vector<8x1xf32>
    %c0_15 = arith.constant 0 : index
    %c0_16 = arith.constant 0 : index
    %22 = vector.load %arg7[%c0_15, %c0_16] : memref<1x1xf32, #tpu.memory_space<vmem>>, vector<1x1xf32>
    %23 = vector.broadcast %22 : vector<1x1xf32> to vector<8x1xf32>
    %24 = arith.addf %21, %23 : vector<8x1xf32>
    %c0_17 = arith.constant 0 : index
    %c0_18 = arith.constant 0 : index
    %25 = vector.load %arg8[%c0_17, %c0_18] : memref<8x1xf32, #tpu.memory_space<vmem>>, vector<8x1xf32>
    tpu.vector_store %arg8[%c0_17, %c0_18], %24 {strides = array<i32>} : memref<8x1xf32, #tpu.memory_space<vmem>>, vector<8x1xf32>,
    return
  }
  func.func @transform_0(%arg0: i32) -> (i32, i32) {
    %c0_i32 = arith.constant 0 : i32
    %c0_i32_0 = arith.constant 0 : i32
    return %arg0, %c0_i32 : i32, i32
  }
  func.func @transform_1(%arg0: i32) -> (i32, i32) {
    %c0_i32 = arith.constant 0 : i32
    %c0_i32_0 = arith.constant 0 : i32
    %c0_i32_1 = arith.constant 0 : i32
    return %c0_i32, %c0_i32_0 : i32, i32
  }
  func.func @transform_2(%arg0: i32) -> (i32, i32) {
    %c0_i32 = arith.constant 0 : i32
    %c0_i32_0 = arith.constant 0 : i32
    %c0_i32_1 = arith.constant 0 : i32
    return %c0_i32, %c0_i32_0 : i32, i32
  }
  func.func @transform_3(%arg0: i32) -> (i32, i32) {
    %c0_i32 = arith.constant 0 : i32
    %c0_i32_0 = arith.constant 0 : i32
    %c0_i32_1 = arith.constant 0 : i32
    return %c0_i32, %c0_i32_0 : i32, i32
  }
  func.func @transform_4(%arg0: i32) -> (i32, i32) {
    %c0_i32 = arith.constant 0 : i32
    %c0_i32_0 = arith.constant 0 : i32
    %c0_i32_1 = arith.constant 0 : i32
    return %c0_i32, %c0_i32_0 : i32, i32
  }
  func.func @transform_5(%arg0: i32) -> (i32, i32) {
    %c0_i32 = arith.constant 0 : i32
    %c0_i32_0 = arith.constant 0 : i32
    %c0_i32_1 = arith.constant 0 : i32
    return %c0_i32, %c0_i32_0 : i32, i32
  }
  func.func @transform_6(%arg0: i32) -> (i32, i32) {
    %c0_i32 = arith.constant 0 : i32
    %c0_i32_0 = arith.constant 0 : i32
    %c0_i32_1 = arith.constant 0 : i32
    return %c0_i32, %c0_i32_0 : i32, i32
  }
  func.func @transform_7(%arg0: i32) -> (i32, i32) {
    %c0_i32 = arith.constant 0 : i32
    %c0_i32_0 = arith.constant 0 : i32
    return %arg0, %c0_i32 : i32, i32
  }
}

</mosaic_0001>

<bundles_post_ra>
// kernel: tpu_custom_call.1
= control target key start
LH: loop header
LB: loop body
LE: loop exit
PB: predicated region body
PF: predicated region fallthrough
CT: control target
= control target key end

     0   :  { %s21275_s0 = inlined_call_operand.hbm [shape: f32[8,9216], index: 0, kind: input, shape index: {}]   ;;  %s21276_s1 = inlined_call_operand.hbm [shape: bf16[9216,384], index: 1, kind: input, shape index: {}]   ;;  %s21277_s2 = inlined_call_operand.hbm [shape: f32[1,384], index: 2, kind: input, shape index: {}]   ;;  %s21278_s3 = inlined_call_operand.hbm [shape: bf16[384,384], index: 3, kind: input, shape index: {}]   ;;  %s21279_s4 = inlined_call_operand.hbm [shape: f32[1,384], index: 4, kind: input, shape index: {}]   ;;  %s21280_s5 = inlined_call_operand.hbm [shape: f32[1,384], index: 5, kind: input, shape index: {}]   ;;  %s21281_s6 = inlined_call_operand.<no memory space> [shape: f32[1,1], index: 6, kind: input, shape index: {}]   ;;  %s21282_s7 = inlined_call_operand.vmem [shape: f32[8,1], index: 7, kind: output, shape index: {}]  }
   0x1   :  { %v12_v0 = vstv %s21281_s6 }
   0x2   :  { %13 = vst [vmem:[#allocation2] sm:$0x1] %v12_v0 }
   0x3   :  { %14 = vsyncpa [#allocation4], 0 }
   0x4   :  { %15 = vsyncpa [#allocation6], 0 }
   0x5   :  { %16 = vsyncpa [#allocation9], 0 }
   0x6   :  { %17 = vsyncpa [#allocation12], 0  ;;  %s20752_s26 = smov [#allocation5]   ;;  %s20612_s30 = scalar_lea.hbm %s21276_s1, 221184 }
   0x7   :  { %s33_s27 = sshll.u32 %s20752_s26, 4  ;;  %p20613_p0 = scmp.ne.s32.totalorder %s21276_s1, %s20612_s30  ;;  %s34_s27 = int_to_ptr.vmem [resolvable:$true] %s33_s27 }
   0x8   :  { %p20616_p1 = scmp.lt.u32.totalorder %s20612_s30, %s21276_s1 }
   0xa   :  { %p20618_p2 = pnand %p20616_p1, %p20613_p0 }
   0xc   :  { %20621 = shalt.err (!%p20618_p2)
}
   0xd   :  { %s20622_s6 = scalar_lea.vmem %s34_s27, 221184  ;;  %p20627_p4 = scmp.lt.s32.totalorder %s34_s27, %s34_s27 }
   0xe   :  { %p20623_p3 = scmp.ne.s32.totalorder %s34_s27, %s20622_s6  ;;  %p20628_p5 = scmp.lt.s32.totalorder %s20622_s6, %s20622_s6 }
  0x10   :  { %p20629_p6 = por %p20628_p5, %p20627_p4 }
  0x12   :  { %p20630_p7 = pnand %p20629_p6, %p20623_p3 }
  0x14   :  { %20633 = shalt.err (!%p20630_p7)
}
  0x15   :  { %s20753_s12 = smov 192   ;;  %s20754_s13 = smov 12  }
  0x16   :  { %39 = dma.hbm_to_vmem [thread:$0]  %s21276_s1, 221184, %s34_s27, [#allocation6], %s20753_s12, %s20753_s12, %s20754_s13  }
  0x17   :  { %s20755_s16 = smov [#allocation8]   ;;  %s20756_s18 = smov [#allocation3]  }
  0x18   :  { %s55_s17 = sshll.u32 %s20755_s16, 4  ;;  %s24_s19 = sshll.u32 %s20756_s18, 4  ;;  %s56_s17 = int_to_ptr.vmem [resolvable:$true] %s55_s17  ;;  %s25_s19 = int_to_ptr.vmem [resolvable:$true] %s24_s19 }
  0x19   :  { %s20634_s22 = scalar_lea.hbm %s21278_s3, 9216 }
  0x1a   :  { %p20635_p8 = scmp.ne.s32.totalorder %s21278_s3, %s20634_s22  ;;  %p20638_p9 = scmp.lt.u32.totalorder %s20634_s22, %s21278_s3 }
  0x1c   :  { %p20640_p10 = pnand %p20638_p9, %p20635_p8 }
  0x1e   :  { %20643 = shalt.err (!%p20640_p10)
}
  0x1f   :  { %s20644_s1 = scalar_lea.vmem %s56_s17, 9216  ;;  %p20649_p12 = scmp.lt.s32.totalorder %s56_s17, %s56_s17 }
  0x20   :  { %p20645_p11 = scmp.ne.s32.totalorder %s56_s17, %s20644_s1  ;;  %p20650_p13 = scmp.lt.s32.totalorder %s20644_s1, %s20644_s1 }
  0x22   :  { %p20651_p0 = por %p20650_p13, %p20649_p12 }
  0x24   :  { %p20652_p1 = pnand %p20651_p0, %p20645_p11 }
  0x26   :  { %20655 = shalt.err (!%p20652_p1)
}
  0x27   :  { %61 = dma.hbm_to_vmem [thread:$0]  %s21278_s3, 9216, %s56_s17, [#allocation9], %s20753_s12, %s20753_s12, %s20754_s13  }
  0x28   :  { %s20656_s8 = scalar_lea.hbm %s21275_s0, 9216 }
  0x29   :  { %p20657_p2 = scmp.ne.s32.totalorder %s21275_s0, %s20656_s8  ;;  %p20660_p3 = scmp.lt.u32.totalorder %s20656_s8, %s21275_s0 }
  0x2b   :  { %p20662_p4 = pnand %p20660_p3, %p20657_p2 }
  0x2d   :  { %20665 = shalt.err (!%p20662_p4)
}
  0x2e   :  { %s20666_s14 = scalar_lea.vmem %s25_s19, 9216  ;;  %p20671_p6 = scmp.lt.s32.totalorder %s25_s19, %s25_s19 }
  0x2f   :  { %p20667_p5 = scmp.ne.s32.totalorder %s25_s19, %s20666_s14  ;;  %p20672_p7 = scmp.lt.s32.totalorder %s20666_s14, %s20666_s14 }
  0x31   :  { %p20673_p8 = por %p20672_p7, %p20671_p6 }
  0x33   :  { %p20674_p9 = pnand %p20673_p8, %p20667_p5 }
  0x35   :  { %20677 = shalt.err (!%p20674_p9)
}
  0x36   :  { %27 = dma.hbm_to_vmem [thread:$0]  %s21275_s0, 9216, %s25_s19, [#allocation4]  }
  0x37   :  { %s20757_s13 = smov [#allocation7]   ;;  %s20758_s16 = smov [#allocation10]  }
  0x38   :  { %s46_s15 = sshll.u32 %s20757_s13, 4  ;;  %s68_s17 = sshll.u32 %s20758_s16, 4  ;;  %s47_s15 = int_to_ptr.vmem [resolvable:$true] %s46_s15  ;;  %s69_s17 = int_to_ptr.vmem [resolvable:$true] %s68_s17 }
  0x39   :  { %s20678_s21 = scalar_lea.hbm %s21277_s2, 48 }
  0x3a   :  { %p20679_p10 = scmp.ne.s32.totalorder %s21277_s2, %s20678_s21  ;;  %p20682_p11 = scmp.lt.u32.totalorder %s20678_s21, %s21277_s2 }
  0x3c   :  { %p20684_p12 = pnand %p20682_p11, %p20679_p10 }
  0x3e   :  { %20687 = shalt.err (!%p20684_p12)
}
  0x3f   :  { %s20688_s0 = scalar_lea.vmem %s47_s15, 48  ;;  %s20692_s19 = scalar_lea.vmem %s47_s15, 64 }
  0x40   :  { %p20689_p13 = scmp.ne.s32.totalorder %s47_s15, %s20688_s0  ;;  %p20693_p0 = scmp.lt.s32.totalorder %s47_s15, %s47_s15 }
  0x41   :  { %p20694_p1 = scmp.lt.s32.totalorder %s20692_s19, %s20688_s0 }
  0x43   :  { %p20695_p2 = por %p20694_p1, %p20693_p0 }
  0x45   :  { %p20696_p3 = pnand %p20695_p2, %p20689_p13 }
  0x47   :  { %20699 = shalt.err (!%p20696_p3)
}
  0x48   :  { %49 = dma.hbm_to_vmem [thread:$0]  %s21277_s2, 48, %s47_s15, [#allocation6]  }
  0x49   :  { %s20700_s29 = scalar_lea.hbm %s21279_s4, 48 }
  0x4a   :  { %p20701_p4 = scmp.ne.s32.totalorder %s21279_s4, %s20700_s29  ;;  %p20704_p5 = scmp.lt.u32.totalorder %s20700_s29, %s21279_s4 }
  0x4c   :  { %p20706_p6 = pnand %p20704_p5, %p20701_p4 }
  0x4e   :  { %20709 = shalt.err (!%p20706_p6)
}
  0x4f   :  { %s20710_s11 = scalar_lea.vmem %s69_s17, 48  ;;  %s20714_s6 = scalar_lea.vmem %s69_s17, 64 }
  0x50   :  { %p20711_p7 = scmp.ne.s32.totalorder %s69_s17, %s20710_s11  ;;  %p20715_p8 = scmp.lt.s32.totalorder %s69_s17, %s69_s17 }
  0x51   :  { %p20716_p9 = scmp.lt.s32.totalorder %s20714_s6, %s20710_s11 }
  0x53   :  { %p20717_p10 = por %p20716_p9, %p20715_p8 }
  0x55   :  { %p20718_p11 = pnand %p20717_p10, %p20711_p7 }
  0x57   :  { %20721 = shalt.err (!%p20718_p11)
}
  0x58   :  { %71 = dma.hbm_to_vmem [thread:$0]  %s21279_s4, 48, %s69_s17, [#allocation9]  }
  0x59   :  { %s20759_s3 = smov [#allocation11]   ;;  %s20722_s16 = scalar_lea.hbm %s21280_s5, 48 }
  0x5a   :  { %s78_s12 = sshll.u32 %s20759_s3, 4  ;;  %p20723_p12 = scmp.ne.s32.totalorder %s21280_s5, %s20722_s16  ;;  %s79_s12 = int_to_ptr.vmem [resolvable:$true] %s78_s12 }
  0x5b   :  { %p20726_p13 = scmp.lt.u32.totalorder %s20722_s16, %s21280_s5 }
  0x5d   :  { %p20728_p0 = pnand %p20726_p13, %p20723_p12 }
  0x5f   :  { %20731 = shalt.err (!%p20728_p0)
}
  0x60   :  { %s20732_s23 = scalar_lea.vmem %s79_s12, 48  ;;  %s20736_s4 = scalar_lea.vmem %s79_s12, 64 }
  0x61   :  { %p20733_p1 = scmp.ne.s32.totalorder %s79_s12, %s20732_s23  ;;  %p20737_p2 = scmp.lt.s32.totalorder %s79_s12, %s79_s12 }
  0x62   :  { %p20738_p3 = scmp.lt.s32.totalorder %s20736_s4, %s20732_s23 }
  0x64   :  { %p20739_p4 = por %p20738_p3, %p20737_p2 }
  0x66   :  { %p20740_p5 = pnand %p20739_p4, %p20733_p1 }
  0x68   :  { %20743 = shalt.err (!%p20740_p5)
}
  0x69   :  { %81 = dma.hbm_to_vmem [thread:$0]  %s21280_s5, 48, %s79_s12, [#allocation12]  }
  0x6a   :  { %20744 = dma.done.wait [#allocation4], 9216  }
  0x6b   :  { %20745 = vsyncadd [#allocation4], 4294958080 }
  0x6c   :  { %20746 = dma.done.wait [#allocation6], 221232  }
  0x6d   :  { %20747 = vsyncadd [#allocation6], 4294746064 }
  0x6e   :  { %20748 = dma.done.wait [#allocation9], 9264  }
  0x6f   :  { %20749 = vsyncadd [#allocation9], 4294958032 }
  0x70   :  { %20750 = dma.done.wait [#allocation12], 48  }
  0x71   :  { %20751 = vsyncadd [#allocation12], 4294967248  ;;  %v18211_v1 = vld [vmem:[#allocation5 + $0x4] ss:$12 sps:$4 sm:$0xff]   ;;  %v18215_v3 = vld [vmem:[#allocation5] ss:$12 sps:$4 sm:$0xff]  }
  0x72   :  { %v18213_v2 = vld [vmem:[#allocation5 + $0xc04] ss:$12 sps:$4 sm:$0xff]   ;;  %11784 = vmatprep.subr.bf16.mxu1 %v18211_v1  ;;  %v18216_v4 = vld [vmem:[#allocation5 + $0xc00] ss:$12 sps:$4 sm:$0xff]   ;;  %v18217_v5 = vld [vmem:[#allocation5 + $0x1c] ss:$12 sps:$4 sm:$0xff]  }
  0x73   :  { %12112 = vmatprep.subr.bf16.mxu0 %v18213_v2  ;;  %11785 = vmatpush1.bf16.msra.mxu1 %v18215_v3  ;;  %v18219_v6 = vld [vmem:[#allocation5 + $0xc1c] ss:$12 sps:$4 sm:$0xff]   ;;  %v18221_v7 = vld [vmem:[#allocation5 + $0x18] ss:$12 sps:$4 sm:$0xff]   ;;  %v18223_v9 = vld [vmem:[#allocation5 + $0x34] ss:$12 sps:$4 sm:$0xff]  }
  0x74   :  { %12113 = vmatpush1.bf16.msra.mxu0 %v18216_v4  ;;  %11786 = vmatprep.subr.bf16.mxu1 %v18217_v5  ;;  %v18222_v8 = vld [vmem:[#allocation5 + $0xc18] ss:$12 sps:$4 sm:$0xff]   ;;  %v18225_v10 = vld [vmem:[#allocation5 + $0xc34] ss:$12 sps:$4 sm:$0xff]   ;;  %v18227_v11 = vld [vmem:[#allocation5 + $0x30] ss:$12 sps:$4 sm:$0xff]  }
  0x75   :  { %12114 = vmatprep.subr.bf16.mxu0 %v18219_v6  ;;  %v18228_v12 = vld [vmem:[#allocation5 + $0xc30] ss:$12 sps:$4 sm:$0xff]   ;;  %v18229_v13 = vld [vmem:[#allocation5 + $0x4c] ss:$12 sps:$4 sm:$0xff]   ;;  %v18233_v15 = vld [vmem:[#allocation5 + $0x48] ss:$12 sps:$4 sm:$0xff]  }
  0x76   :  { %v18231_v14 = vld [vmem:[#allocation5 + $0xc4c] ss:$12 sps:$4 sm:$0xff]   ;;  %v18234_v16 = vld [vmem:[#allocation5 + $0xc48] ss:$12 sps:$4 sm:$0xff]   ;;  %v18235_v17 = vld [vmem:[#allocation5 + $0x64] ss:$12 sps:$4 sm:$0xff]  }
  0x77   :  { %11787 = vmatpush1.bf16.msra.mxu1 %v18221_v7  ;;  %v18237_v18 = vld [vmem:[#allocation5 + $0xc64] ss:$12 sps:$4 sm:$0xff]   ;;  %v18239_v19 = vld [vmem:[#allocation5 + $0x60] ss:$12 sps:$4 sm:$0xff]   ;;  %v18241_v21 = vld [vmem:[#allocation5 + $0x7c] ss:$12 sps:$4 sm:$0xff]  }
  0x78   :  { %12115 = vmatpush1.bf16.msra.mxu0 %v18222_v8  ;;  %11788 = vmatprep.subr.bf16.mxu1 %v18223_v9  ;;  %v18240_v20 = vld [vmem:[#allocation5 + $0xc60] ss:$12 sps:$4 sm:$0xff]   ;;  %v18243_v22 = vld [vmem:[#allocation5 + $0xc7c] ss:$12 sps:$4 sm:$0xff]   ;;  %v18245_v23 = vld [vmem:[#allocation5 + $0x78] ss:$12 sps:$4 sm:$0xff]  }
  0x79   :  { %12116 = vmatprep.subr.bf16.mxu0 %v18225_v10  ;;  %v18246_v24 = vld [vmem:[#allocation5 + $0xc78] ss:$12 sps:$4 sm:$0xff]   ;;  %v18247_v25 = vld [vmem:[#allocation5 + $0x94] ss:$12 sps:$4 sm:$0xff]   ;;  %v18251_v27 = vld [vmem:[#allocation5 + $0x90] ss:$12 sps:$4 sm:$0xff]  }
  0x7a   :  { %v18249_v26 = vld [vmem:[#allocation5 + $0xc94] ss:$12 sps:$4 sm:$0xff]   ;;  %v18252_v28 = vld [vmem:[#allocation5 + $0xc90] ss:$12 sps:$4 sm:$0xff]   ;;  %v18253_v29 = vld [vmem:[#allocation5 + $0xac] ss:$12 sps:$4 sm:$0xff]  }
  0x7b   :  { %11789 = vmatpush1.bf16.msra.mxu1 %v18227_v11  ;;  %v18255_v30 = vld [vmem:[#allocation5 + $0xcac] ss:$12 sps:$4 sm:$0xff]   ;;  %v18257_v31 = vld [vmem:[#allocation5 + $0xa8] ss:$12 sps:$4 sm:$0xff]   ;;  %v18259_v33 = vld [vmem:[#allocation5 + $0xc4] ss:$12 sps:$4 sm:$0xff]  }
  0x7c   :  { %12117 = vmatpush1.bf16.msra.mxu0 %v18228_v12  ;;  %11790 = vmatprep.subr.bf16.mxu1 %v18229_v13  ;;  %v18258_v32 = vld [vmem:[#allocation5 + $0xca8] ss:$12 sps:$4 sm:$0xff]   ;;  %v18261_v34 = vld [vmem:[#allocation5 + $0xcc4] ss:$12 sps:$4 sm:$0xff]   ;;  %v18263_v35 = vld [vmem:[#allocation5 + $0xc0] ss:$12 sps:$4 sm:$0xff]  }
  0x7d   :  { %12118 = vmatprep.subr.bf16.mxu0 %v18231_v14  ;;  %v18264_v36 = vld [vmem:[#allocation5 + $0xcc0] ss:$12 sps:$4 sm:$0xff]   ;;  %v18265_v37 = vld [vmem:[#allocation5 + $0xdc] ss:$12 sps:$4 sm:$0xff]   ;;  %v18269_v39 = vld [vmem:[#allocation5 + $0xd8] ss:$12 sps:$4 sm:$0xff]  }
  0x7e   :  { %v18267_v38 = vld [vmem:[#allocation5 + $0xcdc] ss:$12 sps:$4 sm:$0xff]   ;;  %v18270_v40 = vld [vmem:[#allocation5 + $0xcd8] ss:$12 sps:$4 sm:$0xff]   ;;  %v18271_v41 = vld [vmem:[#allocation5 + $0xf4] ss:$12 sps:$4 sm:$0xff]  }
  0x7f   :  { %11791 = vmatpush1.bf16.msra.mxu1 %v18233_v15  ;;  %v18273_v42 = vld [vmem:[#allocation5 + $0xcf4] ss:$12 sps:$4 sm:$0xff]   ;;  %v18275_v43 = vld [vmem:[#allocation5 + $0xf0] ss:$12 sps:$4 sm:$0xff]   ;;  %v18277_v45 = vld [vmem:[#allocation5 + $0x10c] ss:$12 sps:$4 sm:$0xff]  }
  0x80   :  { %12119 = vmatpush1.bf16.msra.mxu0 %v18234_v16  ;;  %11792 = vmatprep.subr.bf16.mxu1 %v18235_v17  ;;  %v18276_v44 = vld [vmem:[#allocation5 + $0xcf0] ss:$12 sps:$4 sm:$0xff]   ;;  %v18279_v46 = vld [vmem:[#allocation5 + $0xd0c] ss:$12 sps:$4 sm:$0xff]   ;;  %v18281_v48 = vld [vmem:[#allocation5 + $0x108] ss:$12 sps:$4 sm:$0xff]  }
  0x81   :  { %12120 = vmatprep.subr.bf16.mxu0 %v18237_v18  ;;  %v104_v47 = vld [vmem:[#allocation3 + $0x8] sm:$0xff]  ;;  %v18283_v52 = vld [vmem:[#allocation5 + $0x124] ss:$12 sps:$4 sm:$0xff]   ;;  %v18295_v61 = vld [vmem:[#allocation5 + $0x154] ss:$12 sps:$4 sm:$0xff]   ;;  %vm20762_vm0 = vmmov 0  }
  0x82   :  { %v20878_v49 = vpack.c.bf16 %v104_v47, %v104_v47  ;;  %v18282_v50 = vld [vmem:[#allocation5 + $0xd08] ss:$12 sps:$4 sm:$0xff]   ;;  %v18285_v53 = vld [vmem:[#allocation5 + $0xd24] ss:$12 sps:$4 sm:$0xff]   ;;  %v18287_v55 = vld [vmem:[#allocation5 + $0x120] ss:$12 sps:$4 sm:$0xff]  }
  0x83   :  { %11793 = vmatpush1.bf16.msra.mxu1 %v18239_v19  ;;  %v120_v51 = vld [vmem:[#allocation3 + $0x88] sm:$0xff]  ;;  %v18293_v59 = vld [vmem:[#allocation5 + $0x138] ss:$12 sps:$4 sm:$0xff]   ;;  %v18297_v62 = vld [vmem:[#allocation5 + $0xd54] ss:$12 sps:$4 sm:$0xff]   ;;  %vm15400_vm1 = vcmask 7168  }
  0x84   :  { %12121 = vmatpush1.bf16.msra.mxu0 %v18240_v20  ;;  %11794 = vmatprep.subr.bf16.mxu1 %v18241_v21  ;;  %v20880_v54 = vpack.c.bf16 %v120_v51, %v120_v51  ;;  %v18288_v56 = vld [vmem:[#allocation5 + $0xd20] ss:$12 sps:$4 sm:$0xff]   ;;  %v18289_v57 = vld [vmem:[#allocation5 + $0x13c] ss:$12 sps:$4 sm:$0xff]   ;;  %v18294_v60 = vld [vmem:[#allocation5 + $0xd38] ss:$12 sps:$4 sm:$0xff]  }
  0x85   :  { %12122 = vmatprep.subr.bf16.mxu0 %v18243_v22  ;;  %11816 = vmatprep.mubr.bf16.mxu1 %v20878_v49  ;;  %v18291_v58 = vld [vmem:[#allocation5 + $0xd3c] ss:$12 sps:$4 sm:$0xff]   ;;  %v18301_v1 = vld [vmem:[#allocation5 + $0x16c] ss:$12 sps:$4 sm:$0xff]   ;;  %v18309_v5 = vld [vmem:[#allocation5 + $0x184] ss:$12 sps:$4 sm:$0xff]  }
  0x86   :  { %12144 = vmatprep.mubr.bf16.mxu0 %v20880_v54  ;;  %v18299_v63 = vld [vmem:[#allocation5 + $0x150] ss:$12 sps:$4 sm:$0xff]   ;;  %v18303_v2 = vld [vmem:[#allocation5 + $0xd6c] ss:$12 sps:$4 sm:$0xff]   ;;  %v18305_v3 = vld [vmem:[#allocation5 + $0x168] ss:$12 sps:$4 sm:$0xff]  }
  0x87   :  { %11795 = vmatpush1.bf16.msra.mxu1 %v18245_v23  ;;  %v18300_v0 = vld [vmem:[#allocation5 + $0xd50] ss:$12 sps:$4 sm:$0xff]   ;;  %v18306_v4 = vld [vmem:[#allocation5 + $0xd68] ss:$12 sps:$4 sm:$0xff]   ;;  %v103_v6 = vld [vmem:[#allocation3] sm:$0xff] }
  0x88   :  { %12123 = vmatpush1.bf16.msra.mxu0 %v18246_v24  ;;  %11796 = vmatprep.subr.bf16.mxu1 %v18247_v25  ;;  %v119_v7 = vld [vmem:[#allocation3 + $0x80] sm:$0xff]  ;;  %v20884_v11 = vpack.c.bf16 %v103_v6, %v103_v6  ;;  %v18315_v13 = vld [vmem:[#allocation5 + $0x19c] ss:$12 sps:$4 sm:$0xff]   ;;  %v18327_v21 = vld [vmem:[#allocation5 + $0x1cc] ss:$12 sps:$4 sm:$0xff]  }
  0x89   :  { %12124 = vmatprep.subr.bf16.mxu0 %v18249_v26  ;;  %v18312_v8 = vld [vmem:[#allocation5 + $0xd84] ss:$12 sps:$4 sm:$0xff]   ;;  %v18307_v9 = vld [vmem:[#allocation5 + $0x180] ss:$12 sps:$4 sm:$0xff]   ;;  %v20886_v12 = vpack.c.bf16 %v119_v7, %v119_v7  ;;  %v18318_v14 = vld [vmem:[#allocation5 + $0xd9c] ss:$12 sps:$4 sm:$0xff]  }
  0x8a   :  { %v18310_v10 = vld [vmem:[#allocation5 + $0xd80] ss:$12 sps:$4 sm:$0xff]   ;;  %v18313_v15 = vld [vmem:[#allocation5 + $0x198] ss:$12 sps:$4 sm:$0xff]   ;;  %v18319_v19 = vld [vmem:[#allocation5 + $0x1b0] ss:$12 sps:$4 sm:$0xff]  }
  0x8b   :  { %11797 = vmatpush1.bf16.msra.mxu1 %v18251_v27  ;;  %v18316_v16 = vld [vmem:[#allocation5 + $0xd98] ss:$12 sps:$4 sm:$0xff]   ;;  %v18321_v17 = vld [vmem:[#allocation5 + $0x1b4] ss:$12 sps:$4 sm:$0xff]   ;;  %v18322_v20 = vld [vmem:[#allocation5 + $0xdb0] ss:$12 sps:$4 sm:$0xff]  }
  0x8c   :  { %12125 = vmatpush1.bf16.msra.mxu0 %v18252_v28  ;;  %11798 = vmatprep.subr.bf16.mxu1 %v18253_v29  ;;  %v18324_v18 = vld [vmem:[#allocation5 + $0xdb4] ss:$12 sps:$4 sm:$0xff]   ;;  %v18330_v22 = vld [vmem:[#allocation5 + $0xdcc] ss:$12 sps:$4 sm:$0xff]   ;;  %v18333_v25 = vld [vmem:[#allocation5 + $0x1e4] ss:$12 sps:$4 sm:$0xff]  }
  0x8d   :  { %12126 = vmatprep.subr.bf16.mxu0 %v18255_v30  ;;  %v18325_v23 = vld [vmem:[#allocation5 + $0x1c8] ss:$12 sps:$4 sm:$0xff]   ;;  %v18336_v26 = vld [vmem:[#allocation5 + $0xde4] ss:$12 sps:$4 sm:$0xff]   ;;  %v18331_v27 = vld [vmem:[#allocation5 + $0x1e0] ss:$12 sps:$4 sm:$0xff]  }
  0x8e   :  { %v18328_v24 = vld [vmem:[#allocation5 + $0xdc8] ss:$12 sps:$4 sm:$0xff]   ;;  %v18334_v28 = vld [vmem:[#allocation5 + $0xde0] ss:$12 sps:$4 sm:$0xff]   ;;  %v18388_v6 = vld [vmem:[#allocation5 + $0xeb8] ss:$12 sps:$4 sm:$0xff]  }
  0x8f   :  { %11799 = vmatpush1.bf16.msra.mxu1 %v18257_v31  ;;  %v18339_v29 = vld [vmem:[#allocation5 + $0x1fc] ss:$12 sps:$4 sm:$0xff]   ;;  %v18337_v31 = vld [vmem:[#allocation5 + $0x1f8] ss:$12 sps:$4 sm:$0xff]   ;;  %v18355_v47 = vld [vmem:[#allocation5 + $0x240] ss:$12 sps:$4 sm:$0xff]  }
  0x90   :  { %12127 = vmatpush1.bf16.msra.mxu0 %v18258_v32  ;;  %11800 = vmatprep.subr.bf16.mxu1 %v18259_v33  ;;  %v18342_v30 = vld [vmem:[#allocation5 + $0xdfc] ss:$12 sps:$4 sm:$0xff]   ;;  %v18340_v32 = vld [vmem:[#allocation5 + $0xdf8] ss:$12 sps:$4 sm:$0xff]   ;;  %v18345_v33 = vld [vmem:[#allocation5 + $0x214] ss:$12 sps:$4 sm:$0xff]  }
  0x91   :  { %12128 = vmatprep.subr.bf16.mxu0 %v18261_v34  ;;  %v18348_v34 = vld [vmem:[#allocation5 + $0xe14] ss:$12 sps:$4 sm:$0xff]   ;;  %v18366_v51 = vld [vmem:[#allocation5 + $0xe5c] ss:$12 sps:$4 sm:$0xff]  }
  0x92   :  { %v18393_v7 = vld [vmem:[#allocation5 + $0x2d4] ss:$12 sps:$4 sm:$0xff]  }
  0x93   :  { %11801 = vmatpush1.bf16.msra.mxu1 %v18263_v35  ;;  %v106_v35 = vld [vmem:[#allocation3 + $0x18] sm:$0xff] }
  0x94   :  { %12129 = vmatpush1.bf16.msra.mxu0 %v18264_v36  ;;  %11802 = vmatprep.subr.bf16.mxu1 %v18265_v37  ;;  %v18343_v36 = vld [vmem:[#allocation5 + $0x210] ss:$12 sps:$4 sm:$0xff]   ;;  %v20890_v37 = vpack.c.bf16 %v106_v35, %v106_v35 }
  0x95   :  { %12130 = vmatprep.subr.bf16.mxu0 %v18267_v38  ;;  %v18346_v38 = vld [vmem:[#allocation5 + $0xe10] ss:$12 sps:$4 sm:$0xff]  }
  0x96   :  { %v18415_v35 = vld [vmem:[#allocation5 + $0x330] ss:$12 sps:$4 sm:$0xff]  }
  0x97   :  { %11803 = vmatpush1.bf16.msra.mxu1 %v18269_v39  ;;  %v122_v39 = vld [vmem:[#allocation3 + $0x98] sm:$0xff] }
  0x98   :  { %12131 = vmatpush1.bf16.msra.mxu0 %v18270_v40  ;;  %11804 = vmatprep.subr.bf16.mxu1 %v18271_v41  ;;  %v18351_v40 = vld [vmem:[#allocation5 + $0x22c] ss:$12 sps:$4 sm:$0xff]  }
  0x99   :  { %12132 = vmatprep.subr.bf16.mxu0 %v18273_v42  ;;  %v18354_v41 = vld [vmem:[#allocation5 + $0xe2c] ss:$12 sps:$4 sm:$0xff]   ;;  %v20892_v42 = vpack.c.bf16 %v122_v39, %v122_v39 }
  0x9a   :  { %v18426_v39 = vld [vmem:[#allocation5 + $0xf4c] ss:$12 sps:$4 sm:$0xff]  }
  0x9b   :  { %11805 = vmatpush1.bf16.msra.mxu1 %v18275_v43  ;;  %v18349_v43 = vld [vmem:[#allocation5 + $0x228] ss:$12 sps:$4 sm:$0xff]  }
  0x9c   :  { %12133 = vmatpush1.bf16.msra.mxu0 %v18276_v44  ;;  %11806 = vmatprep.subr.bf16.mxu1 %v18277_v45  ;;  %v18352_v44 = vld [vmem:[#allocation5 + $0xe28] ss:$12 sps:$4 sm:$0xff]   ;;  %v18357_v45 = vld [vmem:[#allocation5 + $0x244] ss:$12 sps:$4 sm:$0xff]  }
  0x9d   :  { %12134 = vmatprep.subr.bf16.mxu0 %v18279_v46  ;;  %v18360_v46 = vld [vmem:[#allocation5 + $0xe44] ss:$12 sps:$4 sm:$0xff]  }
  0x9f   :  { %11807 = vmatpush1.bf16.msra.mxu1 %v18281_v48  ;;  %v18358_v48 = vld [vmem:[#allocation5 + $0xe40] ss:$12 sps:$4 sm:$0xff]  }
  0xa0   :  { %12135 = vmatpush1.bf16.msra.mxu0 %v18282_v50  ;;  %11808 = vmatprep.subr.bf16.mxu1 %v18283_v52  ;;  %v18363_v50 = vld [vmem:[#allocation5 + $0x25c] ss:$12 sps:$4 sm:$0xff]   ;;  %v18361_v52 = vld [vmem:[#allocation5 + $0x258] ss:$12 sps:$4 sm:$0xff]  }
  0xa1   :  { %12136 = vmatprep.subr.bf16.mxu0 %v18285_v53  ;;  %v18364_v53 = vld [vmem:[#allocation5 + $0xe58] ss:$12 sps:$4 sm:$0xff]  }
  0xa3   :  { %11809 = vmatpush1.bf16.msra.mxu1 %v18287_v55  ;;  %v18369_v55 = vld [vmem:[#allocation5 + $0x274] ss:$12 sps:$4 sm:$0xff]  }
  0xa4   :  { %12137 = vmatpush1.bf16.msra.mxu0 %v18288_v56  ;;  %11810 = vmatprep.subr.bf16.mxu1 %v18289_v57  ;;  %v18372_v56 = vld [vmem:[#allocation5 + $0xe74] ss:$12 sps:$4 sm:$0xff]   ;;  %v18367_v57 = vld [vmem:[#allocation5 + $0x270] ss:$12 sps:$4 sm:$0xff]  }
  0xa5   :  { %12138 = vmatprep.subr.bf16.mxu0 %v18291_v58  ;;  %v18370_v58 = vld [vmem:[#allocation5 + $0xe70] ss:$12 sps:$4 sm:$0xff]  }
  0xa7   :  { %11811 = vmatpush1.bf16.msra.mxu1 %v18293_v59  ;;  %v18375_v59 = vld [vmem:[#allocation5 + $0x28c] ss:$12 sps:$4 sm:$0xff]  }
  0xa8   :  { %12139 = vmatpush1.bf16.msra.mxu0 %v18294_v60  ;;  %11812 = vmatprep.subr.bf16.mxu1 %v18295_v61  ;;  %v18378_v60 = vld [vmem:[#allocation5 + $0xe8c] ss:$12 sps:$4 sm:$0xff]   ;;  %v18373_v61 = vld [vmem:[#allocation5 + $0x288] ss:$12 sps:$4 sm:$0xff]  }
  0xa9   :  { %12140 = vmatprep.subr.bf16.mxu0 %v18297_v62  ;;  %v18376_v62 = vld [vmem:[#allocation5 + $0xe88] ss:$12 sps:$4 sm:$0xff]  }
  0xab   :  { %11813 = vmatpush1.bf16.msra.mxu1 %v18299_v63  ;;  %v18381_v63 = vld [vmem:[#allocation5 + $0x2a4] ss:$12 sps:$4 sm:$0xff]  }
  0xac   :  { %12141 = vmatpush1.bf16.msra.mxu0 %v18300_v0  ;;  %11814 = vmatprep.subr.bf16.mxu1 %v18301_v1  ;;  %v18384_v0 = vld [vmem:[#allocation5 + $0xea4] ss:$12 sps:$4 sm:$0xff]   ;;  %v18379_v1 = vld [vmem:[#allocation5 + $0x2a0] ss:$12 sps:$4 sm:$0xff]  }
  0xad   :  { %12142 = vmatprep.subr.bf16.mxu0 %v18303_v2  ;;  %v18382_v2 = vld [vmem:[#allocation5 + $0xea0] ss:$12 sps:$4 sm:$0xff]  }
  0xaf   :  { %11815 = vmatpush1.bf16.msra.mxu1 %v18305_v3  ;;  %v18387_v3 = vld [vmem:[#allocation5 + $0x2bc] ss:$12 sps:$4 sm:$0xff]  }
  0xb0   :  { %12143 = vmatpush1.bf16.msra.mxu0 %v18306_v4  ;;  %11825 = vmatprep.subr.bf16.mxu1 %v18309_v5  ;;  %v18390_v4 = vld [vmem:[#allocation5 + $0xebc] ss:$12 sps:$4 sm:$0xff]   ;;  %v18385_v5 = vld [vmem:[#allocation5 + $0x2b8] ss:$12 sps:$4 sm:$0xff]  }
  0xb1   :  { %12153 = vmatprep.subr.bf16.mxu0 %v18312_v8  ;;  %v18396_v8 = vld [vmem:[#allocation5 + $0xed4] ss:$12 sps:$4 sm:$0xff]  }
  0xb2   :  { %11817 = vmatmul.mubr.bf16.vlgmr.msra.gmra.mrb[0].mxu1 %v20884_v11 }
  0xb3   :  { %12145 = vmatmul.mubr.bf16.vlgmr.msra.gmra.mrb[0].mxu0 %v20886_v12  ;;  %11826 = vmatpush1.bf16.msra.mxu1 %v18307_v9  ;;  %v18391_v9 = vld [vmem:[#allocation5 + $0x2d0] ss:$12 sps:$4 sm:$0xff]  }
  0xb4   :  { %12154 = vmatpush1.bf16.msra.mxu0 %v18310_v10  ;;  %11827 = vmatprep.subr.bf16.mxu1 %v18315_v13  ;;  %v18394_v10 = vld [vmem:[#allocation5 + $0xed0] ss:$12 sps:$4 sm:$0xff]   ;;  %v18399_v13 = vld [vmem:[#allocation5 + $0x2ec] ss:$12 sps:$4 sm:$0xff]  }
  0xb5   :  { %12155 = vmatprep.subr.bf16.mxu0 %v18318_v14  ;;  %11857 = vmatprep.mubr.bf16.mxu1 %v20890_v37  ;;  %v18402_v14 = vld [vmem:[#allocation5 + $0xeec] ss:$12 sps:$4 sm:$0xff]  }
  0xb6   :  { %12185 = vmatprep.mubr.bf16.mxu0 %v20892_v42 }
  0xb7   :  { %11828 = vmatpush1.bf16.msra.mxu1 %v18313_v15  ;;  %v18397_v15 = vld [vmem:[#allocation5 + $0x2e8] ss:$12 sps:$4 sm:$0xff]  }
  0xb8   :  { %12156 = vmatpush1.bf16.msra.mxu0 %v18316_v16  ;;  %11829 = vmatprep.subr.bf16.mxu1 %v18321_v17  ;;  %v18400_v16 = vld [vmem:[#allocation5 + $0xee8] ss:$12 sps:$4 sm:$0xff]   ;;  %v18405_v17 = vld [vmem:[#allocation5 + $0x304] ss:$12 sps:$4 sm:$0xff]  }
  0xb9   :  { %12157 = vmatprep.subr.bf16.mxu0 %v18324_v18  ;;  %v105_v18 = vld [vmem:[#allocation3 + $0x10] sm:$0xff] }
  0xbb   :  { %11830 = vmatpush1.bf16.msra.mxu1 %v18319_v19  ;;  %v121_v19 = vld [vmem:[#allocation3 + $0x90] sm:$0xff] }
  0xbc   :  { %12158 = vmatpush1.bf16.msra.mxu0 %v18322_v20  ;;  %11831 = vmatprep.subr.bf16.mxu1 %v18327_v21  ;;  %v18408_v20 = vld [vmem:[#allocation5 + $0xf04] ss:$12 sps:$4 sm:$0xff]   ;;  %v18403_v21 = vld [vmem:[#allocation5 + $0x300] ss:$12 sps:$4 sm:$0xff]  }
  0xbd   :  { %12159 = vmatprep.subr.bf16.mxu0 %v18330_v22  ;;  %v18406_v22 = vld [vmem:[#allocation5 + $0xf00] ss:$12 sps:$4 sm:$0xff]  }
  0xbf   :  { %11832 = vmatpush1.bf16.msra.mxu1 %v18325_v23  ;;  %v20896_v23 = vpack.c.bf16 %v105_v18, %v105_v18  ;;  %v18478_v18 = vld [vmem:[#allocation5 + $0x1020] ss:$12 sps:$4 sm:$0xff]  }
  0xc0   :  { %12160 = vmatpush1.bf16.msra.mxu0 %v18328_v24  ;;  %11833 = vmatprep.subr.bf16.mxu1 %v18333_v25  ;;  %v20898_v24 = vpack.c.bf16 %v121_v19, %v121_v19  ;;  %v18411_v25 = vld [vmem:[#allocation5 + $0x31c] ss:$12 sps:$4 sm:$0xff]  }
  0xc1   :  { %12161 = vmatprep.subr.bf16.mxu0 %v18336_v26  ;;  %v18414_v26 = vld [vmem:[#allocation5 + $0xf1c] ss:$12 sps:$4 sm:$0xff]  }
  0xc2   :  { %v18483_v19 = vld [vmem:[#allocation5 + $0x43c] ss:$12 sps:$4 sm:$0xff]  }
  0xc3   :  { %11834 = vmatpush1.bf16.msra.mxu1 %v18331_v27  ;;  %v108_v27 = vld [vmem:[#allocation3 + $0x28] sm:$0xff] }
  0xc4   :  { %12162 = vmatpush1.bf16.msra.mxu0 %v18334_v28  ;;  %11835 = vmatprep.subr.bf16.mxu1 %v18339_v29  ;;  %v18409_v28 = vld [vmem:[#allocation5 + $0x318] ss:$12 sps:$4 sm:$0xff]   ;;  %v20902_v29 = vpack.c.bf16 %v108_v27, %v108_v27  ;;  %v18487_v27 = vld [vmem:[#allocation5 + $0x450] ss:$12 sps:$4 sm:$0xff]  }
  0xc5   :  { %12163 = vmatprep.subr.bf16.mxu0 %v18342_v30  ;;  %v18412_v30 = vld [vmem:[#allocation5 + $0xf18] ss:$12 sps:$4 sm:$0xff]  }
  0xc7   :  { %11836 = vmatpush1.bf16.msra.mxu1 %v18337_v31  ;;  %v124_v31 = vld [vmem:[#allocation3 + $0xa8] sm:$0xff] }
  0xc8   :  { %12164 = vmatpush1.bf16.msra.mxu0 %v18340_v32  ;;  %11837 = vmatprep.subr.bf16.mxu1 %v18345_v33  ;;  %v18417_v32 = vld [vmem:[#allocation5 + $0x334] ss:$12 sps:$4 sm:$0xff]  }
  0xc9   :  { %12165 = vmatprep.subr.bf16.mxu0 %v18348_v34  ;;  %v18420_v33 = vld [vmem:[#allocation5 + $0xf34] ss:$12 sps:$4 sm:$0xff]   ;;  %v20904_v34 = vpack.c.bf16 %v124_v31, %v124_v31  ;;  %v18498_v31 = vld [vmem:[#allocation5 + $0x106c] ss:$12 sps:$4 sm:$0xff]  }
  0xcb   :  { %11838 = vmatpush1.bf16.msra.mxu1 %v18343_v36  ;;  %v18418_v36 = vld [vmem:[#allocation5 + $0xf30] ss:$12 sps:$4 sm:$0xff]  }
  0xcc   :  { %12166 = vmatpush1.bf16.msra.mxu0 %v18346_v38  ;;  %11839 = vmatprep.subr.bf16.mxu1 %v18351_v40  ;;  %v18423_v38 = vld [vmem:[#allocation5 + $0x34c] ss:$12 sps:$4 sm:$0xff]   ;;  %v18421_v40 = vld [vmem:[#allocation5 + $0x348] ss:$12 sps:$4 sm:$0xff]  }
  0xcd   :  { %12167 = vmatprep.subr.bf16.mxu0 %v18354_v41  ;;  %v18424_v41 = vld [vmem:[#allocation5 + $0xf48] ss:$12 sps:$4 sm:$0xff]  }
  0xcf   :  { %11840 = vmatpush1.bf16.msra.mxu1 %v18349_v43  ;;  %v18429_v43 = vld [vmem:[#allocation5 + $0x364] ss:$12 sps:$4 sm:$0xff]  }
  0xd0   :  { %12168 = vmatpush1.bf16.msra.mxu0 %v18352_v44  ;;  %11841 = vmatprep.subr.bf16.mxu1 %v18357_v45  ;;  %v18432_v44 = vld [vmem:[#allocation5 + $0xf64] ss:$12 sps:$4 sm:$0xff]   ;;  %v18427_v45 = vld [vmem:[#allocation5 + $0x360] ss:$12 sps:$4 sm:$0xff]  }
  0xd1   :  { %12169 = vmatprep.subr.bf16.mxu0 %v18360_v46  ;;  %v18430_v46 = vld [vmem:[#allocation5 + $0xf60] ss:$12 sps:$4 sm:$0xff]  }
  0xd3   :  { %11842 = vmatpush1.bf16.msra.mxu1 %v18355_v47  ;;  %v18435_v47 = vld [vmem:[#allocation5 + $0x37c] ss:$12 sps:$4 sm:$0xff]  }
  0xd4   :  { %12170 = vmatpush1.bf16.msra.mxu0 %v18358_v48  ;;  %11843 = vmatprep.subr.bf16.mxu1 %v18363_v50  ;;  %v18438_v48 = vld [vmem:[#allocation5 + $0xf7c] ss:$12 sps:$4 sm:$0xff]   ;;  %v18433_v50 = vld [vmem:[#allocation5 + $0x378] ss:$12 sps:$4 sm:$0xff]  }
  0xd5   :  { %12171 = vmatprep.subr.bf16.mxu0 %v18366_v51  ;;  %v18436_v51 = vld [vmem:[#allocation5 + $0xf78] ss:$12 sps:$4 sm:$0xff]  }
  0xd7   :  { %11844 = vmatpush1.bf16.msra.mxu1 %v18361_v52  ;;  %v18441_v52 = vld [vmem:[#allocation5 + $0x394] ss:$12 sps:$4 sm:$0xff]  }
  0xd8   :  { %12172 = vmatpush1.bf16.msra.mxu0 %v18364_v53  ;;  %11845 = vmatprep.subr.bf16.mxu1 %v18369_v55  ;;  %v18444_v53 = vld [vmem:[#allocation5 + $0xf94] ss:$12 sps:$4 sm:$0xff]   ;;  %v18439_v55 = vld [vmem:[#allocation5 + $0x390] ss:$12 sps:$4 sm:$0xff]  }
  0xd9   :  { %12173 = vmatprep.subr.bf16.mxu0 %v18372_v56  ;;  %v18442_v56 = vld [vmem:[#allocation5 + $0xf90] ss:$12 sps:$4 sm:$0xff]  }
  0xdb   :  { %11846 = vmatpush1.bf16.msra.mxu1 %v18367_v57  ;;  %v18447_v57 = vld [vmem:[#allocation5 + $0x3ac] ss:$12 sps:$4 sm:$0xff]  }
  0xdc   :  { %12174 = vmatpush1.bf16.msra.mxu0 %v18370_v58  ;;  %11847 = vmatprep.subr.bf16.mxu1 %v18375_v59  ;;  %v18450_v58 = vld [vmem:[#allocation5 + $0xfac] ss:$12 sps:$4 sm:$0xff]   ;;  %v18445_v59 = vld [vmem:[#allocation5 + $0x3a8] ss:$12 sps:$4 sm:$0xff]  }
  0xdd   :  { %12175 = vmatprep.subr.bf16.mxu0 %v18378_v60  ;;  %v18448_v60 = vld [vmem:[#allocation5 + $0xfa8] ss:$12 sps:$4 sm:$0xff]  }
  0xdf   :  { %11848 = vmatpush1.bf16.msra.mxu1 %v18373_v61  ;;  %v18453_v61 = vld [vmem:[#allocation5 + $0x3c4] ss:$12 sps:$4 sm:$0xff]  }
  0xe0   :  { %12176 = vmatpush1.bf16.msra.mxu0 %v18376_v62  ;;  %11849 = vmatprep.subr.bf16.mxu1 %v18381_v63  ;;  %v18456_v62 = vld [vmem:[#allocation5 + $0xfc4] ss:$12 sps:$4 sm:$0xff]   ;;  %v18451_v63 = vld [vmem:[#allocation5 + $0x3c0] ss:$12 sps:$4 sm:$0xff]  }
  0xe1   :  { %12177 = vmatprep.subr.bf16.mxu0 %v18384_v0  ;;  %v18454_v0 = vld [vmem:[#allocation5 + $0xfc0] ss:$12 sps:$4 sm:$0xff]  }
  0xe3   :  { %11850 = vmatpush1.bf16.msra.mxu1 %v18379_v1  ;;  %v18459_v1 = vld [vmem:[#allocation5 + $0x3dc] ss:$12 sps:$4 sm:$0xff]  }
  0xe4   :  { %12178 = vmatpush1.bf16.msra.mxu0 %v18382_v2  ;;  %11851 = vmatprep.subr.bf16.mxu1 %v18387_v3  ;;  %v18462_v2 = vld [vmem:[#allocation5 + $0xfdc] ss:$12 sps:$4 sm:$0xff]   ;;  %v18457_v3 = vld [vmem:[#allocation5 + $0x3d8] ss:$12 sps:$4 sm:$0xff]  }
  0xe5   :  { %12179 = vmatprep.subr.bf16.mxu0 %v18390_v4  ;;  %v18460_v4 = vld [vmem:[#allocation5 + $0xfd8] ss:$12 sps:$4 sm:$0xff]  }
  0xe7   :  { %11852 = vmatpush1.bf16.msra.mxu1 %v18385_v5  ;;  %v18465_v5 = vld [vmem:[#allocation5 + $0x3f4] ss:$12 sps:$4 sm:$0xff]  }
  0xe8   :  { %12180 = vmatpush1.bf16.msra.mxu0 %v18388_v6  ;;  %11853 = vmatprep.subr.bf16.mxu1 %v18393_v7  ;;  %v18468_v6 = vld [vmem:[#allocation5 + $0xff4] ss:$12 sps:$4 sm:$0xff]   ;;  %v18463_v7 = vld [vmem:[#allocation5 + $0x3f0] ss:$12 sps:$4 sm:$0xff]  }
  0xe9   :  { %12181 = vmatprep.subr.bf16.mxu0 %v18396_v8  ;;  %v18466_v8 = vld [vmem:[#allocation5 + $0xff0] ss:$12 sps:$4 sm:$0xff]  }
  0xeb   :  { %11854 = vmatpush1.bf16.msra.mxu1 %v18391_v9  ;;  %v18471_v9 = vld [vmem:[#allocation5 + $0x40c] ss:$12 sps:$4 sm:$0xff]  }
  0xec   :  { %12182 = vmatpush1.bf16.msra.mxu0 %v18394_v10  ;;  %11855 = vmatprep.subr.bf16.mxu1 %v18399_v13  ;;  %v18474_v10 = vld [vmem:[#allocation5 + $0x100c] ss:$12 sps:$4 sm:$0xff]   ;;  %v18469_v13 = vld [vmem:[#allocation5 + $0x408] ss:$12 sps:$4 sm:$0xff]  }
  0xed   :  { %12183 = vmatprep.subr.bf16.mxu0 %v18402_v14  ;;  %v18472_v14 = vld [vmem:[#allocation5 + $0x1008] ss:$12 sps:$4 sm:$0xff]  }
  0xef   :  { %11856 = vmatpush1.bf16.msra.mxu1 %v18397_v15  ;;  %v18477_v15 = vld [vmem:[#allocation5 + $0x424] ss:$12 sps:$4 sm:$0xff]  }
  0xf0   :  { %12184 = vmatpush1.bf16.msra.mxu0 %v18400_v16  ;;  %11866 = vmatprep.subr.bf16.mxu1 %v18405_v17  ;;  %v18480_v16 = vld [vmem:[#allocation5 + $0x1024] ss:$12 sps:$4 sm:$0xff]   ;;  %v18475_v17 = vld [vmem:[#allocation5 + $0x420] ss:$12 sps:$4 sm:$0xff]  }
  0xf1   :  { %12194 = vmatprep.subr.bf16.mxu0 %v18408_v20  ;;  %v18486_v20 = vld [vmem:[#allocation5 + $0x103c] ss:$12 sps:$4 sm:$0xff]  }
  0xf2   :  { %11858 = vmatmul.mubr.bf16.vlgmr.msra.gmra.mrb[0].mxu1 %v20896_v23 }
  0xf3   :  { %12186 = vmatmul.mubr.bf16.vlgmr.msra.gmra.mrb[0].mxu0 %v20898_v24  ;;  %11867 = vmatpush1.bf16.msra.mxu1 %v18403_v21  ;;  %v18481_v21 = vld [vmem:[#allocation5 + $0x438] ss:$12 sps:$4 sm:$0xff]  }
  0xf4   :  { %12195 = vmatpush1.bf16.msra.mxu0 %v18406_v22  ;;  %11868 = vmatprep.subr.bf16.mxu1 %v18411_v25  ;;  %v18484_v22 = vld [vmem:[#allocation5 + $0x1038] ss:$12 sps:$4 sm:$0xff]   ;;  %v18489_v25 = vld [vmem:[#allocation5 + $0x454] ss:$12 sps:$4 sm:$0xff]  }
  0xf5   :  { %12196 = vmatprep.subr.bf16.mxu0 %v18414_v26  ;;  %11898 = vmatprep.mubr.bf16.mxu1 %v20902_v29  ;;  %v18492_v26 = vld [vmem:[#allocation5 + $0x1054] ss:$12 sps:$4 sm:$0xff]  }
  0xf6   :  { %12226 = vmatprep.mubr.bf16.mxu0 %v20904_v34 }
  0xf7   :  { %11869 = vmatpush1.bf16.msra.mxu1 %v18409_v28  ;;  %v18490_v28 = vld [vmem:[#allocation5 + $0x1050] ss:$12 sps:$4 sm:$0xff]  }
  0xf8   :  { %12197 = vmatpush1.bf16.msra.mxu0 %v18412_v30  ;;  %11870 = vmatprep.subr.bf16.mxu1 %v18417_v32  ;;  %v18495_v30 = vld [vmem:[#allocation5 + $0x46c] ss:$12 sps:$4 sm:$0xff]   ;;  %v18493_v32 = vld [vmem:[#allocation5 + $0x468] ss:$12 sps:$4 sm:$0xff]  }
  0xf9   :  { %12198 = vmatprep.subr.bf16.mxu0 %v18420_v33  ;;  %v18496_v33 = vld [vmem:[#allocation5 + $0x1068] ss:$12 sps:$4 sm:$0xff]  }
  0xfb   :  { %11871 = vmatpush1.bf16.msra.mxu1 %v18415_v35  ;;  %v18501_v35 = vld [vmem:[#allocation5 + $0x484] ss:$12 sps:$4 sm:$0xff]  }
  0xfc   :  { %12199 = vmatpush1.bf16.msra.mxu0 %v18418_v36  ;;  %11872 = vmatprep.subr.bf16.mxu1 %v18423_v38  ;;  %v107_v36 = vld [vmem:[#allocation3 + $0x20] sm:$0xff] }
  0xfd   :  { %12200 = vmatprep.subr.bf16.mxu0 %v18426_v39  ;;  %v123_v38 = vld [vmem:[#allocation3 + $0xa0] sm:$0xff] }
  0xfe   :  { %v18504_v39 = vld [vmem:[#allocation5 + $0x1084] ss:$12 sps:$4 sm:$0xff]  }
  0xff   :  { %11873 = vmatpush1.bf16.msra.mxu1 %v18421_v40  ;;  %v18499_v40 = vld [vmem:[#allocation5 + $0x480] ss:$12 sps:$4 sm:$0xff]  }
 0x100   :  { %12201 = vmatpush1.bf16.msra.mxu0 %v18424_v41  ;;  %11874 = vmatprep.subr.bf16.mxu1 %v18429_v43  ;;  %v18502_v41 = vld [vmem:[#allocation5 + $0x1080] ss:$12 sps:$4 sm:$0xff]   ;;  %v20908_v43 = vpack.c.bf16 %v107_v36, %v107_v36  ;;  %v18568_v36 = vld [vmem:[#allocation5 + $0x1188] ss:$12 sps:$4 sm:$0xff]  }
 0x101   :  { %12202 = vmatprep.subr.bf16.mxu0 %v18432_v44  ;;  %v20910_v44 = vpack.c.bf16 %v123_v38, %v123_v38  ;;  %v18573_v38 = vld [vmem:[#allocation5 + $0x5a4] ss:$12 sps:$4 sm:$0xff]  }
 0x103   :  { %11875 = vmatpush1.bf16.msra.mxu1 %v18427_v45  ;;  %v110_v45 = vld [vmem:[#allocation3 + $0x38] sm:$0xff] }
 0x104   :  { %12203 = vmatpush1.bf16.msra.mxu0 %v18430_v46  ;;  %11876 = vmatprep.subr.bf16.mxu1 %v18435_v47  ;;  %v126_v46 = vld [vmem:[#allocation3 + $0xb8] sm:$0xff] }
 0x105   :  { %12204 = vmatprep.subr.bf16.mxu0 %v18438_v48  ;;  %v18507_v47 = vld [vmem:[#allocation5 + $0x49c] ss:$12 sps:$4 sm:$0xff]  }
 0x106   :  { %v18510_v48 = vld [vmem:[#allocation5 + $0x109c] ss:$12 sps:$4 sm:$0xff]  }
 0x107   :  { %11877 = vmatpush1.bf16.msra.mxu1 %v18433_v50  ;;  %v20912_v50 = vpack.c.bf16 %v110_v45, %v110_v45  ;;  %v18579_v45 = vld [vmem:[#allocation5 + $0x5bc] ss:$12 sps:$4 sm:$0xff]  }
 0x108   :  { %12205 = vmatpush1.bf16.msra.mxu0 %v18436_v51  ;;  %11878 = vmatprep.subr.bf16.mxu1 %v18441_v52  ;;  %v20914_v51 = vpack.c.bf16 %v126_v46, %v126_v46  ;;  %v18505_v52 = vld [vmem:[#allocation5 + $0x498] ss:$12 sps:$4 sm:$0xff]   ;;  %v18582_v46 = vld [vmem:[#allocation5 + $0x11bc] ss:$12 sps:$4 sm:$0xff]  }
 0x109   :  { %12206 = vmatprep.subr.bf16.mxu0 %v18444_v53  ;;  %v18508_v53 = vld [vmem:[#allocation5 + $0x1098] ss:$12 sps:$4 sm:$0xff]  }
 0x10b   :  { %11879 = vmatpush1.bf16.msra.mxu1 %v18439_v55  ;;  %v18513_v55 = vld [vmem:[#allocation5 + $0x4b4] ss:$12 sps:$4 sm:$0xff]  }
 0x10c   :  { %12207 = vmatpush1.bf16.msra.mxu0 %v18442_v56  ;;  %11880 = vmatprep.subr.bf16.mxu1 %v18447_v57  ;;  %v18516_v56 = vld [vmem:[#allocation5 + $0x10b4] ss:$12 sps:$4 sm:$0xff]   ;;  %v18511_v57 = vld [vmem:[#allocation5 + $0x4b0] ss:$12 sps:$4 sm:$0xff]  }
 0x10d   :  { %12208 = vmatprep.subr.bf16.mxu0 %v18450_v58  ;;  %v18514_v58 = vld [vmem:[#allocation5 + $0x10b0] ss:$12 sps:$4 sm:$0xff]  }
 0x10f   :  { %11881 = vmatpush1.bf16.msra.mxu1 %v18445_v59  ;;  %v18519_v59 = vld [vmem:[#allocation5 + $0x4cc] ss:$12 sps:$4 sm:$0xff]  }
 0x110   :  { %12209 = vmatpush1.bf16.msra.mxu0 %v18448_v60  ;;  %11882 = vmatprep.subr.bf16.mxu1 %v18453_v61  ;;  %v18522_v60 = vld [vmem:[#allocation5 + $0x10cc] ss:$12 sps:$4 sm:$0xff]   ;;  %v18517_v61 = vld [vmem:[#allocation5 + $0x4c8] ss:$12 sps:$4 sm:$0xff]  }
 0x111   :  { %12210 = vmatprep.subr.bf16.mxu0 %v18456_v62  ;;  %v18520_v62 = vld [vmem:[#allocation5 + $0x10c8] ss:$12 sps:$4 sm:$0xff]  }
 0x113   :  { %11883 = vmatpush1.bf16.msra.mxu1 %v18451_v63  ;;  %v18525_v63 = vld [vmem:[#allocation5 + $0x4e4] ss:$12 sps:$4 sm:$0xff]  }
 0x114   :  { %12211 = vmatpush1.bf16.msra.mxu0 %v18454_v0  ;;  %11884 = vmatprep.subr.bf16.mxu1 %v18459_v1  ;;  %v18528_v0 = vld [vmem:[#allocation5 + $0x10e4] ss:$12 sps:$4 sm:$0xff]   ;;  %v18523_v1 = vld [vmem:[#allocation5 + $0x4e0] ss:$12 sps:$4 sm:$0xff]  }
 0x115   :  { %12212 = vmatprep.subr.bf16.mxu0 %v18462_v2  ;;  %v18526_v2 = vld [vmem:[#allocation5 + $0x10e0] ss:$12 sps:$4 sm:$0xff]  }
 0x117   :  { %11885 = vmatpush1.bf16.msra.mxu1 %v18457_v3  ;;  %v18531_v3 = vld [vmem:[#allocation5 + $0x4fc] ss:$12 sps:$4 sm:$0xff]  }
 0x118   :  { %12213 = vmatpush1.bf16.msra.mxu0 %v18460_v4  ;;  %11886 = vmatprep.subr.bf16.mxu1 %v18465_v5  ;;  %v18534_v4 = vld [vmem:[#allocation5 + $0x10fc] ss:$12 sps:$4 sm:$0xff]   ;;  %v18529_v5 = vld [vmem:[#allocation5 + $0x4f8] ss:$12 sps:$4 sm:$0xff]  }
 0x119   :  { %12214 = vmatprep.subr.bf16.mxu0 %v18468_v6  ;;  %v18532_v6 = vld [vmem:[#allocation5 + $0x10f8] ss:$12 sps:$4 sm:$0xff]  }
 0x11b   :  { %11887 = vmatpush1.bf16.msra.mxu1 %v18463_v7  ;;  %v18537_v7 = vld [vmem:[#allocation5 + $0x514] ss:$12 sps:$4 sm:$0xff]  }
 0x11c   :  { %12215 = vmatpush1.bf16.msra.mxu0 %v18466_v8  ;;  %11888 = vmatprep.subr.bf16.mxu1 %v18471_v9  ;;  %v18540_v8 = vld [vmem:[#allocation5 + $0x1114] ss:$12 sps:$4 sm:$0xff]   ;;  %v18535_v9 = vld [vmem:[#allocation5 + $0x510] ss:$12 sps:$4 sm:$0xff]  }
 0x11d   :  { %12216 = vmatprep.subr.bf16.mxu0 %v18474_v10  ;;  %v18538_v10 = vld [vmem:[#allocation5 + $0x1110] ss:$12 sps:$4 sm:$0xff]  }
 0x11f   :  { %11889 = vmatpush1.bf16.msra.mxu1 %v18469_v13  ;;  %v18543_v13 = vld [vmem:[#allocation5 + $0x52c] ss:$12 sps:$4 sm:$0xff]  }
 0x120   :  { %12217 = vmatpush1.bf16.msra.mxu0 %v18472_v14  ;;  %11890 = vmatprep.subr.bf16.mxu1 %v18477_v15  ;;  %v18546_v14 = vld [vmem:[#allocation5 + $0x112c] ss:$12 sps:$4 sm:$0xff]   ;;  %v18541_v15 = vld [vmem:[#allocation5 + $0x528] ss:$12 sps:$4 sm:$0xff]  }
 0x121   :  { %12218 = vmatprep.subr.bf16.mxu0 %v18480_v16  ;;  %v18544_v16 = vld [vmem:[#allocation5 + $0x1128] ss:$12 sps:$4 sm:$0xff]  }
 0x123   :  { %11891 = vmatpush1.bf16.msra.mxu1 %v18475_v17  ;;  %v18549_v17 = vld [vmem:[#allocation5 + $0x544] ss:$12 sps:$4 sm:$0xff]  }
 0x124   :  { %12219 = vmatpush1.bf16.msra.mxu0 %v18478_v18  ;;  %11892 = vmatprep.subr.bf16.mxu1 %v18483_v19  ;;  %v18552_v18 = vld [vmem:[#allocation5 + $0x1144] ss:$12 sps:$4 sm:$0xff]   ;;  %v18547_v19 = vld [vmem:[#allocation5 + $0x540] ss:$12 sps:$4 sm:$0xff]  }
 0x125   :  { %12220 = vmatprep.subr.bf16.mxu0 %v18486_v20  ;;  %v18550_v20 = vld [vmem:[#allocation5 + $0x1140] ss:$12 sps:$4 sm:$0xff]  }
 0x127   :  { %11893 = vmatpush1.bf16.msra.mxu1 %v18481_v21  ;;  %v18555_v21 = vld [vmem:[#allocation5 + $0x55c] ss:$12 sps:$4 sm:$0xff]  }
 0x128   :  { %12221 = vmatpush1.bf16.msra.mxu0 %v18484_v22  ;;  %11894 = vmatprep.subr.bf16.mxu1 %v18489_v25  ;;  %v18558_v22 = vld [vmem:[#allocation5 + $0x115c] ss:$12 sps:$4 sm:$0xff]   ;;  %v18553_v25 = vld [vmem:[#allocation5 + $0x558] ss:$12 sps:$4 sm:$0xff]  }
 0x129   :  { %12222 = vmatprep.subr.bf16.mxu0 %v18492_v26  ;;  %v18556_v26 = vld [vmem:[#allocation5 + $0x1158] ss:$12 sps:$4 sm:$0xff]  }
 0x12b   :  { %11895 = vmatpush1.bf16.msra.mxu1 %v18487_v27  ;;  %v18561_v27 = vld [vmem:[#allocation5 + $0x574] ss:$12 sps:$4 sm:$0xff]  }
 0x12c   :  { %12223 = vmatpush1.bf16.msra.mxu0 %v18490_v28  ;;  %11896 = vmatprep.subr.bf16.mxu1 %v18495_v30  ;;  %v18564_v28 = vld [vmem:[#allocation5 + $0x1174] ss:$12 sps:$4 sm:$0xff]   ;;  %v18559_v30 = vld [vmem:[#allocation5 + $0x570] ss:$12 sps:$4 sm:$0xff]  }
 0x12d   :  { %12224 = vmatprep.subr.bf16.mxu0 %v18498_v31  ;;  %v18562_v31 = vld [vmem:[#allocation5 + $0x1170] ss:$12 sps:$4 sm:$0xff]  }
 0x12f   :  { %11897 = vmatpush1.bf16.msra.mxu1 %v18493_v32  ;;  %v18567_v32 = vld [vmem:[#allocation5 + $0x58c] ss:$12 sps:$4 sm:$0xff]  }
 0x130   :  { %12225 = vmatpush1.bf16.msra.mxu0 %v18496_v33  ;;  %11907 = vmatprep.subr.bf16.mxu1 %v18501_v35  ;;  %v18570_v33 = vld [vmem:[#allocation5 + $0x118c] ss:$12 sps:$4 sm:$0xff]   ;;  %v18565_v35 = vld [vmem:[#allocation5 + $0x588] ss:$12 sps:$4 sm:$0xff]  }
 0x131   :  { %12235 = vmatprep.subr.bf16.mxu0 %v18504_v39  ;;  %v18576_v39 = vld [vmem:[#allocation5 + $0x11a4] ss:$12 sps:$4 sm:$0xff]  }
 0x132   :  { %11899 = vmatmul.mubr.bf16.vlgmr.msra.gmra.mrb[0].mxu1 %v20908_v43 }
 0x133   :  { %12227 = vmatmul.mubr.bf16.vlgmr.msra.gmra.mrb[0].mxu0 %v20910_v44  ;;  %11908 = vmatpush1.bf16.msra.mxu1 %v18499_v40  ;;  %v18571_v40 = vld [vmem:[#allocation5 + $0x5a0] ss:$12 sps:$4 sm:$0xff]  }
 0x134   :  { %12236 = vmatpush1.bf16.msra.mxu0 %v18502_v41  ;;  %11909 = vmatprep.subr.bf16.mxu1 %v18507_v47  ;;  %v18574_v41 = vld [vmem:[#allocation5 + $0x11a0] ss:$12 sps:$4 sm:$0xff]   ;;  %v18577_v47 = vld [vmem:[#allocation5 + $0x5b8] ss:$12 sps:$4 sm:$0xff]  }
 0x135   :  { %12237 = vmatprep.subr.bf16.mxu0 %v18510_v48  ;;  %11939 = vmatprep.mubr.bf16.mxu1 %v20912_v50  ;;  %v18580_v48 = vld [vmem:[#allocation5 + $0x11b8] ss:$12 sps:$4 sm:$0xff]  }
 0x136   :  { %12267 = vmatprep.mubr.bf16.mxu0 %v20914_v51 }
 0x137   :  { %11910 = vmatpush1.bf16.msra.mxu1 %v18505_v52  ;;  %v18585_v52 = vld [vmem:[#allocation5 + $0x5d4] ss:$12 sps:$4 sm:$0xff]  }
 0x138   :  { %12238 = vmatpush1.bf16.msra.mxu0 %v18508_v53  ;;  %11911 = vmatprep.subr.bf16.mxu1 %v18513_v55  ;;  %v18588_v53 = vld [vmem:[#allocation5 + $0x11d4] ss:$12 sps:$4 sm:$0xff]   ;;  %v18583_v55 = vld [vmem:[#allocation5 + $0x5d0] ss:$12 sps:$4 sm:$0xff]  }
 0x139   :  { %12239 = vmatprep.subr.bf16.mxu0 %v18516_v56  ;;  %v18586_v56 = vld [vmem:[#allocation5 + $0x11d0] ss:$12 sps:$4 sm:$0xff]  }
 0x13b   :  { %11912 = vmatpush1.bf16.msra.mxu1 %v18511_v57  ;;  %v18591_v57 = vld [vmem:[#allocation5 + $0x5ec] ss:$12 sps:$4 sm:$0xff]  }
 0x13c   :  { %12240 = vmatpush1.bf16.msra.mxu0 %v18514_v58  ;;  %11913 = vmatprep.subr.bf16.mxu1 %v18519_v59  ;;  %v18594_v58 = vld [vmem:[#allocation5 + $0x11ec] ss:$12 sps:$4 sm:$0xff]   ;;  %v18589_v59 = vld [vmem:[#allocation5 + $0x5e8] ss:$12 sps:$4 sm:$0xff]  }
 0x13d   :  { %12241 = vmatprep.subr.bf16.mxu0 %v18522_v60  ;;  %v18592_v60 = vld [vmem:[#allocation5 + $0x11e8] ss:$12 sps:$4 sm:$0xff]  }
 0x13f   :  { %11914 = vmatpush1.bf16.msra.mxu1 %v18517_v61  ;;  %v18597_v61 = vld [vmem:[#allocation5 + $0x604] ss:$12 sps:$4 sm:$0xff]  }
 0x140   :  { %12242 = vmatpush1.bf16.msra.mxu0 %v18520_v62  ;;  %11915 = vmatprep.subr.bf16.mxu1 %v18525_v63  ;;  %v109_v62 = vld [vmem:[#allocation3 + $0x30] sm:$0xff] }
 0x141   :  { %12243 = vmatprep.subr.bf16.mxu0 %v18528_v0  ;;  %v125_v63 = vld [vmem:[#allocation3 + $0xb0] sm:$0xff] }
 0x142   :  { %v18600_v0 = vld [vmem:[#allocation5 + $0x1204] ss:$12 sps:$4 sm:$0xff]  }
 0x143   :  { %11916 = vmatpush1.bf16.msra.mxu1 %v18523_v1  ;;  %v18595_v1 = vld [vmem:[#allocation5 + $0x600] ss:$12 sps:$4 sm:$0xff]  }
 0x144   :  { %12244 = vmatpush1.bf16.msra.mxu0 %v18526_v2  ;;  %11917 = vmatprep.subr.bf16.mxu1 %v18531_v3  ;;  %v18598_v2 = vld [vmem:[#allocation5 + $0x1200] ss:$12 sps:$4 sm:$0xff]   ;;  %v20920_v3 = vpack.c.bf16 %v109_v62, %v109_v62  ;;  %v18658_v62 = vld [vmem:[#allocation5 + $0x12f0] ss:$12 sps:$4 sm:$0xff]  }
 0x145   :  { %12245 = vmatprep.subr.bf16.mxu0 %v18534_v4  ;;  %v20922_v4 = vpack.c.bf16 %v125_v63, %v125_v63  ;;  %v18663_v63 = vld [vmem:[#allocation5 + $0x70c] ss:$12 sps:$4 sm:$0xff]  }
 0x147   :  { %11918 = vmatpush1.bf16.msra.mxu1 %v18529_v5  ;;  %v112_v5 = vld [vmem:[#allocation3 + $0x48] sm:$0xff] }
 0x148   :  { %12246 = vmatpush1.bf16.msra.mxu0 %v18532_v6  ;;  %11919 = vmatprep.subr.bf16.mxu1 %v18537_v7  ;;  %v128_v6 = vld [vmem:[#allocation3 + $0xc8] sm:$0xff] }
 0x149   :  { %12247 = vmatprep.subr.bf16.mxu0 %v18540_v8  ;;  %v18603_v7 = vld [vmem:[#allocation5 + $0x61c] ss:$12 sps:$4 sm:$0xff]  }
 0x14a   :  { %v18606_v8 = vld [vmem:[#allocation5 + $0x121c] ss:$12 sps:$4 sm:$0xff]  }
 0x14b   :  { %11920 = vmatpush1.bf16.msra.mxu1 %v18535_v9  ;;  %v20924_v9 = vpack.c.bf16 %v112_v5, %v112_v5  ;;  %v18669_v5 = vld [vmem:[#allocation5 + $0x724] ss:$12 sps:$4 sm:$0xff]  }
 0x14c   :  { %12248 = vmatpush1.bf16.msra.mxu0 %v18538_v10  ;;  %11921 = vmatprep.subr.bf16.mxu1 %v18543_v13  ;;  %v20926_v10 = vpack.c.bf16 %v128_v6, %v128_v6  ;;  %v18601_v13 = vld [vmem:[#allocation5 + $0x618] ss:$12 sps:$4 sm:$0xff]  }
 0x14d   :  { %12249 = vmatprep.subr.bf16.mxu0 %v18546_v14  ;;  %v18604_v14 = vld [vmem:[#allocation5 + $0x1218] ss:$12 sps:$4 sm:$0xff]  }
 0x14e   :  { %v18672_v6 = vld [vmem:[#allocation5 + $0x1324] ss:$12 sps:$4 sm:$0xff]  }
 0x14f   :  { %11922 = vmatpush1.bf16.msra.mxu1 %v18541_v15  ;;  %v18609_v15 = vld [vmem:[#allocation5 + $0x634] ss:$12 sps:$4 sm:$0xff]  }
 0x150   :  { %12250 = vmatpush1.bf16.msra.mxu0 %v18544_v16  ;;  %11923 = vmatprep.subr.bf16.mxu1 %v18549_v17  ;;  %v18612_v16 = vld [vmem:[#allocation5 + $0x1234] ss:$12 sps:$4 sm:$0xff]   ;;  %v18607_v17 = vld [vmem:[#allocation5 + $0x630] ss:$12 sps:$4 sm:$0xff]  }
 0x151   :  { %12251 = vmatprep.subr.bf16.mxu0 %v18552_v18  ;;  %v18610_v18 = vld [vmem:[#allocation5 + $0x1230] ss:$12 sps:$4 sm:$0xff]  }
 0x153   :  { %11924 = vmatpush1.bf16.msra.mxu1 %v18547_v19  ;;  %v18615_v19 = vld [vmem:[#allocation5 + $0x64c] ss:$12 sps:$4 sm:$0xff]  }
 0x154   :  { %12252 = vmatpush1.bf16.msra.mxu0 %v18550_v20  ;;  %11925 = vmatprep.subr.bf16.mxu1 %v18555_v21  ;;  %v18618_v20 = vld [vmem:[#allocation5 + $0x124c] ss:$12 sps:$4 sm:$0xff]   ;;  %v18613_v21 = vld [vmem:[#allocation5 + $0x648] ss:$12 sps:$4 sm:$0xff]  }
 0x155   :  { %12253 = vmatprep.subr.bf16.mxu0 %v18558_v22  ;;  %v18616_v22 = vld [vmem:[#allocation5 + $0x1248] ss:$12 sps:$4 sm:$0xff]  }
 0x157   :  { %11926 = vmatpush1.bf16.msra.mxu1 %v18553_v25  ;;  %v18621_v25 = vld [vmem:[#allocation5 + $0x664] ss:$12 sps:$4 sm:$0xff]  }
 0x158   :  { %12254 = vmatpush1.bf16.msra.mxu0 %v18556_v26  ;;  %11927 = vmatprep.subr.bf16.mxu1 %v18561_v27  ;;  %v18624_v26 = vld [vmem:[#allocation5 + $0x1264] ss:$12 sps:$4 sm:$0xff]   ;;  %v18619_v27 = vld [vmem:[#allocation5 + $0x660] ss:$12 sps:$4 sm:$0xff]  }
 0x159   :  { %12255 = vmatprep.subr.bf16.mxu0 %v18564_v28  ;;  %v18622_v28 = vld [vmem:[#allocation5 + $0x1260] ss:$12 sps:$4 sm:$0xff]  }
 0x15b   :  { %11928 = vmatpush1.bf16.msra.mxu1 %v18559_v30  ;;  %v18627_v30 = vld [vmem:[#allocation5 + $0x67c] ss:$12 sps:$4 sm:$0xff]  }
 0x15c   :  { %12256 = vmatpush1.bf16.msra.mxu0 %v18562_v31  ;;  %11929 = vmatprep.subr.bf16.mxu1 %v18567_v32  ;;  %v18630_v31 = vld [vmem:[#allocation5 + $0x127c] ss:$12 sps:$4 sm:$0xff]   ;;  %v18625_v32 = vld [vmem:[#allocation5 + $0x678] ss:$12 sps:$4 sm:$0xff]  }
 0x15d   :  { %12257 = vmatprep.subr.bf16.mxu0 %v18570_v33  ;;  %v18628_v33 = vld [vmem:[#allocation5 + $0x1278] ss:$12 sps:$4 sm:$0xff]  }
 0x15f   :  { %11930 = vmatpush1.bf16.msra.mxu1 %v18565_v35  ;;  %v18633_v35 = vld [vmem:[#allocation5 + $0x694] ss:$12 sps:$4 sm:$0xff]  }
 0x160   :  { %12258 = vmatpush1.bf16.msra.mxu0 %v18568_v36  ;;  %11931 = vmatprep.subr.bf16.mxu1 %v18573_v38  ;;  %v18636_v36 = vld [vmem:[#allocation5 + $0x1294] ss:$12 sps:$4 sm:$0xff]   ;;  %v18631_v38 = vld [vmem:[#allocation5 + $0x690] ss:$12 sps:$4 sm:$0xff]  }
 0x161   :  { %12259 = vmatprep.subr.bf16.mxu0 %v18576_v39  ;;  %v18634_v39 = vld [vmem:[#allocation5 + $0x1290] ss:$12 sps:$4 sm:$0xff]  }
 0x163   :  { %11932 = vmatpush1.bf16.msra.mxu1 %v18571_v40  ;;  %v18639_v40 = vld [vmem:[#allocation5 + $0x6ac] ss:$12 sps:$4 sm:$0xff]  }
 0x164   :  { %12260 = vmatpush1.bf16.msra.mxu0 %v18574_v41  ;;  %11933 = vmatprep.subr.bf16.mxu1 %v18579_v45  ;;  %v18642_v41 = vld [vmem:[#allocation5 + $0x12ac] ss:$12 sps:$4 sm:$0xff]   ;;  %v18637_v45 = vld [vmem:[#allocation5 + $0x6a8] ss:$12 sps:$4 sm:$0xff]  }
 0x165   :  { %12261 = vmatprep.subr.bf16.mxu0 %v18582_v46  ;;  %v18640_v46 = vld [vmem:[#allocation5 + $0x12a8] ss:$12 sps:$4 sm:$0xff]  }
 0x167   :  { %11934 = vmatpush1.bf16.msra.mxu1 %v18577_v47  ;;  %v18645_v47 = vld [vmem:[#allocation5 + $0x6c4] ss:$12 sps:$4 sm:$0xff]  }
 0x168   :  { %12262 = vmatpush1.bf16.msra.mxu0 %v18580_v48  ;;  %11935 = vmatprep.subr.bf16.mxu1 %v18585_v52  ;;  %v18648_v48 = vld [vmem:[#allocation5 + $0x12c4] ss:$12 sps:$4 sm:$0xff]   ;;  %v18643_v52 = vld [vmem:[#allocation5 + $0x6c0] ss:$12 sps:$4 sm:$0xff]  }
 0x169   :  { %12263 = vmatprep.subr.bf16.mxu0 %v18588_v53  ;;  %v18646_v53 = vld [vmem:[#allocation5 + $0x12c0] ss:$12 sps:$4 sm:$0xff]  }
 0x16b   :  { %11936 = vmatpush1.bf16.msra.mxu1 %v18583_v55  ;;  %v18651_v55 = vld [vmem:[#allocation5 + $0x6dc] ss:$12 sps:$4 sm:$0xff]  }
 0x16c   :  { %12264 = vmatpush1.bf16.msra.mxu0 %v18586_v56  ;;  %11937 = vmatprep.subr.bf16.mxu1 %v18591_v57  ;;  %v18654_v56 = vld [vmem:[#allocation5 + $0x12dc] ss:$12 sps:$4 sm:$0xff]   ;;  %v18649_v57 = vld [vmem:[#allocation5 + $0x6d8] ss:$12 sps:$4 sm:$0xff]  }
 0x16d   :  { %12265 = vmatprep.subr.bf16.mxu0 %v18594_v58  ;;  %v18652_v58 = vld [vmem:[#allocation5 + $0x12d8] ss:$12 sps:$4 sm:$0xff]  }
 0x16f   :  { %11938 = vmatpush1.bf16.msra.mxu1 %v18589_v59  ;;  %v18657_v59 = vld [vmem:[#allocation5 + $0x6f4] ss:$12 sps:$4 sm:$0xff]  }
 0x170   :  { %12266 = vmatpush1.bf16.msra.mxu0 %v18592_v60  ;;  %11948 = vmatprep.subr.bf16.mxu1 %v18597_v61  ;;  %v18660_v60 = vld [vmem:[#allocation5 + $0x12f4] ss:$12 sps:$4 sm:$0xff]   ;;  %v18655_v61 = vld [vmem:[#allocation5 + $0x6f0] ss:$12 sps:$4 sm:$0xff]  }
 0x171   :  { %12276 = vmatprep.subr.bf16.mxu0 %v18600_v0  ;;  %v18666_v0 = vld [vmem:[#allocation5 + $0x130c] ss:$12 sps:$4 sm:$0xff]  }
 0x172   :  { %11940 = vmatmul.mubr.bf16.vlgmr.msra.gmra.mrb[0].mxu1 %v20920_v3 }
 0x173   :  { %12268 = vmatmul.mubr.bf16.vlgmr.msra.gmra.mrb[0].mxu0 %v20922_v4  ;;  %11949 = vmatpush1.bf16.msra.mxu1 %v18595_v1  ;;  %v18661_v1 = vld [vmem:[#allocation5 + $0x708] ss:$12 sps:$4 sm:$0xff]  }
 0x174   :  { %12277 = vmatpush1.bf16.msra.mxu0 %v18598_v2  ;;  %11950 = vmatprep.subr.bf16.mxu1 %v18603_v7  ;;  %v18664_v2 = vld [vmem:[#allocation5 + $0x1308] ss:$12 sps:$4 sm:$0xff]   ;;  %v18667_v7 = vld [vmem:[#allocation5 + $0x720] ss:$12 sps:$4 sm:$0xff]  }
 0x175   :  { %12278 = vmatprep.subr.bf16.mxu0 %v18606_v8  ;;  %11980 = vmatprep.mubr.bf16.mxu1 %v20924_v9  ;;  %v18670_v8 = vld [vmem:[#allocation5 + $0x1320] ss:$12 sps:$4 sm:$0xff]  }
 0x176   :  { %12308 = vmatprep.mubr.bf16.mxu0 %v20926_v10 }
 0x177   :  { %11951 = vmatpush1.bf16.msra.mxu1 %v18601_v13  ;;  %v18675_v13 = vld [vmem:[#allocation5 + $0x73c] ss:$12 sps:$4 sm:$0xff]  }
 0x178   :  { %12279 = vmatpush1.bf16.msra.mxu0 %v18604_v14  ;;  %11952 = vmatprep.subr.bf16.mxu1 %v18609_v15  ;;  %v18678_v14 = vld [vmem:[#allocation5 + $0x133c] ss:$12 sps:$4 sm:$0xff]   ;;  %v18673_v15 = vld [vmem:[#allocation5 + $0x738] ss:$12 sps:$4 sm:$0xff]  }
 0x179   :  { %12280 = vmatprep.subr.bf16.mxu0 %v18612_v16  ;;  %v18676_v16 = vld [vmem:[#allocation5 + $0x1338] ss:$12 sps:$4 sm:$0xff]  }
 0x17b   :  { %11953 = vmatpush1.bf16.msra.mxu1 %v18607_v17  ;;  %v18681_v17 = vld [vmem:[#allocation5 + $0x754] ss:$12 sps:$4 sm:$0xff]  }
 0x17c   :  { %12281 = vmatpush1.bf16.msra.mxu0 %v18610_v18  ;;  %11954 = vmatprep.subr.bf16.mxu1 %v18615_v19  ;;  %v18684_v18 = vld [vmem:[#allocation5 + $0x1354] ss:$12 sps:$4 sm:$0xff]   ;;  %v18679_v19 = vld [vmem:[#allocation5 + $0x750] ss:$12 sps:$4 sm:$0xff]  }
 0x17d   :  { %12282 = vmatprep.subr.bf16.mxu0 %v18618_v20  ;;  %v18682_v20 = vld [vmem:[#allocation5 + $0x1350] ss:$12 sps:$4 sm:$0xff]  }
 0x17f   :  { %11955 = vmatpush1.bf16.msra.mxu1 %v18613_v21  ;;  %v18687_v21 = vld [vmem:[#allocation5 + $0x76c] ss:$12 sps:$4 sm:$0xff]  }
 0x180   :  { %12283 = vmatpush1.bf16.msra.mxu0 %v18616_v22  ;;  %11956 = vmatprep.subr.bf16.mxu1 %v18621_v25  ;;  %v18690_v22 = vld [vmem:[#allocation5 + $0x136c] ss:$12 sps:$4 sm:$0xff]   ;;  %v18685_v25 = vld [vmem:[#allocation5 + $0x768] ss:$12 sps:$4 sm:$0xff]  }
 0x181   :  { %12284 = vmatprep.subr.bf16.mxu0 %v18624_v26  ;;  %v18688_v26 = vld [vmem:[#allocation5 + $0x1368] ss:$12 sps:$4 sm:$0xff]  }
 0x183   :  { %11957 = vmatpush1.bf16.msra.mxu1 %v18619_v27  ;;  %v18693_v27 = vld [vmem:[#allocation5 + $0x784] ss:$12 sps:$4 sm:$0xff]  }
 0x184   :  { %12285 = vmatpush1.bf16.msra.mxu0 %v18622_v28  ;;  %11958 = vmatprep.subr.bf16.mxu1 %v18627_v30  ;;  %v18696_v28 = vld [vmem:[#allocation5 + $0x1384] ss:$12 sps:$4 sm:$0xff]  }
 0x185   :  { %12286 = vmatprep.subr.bf16.mxu0 %v18630_v31  ;;  %v111_v30 = vld [vmem:[#allocation3 + $0x40] sm:$0xff] }
 0x186   :  { %v127_v31 = vld [vmem:[#allocation3 + $0xc0] sm:$0xff] }
 0x187   :  { %11959 = vmatpush1.bf16.msra.mxu1 %v18625_v32  ;;  %v114_v32 = vld [vmem:[#allocation3 + $0x58] sm:$0xff] }
 0x188   :  { %12287 = vmatpush1.bf16.msra.mxu0 %v18628_v33  ;;  %11960 = vmatprep.subr.bf16.mxu1 %v18633_v35  ;;  %v130_v33 = vld [vmem:[#allocation3 + $0xd8] sm:$0xff]  ;;  %v20932_v35 = vpack.c.bf16 %v111_v30, %v111_v30  ;;  %v18753_v30 = vld [vmem:[#allocation5 + $0x874] ss:$12 sps:$4 sm:$0xff]  }
 0x189   :  { %12288 = vmatprep.subr.bf16.mxu0 %v18636_v36  ;;  %v20934_v36 = vpack.c.bf16 %v127_v31, %v127_v31  ;;  %v18756_v31 = vld [vmem:[#allocation5 + $0x1474] ss:$12 sps:$4 sm:$0xff]  }
 0x18b   :  { %11961 = vmatpush1.bf16.msra.mxu1 %v18631_v38  ;;  %v18691_v38 = vld [vmem:[#allocation5 + $0x780] ss:$12 sps:$4 sm:$0xff]  }
 0x18c   :  { %12289 = vmatpush1.bf16.msra.mxu0 %v18634_v39  ;;  %11962 = vmatprep.subr.bf16.mxu1 %v18639_v40  ;;  %v18694_v39 = vld [vmem:[#allocation5 + $0x1380] ss:$12 sps:$4 sm:$0xff]   ;;  %v18699_v40 = vld [vmem:[#allocation5 + $0x79c] ss:$12 sps:$4 sm:$0xff]  }
 0x18d   :  { %12290 = vmatprep.subr.bf16.mxu0 %v18642_v41  ;;  %v18702_v41 = vld [vmem:[#allocation5 + $0x139c] ss:$12 sps:$4 sm:$0xff]  }
 0x18f   :  { %11963 = vmatpush1.bf16.msra.mxu1 %v18637_v45  ;;  %v20936_v45 = vpack.c.bf16 %v114_v32, %v114_v32  ;;  %v18751_v32 = vld [vmem:[#allocation5 + $0x870] ss:$12 sps:$4 sm:$0xff]  }
 0x190   :  { %12291 = vmatpush1.bf16.msra.mxu0 %v18640_v46  ;;  %11964 = vmatprep.subr.bf16.mxu1 %v18645_v47  ;;  %v20938_v46 = vpack.c.bf16 %v130_v33, %v130_v33  ;;  %v18697_v47 = vld [vmem:[#allocation5 + $0x798] ss:$12 sps:$4 sm:$0xff]   ;;  %v18754_v33 = vld [vmem:[#allocation5 + $0x1470] ss:$12 sps:$4 sm:$0xff]  }
 0x191   :  { %12292 = vmatprep.subr.bf16.mxu0 %v18648_v48  ;;  %v18700_v48 = vld [vmem:[#allocation5 + $0x1398] ss:$12 sps:$4 sm:$0xff]  }
 0x193   :  { %11965 = vmatpush1.bf16.msra.mxu1 %v18643_v52  ;;  %v18705_v52 = vld [vmem:[#allocation5 + $0x7b4] ss:$12 sps:$4 sm:$0xff]  }
 0x194   :  { %12293 = vmatpush1.bf16.msra.mxu0 %v18646_v53  ;;  %11966 = vmatprep.subr.bf16.mxu1 %v18651_v55  ;;  %v18708_v53 = vld [vmem:[#allocation5 + $0x13b4] ss:$12 sps:$4 sm:$0xff]   ;;  %v18703_v55 = vld [vmem:[#allocation5 + $0x7b0] ss:$12 sps:$4 sm:$0xff]  }
 0x195   :  { %12294 = vmatprep.subr.bf16.mxu0 %v18654_v56  ;;  %v18706_v56 = vld [vmem:[#allocation5 + $0x13b0] ss:$12 sps:$4 sm:$0xff]  }
 0x197   :  { %11967 = vmatpush1.bf16.msra.mxu1 %v18649_v57  ;;  %v18711_v57 = vld [vmem:[#allocation5 + $0x7cc] ss:$12 sps:$4 sm:$0xff]  }
 0x198   :  { %12295 = vmatpush1.bf16.msra.mxu0 %v18652_v58  ;;  %11968 = vmatprep.subr.bf16.mxu1 %v18657_v59  ;;  %v18714_v58 = vld [vmem:[#allocation5 + $0x13cc] ss:$12 sps:$4 sm:$0xff]   ;;  %v18709_v59 = vld [vmem:[#allocation5 + $0x7c8] ss:$12 sps:$4 sm:$0xff]  }
 0x199   :  { %12296 = vmatprep.subr.bf16.mxu0 %v18660_v60  ;;  %v18712_v60 = vld [vmem:[#allocation5 + $0x13c8] ss:$12 sps:$4 sm:$0xff]  }
 0x19b   :  { %11969 = vmatpush1.bf16.msra.mxu1 %v18655_v61  ;;  %v18717_v61 = vld [vmem:[#allocation5 + $0x7e4] ss:$12 sps:$4 sm:$0xff]  }
 0x19c   :  { %12297 = vmatpush1.bf16.msra.mxu0 %v18658_v62  ;;  %11970 = vmatprep.subr.bf16.mxu1 %v18663_v63  ;;  %v18720_v62 = vld [vmem:[#allocation5 + $0x13e4] ss:$12 sps:$4 sm:$0xff]   ;;  %v18715_v63 = vld [vmem:[#allocation5 + $0x7e0] ss:$12 sps:$4 sm:$0xff]  }
 0x19d   :  { %12298 = vmatprep.subr.bf16.mxu0 %v18666_v0  ;;  %v18718_v0 = vld [vmem:[#allocation5 + $0x13e0] ss:$12 sps:$4 sm:$0xff]  }
 0x19f   :  { %11971 = vmatpush1.bf16.msra.mxu1 %v18661_v1  ;;  %v18723_v1 = vld [vmem:[#allocation5 + $0x7fc] ss:$12 sps:$4 sm:$0xff]  }
 0x1a0   :  { %12299 = vmatpush1.bf16.msra.mxu0 %v18664_v2  ;;  %11972 = vmatprep.subr.bf16.mxu1 %v18669_v5  ;;  %v18726_v2 = vld [vmem:[#allocation5 + $0x13fc] ss:$12 sps:$4 sm:$0xff]   ;;  %v18721_v5 = vld [vmem:[#allocation5 + $0x7f8] ss:$12 sps:$4 sm:$0xff]  }
 0x1a1   :  { %12300 = vmatprep.subr.bf16.mxu0 %v18672_v6  ;;  %v18724_v6 = vld [vmem:[#allocation5 + $0x13f8] ss:$12 sps:$4 sm:$0xff]  }
 0x1a3   :  { %11973 = vmatpush1.bf16.msra.mxu1 %v18667_v7  ;;  %v18729_v7 = vld [vmem:[#allocation5 + $0x814] ss:$12 sps:$4 sm:$0xff]  }
 0x1a4   :  { %12301 = vmatpush1.bf16.msra.mxu0 %v18670_v8  ;;  %11974 = vmatprep.subr.bf16.mxu1 %v18675_v13  ;;  %v18732_v8 = vld [vmem:[#allocation5 + $0x1414] ss:$12 sps:$4 sm:$0xff]   ;;  %v18727_v13 = vld [vmem:[#allocation5 + $0x810] ss:$12 sps:$4 sm:$0xff]  }
 0x1a5   :  { %12302 = vmatprep.subr.bf16.mxu0 %v18678_v14  ;;  %v18730_v14 = vld [vmem:[#allocation5 + $0x1410] ss:$12 sps:$4 sm:$0xff]  }
 0x1a7   :  { %11975 = vmatpush1.bf16.msra.mxu1 %v18673_v15  ;;  %v18735_v15 = vld [vmem:[#allocation5 + $0x82c] ss:$12 sps:$4 sm:$0xff]  }
 0x1a8   :  { %12303 = vmatpush1.bf16.msra.mxu0 %v18676_v16  ;;  %11976 = vmatprep.subr.bf16.mxu1 %v18681_v17  ;;  %v18738_v16 = vld [vmem:[#allocation5 + $0x142c] ss:$12 sps:$4 sm:$0xff]   ;;  %v18733_v17 = vld [vmem:[#allocation5 + $0x828] ss:$12 sps:$4 sm:$0xff]  }
 0x1a9   :  { %12304 = vmatprep.subr.bf16.mxu0 %v18684_v18  ;;  %v18736_v18 = vld [vmem:[#allocation5 + $0x1428] ss:$12 sps:$4 sm:$0xff]  }
 0x1ab   :  { %11977 = vmatpush1.bf16.msra.mxu1 %v18679_v19  ;;  %v18741_v19 = vld [vmem:[#allocation5 + $0x844] ss:$12 sps:$4 sm:$0xff]  }
 0x1ac   :  { %12305 = vmatpush1.bf16.msra.mxu0 %v18682_v20  ;;  %11978 = vmatprep.subr.bf16.mxu1 %v18687_v21  ;;  %v18744_v20 = vld [vmem:[#allocation5 + $0x1444] ss:$12 sps:$4 sm:$0xff]   ;;  %v18739_v21 = vld [vmem:[#allocation5 + $0x840] ss:$12 sps:$4 sm:$0xff]  }
 0x1ad   :  { %12306 = vmatprep.subr.bf16.mxu0 %v18690_v22  ;;  %v18742_v22 = vld [vmem:[#allocation5 + $0x1440] ss:$12 sps:$4 sm:$0xff]  }
 0x1af   :  { %11979 = vmatpush1.bf16.msra.mxu1 %v18685_v25  ;;  %v18747_v25 = vld [vmem:[#allocation5 + $0x85c] ss:$12 sps:$4 sm:$0xff]  }
 0x1b0   :  { %12307 = vmatpush1.bf16.msra.mxu0 %v18688_v26  ;;  %11989 = vmatprep.subr.bf16.mxu1 %v18693_v27  ;;  %v18750_v26 = vld [vmem:[#allocation5 + $0x145c] ss:$12 sps:$4 sm:$0xff]   ;;  %v18745_v27 = vld [vmem:[#allocation5 + $0x858] ss:$12 sps:$4 sm:$0xff]  }
 0x1b1   :  { %12317 = vmatprep.subr.bf16.mxu0 %v18696_v28  ;;  %v18748_v28 = vld [vmem:[#allocation5 + $0x1458] ss:$12 sps:$4 sm:$0xff]  }
 0x1b2   :  { %11981 = vmatmul.mubr.bf16.vlgmr.msra.gmra.mrb[0].mxu1 %v20932_v35 }
 0x1b3   :  { %12309 = vmatmul.mubr.bf16.vlgmr.msra.gmra.mrb[0].mxu0 %v20934_v36  ;;  %11990 = vmatpush1.bf16.msra.mxu1 %v18691_v38  ;;  %v18759_v38 = vld [vmem:[#allocation5 + $0x88c] ss:$12 sps:$4 sm:$0xff]  }
 0x1b4   :  { %12318 = vmatpush1.bf16.msra.mxu0 %v18694_v39  ;;  %11991 = vmatprep.subr.bf16.mxu1 %v18699_v40  ;;  %v18762_v39 = vld [vmem:[#allocation5 + $0x148c] ss:$12 sps:$4 sm:$0xff]   ;;  %v18757_v40 = vld [vmem:[#allocation5 + $0x888] ss:$12 sps:$4 sm:$0xff]  }
 0x1b5   :  { %12319 = vmatprep.subr.bf16.mxu0 %v18702_v41  ;;  %12021 = vmatprep.mubr.bf16.mxu1 %v20936_v45  ;;  %v18760_v41 = vld [vmem:[#allocation5 + $0x1488] ss:$12 sps:$4 sm:$0xff]  }
 0x1b6   :  { %12349 = vmatprep.mubr.bf16.mxu0 %v20938_v46 }
 0x1b7   :  { %11992 = vmatpush1.bf16.msra.mxu1 %v18697_v47  ;;  %v18765_v47 = vld [vmem:[#allocation5 + $0x8a4] ss:$12 sps:$4 sm:$0xff]  }
 0x1b8   :  { %12320 = vmatpush1.bf16.msra.mxu0 %v18700_v48  ;;  %11993 = vmatprep.subr.bf16.mxu1 %v18705_v52  ;;  %v18768_v48 = vld [vmem:[#allocation5 + $0x14a4] ss:$12 sps:$4 sm:$0xff]   ;;  %v18763_v52 = vld [vmem:[#allocation5 + $0x8a0] ss:$12 sps:$4 sm:$0xff]  }
 0x1b9   :  { %12321 = vmatprep.subr.bf16.mxu0 %v18708_v53  ;;  %v18766_v53 = vld [vmem:[#allocation5 + $0x14a0] ss:$12 sps:$4 sm:$0xff]  }
 0x1bb   :  { %11994 = vmatpush1.bf16.msra.mxu1 %v18703_v55  ;;  %v18771_v55 = vld [vmem:[#allocation5 + $0x8bc] ss:$12 sps:$4 sm:$0xff]  }
 0x1bc   :  { %12322 = vmatpush1.bf16.msra.mxu0 %v18706_v56  ;;  %11995 = vmatprep.subr.bf16.mxu1 %v18711_v57  ;;  %v18774_v56 = vld [vmem:[#allocation5 + $0x14bc] ss:$12 sps:$4 sm:$0xff]   ;;  %v18769_v57 = vld [vmem:[#allocation5 + $0x8b8] ss:$12 sps:$4 sm:$0xff]  }
 0x1bd   :  { %12323 = vmatprep.subr.bf16.mxu0 %v18714_v58  ;;  %v18772_v58 = vld [vmem:[#allocation5 + $0x14b8] ss:$12 sps:$4 sm:$0xff]  }
 0x1bf   :  { %11996 = vmatpush1.bf16.msra.mxu1 %v18709_v59  ;;  %v18777_v59 = vld [vmem:[#allocation5 + $0x8d4] ss:$12 sps:$4 sm:$0xff]  }
 0x1c0   :  { %12324 = vmatpush1.bf16.msra.mxu0 %v18712_v60  ;;  %11997 = vmatprep.subr.bf16.mxu1 %v18717_v61  ;;  %v18780_v60 = vld [vmem:[#allocation5 + $0x14d4] ss:$12 sps:$4 sm:$0xff]   ;;  %v18775_v61 = vld [vmem:[#allocation5 + $0x8d0] ss:$12 sps:$4 sm:$0xff]  }
 0x1c1   :  { %12325 = vmatprep.subr.bf16.mxu0 %v18720_v62  ;;  %v18778_v62 = vld [vmem:[#allocation5 + $0x14d0] ss:$12 sps:$4 sm:$0xff]  }
 0x1c3   :  { %11998 = vmatpush1.bf16.msra.mxu1 %v18715_v63  ;;  %v18783_v63 = vld [vmem:[#allocation5 + $0x8ec] ss:$12 sps:$4 sm:$0xff]  }
 0x1c4   :  { %12326 = vmatpush1.bf16.msra.mxu0 %v18718_v0  ;;  %11999 = vmatprep.subr.bf16.mxu1 %v18723_v1  ;;  %v18786_v0 = vld [vmem:[#allocation5 + $0x14ec] ss:$12 sps:$4 sm:$0xff]   ;;  %v18781_v1 = vld [vmem:[#allocation5 + $0x8e8] ss:$12 sps:$4 sm:$0xff]  }
 0x1c5   :  { %12327 = vmatprep.subr.bf16.mxu0 %v18726_v2  ;;  %v18784_v2 = vld [vmem:[#allocation5 + $0x14e8] ss:$12 sps:$4 sm:$0xff]  }
 0x1c7   :  { %12000 = vmatpush1.bf16.msra.mxu1 %v18721_v5  ;;  %v18789_v5 = vld [vmem:[#allocation5 + $0x904] ss:$12 sps:$4 sm:$0xff]  }
 0x1c8   :  { %12328 = vmatpush1.bf16.msra.mxu0 %v18724_v6  ;;  %12001 = vmatprep.subr.bf16.mxu1 %v18729_v7  ;;  %v113_v6 = vld [vmem:[#allocation3 + $0x50] sm:$0xff] }
 0x1c9   :  { %12329 = vmatprep.subr.bf16.mxu0 %v18732_v8  ;;  %v129_v7 = vld [vmem:[#allocation3 + $0xd0] sm:$0xff] }
 0x1ca   :  { %v18792_v8 = vld [vmem:[#allocation5 + $0x1504] ss:$12 sps:$4 sm:$0xff]  }
 0x1cb   :  { %12002 = vmatpush1.bf16.msra.mxu1 %v18727_v13  ;;  %v116_v13 = vld [vmem:[#allocation3 + $0x68] sm:$0xff] }
 0x1cc   :  { %12330 = vmatpush1.bf16.msra.mxu0 %v18730_v14  ;;  %12003 = vmatprep.subr.bf16.mxu1 %v18735_v15  ;;  %v20944_v14 = vpack.c.bf16 %v113_v6, %v113_v6  ;;  %v20946_v15 = vpack.c.bf16 %v129_v7, %v129_v7  ;;  %v18838_v6 = vld [vmem:[#allocation5 + $0x15c0] ss:$12 sps:$4 sm:$0xff]   ;;  %v18843_v7 = vld [vmem:[#allocation5 + $0x9dc] ss:$12 sps:$4 sm:$0xff]  }
 0x1cd   :  { %12331 = vmatprep.subr.bf16.mxu0 %v18738_v16  ;;  %v132_v16 = vld [vmem:[#allocation3 + $0xe8] sm:$0xff] }
 0x1cf   :  { %12004 = vmatpush1.bf16.msra.mxu1 %v18733_v17  ;;  %v18787_v17 = vld [vmem:[#allocation5 + $0x900] ss:$12 sps:$4 sm:$0xff]  }
 0x1d0   :  { %12332 = vmatpush1.bf16.msra.mxu0 %v18736_v18  ;;  %12005 = vmatprep.subr.bf16.mxu1 %v18741_v19  ;;  %v18790_v18 = vld [vmem:[#allocation5 + $0x1500] ss:$12 sps:$4 sm:$0xff]   ;;  %v18795_v19 = vld [vmem:[#allocation5 + $0x91c] ss:$12 sps:$4 sm:$0xff]  }
 0x1d1   :  { %12333 = vmatprep.subr.bf16.mxu0 %v18744_v20  ;;  %v18798_v20 = vld [vmem:[#allocation5 + $0x151c] ss:$12 sps:$4 sm:$0xff]  }
 0x1d3   :  { %12006 = vmatpush1.bf16.msra.mxu1 %v18739_v21  ;;  %v18793_v21 = vld [vmem:[#allocation5 + $0x918] ss:$12 sps:$4 sm:$0xff]  }
 0x1d4   :  { %12334 = vmatpush1.bf16.msra.mxu0 %v18742_v22  ;;  %12007 = vmatprep.subr.bf16.mxu1 %v18747_v25  ;;  %v20948_v22 = vpack.c.bf16 %v116_v13, %v116_v13  ;;  %v20950_v25 = vpack.c.bf16 %v132_v16, %v132_v16  ;;  %v18841_v13 = vld [vmem:[#allocation5 + $0x9d8] ss:$12 sps:$4 sm:$0xff]  }
 0x1d5   :  { %12335 = vmatprep.subr.bf16.mxu0 %v18750_v26  ;;  %v18796_v26 = vld [vmem:[#allocation5 + $0x1518] ss:$12 sps:$4 sm:$0xff]  }
 0x1d6   :  { %v18844_v16 = vld [vmem:[#allocation5 + $0x15d8] ss:$12 sps:$4 sm:$0xff]  }
 0x1d7   :  { %12008 = vmatpush1.bf16.msra.mxu1 %v18745_v27  ;;  %v18801_v27 = vld [vmem:[#allocation5 + $0x934] ss:$12 sps:$4 sm:$0xff]  }
 0x1d8   :  { %12336 = vmatpush1.bf16.msra.mxu0 %v18748_v28  ;;  %12009 = vmatprep.subr.bf16.mxu1 %v18753_v30  ;;  %v18804_v28 = vld [vmem:[#allocation5 + $0x1534] ss:$12 sps:$4 sm:$0xff]   ;;  %v18799_v30 = vld [vmem:[#allocation5 + $0x930] ss:$12 sps:$4 sm:$0xff]  }
 0x1d9   :  { %12337 = vmatprep.subr.bf16.mxu0 %v18756_v31  ;;  %v18802_v31 = vld [vmem:[#allocation5 + $0x1530] ss:$12 sps:$4 sm:$0xff]  }
 0x1db   :  { %12010 = vmatpush1.bf16.msra.mxu1 %v18751_v32  ;;  %v18807_v32 = vld [vmem:[#allocation5 + $0x94c] ss:$12 sps:$4 sm:$0xff]  }
 0x1dc   :  { %12338 = vmatpush1.bf16.msra.mxu0 %v18754_v33  ;;  %12011 = vmatprep.subr.bf16.mxu1 %v18759_v38  ;;  %v18810_v33 = vld [vmem:[#allocation5 + $0x154c] ss:$12 sps:$4 sm:$0xff]   ;;  %v18805_v38 = vld [vmem:[#allocation5 + $0x948] ss:$12 sps:$4 sm:$0xff]  }
 0x1dd   :  { %12339 = vmatprep.subr.bf16.mxu0 %v18762_v39  ;;  %v18808_v39 = vld [vmem:[#allocation5 + $0x1548] ss:$12 sps:$4 sm:$0xff]  }
 0x1df   :  { %12012 = vmatpush1.bf16.msra.mxu1 %v18757_v40  ;;  %v18813_v40 = vld [vmem:[#allocation5 + $0x964] ss:$12 sps:$4 sm:$0xff]  }
 0x1e0   :  { %12340 = vmatpush1.bf16.msra.mxu0 %v18760_v41  ;;  %12013 = vmatprep.subr.bf16.mxu1 %v18765_v47  ;;  %v18816_v41 = vld [vmem:[#allocation5 + $0x1564] ss:$12 sps:$4 sm:$0xff]   ;;  %v18811_v47 = vld [vmem:[#allocation5 + $0x960] ss:$12 sps:$4 sm:$0xff]  }
 0x1e1   :  { %12341 = vmatprep.subr.bf16.mxu0 %v18768_v48  ;;  %v18814_v48 = vld [vmem:[#allocation5 + $0x1560] ss:$12 sps:$4 sm:$0xff]  }
 0x1e3   :  { %12014 = vmatpush1.bf16.msra.mxu1 %v18763_v52  ;;  %v18819_v52 = vld [vmem:[#allocation5 + $0x97c] ss:$12 sps:$4 sm:$0xff]  }
 0x1e4   :  { %12342 = vmatpush1.bf16.msra.mxu0 %v18766_v53  ;;  %12015 = vmatprep.subr.bf16.mxu1 %v18771_v55  ;;  %v18822_v53 = vld [vmem:[#allocation5 + $0x157c] ss:$12 sps:$4 sm:$0xff]   ;;  %v18817_v55 = vld [vmem:[#allocation5 + $0x978] ss:$12 sps:$4 sm:$0xff]  }
 0x1e5   :  { %12343 = vmatprep.subr.bf16.mxu0 %v18774_v56  ;;  %v18820_v56 = vld [vmem:[#allocation5 + $0x1578] ss:$12 sps:$4 sm:$0xff]  }
 0x1e7   :  { %12016 = vmatpush1.bf16.msra.mxu1 %v18769_v57  ;;  %v18825_v57 = vld [vmem:[#allocation5 + $0x994] ss:$12 sps:$4 sm:$0xff]  }
 0x1e8   :  { %12344 = vmatpush1.bf16.msra.mxu0 %v18772_v58  ;;  %12017 = vmatprep.subr.bf16.mxu1 %v18777_v59  ;;  %v18828_v58 = vld [vmem:[#allocation5 + $0x1594] ss:$12 sps:$4 sm:$0xff]   ;;  %v18823_v59 = vld [vmem:[#allocation5 + $0x990] ss:$12 sps:$4 sm:$0xff]  }
 0x1e9   :  { %12345 = vmatprep.subr.bf16.mxu0 %v18780_v60  ;;  %v18826_v60 = vld [vmem:[#allocation5 + $0x1590] ss:$12 sps:$4 sm:$0xff]  }
 0x1eb   :  { %12018 = vmatpush1.bf16.msra.mxu1 %v18775_v61  ;;  %v18831_v61 = vld [vmem:[#allocation5 + $0x9ac] ss:$12 sps:$4 sm:$0xff]  }
 0x1ec   :  { %12346 = vmatpush1.bf16.msra.mxu0 %v18778_v62  ;;  %12019 = vmatprep.subr.bf16.mxu1 %v18783_v63  ;;  %v18834_v62 = vld [vmem:[#allocation5 + $0x15ac] ss:$12 sps:$4 sm:$0xff]   ;;  %v18829_v63 = vld [vmem:[#allocation5 + $0x9a8] ss:$12 sps:$4 sm:$0xff]  }
 0x1ed   :  { %12347 = vmatprep.subr.bf16.mxu0 %v18786_v0  ;;  %v18832_v0 = vld [vmem:[#allocation5 + $0x15a8] ss:$12 sps:$4 sm:$0xff]  }
 0x1ef   :  { %12020 = vmatpush1.bf16.msra.mxu1 %v18781_v1  ;;  %v18837_v1 = vld [vmem:[#allocation5 + $0x9c4] ss:$12 sps:$4 sm:$0xff]  }
 0x1f0   :  { %12348 = vmatpush1.bf16.msra.mxu0 %v18784_v2  ;;  %12030 = vmatprep.subr.bf16.mxu1 %v18789_v5  ;;  %v18840_v2 = vld [vmem:[#allocation5 + $0x15c4] ss:$12 sps:$4 sm:$0xff]   ;;  %v18835_v5 = vld [vmem:[#allocation5 + $0x9c0] ss:$12 sps:$4 sm:$0xff]  }
 0x1f1   :  { %12358 = vmatprep.subr.bf16.mxu0 %v18792_v8  ;;  %v18846_v8 = vld [vmem:[#allocation5 + $0x15dc] ss:$12 sps:$4 sm:$0xff]  }
 0x1f2   :  { %12022 = vmatmul.mubr.bf16.vlgmr.msra.gmra.mrb[0].mxu1 %v20944_v14 }
 0x1f3   :  { %12350 = vmatmul.mubr.bf16.vlgmr.msra.gmra.mrb[0].mxu0 %v20946_v15  ;;  %12031 = vmatpush1.bf16.msra.mxu1 %v18787_v17  ;;  %v18849_v17 = vld [vmem:[#allocation5 + $0x9f4] ss:$12 sps:$4 sm:$0xff]  }
 0x1f4   :  { %12359 = vmatpush1.bf16.msra.mxu0 %v18790_v18  ;;  %12032 = vmatprep.subr.bf16.mxu1 %v18795_v19  ;;  %v18852_v18 = vld [vmem:[#allocation5 + $0x15f4] ss:$12 sps:$4 sm:$0xff]   ;;  %v18847_v19 = vld [vmem:[#allocation5 + $0x9f0] ss:$12 sps:$4 sm:$0xff]  }
 0x1f5   :  { %12360 = vmatprep.subr.bf16.mxu0 %v18798_v20  ;;  %12062 = vmatprep.mubr.bf16.mxu1 %v20948_v22  ;;  %v18850_v20 = vld [vmem:[#allocation5 + $0x15f0] ss:$12 sps:$4 sm:$0xff]  }
 0x1f6   :  { %12390 = vmatprep.mubr.bf16.mxu0 %v20950_v25 }
 0x1f7   :  { %12033 = vmatpush1.bf16.msra.mxu1 %v18793_v21  ;;  %v18855_v21 = vld [vmem:[#allocation5 + $0xa0c] ss:$12 sps:$4 sm:$0xff]  }
 0x1f8   :  { %12361 = vmatpush1.bf16.msra.mxu0 %v18796_v26  ;;  %12034 = vmatprep.subr.bf16.mxu1 %v18801_v27  ;;  %v18858_v26 = vld [vmem:[#allocation5 + $0x160c] ss:$12 sps:$4 sm:$0xff]   ;;  %v18853_v27 = vld [vmem:[#allocation5 + $0xa08] ss:$12 sps:$4 sm:$0xff]  }
 0x1f9   :  { %12362 = vmatprep.subr.bf16.mxu0 %v18804_v28  ;;  %v18856_v28 = vld [vmem:[#allocation5 + $0x1608] ss:$12 sps:$4 sm:$0xff]  }
 0x1fb   :  { %12035 = vmatpush1.bf16.msra.mxu1 %v18799_v30  ;;  %v18861_v30 = vld [vmem:[#allocation5 + $0xa24] ss:$12 sps:$4 sm:$0xff]  }
 0x1fc   :  { %12363 = vmatpush1.bf16.msra.mxu0 %v18802_v31  ;;  %12036 = vmatprep.subr.bf16.mxu1 %v18807_v32  ;;  %v18864_v31 = vld [vmem:[#allocation5 + $0x1624] ss:$12 sps:$4 sm:$0xff]   ;;  %v18859_v32 = vld [vmem:[#allocation5 + $0xa20] ss:$12 sps:$4 sm:$0xff]  }
 0x1fd   :  { %12364 = vmatprep.subr.bf16.mxu0 %v18810_v33  ;;  %v18862_v33 = vld [vmem:[#allocation5 + $0x1620] ss:$12 sps:$4 sm:$0xff]  }
 0x1ff   :  { %12037 = vmatpush1.bf16.msra.mxu1 %v18805_v38  ;;  %v18867_v38 = vld [vmem:[#allocation5 + $0xa3c] ss:$12 sps:$4 sm:$0xff]  }
 0x200   :  { %12365 = vmatpush1.bf16.msra.mxu0 %v18808_v39  ;;  %12038 = vmatprep.subr.bf16.mxu1 %v18813_v40  ;;  %v18870_v39 = vld [vmem:[#allocation5 + $0x163c] ss:$12 sps:$4 sm:$0xff]   ;;  %v18865_v40 = vld [vmem:[#allocation5 + $0xa38] ss:$12 sps:$4 sm:$0xff]  }
 0x201   :  { %12366 = vmatprep.subr.bf16.mxu0 %v18816_v41  ;;  %v18868_v41 = vld [vmem:[#allocation5 + $0x1638] ss:$12 sps:$4 sm:$0xff]  }
 0x203   :  { %12039 = vmatpush1.bf16.msra.mxu1 %v18811_v47  ;;  %v18873_v47 = vld [vmem:[#allocation5 + $0xa54] ss:$12 sps:$4 sm:$0xff]  }
 0x204   :  { %12367 = vmatpush1.bf16.msra.mxu0 %v18814_v48  ;;  %12040 = vmatprep.subr.bf16.mxu1 %v18819_v52  ;;  %v18876_v48 = vld [vmem:[#allocation5 + $0x1654] ss:$12 sps:$4 sm:$0xff]   ;;  %v18871_v52 = vld [vmem:[#allocation5 + $0xa50] ss:$12 sps:$4 sm:$0xff]  }
 0x205   :  { %12368 = vmatprep.subr.bf16.mxu0 %v18822_v53  ;;  %v18874_v53 = vld [vmem:[#allocation5 + $0x1650] ss:$12 sps:$4 sm:$0xff]  }
 0x207   :  { %12041 = vmatpush1.bf16.msra.mxu1 %v18817_v55  ;;  %v18879_v55 = vld [vmem:[#allocation5 + $0xa6c] ss:$12 sps:$4 sm:$0xff]  }
 0x208   :  { %12369 = vmatpush1.bf16.msra.mxu0 %v18820_v56  ;;  %12042 = vmatprep.subr.bf16.mxu1 %v18825_v57  ;;  %v18882_v56 = vld [vmem:[#allocation5 + $0x166c] ss:$12 sps:$4 sm:$0xff]   ;;  %v18877_v57 = vld [vmem:[#allocation5 + $0xa68] ss:$12 sps:$4 sm:$0xff]  }
 0x209   :  { %12370 = vmatprep.subr.bf16.mxu0 %v18828_v58  ;;  %v18880_v58 = vld [vmem:[#allocation5 + $0x1668] ss:$12 sps:$4 sm:$0xff]  }
 0x20b   :  { %12043 = vmatpush1.bf16.msra.mxu1 %v18823_v59  ;;  %v18885_v59 = vld [vmem:[#allocation5 + $0xa84] ss:$12 sps:$4 sm:$0xff]  }
 0x20c   :  { %12371 = vmatpush1.bf16.msra.mxu0 %v18826_v60  ;;  %12044 = vmatprep.subr.bf16.mxu1 %v18831_v61  ;;  %v18888_v60 = vld [vmem:[#allocation5 + $0x1684] ss:$12 sps:$4 sm:$0xff]  }
 0x20d   :  { %12372 = vmatprep.subr.bf16.mxu0 %v18834_v62  ;;  %v115_v61 = vld [vmem:[#allocation3 + $0x60] sm:$0xff] }
 0x20e   :  { %v131_v62 = vld [vmem:[#allocation3 + $0xe0] sm:$0xff] }
 0x20f   :  { %12045 = vmatpush1.bf16.msra.mxu1 %v18829_v63  ;;  %v118_v63 = vld [vmem:[#allocation3 + $0x78] sm:$0xff] }
 0x210   :  { %12373 = vmatpush1.bf16.msra.mxu0 %v18832_v0  ;;  %12046 = vmatprep.subr.bf16.mxu1 %v18837_v1  ;;  %v134_v0 = vld [vmem:[#allocation3 + $0xf8] sm:$0xff]  ;;  %v20956_v1 = vpack.c.bf16 %v115_v61, %v115_v61  ;;  %v18933_v61 = vld [vmem:[#allocation5 + $0xb44] ss:$12 sps:$4 sm:$0xff]  }
 0x211   :  { %12374 = vmatprep.subr.bf16.mxu0 %v18840_v2  ;;  %v20958_v2 = vpack.c.bf16 %v131_v62, %v131_v62  ;;  %v18936_v62 = vld [vmem:[#allocation5 + $0x1744] ss:$12 sps:$4 sm:$0xff]  }
 0x213   :  { %12047 = vmatpush1.bf16.msra.mxu1 %v18835_v5  ;;  %v18883_v5 = vld [vmem:[#allocation5 + $0xa80] ss:$12 sps:$4 sm:$0xff]  }
 0x214   :  { %12375 = vmatpush1.bf16.msra.mxu0 %v18838_v6  ;;  %12048 = vmatprep.subr.bf16.mxu1 %v18843_v7  ;;  %v18886_v6 = vld [vmem:[#allocation5 + $0x1680] ss:$12 sps:$4 sm:$0xff]   ;;  %v18891_v7 = vld [vmem:[#allocation5 + $0xa9c] ss:$12 sps:$4 sm:$0xff]  }
 0x215   :  { %12376 = vmatprep.subr.bf16.mxu0 %v18846_v8  ;;  %v18894_v8 = vld [vmem:[#allocation5 + $0x169c] ss:$12 sps:$4 sm:$0xff]  }
 0x217   :  { %12049 = vmatpush1.bf16.msra.mxu1 %v18841_v13  ;;  %v18889_v13 = vld [vmem:[#allocation5 + $0xa98] ss:$12 sps:$4 sm:$0xff]  }
 0x218   :  { %12377 = vmatpush1.bf16.msra.mxu0 %v18844_v16  ;;  %12050 = vmatprep.subr.bf16.mxu1 %v18849_v17  ;;  %v20960_v16 = vpack.c.bf16 %v118_v63, %v118_v63  ;;  %v20962_v17 = vpack.c.bf16 %v134_v0, %v134_v0  ;;  %v18931_v63 = vld [vmem:[#allocation5 + $0xb40] ss:$12 sps:$4 sm:$0xff]  }
 0x219   :  { %12378 = vmatprep.subr.bf16.mxu0 %v18852_v18  ;;  %v18892_v18 = vld [vmem:[#allocation5 + $0x1698] ss:$12 sps:$4 sm:$0xff]   ;;  %v18934_v0 = vld [vmem:[#allocation5 + $0x1740] ss:$12 sps:$4 sm:$0xff]  }
 0x21b   :  { %12051 = vmatpush1.bf16.msra.mxu1 %v18847_v19  ;;  %v18897_v19 = vld [vmem:[#allocation5 + $0xab4] ss:$12 sps:$4 sm:$0xff]  }
 0x21c   :  { %12379 = vmatpush1.bf16.msra.mxu0 %v18850_v20  ;;  %12052 = vmatprep.subr.bf16.mxu1 %v18855_v21  ;;  %v18900_v20 = vld [vmem:[#allocation5 + $0x16b4] ss:$12 sps:$4 sm:$0xff]   ;;  %v18895_v21 = vld [vmem:[#allocation5 + $0xab0] ss:$12 sps:$4 sm:$0xff]  }
 0x21d   :  { %12380 = vmatprep.subr.bf16.mxu0 %v18858_v26  ;;  %v18898_v26 = vld [vmem:[#allocation5 + $0x16b0] ss:$12 sps:$4 sm:$0xff]  }
 0x21f   :  { %12053 = vmatpush1.bf16.msra.mxu1 %v18853_v27  ;;  %v18903_v27 = vld [vmem:[#allocation5 + $0xacc] ss:$12 sps:$4 sm:$0xff]  }
 0x220   :  { %12381 = vmatpush1.bf16.msra.mxu0 %v18856_v28  ;;  %12054 = vmatprep.subr.bf16.mxu1 %v18861_v30  ;;  %v18906_v28 = vld [vmem:[#allocation5 + $0x16cc] ss:$12 sps:$4 sm:$0xff]   ;;  %v18901_v30 = vld [vmem:[#allocation5 + $0xac8] ss:$12 sps:$4 sm:$0xff]  }
 0x221   :  { %12382 = vmatprep.subr.bf16.mxu0 %v18864_v31  ;;  %v18904_v31 = vld [vmem:[#allocation5 + $0x16c8] ss:$12 sps:$4 sm:$0xff]  }
 0x223   :  { %12055 = vmatpush1.bf16.msra.mxu1 %v18859_v32  ;;  %v18909_v32 = vld [vmem:[#allocation5 + $0xae4] ss:$12 sps:$4 sm:$0xff]  }
 0x224   :  { %12383 = vmatpush1.bf16.msra.mxu0 %v18862_v33  ;;  %12056 = vmatprep.subr.bf16.mxu1 %v18867_v38  ;;  %v18912_v33 = vld [vmem:[#allocation5 + $0x16e4] ss:$12 sps:$4 sm:$0xff]   ;;  %v18907_v38 = vld [vmem:[#allocation5 + $0xae0] ss:$12 sps:$4 sm:$0xff]  }
 0x225   :  { %12384 = vmatprep.subr.bf16.mxu0 %v18870_v39  ;;  %v18910_v39 = vld [vmem:[#allocation5 + $0x16e0] ss:$12 sps:$4 sm:$0xff]  }
 0x227   :  { %12057 = vmatpush1.bf16.msra.mxu1 %v18865_v40  ;;  %v18915_v40 = vld [vmem:[#allocation5 + $0xafc] ss:$12 sps:$4 sm:$0xff]  }
 0x228   :  { %12385 = vmatpush1.bf16.msra.mxu0 %v18868_v41  ;;  %12058 = vmatprep.subr.bf16.mxu1 %v18873_v47  ;;  %v18918_v41 = vld [vmem:[#allocation5 + $0x16fc] ss:$12 sps:$4 sm:$0xff]   ;;  %v18913_v47 = vld [vmem:[#allocation5 + $0xaf8] ss:$12 sps:$4 sm:$0xff]  }
 0x229   :  { %12386 = vmatprep.subr.bf16.mxu0 %v18876_v48  ;;  %v18916_v48 = vld [vmem:[#allocation5 + $0x16f8] ss:$12 sps:$4 sm:$0xff]  }
 0x22b   :  { %12059 = vmatpush1.bf16.msra.mxu1 %v18871_v52  ;;  %v18921_v52 = vld [vmem:[#allocation5 + $0xb14] ss:$12 sps:$4 sm:$0xff]  }
 0x22c   :  { %12387 = vmatpush1.bf16.msra.mxu0 %v18874_v53  ;;  %12060 = vmatprep.subr.bf16.mxu1 %v18879_v55  ;;  %v18924_v53 = vld [vmem:[#allocation5 + $0x1714] ss:$12 sps:$4 sm:$0xff]   ;;  %v18919_v55 = vld [vmem:[#allocation5 + $0xb10] ss:$12 sps:$4 sm:$0xff]  }
 0x22d   :  { %12388 = vmatprep.subr.bf16.mxu0 %v18882_v56  ;;  %v18922_v56 = vld [vmem:[#allocation5 + $0x1710] ss:$12 sps:$4 sm:$0xff]  }
 0x22f   :  { %12061 = vmatpush1.bf16.msra.mxu1 %v18877_v57  ;;  %v18927_v57 = vld [vmem:[#allocation5 + $0xb2c] ss:$12 sps:$4 sm:$0xff]  }
 0x230   :  { %12389 = vmatpush1.bf16.msra.mxu0 %v18880_v58  ;;  %12071 = vmatprep.subr.bf16.mxu1 %v18885_v59  ;;  %v18930_v58 = vld [vmem:[#allocation5 + $0x172c] ss:$12 sps:$4 sm:$0xff]   ;;  %v18925_v59 = vld [vmem:[#allocation5 + $0xb28] ss:$12 sps:$4 sm:$0xff]  }
 0x231   :  { %12399 = vmatprep.subr.bf16.mxu0 %v18888_v60  ;;  %v18928_v60 = vld [vmem:[#allocation5 + $0x1728] ss:$12 sps:$4 sm:$0xff]  }
 0x232   :  { %12063 = vmatmul.mubr.bf16.vlgmr.msra.gmra.mrb[0].mxu1 %v20956_v1 }
 0x233   :  { %12391 = vmatmul.mubr.bf16.vlgmr.msra.gmra.mrb[0].mxu0 %v20958_v2  ;;  %12072 = vmatpush1.bf16.msra.mxu1 %v18883_v5  ;;  %v18939_v5 = vld [vmem:[#allocation5 + $0xb5c] ss:$12 sps:$4 sm:$0xff]  }
 0x234   :  { %12400 = vmatpush1.bf16.msra.mxu0 %v18886_v6  ;;  %12073 = vmatprep.subr.bf16.mxu1 %v18891_v7  ;;  %v18942_v6 = vld [vmem:[#allocation5 + $0x175c] ss:$12 sps:$4 sm:$0xff]   ;;  %v18937_v7 = vld [vmem:[#allocation5 + $0xb58] ss:$12 sps:$4 sm:$0xff]  }
 0x235   :  { %12401 = vmatprep.subr.bf16.mxu0 %v18894_v8  ;;  %12103 = vmatprep.mubr.bf16.mxu1 %v20960_v16  ;;  %v18940_v8 = vld [vmem:[#allocation5 + $0x1758] ss:$12 sps:$4 sm:$0xff]  }
 0x236   :  { %12431 = vmatprep.mubr.bf16.mxu0 %v20962_v17 }
 0x237   :  { %12074 = vmatpush1.bf16.msra.mxu1 %v18889_v13  ;;  %v18945_v13 = vld [vmem:[#allocation5 + $0xb74] ss:$12 sps:$4 sm:$0xff]  }
 0x238   :  { %12402 = vmatpush1.bf16.msra.mxu0 %v18892_v18  ;;  %12075 = vmatprep.subr.bf16.mxu1 %v18897_v19  ;;  %v18948_v18 = vld [vmem:[#allocation5 + $0x1774] ss:$12 sps:$4 sm:$0xff]   ;;  %v18943_v19 = vld [vmem:[#allocation5 + $0xb70] ss:$12 sps:$4 sm:$0xff]  }
 0x239   :  { %12403 = vmatprep.subr.bf16.mxu0 %v18900_v20  ;;  %v18946_v20 = vld [vmem:[#allocation5 + $0x1770] ss:$12 sps:$4 sm:$0xff]  }
 0x23b   :  { %12076 = vmatpush1.bf16.msra.mxu1 %v18895_v21  ;;  %v18951_v21 = vld [vmem:[#allocation5 + $0xb8c] ss:$12 sps:$4 sm:$0xff]  }
 0x23c   :  { %12404 = vmatpush1.bf16.msra.mxu0 %v18898_v26  ;;  %12077 = vmatprep.subr.bf16.mxu1 %v18903_v27  ;;  %v18954_v26 = vld [vmem:[#allocation5 + $0x178c] ss:$12 sps:$4 sm:$0xff]   ;;  %v18949_v27 = vld [vmem:[#allocation5 + $0xb88] ss:$12 sps:$4 sm:$0xff]  }
 0x23d   :  { %12405 = vmatprep.subr.bf16.mxu0 %v18906_v28  ;;  %v18952_v28 = vld [vmem:[#allocation5 + $0x1788] ss:$12 sps:$4 sm:$0xff]  }
 0x23f   :  { %12078 = vmatpush1.bf16.msra.mxu1 %v18901_v30  ;;  %v18957_v30 = vld [vmem:[#allocation5 + $0xba4] ss:$12 sps:$4 sm:$0xff]  }
 0x240   :  { %12406 = vmatpush1.bf16.msra.mxu0 %v18904_v31  ;;  %12079 = vmatprep.subr.bf16.mxu1 %v18909_v32  ;;  %v18960_v31 = vld [vmem:[#allocation5 + $0x17a4] ss:$12 sps:$4 sm:$0xff]   ;;  %v18955_v32 = vld [vmem:[#allocation5 + $0xba0] ss:$12 sps:$4 sm:$0xff]  }
 0x241   :  { %12407 = vmatprep.subr.bf16.mxu0 %v18912_v33  ;;  %v18958_v33 = vld [vmem:[#allocation5 + $0x17a0] ss:$12 sps:$4 sm:$0xff]  }
 0x243   :  { %12080 = vmatpush1.bf16.msra.mxu1 %v18907_v38  ;;  %v18963_v38 = vld [vmem:[#allocation5 + $0xbbc] ss:$12 sps:$4 sm:$0xff]  }
 0x244   :  { %12408 = vmatpush1.bf16.msra.mxu0 %v18910_v39  ;;  %12081 = vmatprep.subr.bf16.mxu1 %v18915_v40  ;;  %v18966_v39 = vld [vmem:[#allocation5 + $0x17bc] ss:$12 sps:$4 sm:$0xff]   ;;  %v18961_v40 = vld [vmem:[#allocation5 + $0xbb8] ss:$12 sps:$4 sm:$0xff]  }
 0x245   :  { %12409 = vmatprep.subr.bf16.mxu0 %v18918_v41  ;;  %v18964_v41 = vld [vmem:[#allocation5 + $0x17b8] ss:$12 sps:$4 sm:$0xff]  }
 0x247   :  { %12082 = vmatpush1.bf16.msra.mxu1 %v18913_v47  ;;  %v18969_v47 = vld [vmem:[#allocation5 + $0xbd4] ss:$12 sps:$4 sm:$0xff]  }
 0x248   :  { %12410 = vmatpush1.bf16.msra.mxu0 %v18916_v48  ;;  %12083 = vmatprep.subr.bf16.mxu1 %v18921_v52  ;;  %v18972_v48 = vld [vmem:[#allocation5 + $0x17d4] ss:$12 sps:$4 sm:$0xff]   ;;  %v18967_v52 = vld [vmem:[#allocation5 + $0xbd0] ss:$12 sps:$4 sm:$0xff]  }
 0x249   :  { %12411 = vmatprep.subr.bf16.mxu0 %v18924_v53  ;;  %v18970_v53 = vld [vmem:[#allocation5 + $0x17d0] ss:$12 sps:$4 sm:$0xff]  }
 0x24b   :  { %12084 = vmatpush1.bf16.msra.mxu1 %v18919_v55  ;;  %v18975_v55 = vld [vmem:[#allocation5 + $0xbec] ss:$12 sps:$4 sm:$0xff]  }
 0x24c   :  { %12412 = vmatpush1.bf16.msra.mxu0 %v18922_v56  ;;  %12085 = vmatprep.subr.bf16.mxu1 %v18927_v57  ;;  %v18978_v56 = vld [vmem:[#allocation5 + $0x17ec] ss:$12 sps:$4 sm:$0xff]   ;;  %v18973_v57 = vld [vmem:[#allocation5 + $0xbe8] ss:$12 sps:$4 sm:$0xff]  }
 0x24d   :  { %12413 = vmatprep.subr.bf16.mxu0 %v18930_v58  ;;  %v18976_v58 = vld [vmem:[#allocation5 + $0x17e8] ss:$12 sps:$4 sm:$0xff]  }
 0x24f   :  { %12086 = vmatpush1.bf16.msra.mxu1 %v18925_v59  ;;  %v117_v59 = vld [vmem:[#allocation3 + $0x70] sm:$0xff] }
 0x250   :  { %12414 = vmatpush1.bf16.msra.mxu0 %v18928_v60  ;;  %12087 = vmatprep.subr.bf16.mxu1 %v18933_v61  ;;  %v18981_v60 = vld [vmem:[#allocation5 + $0x1804] ss:$12 sps:$4 sm:$0xff]  }
 0x251   :  { %12415 = vmatprep.subr.bf16.mxu0 %v18936_v62  ;;  %v133_v61 = vld [vmem:[#allocation3 + $0xf0] sm:$0xff] }
 0x252   :  { %v18982_v62 = vld [vmem:[#allocation5 + $0xc8] ss:$12 sps:$4 sm:$0xff]  }
 0x253   :  { %12088 = vmatpush1.bf16.msra.mxu1 %v18931_v63  ;;  %v136_v63 = vld [vmem:[#allocation3 + $0x108] sm:$0xff] }
 0x254   :  { %12416 = vmatpush1.bf16.msra.mxu0 %v18934_v0  ;;  %12089 = vmatprep.subr.bf16.mxu1 %v18939_v5  ;;  %v20968_v0 = vpack.c.bf16 %v117_v59, %v117_v59  ;;  %v20970_v5 = vpack.c.bf16 %v133_v61, %v133_v61  ;;  %v19017_v59 = vld [vmem:[#allocation5 + $0x170] ss:$12 sps:$4 sm:$0xff]  }
 0x255   :  { %12417 = vmatprep.subr.bf16.mxu0 %v18942_v6  ;;  %v18979_v6 = vld [vmem:[#allocation5 + $0x1800] ss:$12 sps:$4 sm:$0xff]   ;;  %v19018_v61 = vld [vmem:[#allocation5 + $0xb0] ss:$12 sps:$4 sm:$0xff]  }
 0x257   :  { %12090 = vmatpush1.bf16.msra.mxu1 %v18937_v7  ;;  %v18983_v7 = vld [vmem:[#allocation5 + $0x8] ss:$12 sps:$4 sm:$0xff]  }
 0x258   :  { %12418 = vmatpush1.bf16.msra.mxu0 %v18940_v8  ;;  %12091 = vmatprep.subr.bf16.mxu1 %v18945_v13  ;;  %v18986_v8 = vld [vmem:[#allocation5 + $0x181c] ss:$12 sps:$4 sm:$0xff]   ;;  %v18987_v13 = vld [vmem:[#allocation5 + $0xe0] ss:$12 sps:$4 sm:$0xff]  }
 0x259   :  { %12419 = vmatprep.subr.bf16.mxu0 %v18948_v18  ;;  %v18984_v18 = vld [vmem:[#allocation5 + $0x1818] ss:$12 sps:$4 sm:$0xff]  }
 0x25b   :  { %12092 = vmatpush1.bf16.msra.mxu1 %v18943_v19  ;;  %v20972_v19 = vpack.c.bf16 %v136_v63, %v136_v63  ;;  %v19022_v63 = vld [vmem:[#allocation5 + $0x248] ss:$12 sps:$4 sm:$0xff]  }
 0x25c   :  { %12420 = vmatpush1.bf16.msra.mxu0 %v18946_v20  ;;  %12093 = vmatprep.subr.bf16.mxu1 %v18951_v21  ;;  %v18988_v20 = vld [vmem:[#allocation5 + $0x20] ss:$12 sps:$4 sm:$0xff]  }
 0x25d   :  { %12421 = vmatprep.subr.bf16.mxu0 %v18954_v26  ;;  %v18991_v21 = vld [vmem:[#allocation5 + $0x1834] ss:$12 sps:$4 sm:$0xff]   ;;  %v18992_v26 = vld [vmem:[#allocation5 + $0xf8] ss:$12 sps:$4 sm:$0xff]  }
 0x25f   :  { %12094 = vmatpush1.bf16.msra.mxu1 %v18949_v27  ;;  %v18989_v27 = vld [vmem:[#allocation5 + $0x1830] ss:$12 sps:$4 sm:$0xff]  }
 0x260   :  { %12422 = vmatpush1.bf16.msra.mxu0 %v18952_v28  ;;  %12095 = vmatprep.subr.bf16.mxu1 %v18957_v30  ;;  %v18993_v28 = vld [vmem:[#allocation5 + $0x38] ss:$12 sps:$4 sm:$0xff]  }
 0x261   :  { %12423 = vmatprep.subr.bf16.mxu0 %v18960_v31  ;;  %v18996_v30 = vld [vmem:[#allocation5 + $0x184c] ss:$12 sps:$4 sm:$0xff]   ;;  %v18997_v31 = vld [vmem:[#allocation5 + $0x110] ss:$12 sps:$4 sm:$0xff]  }
 0x263   :  { %12096 = vmatpush1.bf16.msra.mxu1 %v18955_v32  ;;  %v18994_v32 = vld [vmem:[#allocation5 + $0x1848] ss:$12 sps:$4 sm:$0xff]  }
 0x264   :  { %12424 = vmatpush1.bf16.msra.mxu0 %v18958_v33  ;;  %12097 = vmatprep.subr.bf16.mxu1 %v18963_v38  ;;  %v18998_v33 = vld [vmem:[#allocation5 + $0x50] ss:$12 sps:$4 sm:$0xff]  }
 0x265   :  { %12425 = vmatprep.subr.bf16.mxu0 %v18966_v39  ;;  %v19001_v38 = vld [vmem:[#allocation5 + $0x1864] ss:$12 sps:$4 sm:$0xff]   ;;  %v19002_v39 = vld [vmem:[#allocation5 + $0x128] ss:$12 sps:$4 sm:$0xff]  }
 0x267   :  { %12098 = vmatpush1.bf16.msra.mxu1 %v18961_v40  ;;  %v18999_v40 = vld [vmem:[#allocation5 + $0x1860] ss:$12 sps:$4 sm:$0xff]  }
 0x268   :  { %12426 = vmatpush1.bf16.msra.mxu0 %v18964_v41  ;;  %12099 = vmatprep.subr.bf16.mxu1 %v18969_v47  ;;  %v19006_v41 = vld [vmem:[#allocation5 + $0x187c] ss:$12 sps:$4 sm:$0xff]   ;;  %v19007_v47 = vld [vmem:[#allocation5 + $0x140] ss:$12 sps:$4 sm:$0xff]  }
 0x269   :  { %12427 = vmatprep.subr.bf16.mxu0 %v18972_v48  ;;  %v19004_v48 = vld [vmem:[#allocation5 + $0x1878] ss:$12 sps:$4 sm:$0xff]  }
 0x26b   :  { %12100 = vmatpush1.bf16.msra.mxu1 %v18967_v52  ;;  %v19008_v52 = vld [vmem:[#allocation5 + $0x80] ss:$12 sps:$4 sm:$0xff]  }
 0x26c   :  { %12428 = vmatpush1.bf16.msra.mxu0 %v18970_v53  ;;  %12101 = vmatprep.subr.bf16.mxu1 %v18975_v55  ;;  %v19011_v53 = vld [vmem:[#allocation5 + $0x1894] ss:$12 sps:$4 sm:$0xff]   ;;  %v19012_v55 = vld [vmem:[#allocation5 + $0x158] ss:$12 sps:$4 sm:$0xff]  }
 0x26d   :  { %12429 = vmatprep.subr.bf16.mxu0 %v18978_v56  ;;  %v19009_v56 = vld [vmem:[#allocation5 + $0x1890] ss:$12 sps:$4 sm:$0xff]  }
 0x26f   :  { %12102 = vmatpush1.bf16.msra.mxu1 %v18973_v57  ;;  %v19013_v57 = vld [vmem:[#allocation5 + $0x98] ss:$12 sps:$4 sm:$0xff]  }
 0x270   :  { %12430 = vmatpush1.bf16.msra.mxu0 %v18976_v58  ;;  %17211 = vmatprep.subr.bf16.mxu1 %v18982_v62  ;;  %v19016_v58 = vld [vmem:[#allocation5 + $0x18ac] ss:$12 sps:$4 sm:$0xff]   ;;  %v19021_v62 = vld [vmem:[#allocation5 + $0x18c4] ss:$12 sps:$4 sm:$0xff]  }
 0x271   :  { %12440 = vmatprep.subr.bf16.mxu0 %v18981_v60  ;;  %v19014_v60 = vld [vmem:[#allocation5 + $0x18a8] ss:$12 sps:$4 sm:$0xff]  }
 0x272   :  { %12104 = vmatmul.mubr.bf16.vlgmr.msra.gmra.mrb[0].mxu1 %v20968_v0 }
 0x273   :  { %12432 = vmatmul.mubr.bf16.vlgmr.msra.gmra.mrb[0].mxu0 %v20970_v5  ;;  %17212 = vmatpush3.bf16.msra.mxu1 %v18983_v7  ;;  %v19023_v7 = vld [vmem:[#allocation5 + $0x188] ss:$12 sps:$4 sm:$0xff]  }
 0x274   :  { %12441 = vmatpush1.bf16.msra.mxu0 %v18979_v6  ;;  %17213 = vmatprep.subr.bf16.mxu1 %v18987_v13  ;;  %v19019_v6 = vld [vmem:[#allocation5 + $0x18c0] ss:$12 sps:$4 sm:$0xff]  }
 0x275   :  { %12442 = vmatprep.subr.bf16.mxu0 %v18986_v8  ;;  %13292 = vmatprep.mubr.bf16.mxu1 %v20878_v49  ;;  %v19003_v49 = vld [vmem:[#allocation5 + $0x68] ss:$12 sps:$4 sm:$0xff]   ;;  %v19027_v13 = vld [vmem:[#allocation5 + $0x260] ss:$12 sps:$4 sm:$0xff]  }
 0x276   :  { %12472 = vmatprep.mubr.bf16.mxu0 %v20972_v19  ;;  %v19026_v8 = vld [vmem:[#allocation5 + $0x18dc] ss:$12 sps:$4 sm:$0xff]  }
 0x277   :  { %17214 = vmatpush3.bf16.msra.mxu1 %v18988_v20  ;;  %v19028_v20 = vld [vmem:[#allocation5 + $0x1a0] ss:$12 sps:$4 sm:$0xff]  }
 0x278   :  { %12443 = vmatpush1.bf16.msra.mxu0 %v18984_v18  ;;  %17215 = vmatprep.subr.bf16.mxu1 %v18992_v26  ;;  %v19024_v18 = vld [vmem:[#allocation5 + $0x18d8] ss:$12 sps:$4 sm:$0xff]  }
 0x279   :  { %12444 = vmatprep.subr.bf16.mxu0 %v18991_v21  ;;  %v19031_v21 = vld [vmem:[#allocation5 + $0x18f4] ss:$12 sps:$4 sm:$0xff]   ;;  %v19032_v26 = vld [vmem:[#allocation5 + $0x278] ss:$12 sps:$4 sm:$0xff]  }
 0x27b   :  { %17216 = vmatpush3.bf16.msra.mxu1 %v18993_v28  ;;  %v19033_v28 = vld [vmem:[#allocation5 + $0x1b8] ss:$12 sps:$4 sm:$0xff]  }
 0x27c   :  { %12445 = vmatpush1.bf16.msra.mxu0 %v18989_v27  ;;  %17217 = vmatprep.subr.bf16.mxu1 %v18997_v31  ;;  %v19029_v27 = vld [vmem:[#allocation5 + $0x18f0] ss:$12 sps:$4 sm:$0xff]  }
 0x27d   :  { %12446 = vmatprep.subr.bf16.mxu0 %v18996_v30  ;;  %v19036_v30 = vld [vmem:[#allocation5 + $0x190c] ss:$12 sps:$4 sm:$0xff]   ;;  %v19037_v31 = vld [vmem:[#allocation5 + $0x290] ss:$12 sps:$4 sm:$0xff]  }
 0x27f   :  { %17218 = vmatpush3.bf16.msra.mxu1 %v18998_v33  ;;  %v19041_v33 = vld [vmem:[#allocation5 + $0x1924] ss:$12 sps:$4 sm:$0xff]  }
 0x280   :  { %12447 = vmatpush1.bf16.msra.mxu0 %v18994_v32  ;;  %17219 = vmatprep.subr.bf16.mxu1 %v19002_v39  ;;  %v19034_v32 = vld [vmem:[#allocation5 + $0x1908] ss:$12 sps:$4 sm:$0xff]   ;;  %v19039_v39 = vld [vmem:[#allocation5 + $0x1920] ss:$12 sps:$4 sm:$0xff]  }
 0x281   :  { %12448 = vmatprep.subr.bf16.mxu0 %v19001_v38  ;;  %v19042_v38 = vld [vmem:[#allocation5 + $0x2a8] ss:$12 sps:$4 sm:$0xff]  }
 0x283   :  { %17220 = vmatpush3.bf16.msra.mxu1 %v19003_v49  ;;  %v19047_v49 = vld [vmem:[#allocation5 + $0x2c0] ss:$12 sps:$4 sm:$0xff]  }
 0x284   :  { %12449 = vmatpush1.bf16.msra.mxu0 %v18999_v40  ;;  %17221 = vmatprep.subr.bf16.mxu1 %v19007_v47  ;;  %v19043_v40 = vld [vmem:[#allocation5 + $0x1e8] ss:$12 sps:$4 sm:$0xff]   ;;  %v19048_v47 = vld [vmem:[#allocation5 + $0x200] ss:$12 sps:$4 sm:$0xff]  }
 0x285   :  { %12450 = vmatprep.subr.bf16.mxu0 %v19006_v41  ;;  %v19044_v41 = vld [vmem:[#allocation5 + $0x1938] ss:$12 sps:$4 sm:$0xff]  }
 0x287   :  { %17222 = vmatpush3.bf16.msra.mxu1 %v19008_v52  ;;  %v19052_v52 = vld [vmem:[#allocation5 + $0x2d8] ss:$12 sps:$4 sm:$0xff]  }
 0x288   :  { %12451 = vmatpush1.bf16.msra.mxu0 %v19004_v48  ;;  %17223 = vmatprep.subr.bf16.mxu1 %v19012_v55  ;;  %v19051_v48 = vld [vmem:[#allocation5 + $0x1954] ss:$12 sps:$4 sm:$0xff]   ;;  %v19053_v55 = vld [vmem:[#allocation5 + $0x218] ss:$12 sps:$4 sm:$0xff]  }
 0x289   :  { %12452 = vmatprep.subr.bf16.mxu0 %v19011_v53  ;;  %v19049_v53 = vld [vmem:[#allocation5 + $0x1950] ss:$12 sps:$4 sm:$0xff]  }
 0x28b   :  { %17224 = vmatpush3.bf16.msra.mxu1 %v19013_v57  ;;  %v19057_v57 = vld [vmem:[#allocation5 + $0x2f0] ss:$12 sps:$4 sm:$0xff]  }
 0x28c   :  { %12453 = vmatpush1.bf16.msra.mxu0 %v19009_v56  ;;  %17225 = vmatprep.subr.bf16.mxu1 %v19017_v59  ;;  %v19056_v56 = vld [vmem:[#allocation5 + $0x196c] ss:$12 sps:$4 sm:$0xff]   ;;  %v19058_v59 = vld [vmem:[#allocation5 + $0x230] ss:$12 sps:$4 sm:$0xff]  }
 0x28d   :  { %12454 = vmatprep.subr.bf16.mxu0 %v19016_v58  ;;  %v19054_v58 = vld [vmem:[#allocation5 + $0x1968] ss:$12 sps:$4 sm:$0xff]  }
 0x28f   :  { %17226 = vmatpush3.bf16.msra.mxu1 %v19018_v61  ;;  %v135_v61 = vld [vmem:[#allocation3 + $0x100] sm:$0xff] }
 0x290   :  { %12455 = vmatpush1.bf16.msra.mxu0 %v19014_v60  ;;  %17233 = vmatprep.subr.bf16.mxu1 %v19022_v63  ;;  %v19061_v60 = vld [vmem:[#allocation5 + $0x1984] ss:$12 sps:$4 sm:$0xff]   ;;  %v138_v63 = vld [vmem:[#allocation3 + $0x118] sm:$0xff] }
 0x291   :  { %12456 = vmatprep.subr.bf16.mxu0 %v19021_v62  ;;  %v19062_v62 = vld [vmem:[#allocation5 + $0x3c8] ss:$12 sps:$4 sm:$0xff]  }
 0x292   :  { %13293 = vmatmul.mubr.bf16.vlgmr.msra.gmra.mrb[4].mxu1 %v20884_v11  ;;  %v19038_v11 = vld [vmem:[#allocation5 + $0x1d0] ss:$12 sps:$4 sm:$0xff]  }
 0x293   :  { %17234 = vmatpush3.bf16.msra.mxu1 %v19023_v7  ;;  %13332 = vmatprep.mubr.bf16.mxu1 %v20890_v37  ;;  %v19046_v37 = vld [vmem:[#allocation5 + $0x193c] ss:$12 sps:$4 sm:$0xff]   ;;  %v19059_v7 = vld [vmem:[#allocation5 + $0x1980] ss:$12 sps:$4 sm:$0xff]  }
 0x294   :  { %12457 = vmatpush1.bf16.msra.mxu0 %v19019_v6  ;;  %17235 = vmatprep.subr.bf16.mxu1 %v19027_v13  ;;  %v20980_v6 = vpack.c.bf16 %v135_v61, %v135_v61  ;;  %v19066_v13 = vld [vmem:[#allocation5 + $0x199c] ss:$12 sps:$4 sm:$0xff]  }
 0x295   :  { %12458 = vmatprep.subr.bf16.mxu0 %v19026_v8  ;;  %v19063_v8 = vld [vmem:[#allocation5 + $0x308] ss:$12 sps:$4 sm:$0xff]  }
 0x296   :  { %v19102_v61 = vld [vmem:[#allocation5 + $0x548] ss:$12 sps:$4 sm:$0xff]  }
 0x297   :  { %17236 = vmatpush3.bf16.msra.mxu1 %v19028_v20  ;;  %v19064_v20 = vld [vmem:[#allocation5 + $0x1998] ss:$12 sps:$4 sm:$0xff]  }
 0x298   :  { %12459 = vmatpush1.bf16.msra.mxu0 %v19024_v18  ;;  %17237 = vmatprep.subr.bf16.mxu1 %v19032_v26  ;;  %v19067_v18 = vld [vmem:[#allocation5 + $0x3e0] ss:$12 sps:$4 sm:$0xff]  }
 0x299   :  { %12460 = vmatprep.subr.bf16.mxu0 %v19031_v21  ;;  %v20982_v21 = vpack.c.bf16 %v138_v63, %v138_v63  ;;  %v19068_v26 = vld [vmem:[#allocation5 + $0x320] ss:$12 sps:$4 sm:$0xff]   ;;  %v19103_v63 = vld [vmem:[#allocation5 + $0x488] ss:$12 sps:$4 sm:$0xff]  }
 0x29b   :  { %17238 = vmatpush3.bf16.msra.mxu1 %v19033_v28  ;;  %v19072_v28 = vld [vmem:[#allocation5 + $0x3f8] ss:$12 sps:$4 sm:$0xff]  }
 0x29c   :  { %12461 = vmatpush1.bf16.msra.mxu0 %v19029_v27  ;;  %17239 = vmatprep.subr.bf16.mxu1 %v19037_v31  ;;  %v19071_v27 = vld [vmem:[#allocation5 + $0x19b4] ss:$12 sps:$4 sm:$0xff]   ;;  %v19073_v31 = vld [vmem:[#allocation5 + $0x338] ss:$12 sps:$4 sm:$0xff]  }
 0x29d   :  { %12462 = vmatprep.subr.bf16.mxu0 %v19036_v30  ;;  %v19069_v30 = vld [vmem:[#allocation5 + $0x19b0] ss:$12 sps:$4 sm:$0xff]  }
 0x29f   :  { %17240 = vmatpush3.bf16.msra.mxu1 %v19038_v11  ;;  %v19077_v11 = vld [vmem:[#allocation5 + $0x410] ss:$12 sps:$4 sm:$0xff]  }
 0x2a0   :  { %12463 = vmatpush1.bf16.msra.mxu0 %v19034_v32  ;;  %17241 = vmatprep.subr.bf16.mxu1 %v19042_v38  ;;  %v19076_v32 = vld [vmem:[#allocation5 + $0x19cc] ss:$12 sps:$4 sm:$0xff]   ;;  %v19081_v38 = vld [vmem:[#allocation5 + $0x19e4] ss:$12 sps:$4 sm:$0xff]  }
 0x2a1   :  { %12464 = vmatprep.subr.bf16.mxu0 %v19041_v33  ;;  %v19078_v33 = vld [vmem:[#allocation5 + $0x350] ss:$12 sps:$4 sm:$0xff]  }
 0x2a3   :  { %17242 = vmatpush3.bf16.msra.mxu1 %v19043_v40  ;;  %v19079_v40 = vld [vmem:[#allocation5 + $0x19e0] ss:$12 sps:$4 sm:$0xff]  }
 0x2a4   :  { %12465 = vmatpush1.bf16.msra.mxu0 %v19039_v39  ;;  %17243 = vmatprep.subr.bf16.mxu1 %v19047_v49  ;;  %v19082_v39 = vld [vmem:[#allocation5 + $0x428] ss:$12 sps:$4 sm:$0xff]   ;;  %v19087_v49 = vld [vmem:[#allocation5 + $0x440] ss:$12 sps:$4 sm:$0xff]  }
 0x2a5   :  { %12466 = vmatprep.subr.bf16.mxu0 %v19046_v37  ;;  %v19086_v37 = vld [vmem:[#allocation5 + $0x19fc] ss:$12 sps:$4 sm:$0xff]  }
 0x2a7   :  { %17244 = vmatpush3.bf16.msra.mxu1 %v19048_v47  ;;  %v19088_v47 = vld [vmem:[#allocation5 + $0x380] ss:$12 sps:$4 sm:$0xff]  }
 0x2a8   :  { %12467 = vmatpush1.bf16.msra.mxu0 %v19044_v41  ;;  %17245 = vmatprep.subr.bf16.mxu1 %v19052_v52  ;;  %v19084_v41 = vld [vmem:[#allocation5 + $0x19f8] ss:$12 sps:$4 sm:$0xff]  }
 0x2a9   :  { %12468 = vmatprep.subr.bf16.mxu0 %v19051_v48  ;;  %v19091_v48 = vld [vmem:[#allocation5 + $0x1a14] ss:$12 sps:$4 sm:$0xff]   ;;  %v19092_v52 = vld [vmem:[#allocation5 + $0x458] ss:$12 sps:$4 sm:$0xff]  }
 0x2ab   :  { %17246 = vmatpush3.bf16.msra.mxu1 %v19053_v55  ;;  %v19093_v55 = vld [vmem:[#allocation5 + $0x398] ss:$12 sps:$4 sm:$0xff]  }
 0x2ac   :  { %12469 = vmatpush1.bf16.msra.mxu0 %v19049_v53  ;;  %17247 = vmatprep.subr.bf16.mxu1 %v19057_v57  ;;  %v19089_v53 = vld [vmem:[#allocation5 + $0x1a10] ss:$12 sps:$4 sm:$0xff]  }
 0x2ad   :  { %12470 = vmatprep.subr.bf16.mxu0 %v19056_v56  ;;  %v19096_v56 = vld [vmem:[#allocation5 + $0x1a2c] ss:$12 sps:$4 sm:$0xff]   ;;  %v19097_v57 = vld [vmem:[#allocation5 + $0x470] ss:$12 sps:$4 sm:$0xff]  }
 0x2af   :  { %17248 = vmatpush3.bf16.msra.mxu1 %v19058_v59  ;;  %v19098_v59 = vld [vmem:[#allocation5 + $0x3b0] ss:$12 sps:$4 sm:$0xff]  }
 0x2b0   :  { %12471 = vmatpush1.bf16.msra.mxu0 %v19054_v58  ;;  %17255 = vmatprep.subr.bf16.mxu1 %v19062_v62  ;;  %v19094_v58 = vld [vmem:[#allocation5 + $0x1a28] ss:$12 sps:$4 sm:$0xff]   ;;  %v19099_v62 = vld [vmem:[#allocation5 + $0x1a40] ss:$12 sps:$4 sm:$0xff]  }
 0x2b1   :  { %12481 = vmatprep.subr.bf16.mxu0 %v19061_v60  ;;  %v19101_v60 = vld [vmem:[#allocation5 + $0x1a44] ss:$12 sps:$4 sm:$0xff]  }
 0x2b2   :  { %13333 = vmatmul.mubr.bf16.vlgmr.msra.gmra.mrb[8].mxu1 %v20896_v23  ;;  %v19074_v23 = vld [vmem:[#allocation5 + $0x19c8] ss:$12 sps:$4 sm:$0xff]  }
 0x2b3   :  { %12473 = vmatmul.mubr.bf16.vlgmr.msra.gmra.mrb[0].mxu0 %v20980_v6  ;;  %17256 = vmatpush3.bf16.msra.mxu1 %v19063_v8  ;;  %v19107_v8 = vld [vmem:[#allocation5 + $0x560] ss:$12 sps:$4 sm:$0xff]  }
 0x2b4   :  { %12482 = vmatpush1.bf16.msra.mxu0 %v19059_v7  ;;  %17257 = vmatprep.subr.bf16.mxu1 %v19067_v18  ;;  %v19106_v7 = vld [vmem:[#allocation5 + $0x1a5c] ss:$12 sps:$4 sm:$0xff]   ;;  %v19108_v18 = vld [vmem:[#allocation5 + $0x4a0] ss:$12 sps:$4 sm:$0xff]  }
 0x2b5   :  { %12483 = vmatprep.subr.bf16.mxu0 %v19066_v13  ;;  %13372 = vmatprep.mubr.bf16.mxu1 %v20902_v29  ;;  %v19083_v29 = vld [vmem:[#allocation5 + $0x368] ss:$12 sps:$4 sm:$0xff]   ;;  %v19104_v13 = vld [vmem:[#allocation5 + $0x1a58] ss:$12 sps:$4 sm:$0xff]  }
 0x2b6   :  { %12513 = vmatprep.mubr.bf16.mxu0 %v20982_v21 }
 0x2b7   :  { %17258 = vmatpush3.bf16.msra.mxu1 %v19068_v26  ;;  %v19112_v26 = vld [vmem:[#allocation5 + $0x578] ss:$12 sps:$4 sm:$0xff]  }
 0x2b8   :  { %12484 = vmatpush1.bf16.msra.mxu0 %v19064_v20  ;;  %17259 = vmatprep.subr.bf16.mxu1 %v19072_v28  ;;  %v19111_v20 = vld [vmem:[#allocation5 + $0x1a74] ss:$12 sps:$4 sm:$0xff]   ;;  %v19113_v28 = vld [vmem:[#allocation5 + $0x4b8] ss:$12 sps:$4 sm:$0xff]  }
 0x2b9   :  { %12485 = vmatprep.subr.bf16.mxu0 %v19071_v27  ;;  %v19109_v27 = vld [vmem:[#allocation5 + $0x1a70] ss:$12 sps:$4 sm:$0xff]  }
 0x2bb   :  { %17260 = vmatpush3.bf16.msra.mxu1 %v19073_v31  ;;  %v19117_v31 = vld [vmem:[#allocation5 + $0x590] ss:$12 sps:$4 sm:$0xff]  }
 0x2bc   :  { %12486 = vmatpush1.bf16.msra.mxu0 %v19069_v30  ;;  %17261 = vmatprep.subr.bf16.mxu1 %v19077_v11  ;;  %v19116_v30 = vld [vmem:[#allocation5 + $0x1a8c] ss:$12 sps:$4 sm:$0xff]   ;;  %v19121_v11 = vld [vmem:[#allocation5 + $0x1aa4] ss:$12 sps:$4 sm:$0xff]  }
 0x2bd   :  { %12487 = vmatprep.subr.bf16.mxu0 %v19076_v32  ;;  %v19114_v32 = vld [vmem:[#allocation5 + $0x1a88] ss:$12 sps:$4 sm:$0xff]  }
 0x2bf   :  { %17262 = vmatpush3.bf16.msra.mxu1 %v19078_v33  ;;  %v19119_v33 = vld [vmem:[#allocation5 + $0x1aa0] ss:$12 sps:$4 sm:$0xff]  }
 0x2c0   :  { %12488 = vmatpush1.bf16.msra.mxu0 %v19074_v23  ;;  %17263 = vmatprep.subr.bf16.mxu1 %v19082_v39  ;;  %v19122_v23 = vld [vmem:[#allocation5 + $0x5a8] ss:$12 sps:$4 sm:$0xff]   ;;  %v19127_v39 = vld [vmem:[#allocation5 + $0x5c0] ss:$12 sps:$4 sm:$0xff]  }
 0x2c1   :  { %12489 = vmatprep.subr.bf16.mxu0 %v19081_v38  ;;  %v19123_v38 = vld [vmem:[#allocation5 + $0x4e8] ss:$12 sps:$4 sm:$0xff]  }
 0x2c3   :  { %17264 = vmatpush3.bf16.msra.mxu1 %v19083_v29  ;;  %v19128_v29 = vld [vmem:[#allocation5 + $0x500] ss:$12 sps:$4 sm:$0xff]  }
 0x2c4   :  { %12490 = vmatpush1.bf16.msra.mxu0 %v19079_v40  ;;  %17265 = vmatprep.subr.bf16.mxu1 %v19087_v49  ;;  %v19124_v40 = vld [vmem:[#allocation5 + $0x1ab8] ss:$12 sps:$4 sm:$0xff]  }
 0x2c5   :  { %12491 = vmatprep.subr.bf16.mxu0 %v19086_v37  ;;  %v19131_v37 = vld [vmem:[#allocation5 + $0x1ad4] ss:$12 sps:$4 sm:$0xff]   ;;  %v19132_v49 = vld [vmem:[#allocation5 + $0x5d8] ss:$12 sps:$4 sm:$0xff]  }
 0x2c7   :  { %17266 = vmatpush3.bf16.msra.mxu1 %v19088_v47  ;;  %v19133_v47 = vld [vmem:[#allocation5 + $0x518] ss:$12 sps:$4 sm:$0xff]  }
 0x2c8   :  { %12492 = vmatpush1.bf16.msra.mxu0 %v19084_v41  ;;  %17267 = vmatprep.subr.bf16.mxu1 %v19092_v52  ;;  %v19129_v41 = vld [vmem:[#allocation5 + $0x1ad0] ss:$12 sps:$4 sm:$0xff]  }
 0x2c9   :  { %12493 = vmatprep.subr.bf16.mxu0 %v19091_v48  ;;  %v19136_v48 = vld [vmem:[#allocation5 + $0x1aec] ss:$12 sps:$4 sm:$0xff]   ;;  %v19137_v52 = vld [vmem:[#allocation5 + $0x5f0] ss:$12 sps:$4 sm:$0xff]  }
 0x2cb   :  { %17268 = vmatpush3.bf16.msra.mxu1 %v19093_v55  ;;  %v19138_v55 = vld [vmem:[#allocation5 + $0x530] ss:$12 sps:$4 sm:$0xff]  }
 0x2cc   :  { %12494 = vmatpush1.bf16.msra.mxu0 %v19089_v53  ;;  %17269 = vmatprep.subr.bf16.mxu1 %v19097_v57  ;;  %v19134_v53 = vld [vmem:[#allocation5 + $0x1ae8] ss:$12 sps:$4 sm:$0xff]  }
 0x2cd   :  { %12495 = vmatprep.subr.bf16.mxu0 %v19096_v56  ;;  %v19141_v56 = vld [vmem:[#allocation5 + $0x1b04] ss:$12 sps:$4 sm:$0xff]  }
 0x2ce   :  { %v137_v57 = vld [vmem:[#allocation3 + $0x110] sm:$0xff] }
 0x2cf   :  { %17270 = vmatpush3.bf16.msra.mxu1 %v19098_v59  ;;  %v140_v59 = vld [vmem:[#allocation3 + $0x128] sm:$0xff] }
 0x2d0   :  { %12496 = vmatpush1.bf16.msra.mxu0 %v19094_v58  ;;  %17277 = vmatprep.subr.bf16.mxu1 %v19102_v61  ;;  %v19142_v58 = vld [vmem:[#allocation5 + $0x6c8] ss:$12 sps:$4 sm:$0xff]   ;;  %v19139_v61 = vld [vmem:[#allocation5 + $0x1b00] ss:$12 sps:$4 sm:$0xff]  }
 0x2d1   :  { %12497 = vmatprep.subr.bf16.mxu0 %v19101_v60  ;;  %v20990_v60 = vpack.c.bf16 %v137_v57, %v137_v57  ;;  %v19183_v57 = vld [vmem:[#allocation5 + $0x788] ss:$12 sps:$4 sm:$0xff]  }
 0x2d2   :  { %13373 = vmatmul.mubr.bf16.vlgmr.msra.gmra.mrb[12].mxu1 %v20908_v43  ;;  %v19118_v43 = vld [vmem:[#allocation5 + $0x4d0] ss:$12 sps:$4 sm:$0xff]  }
 0x2d3   :  { %17278 = vmatpush3.bf16.msra.mxu1 %v19103_v63  ;;  %13412 = vmatprep.mubr.bf16.mxu1 %v20912_v50  ;;  %v19126_v50 = vld [vmem:[#allocation5 + $0x1abc] ss:$12 sps:$4 sm:$0xff]  }
 0x2d4   :  { %12498 = vmatpush1.bf16.msra.mxu0 %v19099_v62  ;;  %17279 = vmatprep.subr.bf16.mxu1 %v19107_v8  ;;  %v19143_v62 = vld [vmem:[#allocation5 + $0x608] ss:$12 sps:$4 sm:$0xff]   ;;  %v19144_v8 = vld [vmem:[#allocation5 + $0x1b18] ss:$12 sps:$4 sm:$0xff]  }
 0x2d5   :  { %12499 = vmatprep.subr.bf16.mxu0 %v19106_v7  ;;  %v19146_v63 = vld [vmem:[#allocation5 + $0x1b1c] ss:$12 sps:$4 sm:$0xff]   ;;  %v19147_v7 = vld [vmem:[#allocation5 + $0x6e0] ss:$12 sps:$4 sm:$0xff]  }
 0x2d7   :  { %17280 = vmatpush3.bf16.msra.mxu1 %v19108_v18  ;;  %v19148_v18 = vld [vmem:[#allocation5 + $0x620] ss:$12 sps:$4 sm:$0xff]  }
 0x2d8   :  { %12500 = vmatpush1.bf16.msra.mxu0 %v19104_v13  ;;  %17281 = vmatprep.subr.bf16.mxu1 %v19112_v26  ;;  %v20992_v13 = vpack.c.bf16 %v140_v59, %v140_v59  ;;  %v19152_v26 = vld [vmem:[#allocation5 + $0x6f8] ss:$12 sps:$4 sm:$0xff]   ;;  %v19187_v59 = vld [vmem:[#allocation5 + $0x860] ss:$12 sps:$4 sm:$0xff]  }
 0x2d9   :  { %12501 = vmatprep.subr.bf16.mxu0 %v19111_v20  ;;  %v19151_v20 = vld [vmem:[#allocation5 + $0x1b34] ss:$12 sps:$4 sm:$0xff]  }
 0x2db   :  { %17282 = vmatpush3.bf16.msra.mxu1 %v19113_v28  ;;  %v19153_v28 = vld [vmem:[#allocation5 + $0x638] ss:$12 sps:$4 sm:$0xff]  }
 0x2dc   :  { %12502 = vmatpush1.bf16.msra.mxu0 %v19109_v27  ;;  %17283 = vmatprep.subr.bf16.mxu1 %v19117_v31  ;;  %v19149_v27 = vld [vmem:[#allocation5 + $0x1b30] ss:$12 sps:$4 sm:$0xff]  }
 0x2dd   :  { %12503 = vmatprep.subr.bf16.mxu0 %v19116_v30  ;;  %v19156_v30 = vld [vmem:[#allocation5 + $0x1b4c] ss:$12 sps:$4 sm:$0xff]   ;;  %v19157_v31 = vld [vmem:[#allocation5 + $0x710] ss:$12 sps:$4 sm:$0xff]  }
 0x2df   :  { %17284 = vmatpush3.bf16.msra.mxu1 %v19118_v43  ;;  %v19161_v43 = vld [vmem:[#allocation5 + $0x1b64] ss:$12 sps:$4 sm:$0xff]  }
 0x2e0   :  { %12504 = vmatpush1.bf16.msra.mxu0 %v19114_v32  ;;  %17285 = vmatprep.subr.bf16.mxu1 %v19122_v23  ;;  %v19158_v32 = vld [vmem:[#allocation5 + $0x650] ss:$12 sps:$4 sm:$0xff]   ;;  %v19159_v23 = vld [vmem:[#allocation5 + $0x1b60] ss:$12 sps:$4 sm:$0xff]  }
 0x2e1   :  { %12505 = vmatprep.subr.bf16.mxu0 %v19121_v11  ;;  %v19162_v11 = vld [vmem:[#allocation5 + $0x728] ss:$12 sps:$4 sm:$0xff]  }
 0x2e3   :  { %17286 = vmatpush3.bf16.msra.mxu1 %v19123_v38  ;;  %v19167_v38 = vld [vmem:[#allocation5 + $0x740] ss:$12 sps:$4 sm:$0xff]  }
 0x2e4   :  { %12506 = vmatpush1.bf16.msra.mxu0 %v19119_v33  ;;  %17287 = vmatprep.subr.bf16.mxu1 %v19127_v39  ;;  %v19166_v33 = vld [vmem:[#allocation5 + $0x1b7c] ss:$12 sps:$4 sm:$0xff]   ;;  %v19168_v39 = vld [vmem:[#allocation5 + $0x680] ss:$12 sps:$4 sm:$0xff]  }
 0x2e5   :  { %12507 = vmatprep.subr.bf16.mxu0 %v19126_v50  ;;  %v19164_v50 = vld [vmem:[#allocation5 + $0x1b78] ss:$12 sps:$4 sm:$0xff]  }
 0x2e7   :  { %17288 = vmatpush3.bf16.msra.mxu1 %v19128_v29  ;;  %v19172_v29 = vld [vmem:[#allocation5 + $0x758] ss:$12 sps:$4 sm:$0xff]  }
 0x2e8   :  { %12508 = vmatpush1.bf16.msra.mxu0 %v19124_v40  ;;  %17289 = vmatprep.subr.bf16.mxu1 %v19132_v49  ;;  %v19171_v40 = vld [vmem:[#allocation5 + $0x1b94] ss:$12 sps:$4 sm:$0xff]   ;;  %v19173_v49 = vld [vmem:[#allocation5 + $0x698] ss:$12 sps:$4 sm:$0xff]  }
 0x2e9   :  { %12509 = vmatprep.subr.bf16.mxu0 %v19131_v37  ;;  %v19169_v37 = vld [vmem:[#allocation5 + $0x1b90] ss:$12 sps:$4 sm:$0xff]  }
 0x2eb   :  { %17290 = vmatpush3.bf16.msra.mxu1 %v19133_v47  ;;  %v19177_v47 = vld [vmem:[#allocation5 + $0x770] ss:$12 sps:$4 sm:$0xff]  }
 0x2ec   :  { %12510 = vmatpush1.bf16.msra.mxu0 %v19129_v41  ;;  %17291 = vmatprep.subr.bf16.mxu1 %v19137_v52  ;;  %v19176_v41 = vld [vmem:[#allocation5 + $0x1bac] ss:$12 sps:$4 sm:$0xff]   ;;  %v19178_v52 = vld [vmem:[#allocation5 + $0x6b0] ss:$12 sps:$4 sm:$0xff]  }
 0x2ed   :  { %12511 = vmatprep.subr.bf16.mxu0 %v19136_v48  ;;  %v19174_v48 = vld [vmem:[#allocation5 + $0x1ba8] ss:$12 sps:$4 sm:$0xff]  }
 0x2ef   :  { %17292 = vmatpush3.bf16.msra.mxu1 %v19138_v55  ;;  %v19182_v55 = vld [vmem:[#allocation5 + $0x848] ss:$12 sps:$4 sm:$0xff]  }
 0x2f0   :  { %12512 = vmatpush1.bf16.msra.mxu0 %v19134_v53  ;;  %17299 = vmatprep.subr.bf16.mxu1 %v19142_v58  ;;  %v19181_v53 = vld [vmem:[#allocation5 + $0x1bc4] ss:$12 sps:$4 sm:$0xff]   ;;  %v19186_v58 = vld [vmem:[#allocation5 + $0x1bdc] ss:$12 sps:$4 sm:$0xff]  }
 0x2f1   :  { %12522 = vmatprep.subr.bf16.mxu0 %v19141_v56  ;;  %v19179_v56 = vld [vmem:[#allocation5 + $0x1bc0] ss:$12 sps:$4 sm:$0xff]  }
 0x2f2   :  { %13413 = vmatmul.mubr.bf16.vlgmr.msra.gmra.mrb[16].mxu1 %v20920_v3  ;;  %v19154_v3 = vld [vmem:[#allocation5 + $0x1b48] ss:$12 sps:$4 sm:$0xff]  }
 0x2f3   :  { %12514 = vmatmul.mubr.bf16.vlgmr.msra.gmra.mrb[0].mxu0 %v20990_v60  ;;  %17300 = vmatpush3.bf16.msra.mxu1 %v19143_v62  ;;  %v19188_v62 = vld [vmem:[#allocation5 + $0x7a0] ss:$12 sps:$4 sm:$0xff]  }
 0x2f4   :  { %12523 = vmatpush1.bf16.msra.mxu0 %v19139_v61  ;;  %17301 = vmatprep.subr.bf16.mxu1 %v19147_v7  ;;  %v19184_v61 = vld [vmem:[#allocation5 + $0x1bd8] ss:$12 sps:$4 sm:$0xff]  }
 0x2f5   :  { %12524 = vmatprep.subr.bf16.mxu0 %v19146_v63  ;;  %13452 = vmatprep.mubr.bf16.mxu1 %v20924_v9  ;;  %v19163_v9 = vld [vmem:[#allocation5 + $0x668] ss:$12 sps:$4 sm:$0xff]   ;;  %v19192_v7 = vld [vmem:[#allocation5 + $0x878] ss:$12 sps:$4 sm:$0xff]  }
 0x2f6   :  { %12554 = vmatprep.mubr.bf16.mxu0 %v20992_v13  ;;  %v19191_v63 = vld [vmem:[#allocation5 + $0x1bf4] ss:$12 sps:$4 sm:$0xff]  }
 0x2f7   :  { %17302 = vmatpush3.bf16.msra.mxu1 %v19148_v18  ;;  %v19193_v18 = vld [vmem:[#allocation5 + $0x7b8] ss:$12 sps:$4 sm:$0xff]  }
 0x2f8   :  { %12525 = vmatpush1.bf16.msra.mxu0 %v19144_v8  ;;  %17303 = vmatprep.subr.bf16.mxu1 %v19152_v26  ;;  %v19189_v8 = vld [vmem:[#allocation5 + $0x1bf0] ss:$12 sps:$4 sm:$0xff]  }
 0x2f9   :  { %12526 = vmatprep.subr.bf16.mxu0 %v19151_v20  ;;  %v19196_v20 = vld [vmem:[#allocation5 + $0x1c0c] ss:$12 sps:$4 sm:$0xff]   ;;  %v19197_v26 = vld [vmem:[#allocation5 + $0x890] ss:$12 sps:$4 sm:$0xff]  }
 0x2fb   :  { %17304 = vmatpush3.bf16.msra.mxu1 %v19153_v28  ;;  %v19201_v28 = vld [vmem:[#allocation5 + $0x1c24] ss:$12 sps:$4 sm:$0xff]  }
 0x2fc   :  { %12527 = vmatpush1.bf16.msra.mxu0 %v19149_v27  ;;  %17305 = vmatprep.subr.bf16.mxu1 %v19157_v31  ;;  %v19194_v27 = vld [vmem:[#allocation5 + $0x1c08] ss:$12 sps:$4 sm:$0xff]   ;;  %v19199_v31 = vld [vmem:[#allocation5 + $0x1c20] ss:$12 sps:$4 sm:$0xff]  }
 0x2fd   :  { %12528 = vmatprep.subr.bf16.mxu0 %v19156_v30  ;;  %v19202_v30 = vld [vmem:[#allocation5 + $0x8a8] ss:$12 sps:$4 sm:$0xff]  }
 0x2ff   :  { %17306 = vmatpush3.bf16.msra.mxu1 %v19158_v32  ;;  %v19207_v32 = vld [vmem:[#allocation5 + $0x8c0] ss:$12 sps:$4 sm:$0xff]  }
 0x300   :  { %12529 = vmatpush1.bf16.msra.mxu0 %v19154_v3  ;;  %17307 = vmatprep.subr.bf16.mxu1 %v19162_v11  ;;  %v19203_v3 = vld [vmem:[#allocation5 + $0x7e8] ss:$12 sps:$4 sm:$0xff]   ;;  %v19208_v11 = vld [vmem:[#allocation5 + $0x800] ss:$12 sps:$4 sm:$0xff]  }
 0x301   :  { %12530 = vmatprep.subr.bf16.mxu0 %v19161_v43  ;;  %v19204_v43 = vld [vmem:[#allocation5 + $0x1c38] ss:$12 sps:$4 sm:$0xff]  }
 0x303   :  { %17308 = vmatpush3.bf16.msra.mxu1 %v19163_v9  ;;  %v19212_v9 = vld [vmem:[#allocation5 + $0x8d8] ss:$12 sps:$4 sm:$0xff]  }
 0x304   :  { %12531 = vmatpush1.bf16.msra.mxu0 %v19159_v23  ;;  %17309 = vmatprep.subr.bf16.mxu1 %v19167_v38  ;;  %v19211_v23 = vld [vmem:[#allocation5 + $0x1c54] ss:$12 sps:$4 sm:$0xff]   ;;  %v19213_v38 = vld [vmem:[#allocation5 + $0x818] ss:$12 sps:$4 sm:$0xff]  }
 0x305   :  { %12532 = vmatprep.subr.bf16.mxu0 %v19166_v33  ;;  %v19209_v33 = vld [vmem:[#allocation5 + $0x1c50] ss:$12 sps:$4 sm:$0xff]  }
 0x307   :  { %17310 = vmatpush3.bf16.msra.mxu1 %v19168_v39  ;;  %v19217_v39 = vld [vmem:[#allocation5 + $0x8f0] ss:$12 sps:$4 sm:$0xff]  }
 0x308   :  { %12533 = vmatpush1.bf16.msra.mxu0 %v19164_v50  ;;  %17311 = vmatprep.subr.bf16.mxu1 %v19172_v29  ;;  %v19216_v50 = vld [vmem:[#allocation5 + $0x1c6c] ss:$12 sps:$4 sm:$0xff]   ;;  %v19218_v29 = vld [vmem:[#allocation5 + $0x830] ss:$12 sps:$4 sm:$0xff]  }
 0x309   :  { %12534 = vmatprep.subr.bf16.mxu0 %v19171_v40  ;;  %v19214_v40 = vld [vmem:[#allocation5 + $0x1c68] ss:$12 sps:$4 sm:$0xff]  }
 0x30b   :  { %17312 = vmatpush3.bf16.msra.mxu1 %v19173_v49  ;;  %v139_v49 = vld [vmem:[#allocation3 + $0x120] sm:$0xff] }
 0x30c   :  { %12535 = vmatpush1.bf16.msra.mxu0 %v19169_v37  ;;  %17313 = vmatprep.subr.bf16.mxu1 %v19177_v47  ;;  %v19221_v37 = vld [vmem:[#allocation5 + $0x1c84] ss:$12 sps:$4 sm:$0xff]   ;;  %v142_v47 = vld [vmem:[#allocation3 + $0x138] sm:$0xff] }
 0x30d   :  { %12536 = vmatprep.subr.bf16.mxu0 %v19176_v41  ;;  %v19222_v41 = vld [vmem:[#allocation5 + $0x9c8] ss:$12 sps:$4 sm:$0xff]  }
 0x30f   :  { %17314 = vmatpush3.bf16.msra.mxu1 %v19178_v52  ;;  %v19219_v52 = vld [vmem:[#allocation5 + $0x1c80] ss:$12 sps:$4 sm:$0xff]  }
 0x310   :  { %12537 = vmatpush1.bf16.msra.mxu0 %v19174_v48  ;;  %17321 = vmatprep.subr.bf16.mxu1 %v19182_v55  ;;  %v21000_v48 = vpack.c.bf16 %v139_v49, %v139_v49  ;;  %v19226_v55 = vld [vmem:[#allocation5 + $0x1c9c] ss:$12 sps:$4 sm:$0xff]  }
 0x311   :  { %12538 = vmatprep.subr.bf16.mxu0 %v19181_v53  ;;  %v19223_v53 = vld [vmem:[#allocation5 + $0x908] ss:$12 sps:$4 sm:$0xff]  }
 0x312   :  { %13453 = vmatmul.mubr.bf16.vlgmr.msra.gmra.mrb[20].mxu1 %v20932_v35  ;;  %v19198_v35 = vld [vmem:[#allocation5 + $0x7d0] ss:$12 sps:$4 sm:$0xff]   ;;  %v19262_v49 = vld [vmem:[#allocation5 + $0xb48] ss:$12 sps:$4 sm:$0xff]  }
 0x313   :  { %17322 = vmatpush3.bf16.msra.mxu1 %v19183_v57  ;;  %13492 = vmatprep.mubr.bf16.mxu1 %v20936_v45  ;;  %v19206_v45 = vld [vmem:[#allocation5 + $0x1c3c] ss:$12 sps:$4 sm:$0xff]   ;;  %v19224_v57 = vld [vmem:[#allocation5 + $0x1c98] ss:$12 sps:$4 sm:$0xff]  }
 0x314   :  { %12539 = vmatpush1.bf16.msra.mxu0 %v19179_v56  ;;  %17323 = vmatprep.subr.bf16.mxu1 %v19187_v59  ;;  %v19227_v56 = vld [vmem:[#allocation5 + $0x9e0] ss:$12 sps:$4 sm:$0xff]  }
 0x315   :  { %12540 = vmatprep.subr.bf16.mxu0 %v19186_v58  ;;  %v21002_v58 = vpack.c.bf16 %v142_v47, %v142_v47  ;;  %v19228_v59 = vld [vmem:[#allocation5 + $0x920] ss:$12 sps:$4 sm:$0xff]   ;;  %v19263_v47 = vld [vmem:[#allocation5 + $0xa88] ss:$12 sps:$4 sm:$0xff]  }
 0x317   :  { %17324 = vmatpush3.bf16.msra.mxu1 %v19188_v62  ;;  %v19232_v62 = vld [vmem:[#allocation5 + $0x9f8] ss:$12 sps:$4 sm:$0xff]  }
 0x318   :  { %12541 = vmatpush1.bf16.msra.mxu0 %v19184_v61  ;;  %17325 = vmatprep.subr.bf16.mxu1 %v19192_v7  ;;  %v19231_v61 = vld [vmem:[#allocation5 + $0x1cb4] ss:$12 sps:$4 sm:$0xff]   ;;  %v19233_v7 = vld [vmem:[#allocation5 + $0x938] ss:$12 sps:$4 sm:$0xff]  }
 0x319   :  { %12542 = vmatprep.subr.bf16.mxu0 %v19191_v63  ;;  %v19229_v63 = vld [vmem:[#allocation5 + $0x1cb0] ss:$12 sps:$4 sm:$0xff]  }
 0x31b   :  { %17326 = vmatpush3.bf16.msra.mxu1 %v19193_v18  ;;  %v19237_v18 = vld [vmem:[#allocation5 + $0xa10] ss:$12 sps:$4 sm:$0xff]  }
 0x31c   :  { %12543 = vmatpush1.bf16.msra.mxu0 %v19189_v8  ;;  %17327 = vmatprep.subr.bf16.mxu1 %v19197_v26  ;;  %v19236_v8 = vld [vmem:[#allocation5 + $0x1ccc] ss:$12 sps:$4 sm:$0xff]   ;;  %v19241_v26 = vld [vmem:[#allocation5 + $0x1ce4] ss:$12 sps:$4 sm:$0xff]  }
 0x31d   :  { %12544 = vmatprep.subr.bf16.mxu0 %v19196_v20  ;;  %v19238_v20 = vld [vmem:[#allocation5 + $0x950] ss:$12 sps:$4 sm:$0xff]  }
 0x31f   :  { %17328 = vmatpush3.bf16.msra.mxu1 %v19198_v35  ;;  %v19239_v35 = vld [vmem:[#allocation5 + $0x1ce0] ss:$12 sps:$4 sm:$0xff]  }
 0x320   :  { %12545 = vmatpush1.bf16.msra.mxu0 %v19194_v27  ;;  %17329 = vmatprep.subr.bf16.mxu1 %v19202_v30  ;;  %v19242_v27 = vld [vmem:[#allocation5 + $0xa28] ss:$12 sps:$4 sm:$0xff]   ;;  %v19247_v30 = vld [vmem:[#allocation5 + $0xa40] ss:$12 sps:$4 sm:$0xff]  }
 0x321   :  { %12546 = vmatprep.subr.bf16.mxu0 %v19201_v28  ;;  %v19246_v28 = vld [vmem:[#allocation5 + $0x1cfc] ss:$12 sps:$4 sm:$0xff]  }
 0x323   :  { %17330 = vmatpush3.bf16.msra.mxu1 %v19203_v3  ;;  %v19248_v3 = vld [vmem:[#allocation5 + $0x980] ss:$12 sps:$4 sm:$0xff]  }
 0x324   :  { %12547 = vmatpush1.bf16.msra.mxu0 %v19199_v31  ;;  %17331 = vmatprep.subr.bf16.mxu1 %v19207_v32  ;;  %v19244_v31 = vld [vmem:[#allocation5 + $0x1cf8] ss:$12 sps:$4 sm:$0xff]  }
 0x325   :  { %12548 = vmatprep.subr.bf16.mxu0 %v19206_v45  ;;  %v19251_v45 = vld [vmem:[#allocation5 + $0x1d14] ss:$12 sps:$4 sm:$0xff]   ;;  %v19252_v32 = vld [vmem:[#allocation5 + $0xa58] ss:$12 sps:$4 sm:$0xff]  }
 0x327   :  { %17332 = vmatpush3.bf16.msra.mxu1 %v19208_v11  ;;  %v19249_v11 = vld [vmem:[#allocation5 + $0x1d10] ss:$12 sps:$4 sm:$0xff]  }
 0x328   :  { %12549 = vmatpush1.bf16.msra.mxu0 %v19204_v43  ;;  %17333 = vmatprep.subr.bf16.mxu1 %v19212_v9 }
 0x329   :  { %12550 = vmatprep.subr.bf16.mxu0 %v19211_v23 }
 0x32b   :  { %17334 = vmatpush3.bf16.msra.mxu1 %v19213_v38  ;;  %v19256_v38 = vld [vmem:[#allocation5 + $0x1d2c] ss:$12 sps:$4 sm:$0xff]  }
 0x32c   :  { %12551 = vmatpush1.bf16.msra.mxu0 %v19209_v33  ;;  %17335 = vmatprep.subr.bf16.mxu1 %v19217_v39  ;;  %v19253_v33 = vld [vmem:[#allocation5 + $0x998] ss:$12 sps:$4 sm:$0xff]   ;;  %v19257_v39 = vld [vmem:[#allocation5 + $0xa70] ss:$12 sps:$4 sm:$0xff]  }
 0x32d   :  { %12552 = vmatprep.subr.bf16.mxu0 %v19216_v50 }
 0x32f   :  { %17336 = vmatpush3.bf16.msra.mxu1 %v19218_v29  ;;  %v19258_v29 = vld [vmem:[#allocation5 + $0x9b0] ss:$12 sps:$4 sm:$0xff]  }
 0x330   :  { %12553 = vmatpush1.bf16.msra.mxu0 %v19214_v40  ;;  %17343 = vmatprep.subr.bf16.mxu1 %v19222_v41  ;;  %v19254_v40 = vld [vmem:[#allocation5 + $0x1d28] ss:$12 sps:$4 sm:$0xff]   ;;  %v19259_v41 = vld [vmem:[#allocation5 + $0x1d40] ss:$12 sps:$4 sm:$0xff]  }
 0x331   :  { %12563 = vmatprep.subr.bf16.mxu0 %v19221_v37  ;;  %v19261_v37 = vld [vmem:[#allocation5 + $0x1d44] ss:$12 sps:$4 sm:$0xff]  }
 0x332   :  { %13493 = vmatmul.mubr.bf16.vlgmr.msra.gmra.mrb[24].mxu1 %v20944_v14  ;;  %v19234_v14 = vld [vmem:[#allocation5 + $0x1cc8] ss:$12 sps:$4 sm:$0xff]  }
 0x333   :  { %12555 = vmatmul.mubr.bf16.vlgmr.msra.gmra.mrb[0].mxu0 %v21000_v48  ;;  %17344 = vmatpush3.bf16.msra.mxu1 %v19223_v53  ;;  %v19267_v53 = vld [vmem:[#allocation5 + $0xb60] ss:$12 sps:$4 sm:$0xff]  }
 0x334   :  { %12564 = vmatpush1.bf16.msra.mxu0 %v19219_v52  ;;  %17345 = vmatprep.subr.bf16.mxu1 %v19227_v56  ;;  %v19266_v52 = vld [vmem:[#allocation5 + $0x1d5c] ss:$12 sps:$4 sm:$0xff]   ;;  %v19268_v56 = vld [vmem:[#allocation5 + $0xaa0] ss:$12 sps:$4 sm:$0xff]  }
 0x335   :  { %12565 = vmatprep.subr.bf16.mxu0 %v19226_v55  ;;  %13532 = vmatprep.mubr.bf16.mxu1 %v20948_v22  ;;  %v19243_v22 = vld [vmem:[#allocation5 + $0x968] ss:$12 sps:$4 sm:$0xff]   ;;  %v19264_v55 = vld [vmem:[#allocation5 + $0x1d58] ss:$12 sps:$4 sm:$0xff]  }
 0x336   :  { %12595 = vmatprep.mubr.bf16.mxu0 %v21002_v58 }
 0x337   :  { %17346 = vmatpush3.bf16.msra.mxu1 %v19228_v59  ;;  %v19272_v59 = vld [vmem:[#allocation5 + $0xb78] ss:$12 sps:$4 sm:$0xff]  }
 0x338   :  { %12566 = vmatpush1.bf16.msra.mxu0 %v19224_v57  ;;  %17347 = vmatprep.subr.bf16.mxu1 %v19232_v62  ;;  %v19271_v57 = vld [vmem:[#allocation5 + $0x1d74] ss:$12 sps:$4 sm:$0xff]   ;;  %v19273_v62 = vld [vmem:[#allocation5 + $0xab8] ss:$12 sps:$4 sm:$0xff]  }
 0x339   :  { %12567 = vmatprep.subr.bf16.mxu0 %v19231_v61  ;;  %v19269_v61 = vld [vmem:[#allocation5 + $0x1d70] ss:$12 sps:$4 sm:$0xff]  }
 0x33b   :  { %17348 = vmatpush3.bf16.msra.mxu1 %v19233_v7  ;;  %v19277_v7 = vld [vmem:[#allocation5 + $0xb90] ss:$12 sps:$4 sm:$0xff]  }
 0x33c   :  { %12568 = vmatpush1.bf16.msra.mxu0 %v19229_v63  ;;  %17349 = vmatprep.subr.bf16.mxu1 %v19237_v18  ;;  %v19276_v63 = vld [vmem:[#allocation5 + $0x1d8c] ss:$12 sps:$4 sm:$0xff]   ;;  %v19281_v18 = vld [vmem:[#allocation5 + $0x1da4] ss:$12 sps:$4 sm:$0xff]  }
 0x33d   :  { %12569 = vmatprep.subr.bf16.mxu0 %v19236_v8  ;;  %v19274_v8 = vld [vmem:[#allocation5 + $0x1d88] ss:$12 sps:$4 sm:$0xff]  }
 0x33f   :  { %17350 = vmatpush3.bf16.msra.mxu1 %v19238_v20  ;;  %v19279_v20 = vld [vmem:[#allocation5 + $0x1da0] ss:$12 sps:$4 sm:$0xff]  }
 0x340   :  { %12570 = vmatpush1.bf16.msra.mxu0 %v19234_v14  ;;  %17351 = vmatprep.subr.bf16.mxu1 %v19242_v27  ;;  %v19282_v14 = vld [vmem:[#allocation5 + $0xba8] ss:$12 sps:$4 sm:$0xff]   ;;  %v19287_v27 = vld [vmem:[#allocation5 + $0xbc0] ss:$12 sps:$4 sm:$0xff]  }
 0x341   :  { %12571 = vmatprep.subr.bf16.mxu0 %v19241_v26  ;;  %v19283_v26 = vld [vmem:[#allocation5 + $0xae8] ss:$12 sps:$4 sm:$0xff]  }
 0x343   :  { %17352 = vmatpush3.bf16.msra.mxu1 %v19243_v22  ;;  %v19288_v22 = vld [vmem:[#allocation5 + $0xb00] ss:$12 sps:$4 sm:$0xff]  }
 0x344   :  { %12572 = vmatpush1.bf16.msra.mxu0 %v19239_v35  ;;  %17353 = vmatprep.subr.bf16.mxu1 %v19247_v30  ;;  %v19284_v35 = vld [vmem:[#allocation5 + $0x1db8] ss:$12 sps:$4 sm:$0xff]  }
 0x345   :  { %12573 = vmatprep.subr.bf16.mxu0 %v19246_v28  ;;  %v21008_v43 = vpop.f32.mrb[0].mxu1  ;;  %v19291_v28 = vld [vmem:[#allocation5 + $0x1dd4] ss:$12 sps:$4 sm:$0xff]   ;;  %v19292_v30 = vld [vmem:[#allocation5 + $0xbd8] ss:$12 sps:$4 sm:$0xff]  }
 0x346   :  { %v21010_v23 = vpop.f32.mrb[1].mxu1 }
 0x347   :  { %v12109_v9 = vpop.f32.mrb[2].mxu1  ;;  %17354 = vmatpush3.bf16.msra.mxu1 %v19248_v3  ;;  %v19293_v3 = vld [vmem:[#allocation5 + $0xb18] ss:$12 sps:$4 sm:$0xff]  }
 0x348   :  { %12574 = vmatpush1.bf16.msra.mxu0 %v19244_v31  ;;  %v12110_v50 = vpop.f32.mrb[3].mxu1  ;;  %17355 = vmatprep.subr.bf16.mxu1 %v19252_v32  ;;  %v19289_v31 = vld [vmem:[#allocation5 + $0x1dd0] ss:$12 sps:$4 sm:$0xff]  }
 0x349   :  { %12575 = vmatprep.subr.bf16.mxu0 %v19251_v45  ;;  %v19296_v45 = vld [vmem:[#allocation5 + $0x1dec] ss:$12 sps:$4 sm:$0xff]   ;;  %v19297_v32 = vld [vmem:[#allocation5 + $0xbf0] ss:$12 sps:$4 sm:$0xff]   ;;  %v19302_v50 = vld [vmem:[#allocation5 + $0xcc8] ss:$12 sps:$4 sm:$0xff]  }
 0x34a   :  { %v19298_v9 = vld [vmem:[#allocation5 + $0xb30] ss:$12 sps:$4 sm:$0xff]  }
 0x34b   :  { %17356 = vmatpush3.bf16.msra.mxu1 %v19253_v33  ;;  %v19301_v33 = vld [vmem:[#allocation5 + $0x1e04] ss:$12 sps:$4 sm:$0xff]  }
 0x34c   :  { %12576 = vmatpush1.bf16.msra.mxu0 %v19249_v11  ;;  %17357 = vmatprep.subr.bf16.mxu1 %v19257_v39  ;;  %v19294_v11 = vld [vmem:[#allocation5 + $0x1de8] ss:$12 sps:$4 sm:$0xff]  }
 0x34d   :  { %12577 = vmatprep.subr.bf16.mxu0 %v19256_v38  ;;  %v141_v38 = vld [vmem:[#allocation3 + $0x130] sm:$0xff]  ;;  %v144_v39 = vld [vmem:[#allocation3 + $0x148] sm:$0xff] }
 0x34f   :  { %17358 = vmatpush3.bf16.msra.mxu1 %v19258_v29  ;;  %v19299_v29 = vld [vmem:[#allocation5 + $0x1e00] ss:$12 sps:$4 sm:$0xff]  }
 0x350   :  { %12578 = vmatpush1.bf16.msra.mxu0 %v19254_v40  ;;  %17365 = vmatprep.subr.bf16.mxu1 %v19262_v49  ;;  %v21014_v40 = vpack.c.bf16 %v141_v38, %v141_v38  ;;  %v19306_v49 = vld [vmem:[#allocation5 + $0x1e1c] ss:$12 sps:$4 sm:$0xff]  }
 0x351   :  { %12579 = vmatprep.subr.bf16.mxu0 %v19261_v37  ;;  %v19303_v37 = vld [vmem:[#allocation5 + $0xc08] ss:$12 sps:$4 sm:$0xff]  }
 0x352   :  { %13533 = vmatmul.mubr.bf16.vlgmr.msra.gmra.mrb[28].mxu1 %v20956_v1  ;;  %v19278_v1 = vld [vmem:[#allocation5 + $0xad0] ss:$12 sps:$4 sm:$0xff]  }
 0x353   :  { %17366 = vmatpush3.bf16.msra.mxu1 %v19263_v47  ;;  %13572 = vmatprep.mubr.bf16.mxu1 %v20960_v16  ;;  %v19286_v16 = vld [vmem:[#allocation5 + $0x1dbc] ss:$12 sps:$4 sm:$0xff]   ;;  %v19304_v47 = vld [vmem:[#allocation5 + $0x1e18] ss:$12 sps:$4 sm:$0xff]  }
 0x354   :  { %12580 = vmatpush1.bf16.msra.mxu0 %v19259_v41  ;;  %17367 = vmatprep.subr.bf16.mxu1 %v19267_v53  ;;  %v19307_v41 = vld [vmem:[#allocation5 + $0xce0] ss:$12 sps:$4 sm:$0xff]  }
 0x355   :  { %12581 = vmatprep.subr.bf16.mxu0 %v19266_v52  ;;  %v21016_v52 = vpack.c.bf16 %v144_v39, %v144_v39  ;;  %v19308_v53 = vld [vmem:[#allocation5 + $0xc20] ss:$12 sps:$4 sm:$0xff]  }
 0x357   :  { %17368 = vmatpush3.bf16.msra.mxu1 %v19268_v56  ;;  %v19312_v56 = vld [vmem:[#allocation5 + $0xcf8] ss:$12 sps:$4 sm:$0xff]  }
 0x358   :  { %12582 = vmatpush1.bf16.msra.mxu0 %v19264_v55  ;;  %17369 = vmatprep.subr.bf16.mxu1 %v19272_v59  ;;  %v19311_v55 = vld [vmem:[#allocation5 + $0x1e34] ss:$12 sps:$4 sm:$0xff]   ;;  %v2553_v59 = vlaneseq }
 0x359   :  { %12583 = vmatprep.subr.bf16.mxu0 %v19271_v57  ;;  %v19309_v57 = vld [vmem:[#allocation5 + $0x1e30] ss:$12 sps:$4 sm:$0xff]  }
 0x35b   :  { %17370 = vmatpush3.bf16.msra.mxu1 %v19273_v62  ;;  %v19316_v62 = vld [vmem:[#allocation5 + $0x1e4c] ss:$12 sps:$4 sm:$0xff]  }
 0x35c   :  { %12584 = vmatpush1.bf16.msra.mxu0 %v19269_v61  ;;  %17371 = vmatprep.subr.bf16.mxu1 %v19277_v7  ;;  %v19313_v61 = vld [vmem:[#allocation5 + $0xc38] ss:$12 sps:$4 sm:$0xff]   ;;  %v19314_v7 = vld [vmem:[#allocation5 + $0x1e48] ss:$12 sps:$4 sm:$0xff]  }
 0x35d   :  { %12585 = vmatprep.subr.bf16.mxu0 %v19276_v63 }
 0x35f   :  { %17372 = vmatpush3.bf16.msra.mxu1 %v19278_v1  ;;  %v19318_v1 = vld [vmem:[#allocation5 + $0xc50] ss:$12 sps:$4 sm:$0xff]  }
 0x360   :  { %12586 = vmatpush1.bf16.msra.mxu0 %v19274_v8  ;;  %17373 = vmatprep.subr.bf16.mxu1 %v19282_v14  ;;  %v21022_v8 = vshrl.u32 %v2553_v59, 7  ;;  %v19341_v59 = vld [vmem:[#allocation5 + $0x1ec4] ss:$12 sps:$4 sm:$0xff]  }
 0x361   :  { %12587 = vmatprep.subr.bf16.mxu0 %v19281_v18  ;;  %v19321_v18 = vld [vmem:[#allocation5 + $0x1e64] ss:$12 sps:$4 sm:$0xff]  }
 0x363   :  { %17374 = vmatpush3.bf16.msra.mxu1 %v19283_v26 }
 0x364   :  { %12588 = vmatpush1.bf16.msra.mxu0 %v19279_v20  ;;  %17375 = vmatprep.subr.bf16.mxu1 %v19287_v27  ;;  %v21025_v27 = vsub.s32 2, %v21022_v8 }
 0x365   :  { %12589 = vmatprep.subr.bf16.mxu0 %v19286_v16  ;;  %v17227_v63 = vpop.f32.mrb[4].mxu1  ;;  %v19319_v16 = vld [vmem:[#allocation5 + $0x1e60] ss:$12 sps:$4 sm:$0xff]  }
 0x366   :  { %v17228_v14 = vpop.f32.mrb[5].mxu1 }
 0x367   :  { %17376 = vmatpush3.bf16.msra.mxu1 %v19288_v22  ;;  %v17229_v20 = vadd.f32 %v17228_v14, %v17227_v63  ;;  %v17230_v26 = vpop.f32.mrb[6].mxu1  ;;  %v2551_v22 = vld [vmem:[#allocation7] sm:$0x7]  ;;  %v19346_v63 = vld [vmem:[#allocation5 + $0x1edc] ss:$12 sps:$4 sm:$0xff]  }
 0x368   :  { %12590 = vmatpush1.bf16.msra.mxu0 %v19284_v35  ;;  %17377 = vmatprep.subr.bf16.mxu1 %v19292_v30  ;;  %v17231_v35 = vpop.f32.mrb[7].mxu1  ;;  %v19326_v30 = vld [vmem:[#allocation5 + $0x1e7c] ss:$12 sps:$4 sm:$0xff]   ;;  %v19351_v14 = vld [vmem:[#allocation5 + $0x1ef4] ss:$12 sps:$4 sm:$0xff]  }
 0x369   :  { %12591 = vmatprep.subr.bf16.mxu0 %v19291_v28  ;;  %v19323_v28 = vld [vmem:[#allocation5 + $0xc68] ss:$12 sps:$4 sm:$0xff]   ;;  %v19353_v26 = vld [vmem:[#allocation5 + $0xdb8] ss:$12 sps:$4 sm:$0xff]   ;;  %v19357_v35 = vld [vmem:[#allocation5 + $0xe90] ss:$12 sps:$4 sm:$0xff]  }
 0x36b   :  { %17378 = vmatpush3.bf16.msra.mxu1 %v19293_v3  ;;  %v19324_v3 = vld [vmem:[#allocation5 + $0x1e78] ss:$12 sps:$4 sm:$0xff]  }
 0x36c   :  { %12592 = vmatpush1.bf16.msra.mxu0 %v19289_v31  ;;  %17379 = vmatprep.subr.bf16.mxu1 %v19297_v32  ;;  %v19327_v31 = vld [vmem:[#allocation5 + $0xd40] ss:$12 sps:$4 sm:$0xff]  }
 0x36d   :  { %12593 = vmatprep.subr.bf16.mxu0 %v19296_v45  ;;  %v2564_v45 = vrot.slane %v2551_v22, %v21025_v27  ;;  %v19328_v32 = vld [vmem:[#allocation5 + $0xc80] ss:$12 sps:$4 sm:$0xff]   ;;  %v19354_v22 = vld [vmem:[#allocation5 + $0x1f08] ss:$12 sps:$4 sm:$0xff]  }
 0x36f   :  { %17380 = vmatpush3.bf16.msra.mxu1 %v19298_v9  ;;  %v19332_v9 = vld [vmem:[#allocation5 + $0xd58] ss:$12 sps:$4 sm:$0xff]   ;;  %v13295_v38 = vadd.f32 %v17229_v20, %v2564_v45  ;;  %v19349_v20 = vld [vmem:[#allocation5 + $0x1ef0] ss:$12 sps:$4 sm:$0xff]   ;;  %v19367_v45 = vld [vmem:[#allocation5 + $0xec0] ss:$12 sps:$4 sm:$0xff]  }
 0x370   :  { %12594 = vmatpush1.bf16.msra.mxu0 %v19294_v11  ;;  %17387 = vmatprep.subr.bf16.mxu1 %v19302_v50  ;;  %v19331_v11 = vld [vmem:[#allocation5 + $0x1e94] ss:$12 sps:$4 sm:$0xff]  }
 0x371   :  { %12604 = vmatprep.subr.bf16.mxu0 %v19301_v33  ;;  %v19329_v33 = vld [vmem:[#allocation5 + $0x1e90] ss:$12 sps:$4 sm:$0xff]  }
 0x372   :  { %13573 = vmatmul.mubr.bf16.vlgmr.msra.gmra.mrb[32].mxu1 %v20968_v0  ;;  %v19317_v0 = vld [vmem:[#allocation5 + $0xd10] ss:$12 sps:$4 sm:$0xff]  }
 0x373   :  { %12596 = vmatmul.mubr.bf16.vlgmr.msra.gmra.mrb[0].mxu0 %v21014_v40  ;;  %17388 = vmatpush3.bf16.msra.mxu1 %v19303_v37  ;;  %v19336_v37 = vld [vmem:[#allocation5 + $0x1eac] ss:$12 sps:$4 sm:$0xff]  }
 0x374   :  { %12605 = vmatpush1.bf16.msra.mxu0 %v19299_v29  ;;  %17389 = vmatprep.subr.bf16.mxu1 %v19307_v41  ;;  %v19333_v29 = vld [vmem:[#allocation5 + $0xc98] ss:$12 sps:$4 sm:$0xff]  }
 0x375   :  { %12606 = vmatprep.subr.bf16.mxu0 %v19306_v49  ;;  %13612 = vmatprep.mubr.bf16.mxu1 %v20880_v54  ;;  %v19322_v54 = vld [vmem:[#allocation5 + $0xd28] ss:$12 sps:$4 sm:$0xff]  }
 0x376   :  { %12636 = vmatprep.mubr.bf16.mxu0 %v21016_v52 }
 0x377   :  { %17390 = vmatpush3.bf16.msra.mxu1 %v19308_v53 }
 0x378   :  { %12607 = vmatpush1.bf16.msra.mxu0 %v19304_v47  ;;  %17391 = vmatprep.subr.bf16.mxu1 %v19312_v56  ;;  %v19337_v47 = vld [vmem:[#allocation5 + $0xd70] ss:$12 sps:$4 sm:$0xff]  }
 0x379   :  { %12608 = vmatprep.subr.bf16.mxu0 %v19311_v55  ;;  %v19334_v55 = vld [vmem:[#allocation5 + $0x1ea8] ss:$12 sps:$4 sm:$0xff]  }
 0x37b   :  { %17392 = vmatpush3.bf16.msra.mxu1 %v19313_v61  ;;  %v19342_v61 = vld [vmem:[#allocation5 + $0xe48] ss:$12 sps:$4 sm:$0xff]  }
 0x37c   :  { %12609 = vmatpush1.bf16.msra.mxu0 %v19309_v57  ;;  %17393 = vmatprep.subr.bf16.mxu1 %v19317_v0  ;;  %v19338_v57 = vld [vmem:[#allocation5 + $0xcb0] ss:$12 sps:$4 sm:$0xff]   ;;  %v19343_v0 = vld [vmem:[#allocation5 + $0xd88] ss:$12 sps:$4 sm:$0xff]  }
 0x37d   :  { %12610 = vmatprep.subr.bf16.mxu0 %v19316_v62  ;;  %v19339_v62 = vld [vmem:[#allocation5 + $0x1ec0] ss:$12 sps:$4 sm:$0xff]  }
 0x37f   :  { %17394 = vmatpush3.bf16.msra.mxu1 %v19318_v1  ;;  %v19344_v1 = vld [vmem:[#allocation5 + $0x1ed8] ss:$12 sps:$4 sm:$0xff]  }
 0x380   :  { %12611 = vmatpush1.bf16.msra.mxu0 %v19314_v7  ;;  %17395 = vmatprep.subr.bf16.mxu1 %v19322_v54  ;;  %v19347_v7 = vld [vmem:[#allocation5 + $0xe60] ss:$12 sps:$4 sm:$0xff]   ;;  %v19352_v54 = vld [vmem:[#allocation5 + $0xe78] ss:$12 sps:$4 sm:$0xff]  }
 0x381   :  { %12612 = vmatprep.subr.bf16.mxu0 %v19321_v18  ;;  %v19348_v18 = vld [vmem:[#allocation5 + $0xda0] ss:$12 sps:$4 sm:$0xff]  }
 0x383   :  { %17396 = vmatpush3.bf16.msra.mxu1 %v19323_v28  ;;  %v19361_v28 = vld [vmem:[#allocation5 + $0x1f24] ss:$12 sps:$4 sm:$0xff]  }
 0x384   :  { %12613 = vmatpush1.bf16.msra.mxu0 %v19319_v16  ;;  %17397 = vmatprep.subr.bf16.mxu1 %v19327_v31  ;;  %v19356_v16 = vld [vmem:[#allocation5 + $0x1f0c] ss:$12 sps:$4 sm:$0xff]  }
 0x385   :  { %12614 = vmatprep.subr.bf16.mxu0 %v19326_v30  ;;  %v17249_v50 = vpop.f32.mrb[8].mxu1  ;;  %v19362_v30 = vld [vmem:[#allocation5 + $0xea8] ss:$12 sps:$4 sm:$0xff]   ;;  %v19359_v31 = vld [vmem:[#allocation5 + $0x1f20] ss:$12 sps:$4 sm:$0xff]  }
 0x386   :  { %v17250_v39 = vpop.f32.mrb[9].mxu1 }
 0x387   :  { %17398 = vmatpush3.bf16.msra.mxu1 %v19328_v32  ;;  %v17251_v49 = vadd.f32 %v17250_v39, %v17249_v50  ;;  %v17252_v41 = vpop.f32.mrb[10].mxu1  ;;  %v19364_v32 = vld [vmem:[#allocation5 + $0x1f38] ss:$12 sps:$4 sm:$0xff]  }
 0x388   :  { %12615 = vmatpush1.bf16.msra.mxu0 %v19324_v3  ;;  %17399 = vmatprep.subr.bf16.mxu1 %v19332_v9  ;;  %v17253_v53 = vpop.f32.mrb[11].mxu1  ;;  %v19363_v3 = vld [vmem:[#allocation5 + $0xde8] ss:$12 sps:$4 sm:$0xff]   ;;  %v19373_v50 = vld [vmem:[#allocation5 + $0xe18] ss:$12 sps:$4 sm:$0xff]  }
 0x389   :  { %12616 = vmatprep.subr.bf16.mxu0 %v19331_v11  ;;  %v21028_v56 = vadd.f32 %v17251_v49, %v13295_v38  ;;  %v19368_v11 = vld [vmem:[#allocation5 + $0xe00] ss:$12 sps:$4 sm:$0xff]   ;;  %v19369_v38 = vld [vmem:[#allocation5 + $0x1f50] ss:$12 sps:$4 sm:$0xff]  }
 0x38a   :  { %v19371_v9 = vld [vmem:[#allocation5 + $0x1f54] ss:$12 sps:$4 sm:$0xff]   ;;  %v19376_v41 = vld [vmem:[#allocation5 + $0x1f6c] ss:$12 sps:$4 sm:$0xff]  }
 0x38b   :  { %17400 = vmatpush3.bf16.msra.mxu1 %v19333_v29 }
 0x38c   :  { %12617 = vmatpush1.bf16.msra.mxu0 %v19329_v33  ;;  %17401 = vmatprep.subr.bf16.mxu1 %v19337_v47  ;;  %v19372_v33 = vld [vmem:[#allocation5 + $0xed8] ss:$12 sps:$4 sm:$0xff]   ;;  %v19377_v47 = vld [vmem:[#allocation5 + $0xef0] ss:$12 sps:$4 sm:$0xff]  }
 0x38d   :  { %12618 = vmatprep.subr.bf16.mxu0 %v19336_v37 }
 0x38f   :  { %17402 = vmatpush3.bf16.msra.mxu1 %v19338_v57  ;;  %v19378_v57 = vld [vmem:[#allocation5 + $0xe30] ss:$12 sps:$4 sm:$0xff]  }
 0x390   :  { %12619 = vmatpush1.bf16.msra.mxu0 %v19334_v55  ;;  %17409 = vmatprep.subr.bf16.mxu1 %v19342_v61  ;;  %v19374_v55 = vld [vmem:[#allocation5 + $0x1f68] ss:$12 sps:$4 sm:$0xff]   ;;  %v19381_v61 = vld [vmem:[#allocation5 + $0x1f84] ss:$12 sps:$4 sm:$0xff]  }
 0x391   :  { %12620 = vmatprep.subr.bf16.mxu0 %v19341_v59 }
 0x392   :  { %13613 = vmatmul.mubr.bf16.vlgmr.msra.gmra.mrb[36].mxu1 %v20886_v12  ;;  %v19358_v12 = vld [vmem:[#allocation5 + $0xdd0] ss:$12 sps:$4 sm:$0xff]  }
 0x393   :  { %17410 = vmatpush3.bf16.msra.mxu1 %v19343_v0  ;;  %13652 = vmatprep.mubr.bf16.mxu1 %v20892_v42  ;;  %v19366_v42 = vld [vmem:[#allocation5 + $0x1f3c] ss:$12 sps:$4 sm:$0xff]  }
 0x394   :  { %12621 = vmatpush1.bf16.msra.mxu0 %v19339_v62  ;;  %17411 = vmatprep.subr.bf16.mxu1 %v19347_v7  ;;  %v143_v62 = vld [vmem:[#allocation3 + $0x140] sm:$0xff]  ;;  %v19382_v0 = vld [vmem:[#allocation5 + $0xfc8] ss:$12 sps:$4 sm:$0xff]  }
 0x395   :  { %12622 = vmatprep.subr.bf16.mxu0 %v19346_v63  ;;  %v146_v63 = vld [vmem:[#allocation3 + $0x158] sm:$0xff]  ;;  %v21035_v7 = vpack.c.bf16 %v143_v62, %v143_v62 }
 0x397   :  { %17412 = vmatpush3.bf16.msra.mxu1 %v19348_v18  ;;  %v19383_v18 = vld [vmem:[#allocation5 + $0xf08] ss:$12 sps:$4 sm:$0xff]  }
 0x398   :  { %12623 = vmatpush1.bf16.msra.mxu0 %v19344_v1  ;;  %17413 = vmatprep.subr.bf16.mxu1 %v19352_v54  ;;  %v19379_v1 = vld [vmem:[#allocation5 + $0x1f80] ss:$12 sps:$4 sm:$0xff]  }
 0x399   :  { %12624 = vmatprep.subr.bf16.mxu0 %v19351_v14  ;;  %v19386_v14 = vld [vmem:[#allocation5 + $0x1f9c] ss:$12 sps:$4 sm:$0xff]   ;;  %v19387_v54 = vld [vmem:[#allocation5 + $0xfe0] ss:$12 sps:$4 sm:$0xff]  }
 0x39b   :  { %17414 = vmatpush3.bf16.msra.mxu1 %v19353_v26  ;;  %v19388_v26 = vld [vmem:[#allocation5 + $0xf20] ss:$12 sps:$4 sm:$0xff]  }
 0x39c   :  { %12625 = vmatpush1.bf16.msra.mxu0 %v19349_v20  ;;  %17415 = vmatprep.subr.bf16.mxu1 %v19357_v35  ;;  %v21037_v20 = vpack.c.bf16 %v146_v63, %v146_v63  ;;  %v19392_v35 = vld [vmem:[#allocation5 + $0xff8] ss:$12 sps:$4 sm:$0xff]  }
 0x39d   :  { %12626 = vmatprep.subr.bf16.mxu0 %v19356_v16  ;;  %v19391_v16 = vld [vmem:[#allocation5 + $0x1fb4] ss:$12 sps:$4 sm:$0xff]   ;;  %v19421_v63 = vld [vmem:[#allocation5 + $0x2044] ss:$12 sps:$4 sm:$0xff]  }
 0x39f   :  { %17416 = vmatpush3.bf16.msra.mxu1 %v19358_v12  ;;  %v19393_v12 = vld [vmem:[#allocation5 + $0xf38] ss:$12 sps:$4 sm:$0xff]  }
 0x3a0   :  { %12627 = vmatpush1.bf16.msra.mxu0 %v19354_v22  ;;  %17417 = vmatprep.subr.bf16.mxu1 %v19362_v30  ;;  %v19389_v22 = vld [vmem:[#allocation5 + $0x1fb0] ss:$12 sps:$4 sm:$0xff]   ;;  %v19394_v30 = vld [vmem:[#allocation5 + $0x1fc8] ss:$12 sps:$4 sm:$0xff]  }
 0x3a1   :  { %12628 = vmatprep.subr.bf16.mxu0 %v19361_v28  ;;  %v19396_v28 = vld [vmem:[#allocation5 + $0x1fcc] ss:$12 sps:$4 sm:$0xff]  }
 0x3a3   :  { %17418 = vmatpush3.bf16.msra.mxu1 %v19363_v3  ;;  %v19401_v3 = vld [vmem:[#allocation5 + $0x1fe4] ss:$12 sps:$4 sm:$0xff]  }
 0x3a4   :  { %12629 = vmatpush1.bf16.msra.mxu0 %v19359_v31  ;;  %17419 = vmatprep.subr.bf16.mxu1 %v19367_v45  ;;  %v19398_v31 = vld [vmem:[#allocation5 + $0xf50] ss:$12 sps:$4 sm:$0xff]   ;;  %v19399_v45 = vld [vmem:[#allocation5 + $0x1fe0] ss:$12 sps:$4 sm:$0xff]  }
 0x3a5   :  { %12630 = vmatprep.subr.bf16.mxu0 %v19366_v42  ;;  %v17271_v39 = vpop.f32.mrb[12].mxu1  ;;  %v19402_v42 = vld [vmem:[#allocation5 + $0x1028] ss:$12 sps:$4 sm:$0xff]  }
 0x3a6   :  { %v17272_v29 = vpop.f32.mrb[13].mxu1 }
 0x3a7   :  { %17420 = vmatpush3.bf16.msra.mxu1 %v19368_v11  ;;  %v17273_v37 = vadd.f32 %v17272_v29, %v17271_v39  ;;  %v17274_v49 = vpop.f32.mrb[14].mxu1  ;;  %v19407_v11 = vld [vmem:[#allocation5 + $0x1040] ss:$12 sps:$4 sm:$0xff]   ;;  %v19409_v39 = vld [vmem:[#allocation5 + $0x2010] ss:$12 sps:$4 sm:$0xff]  }
 0x3a8   :  { %12631 = vmatpush1.bf16.msra.mxu0 %v19364_v32  ;;  %17421 = vmatprep.subr.bf16.mxu1 %v19372_v33  ;;  %v17275_v53 = vpop.f32.mrb[15].mxu1  ;;  %v19406_v32 = vld [vmem:[#allocation5 + $0x1ffc] ss:$12 sps:$4 sm:$0xff]   ;;  %v19408_v33 = vld [vmem:[#allocation5 + $0xf80] ss:$12 sps:$4 sm:$0xff]  }
 0x3a9   :  { %12632 = vmatprep.subr.bf16.mxu0 %v19371_v9  ;;  %v21033_v59 = vadd.f32 %v17273_v37, %v21028_v56  ;;  %v19384_v56 = vld [vmem:[#allocation5 + $0x1f98] ss:$12 sps:$4 sm:$0xff]  }
 0x3aa   :  { %v19404_v9 = vld [vmem:[#allocation5 + $0x1ff8] ss:$12 sps:$4 sm:$0xff]  }
 0x3ab   :  { %17422 = vmatpush3.bf16.msra.mxu1 %v19373_v50  ;;  %v19412_v50 = vld [vmem:[#allocation5 + $0x1058] ss:$12 sps:$4 sm:$0xff]  }
 0x3ac   :  { %12633 = vmatpush1.bf16.msra.mxu0 %v19369_v38  ;;  %17423 = vmatprep.subr.bf16.mxu1 %v19377_v47  ;;  %v19411_v38 = vld [vmem:[#allocation5 + $0x2014] ss:$12 sps:$4 sm:$0xff]   ;;  %v19413_v29 = vld [vmem:[#allocation5 + $0xf98] ss:$12 sps:$4 sm:$0xff]  }
 0x3ad   :  { %12634 = vmatprep.subr.bf16.mxu0 %v19376_v41  ;;  %v19416_v53 = vld [vmem:[#allocation5 + $0x202c] ss:$12 sps:$4 sm:$0xff]  }
 0x3af   :  { %17424 = vmatpush3.bf16.msra.mxu1 %v19378_v57 }
 0x3b0   :  { %12635 = vmatpush1.bf16.msra.mxu0 %v19374_v55  ;;  %17431 = vmatprep.subr.bf16.mxu1 %v19382_v0  ;;  %v19417_v55 = vld [vmem:[#allocation5 + $0x1070] ss:$12 sps:$4 sm:$0xff]  }
 0x3b1   :  { %12645 = vmatprep.subr.bf16.mxu0 %v19381_v61  ;;  %v19414_v61 = vld [vmem:[#allocation5 + $0x2028] ss:$12 sps:$4 sm:$0xff]   ;;  %v19418_v0 = vld [vmem:[#allocation5 + $0xfb0] ss:$12 sps:$4 sm:$0xff]  }
 0x3b2   :  { %13653 = vmatmul.mubr.bf16.vlgmr.msra.gmra.mrb[40].mxu1 %v20898_v24  ;;  %v19397_v24 = vld [vmem:[#allocation5 + $0x1010] ss:$12 sps:$4 sm:$0xff]  }
 0x3b3   :  { %12637 = vmatmul.mubr.bf16.vlgmr.msra.gmra.mrb[0].mxu0 %v21035_v7  ;;  %17432 = vmatpush3.bf16.msra.mxu1 %v19383_v18  ;;  %v19419_v18 = vld [vmem:[#allocation5 + $0x2040] ss:$12 sps:$4 sm:$0xff]  }
 0x3b4   :  { %12646 = vmatpush1.bf16.msra.mxu0 %v19379_v1  ;;  %17433 = vmatprep.subr.bf16.mxu1 %v19387_v54  ;;  %v19422_v1 = vld [vmem:[#allocation5 + $0x1148] ss:$12 sps:$4 sm:$0xff]  }
 0x3b5   :  { %12647 = vmatprep.subr.bf16.mxu0 %v19386_v14  ;;  %13692 = vmatprep.mubr.bf16.mxu1 %v20904_v34  ;;  %v19403_v34 = vld [vmem:[#allocation5 + $0xf68] ss:$12 sps:$4 sm:$0xff]  }
 0x3b6   :  { %12677 = vmatprep.mubr.bf16.mxu0 %v21037_v20  ;;  %v19423_v14 = vld [vmem:[#allocation5 + $0x1088] ss:$12 sps:$4 sm:$0xff]  }
 0x3b7   :  { %17434 = vmatpush3.bf16.msra.mxu1 %v19388_v26  ;;  %v19426_v54 = vld [vmem:[#allocation5 + $0x205c] ss:$12 sps:$4 sm:$0xff]   ;;  %v19424_v26 = vld [vmem:[#allocation5 + $0x2058] ss:$12 sps:$4 sm:$0xff]  }
 0x3b8   :  { %12648 = vmatpush1.bf16.msra.mxu0 %v19384_v56  ;;  %17435 = vmatprep.subr.bf16.mxu1 %v19392_v35  ;;  %v19427_v56 = vld [vmem:[#allocation5 + $0x1160] ss:$12 sps:$4 sm:$0xff]   ;;  %v19432_v35 = vld [vmem:[#allocation5 + $0x1178] ss:$12 sps:$4 sm:$0xff]  }
 0x3b9   :  { %12649 = vmatprep.subr.bf16.mxu0 %v19391_v16  ;;  %v19431_v16 = vld [vmem:[#allocation5 + $0x2074] ss:$12 sps:$4 sm:$0xff]  }
 0x3bb   :  { %17436 = vmatpush3.bf16.msra.mxu1 %v19393_v12  ;;  %v19433_v12 = vld [vmem:[#allocation5 + $0x10b8] ss:$12 sps:$4 sm:$0xff]  }
 0x3bc   :  { %12650 = vmatpush1.bf16.msra.mxu0 %v19389_v22  ;;  %17437 = vmatprep.subr.bf16.mxu1 %v19397_v24  ;;  %v19429_v22 = vld [vmem:[#allocation5 + $0x2070] ss:$12 sps:$4 sm:$0xff]  }
 0x3bd   :  { %12651 = vmatprep.subr.bf16.mxu0 %v19396_v28  ;;  %v19436_v28 = vld [vmem:[#allocation5 + $0x208c] ss:$12 sps:$4 sm:$0xff]   ;;  %v19437_v24 = vld [vmem:[#allocation5 + $0x1190] ss:$12 sps:$4 sm:$0xff]  }
 0x3bf   :  { %17438 = vmatpush3.bf16.msra.mxu1 %v19398_v31  ;;  %v19441_v31 = vld [vmem:[#allocation5 + $0x20a4] ss:$12 sps:$4 sm:$0xff]  }
 0x3c0   :  { %12652 = vmatpush1.bf16.msra.mxu0 %v19394_v30  ;;  %17439 = vmatprep.subr.bf16.mxu1 %v19402_v42  ;;  %v19434_v30 = vld [vmem:[#allocation5 + $0x2088] ss:$12 sps:$4 sm:$0xff]   ;;  %v19439_v42 = vld [vmem:[#allocation5 + $0x20a0] ss:$12 sps:$4 sm:$0xff]  }
 0x3c1   :  { %12653 = vmatprep.subr.bf16.mxu0 %v19401_v3  ;;  %v19442_v3 = vld [vmem:[#allocation5 + $0x11a8] ss:$12 sps:$4 sm:$0xff]  }
 0x3c3   :  { %17440 = vmatpush3.bf16.msra.mxu1 %v19403_v34  ;;  %v19447_v34 = vld [vmem:[#allocation5 + $0x11c0] ss:$12 sps:$4 sm:$0xff]  }
 0x3c4   :  { %12654 = vmatpush1.bf16.msra.mxu0 %v19399_v45  ;;  %17441 = vmatprep.subr.bf16.mxu1 %v19407_v11  ;;  %v19443_v45 = vld [vmem:[#allocation5 + $0x10e8] ss:$12 sps:$4 sm:$0xff]   ;;  %v19448_v11 = vld [vmem:[#allocation5 + $0x1100] ss:$12 sps:$4 sm:$0xff]  }
 0x3c5   :  { %12655 = vmatprep.subr.bf16.mxu0 %v19406_v32  ;;  %v17293_v37 = vpop.f32.mrb[16].mxu1  ;;  %v19444_v32 = vld [vmem:[#allocation5 + $0x20b8] ss:$12 sps:$4 sm:$0xff]  }
 0x3c6   :  { %v17294_v49 = vpop.f32.mrb[17].mxu1 }
 0x3c7   :  { %17442 = vmatpush3.bf16.msra.mxu1 %v19408_v33  ;;  %v17295_v41 = vadd.f32 %v17294_v49, %v17293_v37  ;;  %v17296_v47 = vpop.f32.mrb[18].mxu1  ;;  %v19452_v33 = vld [vmem:[#allocation5 + $0x11d8] ss:$12 sps:$4 sm:$0xff]  }
 0x3c8   :  { %12656 = vmatpush1.bf16.msra.mxu0 %v19404_v9  ;;  %17443 = vmatprep.subr.bf16.mxu1 %v19412_v50  ;;  %v17297_v57 = vpop.f32.mrb[19].mxu1  ;;  %v19451_v9 = vld [vmem:[#allocation5 + $0x20d4] ss:$12 sps:$4 sm:$0xff]   ;;  %v19453_v50 = vld [vmem:[#allocation5 + $0x1118] ss:$12 sps:$4 sm:$0xff]  }
 0x3c9   :  { %12657 = vmatprep.subr.bf16.mxu0 %v19411_v38  ;;  %v21044_v62 = vadd.f32 %v17295_v41, %v21033_v59  ;;  %v19428_v59 = vld [vmem:[#allocation5 + $0x10a0] ss:$12 sps:$4 sm:$0xff]   ;;  %v19449_v38 = vld [vmem:[#allocation5 + $0x20d0] ss:$12 sps:$4 sm:$0xff]  }
 0x3ca   :  { %v19456_v41 = vld [vmem:[#allocation5 + $0x20ec] ss:$12 sps:$4 sm:$0xff]   ;;  %v19457_v47 = vld [vmem:[#allocation5 + $0x11f0] ss:$12 sps:$4 sm:$0xff]  }
 0x3cb   :  { %17444 = vmatpush3.bf16.msra.mxu1 %v19413_v29  ;;  %v19458_v57 = vld [vmem:[#allocation5 + $0x1130] ss:$12 sps:$4 sm:$0xff]  }
 0x3cc   :  { %12658 = vmatpush1.bf16.msra.mxu0 %v19409_v39  ;;  %17445 = vmatprep.subr.bf16.mxu1 %v19417_v55  ;;  %v19454_v55 = vld [vmem:[#allocation5 + $0x20e8] ss:$12 sps:$4 sm:$0xff]  }
 0x3cd   :  { %12659 = vmatprep.subr.bf16.mxu0 %v19416_v53 }
 0x3cf   :  { %17446 = vmatpush3.bf16.msra.mxu1 %v19418_v0  ;;  %v19461_v0 = vld [vmem:[#allocation5 + $0x2104] ss:$12 sps:$4 sm:$0xff]  }
 0x3d0   :  { %12660 = vmatpush1.bf16.msra.mxu0 %v19414_v61  ;;  %17453 = vmatprep.subr.bf16.mxu1 %v19422_v1  ;;  %v19462_v1 = vld [vmem:[#allocation5 + $0x12c8] ss:$12 sps:$4 sm:$0xff]  }
 0x3d1   :  { %12661 = vmatprep.subr.bf16.mxu0 %v19421_v63  ;;  %v145_v63 = vld [vmem:[#allocation3 + $0x150] sm:$0xff] }
 0x3d2   :  { %13693 = vmatmul.mubr.bf16.vlgmr.msra.gmra.mrb[44].mxu1 %v20910_v44  ;;  %v19438_v44 = vld [vmem:[#allocation5 + $0x10d0] ss:$12 sps:$4 sm:$0xff]  }
 0x3d3   :  { %17454 = vmatpush3.bf16.msra.mxu1 %v19423_v14  ;;  %13732 = vmatprep.mubr.bf16.mxu1 %v20914_v51  ;;  %v19446_v51 = vld [vmem:[#allocation5 + $0x20bc] ss:$12 sps:$4 sm:$0xff]   ;;  %v21051_v14 = vpack.c.bf16 %v145_v63, %v145_v63  ;;  %v19501_v63 = vld [vmem:[#allocation5 + $0x21c4] ss:$12 sps:$4 sm:$0xff]  }
 0x3d4   :  { %12662 = vmatpush1.bf16.msra.mxu0 %v19419_v18  ;;  %17455 = vmatprep.subr.bf16.mxu1 %v19427_v56  ;;  %v148_v18 = vld [vmem:[#allocation3 + $0x168] sm:$0xff] }
 0x3d5   :  { %12663 = vmatprep.subr.bf16.mxu0 %v19426_v54  ;;  %v19459_v54 = vld [vmem:[#allocation5 + $0x2100] ss:$12 sps:$4 sm:$0xff]   ;;  %v19463_v56 = vld [vmem:[#allocation5 + $0x1208] ss:$12 sps:$4 sm:$0xff]  }
 0x3d7   :  { %17456 = vmatpush3.bf16.msra.mxu1 %v19428_v59  ;;  %v19467_v59 = vld [vmem:[#allocation5 + $0x12e0] ss:$12 sps:$4 sm:$0xff]  }
 0x3d8   :  { %12664 = vmatpush1.bf16.msra.mxu0 %v19424_v26  ;;  %17457 = vmatprep.subr.bf16.mxu1 %v19432_v35  ;;  %v19466_v26 = vld [vmem:[#allocation5 + $0x211c] ss:$12 sps:$4 sm:$0xff]   ;;  %v19468_v35 = vld [vmem:[#allocation5 + $0x1220] ss:$12 sps:$4 sm:$0xff]  }
 0x3d9   :  { %12665 = vmatprep.subr.bf16.mxu0 %v19431_v16  ;;  %v21053_v16 = vpack.c.bf16 %v148_v18, %v148_v18  ;;  %v19499_v18 = vld [vmem:[#allocation5 + $0x21c0] ss:$12 sps:$4 sm:$0xff]  }
 0x3db   :  { %17458 = vmatpush3.bf16.msra.mxu1 %v19433_v12  ;;  %v19472_v12 = vld [vmem:[#allocation5 + $0x12f8] ss:$12 sps:$4 sm:$0xff]  }
 0x3dc   :  { %12666 = vmatpush1.bf16.msra.mxu0 %v19429_v22  ;;  %17459 = vmatprep.subr.bf16.mxu1 %v19437_v24  ;;  %v19471_v22 = vld [vmem:[#allocation5 + $0x2134] ss:$12 sps:$4 sm:$0xff]   ;;  %v19473_v24 = vld [vmem:[#allocation5 + $0x1238] ss:$12 sps:$4 sm:$0xff]  }
 0x3dd   :  { %12667 = vmatprep.subr.bf16.mxu0 %v19436_v28  ;;  %v19469_v28 = vld [vmem:[#allocation5 + $0x2130] ss:$12 sps:$4 sm:$0xff]  }
 0x3df   :  { %17460 = vmatpush3.bf16.msra.mxu1 %v19438_v44  ;;  %v19474_v44 = vld [vmem:[#allocation5 + $0x2148] ss:$12 sps:$4 sm:$0xff]  }
 0x3e0   :  { %12668 = vmatpush1.bf16.msra.mxu0 %v19434_v30  ;;  %17461 = vmatprep.subr.bf16.mxu1 %v19442_v3  ;;  %v19476_v30 = vld [vmem:[#allocation5 + $0x214c] ss:$12 sps:$4 sm:$0xff]   ;;  %v19481_v3 = vld [vmem:[#allocation5 + $0x2164] ss:$12 sps:$4 sm:$0xff]  }
 0x3e1   :  { %12669 = vmatprep.subr.bf16.mxu0 %v19441_v31  ;;  %v19478_v31 = vld [vmem:[#allocation5 + $0x1250] ss:$12 sps:$4 sm:$0xff]  }
 0x3e3   :  { %17462 = vmatpush3.bf16.msra.mxu1 %v19443_v45  ;;  %v19479_v45 = vld [vmem:[#allocation5 + $0x2160] ss:$12 sps:$4 sm:$0xff]  }
 0x3e4   :  { %12670 = vmatpush1.bf16.msra.mxu0 %v19439_v42  ;;  %17463 = vmatprep.subr.bf16.mxu1 %v19447_v34  ;;  %v19482_v42 = vld [vmem:[#allocation5 + $0x1328] ss:$12 sps:$4 sm:$0xff]   ;;  %v19487_v34 = vld [vmem:[#allocation5 + $0x1340] ss:$12 sps:$4 sm:$0xff]  }
 0x3e5   :  { %12671 = vmatprep.subr.bf16.mxu0 %v19446_v51  ;;  %v17315_v39 = vpop.f32.mrb[20].mxu1  ;;  %v19486_v51 = vld [vmem:[#allocation5 + $0x217c] ss:$12 sps:$4 sm:$0xff]  }
 0x3e6   :  { %v17316_v29 = vpop.f32.mrb[21].mxu1 }
 0x3e7   :  { %17464 = vmatpush3.bf16.msra.mxu1 %v19448_v11  ;;  %v17317_v37 = vadd.f32 %v17316_v29, %v17315_v39  ;;  %v17318_v49 = vpop.f32.mrb[22].mxu1  ;;  %v19488_v11 = vld [vmem:[#allocation5 + $0x1280] ss:$12 sps:$4 sm:$0xff]  }
 0x3e8   :  { %12672 = vmatpush1.bf16.msra.mxu0 %v19444_v32  ;;  %17465 = vmatprep.subr.bf16.mxu1 %v19452_v33  ;;  %v17319_v53 = vpop.f32.mrb[23].mxu1  ;;  %v19484_v32 = vld [vmem:[#allocation5 + $0x2178] ss:$12 sps:$4 sm:$0xff]  }
 0x3e9   :  { %12673 = vmatprep.subr.bf16.mxu0 %v19451_v9  ;;  %v21049_v61 = vadd.f32 %v17317_v37, %v21044_v62  ;;  %v19464_v62 = vld [vmem:[#allocation5 + $0x2118] ss:$12 sps:$4 sm:$0xff]   ;;  %v19491_v9 = vld [vmem:[#allocation5 + $0x2194] ss:$12 sps:$4 sm:$0xff]  }
 0x3ea   :  { %v19492_v33 = vld [vmem:[#allocation5 + $0x1358] ss:$12 sps:$4 sm:$0xff]  }
 0x3eb   :  { %17466 = vmatpush3.bf16.msra.mxu1 %v19453_v50  ;;  %v19493_v50 = vld [vmem:[#allocation5 + $0x1298] ss:$12 sps:$4 sm:$0xff]  }
 0x3ec   :  { %12674 = vmatpush1.bf16.msra.mxu0 %v19449_v38  ;;  %17467 = vmatprep.subr.bf16.mxu1 %v19457_v47  ;;  %v19489_v38 = vld [vmem:[#allocation5 + $0x2190] ss:$12 sps:$4 sm:$0xff]  }
 0x3ed   :  { %12675 = vmatprep.subr.bf16.mxu0 %v19456_v41  ;;  %v19496_v41 = vld [vmem:[#allocation5 + $0x21ac] ss:$12 sps:$4 sm:$0xff]   ;;  %v19497_v47 = vld [vmem:[#allocation5 + $0x1370] ss:$12 sps:$4 sm:$0xff]  }
 0x3ef   :  { %17468 = vmatpush3.bf16.msra.mxu1 %v19458_v57 }
 0x3f0   :  { %12676 = vmatpush1.bf16.msra.mxu0 %v19454_v55  ;;  %17475 = vmatprep.subr.bf16.mxu1 %v19462_v1  ;;  %v19494_v55 = vld [vmem:[#allocation5 + $0x21a8] ss:$12 sps:$4 sm:$0xff]  }
 0x3f1   :  { %12686 = vmatprep.subr.bf16.mxu0 %v19461_v0  ;;  %v19498_v0 = vld [vmem:[#allocation5 + $0x12b0] ss:$12 sps:$4 sm:$0xff]   ;;  %v19502_v1 = vld [vmem:[#allocation5 + $0x1448] ss:$12 sps:$4 sm:$0xff]  }
 0x3f2   :  { %13733 = vmatmul.mubr.bf16.vlgmr.msra.gmra.mrb[48].mxu1 %v20922_v4  ;;  %v19477_v4 = vld [vmem:[#allocation5 + $0x1310] ss:$12 sps:$4 sm:$0xff]  }
 0x3f3   :  { %12678 = vmatmul.mubr.bf16.vlgmr.msra.gmra.mrb[0].mxu0 %v21051_v14  ;;  %17476 = vmatpush3.bf16.msra.mxu1 %v19463_v56  ;;  %v19506_v56 = vld [vmem:[#allocation5 + $0x21dc] ss:$12 sps:$4 sm:$0xff]  }
 0x3f4   :  { %12687 = vmatpush1.bf16.msra.mxu0 %v19459_v54  ;;  %17477 = vmatprep.subr.bf16.mxu1 %v19467_v59  ;;  %v19503_v54 = vld [vmem:[#allocation5 + $0x1388] ss:$12 sps:$4 sm:$0xff]   ;;  %v19504_v59 = vld [vmem:[#allocation5 + $0x21d8] ss:$12 sps:$4 sm:$0xff]  }
 0x3f5   :  { %12688 = vmatprep.subr.bf16.mxu0 %v19466_v26  ;;  %13772 = vmatprep.mubr.bf16.mxu1 %v20926_v10  ;;  %v19483_v10 = vld [vmem:[#allocation5 + $0x1268] ss:$12 sps:$4 sm:$0xff]   ;;  %v19507_v26 = vld [vmem:[#allocation5 + $0x1460] ss:$12 sps:$4 sm:$0xff]  }
 0x3f6   :  { %12718 = vmatprep.mubr.bf16.mxu0 %v21053_v16 }
 0x3f7   :  { %17478 = vmatpush3.bf16.msra.mxu1 %v19468_v35  ;;  %v19512_v35 = vld [vmem:[#allocation5 + $0x1478] ss:$12 sps:$4 sm:$0xff]  }
 0x3f8   :  { %12689 = vmatpush1.bf16.msra.mxu0 %v19464_v62  ;;  %17479 = vmatprep.subr.bf16.mxu1 %v19472_v12  ;;  %v19511_v62 = vld [vmem:[#allocation5 + $0x21f4] ss:$12 sps:$4 sm:$0xff]   ;;  %v19513_v12 = vld [vmem:[#allocation5 + $0x13b8] ss:$12 sps:$4 sm:$0xff]  }
 0x3f9   :  { %12690 = vmatprep.subr.bf16.mxu0 %v19471_v22  ;;  %v19509_v22 = vld [vmem:[#allocation5 + $0x21f0] ss:$12 sps:$4 sm:$0xff]  }
 0x3fb   :  { %17480 = vmatpush3.bf16.msra.mxu1 %v19473_v24  ;;  %v19517_v24 = vld [vmem:[#allocation5 + $0x1490] ss:$12 sps:$4 sm:$0xff]  }
 0x3fc   :  { %12691 = vmatpush1.bf16.msra.mxu0 %v19469_v28  ;;  %17481 = vmatprep.subr.bf16.mxu1 %v19477_v4  ;;  %v19516_v28 = vld [vmem:[#allocation5 + $0x220c] ss:$12 sps:$4 sm:$0xff]   ;;  %v19521_v4 = vld [vmem:[#allocation5 + $0x2224] ss:$12 sps:$4 sm:$0xff]  }
 0x3fd   :  { %12692 = vmatprep.subr.bf16.mxu0 %v19476_v30  ;;  %v19514_v30 = vld [vmem:[#allocation5 + $0x2208] ss:$12 sps:$4 sm:$0xff]  }
 0x3ff   :  { %17482 = vmatpush3.bf16.msra.mxu1 %v19478_v31  ;;  %v19519_v31 = vld [vmem:[#allocation5 + $0x2220] ss:$12 sps:$4 sm:$0xff]  }
 0x400   :  { %12693 = vmatpush1.bf16.msra.mxu0 %v19474_v44  ;;  %17483 = vmatprep.subr.bf16.mxu1 %v19482_v42  ;;  %v19522_v44 = vld [vmem:[#allocation5 + $0x14a8] ss:$12 sps:$4 sm:$0xff]   ;;  %v19527_v42 = vld [vmem:[#allocation5 + $0x14c0] ss:$12 sps:$4 sm:$0xff]  }
 0x401   :  { %12694 = vmatprep.subr.bf16.mxu0 %v19481_v3  ;;  %v19523_v3 = vld [vmem:[#allocation5 + $0x13e8] ss:$12 sps:$4 sm:$0xff]  }
 0x403   :  { %17484 = vmatpush3.bf16.msra.mxu1 %v19483_v10  ;;  %v19528_v10 = vld [vmem:[#allocation5 + $0x1400] ss:$12 sps:$4 sm:$0xff]  }
 0x404   :  { %12695 = vmatpush1.bf16.msra.mxu0 %v19479_v45  ;;  %17485 = vmatprep.subr.bf16.mxu1 %v19487_v34  ;;  %v19524_v45 = vld [vmem:[#allocation5 + $0x2238] ss:$12 sps:$4 sm:$0xff]  }
 0x405   :  { %12696 = vmatprep.subr.bf16.mxu0 %v19486_v51  ;;  %v17337_v39 = vpop.f32.mrb[24].mxu1  ;;  %v19531_v51 = vld [vmem:[#allocation5 + $0x2254] ss:$12 sps:$4 sm:$0xff]   ;;  %v19532_v34 = vld [vmem:[#allocation5 + $0x14d8] ss:$12 sps:$4 sm:$0xff]  }
 0x406   :  { %v17338_v29 = vpop.f32.mrb[25].mxu1 }
 0x407   :  { %17486 = vmatpush3.bf16.msra.mxu1 %v19488_v11  ;;  %v17339_v37 = vadd.f32 %v17338_v29, %v17337_v39  ;;  %v17340_v49 = vpop.f32.mrb[26].mxu1  ;;  %v19529_v11 = vld [vmem:[#allocation5 + $0x2250] ss:$12 sps:$4 sm:$0xff]   ;;  %v19536_v39 = vld [vmem:[#allocation5 + $0x226c] ss:$12 sps:$4 sm:$0xff]  }
 0x408   :  { %12697 = vmatpush1.bf16.msra.mxu0 %v19484_v32  ;;  %17487 = vmatprep.subr.bf16.mxu1 %v19492_v33  ;;  %v17341_v53 = vpop.f32.mrb[27].mxu1  ;;  %v19537_v29 = vld [vmem:[#allocation5 + $0x14f0] ss:$12 sps:$4 sm:$0xff]  }
 0x409   :  { %12698 = vmatprep.subr.bf16.mxu0 %v19491_v9  ;;  %v21060_v57 = vadd.f32 %v17339_v37, %v21049_v61  ;;  %v19508_v61 = vld [vmem:[#allocation5 + $0x13a0] ss:$12 sps:$4 sm:$0xff]   ;;  %v19533_v9 = vld [vmem:[#allocation5 + $0x1418] ss:$12 sps:$4 sm:$0xff]  }
 0x40a   :  { %v19541_v53 = vld [vmem:[#allocation5 + $0x2284] ss:$12 sps:$4 sm:$0xff]  }
 0x40b   :  { %17488 = vmatpush3.bf16.msra.mxu1 %v19493_v50 }
 0x40c   :  { %12699 = vmatpush1.bf16.msra.mxu0 %v19489_v38  ;;  %17489 = vmatprep.subr.bf16.mxu1 %v19497_v47  ;;  %v19538_v47 = vld [vmem:[#allocation5 + $0x1430] ss:$12 sps:$4 sm:$0xff]  }
 0x40d   :  { %12700 = vmatprep.subr.bf16.mxu0 %v19496_v41  ;;  %v19534_v41 = vld [vmem:[#allocation5 + $0x2268] ss:$12 sps:$4 sm:$0xff]  }
 0x40f   :  { %17490 = vmatpush3.bf16.msra.mxu1 %v19498_v0  ;;  %v19542_v0 = vld [vmem:[#allocation5 + $0x15c8] ss:$12 sps:$4 sm:$0xff]  }
 0x410   :  { %12701 = vmatpush1.bf16.msra.mxu0 %v19494_v55  ;;  %17497 = vmatprep.subr.bf16.mxu1 %v19502_v1  ;;  %v147_v55 = vld [vmem:[#allocation3 + $0x160] sm:$0xff] }
 0x411   :  { %12702 = vmatprep.subr.bf16.mxu0 %v19501_v63  ;;  %v150_v63 = vld [vmem:[#allocation3 + $0x178] sm:$0xff]  ;;  %v21067_v1 = vpack.c.bf16 %v147_v55, %v147_v55  ;;  %v19579_v55 = vld [vmem:[#allocation5 + $0x2340] ss:$12 sps:$4 sm:$0xff]  }
 0x412   :  { %13773 = vmatmul.mubr.bf16.vlgmr.msra.gmra.mrb[52].mxu1 %v20934_v36  ;;  %v19518_v36 = vld [vmem:[#allocation5 + $0x13d0] ss:$12 sps:$4 sm:$0xff]  }
 0x413   :  { %17498 = vmatpush3.bf16.msra.mxu1 %v19503_v54  ;;  %13812 = vmatprep.mubr.bf16.mxu1 %v20938_v46  ;;  %v19526_v46 = vld [vmem:[#allocation5 + $0x223c] ss:$12 sps:$4 sm:$0xff]  }
 0x414   :  { %12703 = vmatpush1.bf16.msra.mxu0 %v19499_v18  ;;  %17499 = vmatprep.subr.bf16.mxu1 %v19507_v26  ;;  %v19539_v18 = vld [vmem:[#allocation5 + $0x2280] ss:$12 sps:$4 sm:$0xff]   ;;  %v19543_v54 = vld [vmem:[#allocation5 + $0x1508] ss:$12 sps:$4 sm:$0xff]   ;;  %v19544_v26 = vld [vmem:[#allocation5 + $0x2298] ss:$12 sps:$4 sm:$0xff]  }
 0x415   :  { %12704 = vmatprep.subr.bf16.mxu0 %v19506_v56  ;;  %v19547_v56 = vld [vmem:[#allocation5 + $0x15e0] ss:$12 sps:$4 sm:$0xff]  }
 0x417   :  { %17500 = vmatpush3.bf16.msra.mxu1 %v19508_v61  ;;  %v19548_v61 = vld [vmem:[#allocation5 + $0x1520] ss:$12 sps:$4 sm:$0xff]  }
 0x418   :  { %12705 = vmatpush1.bf16.msra.mxu0 %v19504_v59  ;;  %17501 = vmatprep.subr.bf16.mxu1 %v19512_v35  ;;  %v21069_v59 = vpack.c.bf16 %v150_v63, %v150_v63  ;;  %v19552_v35 = vld [vmem:[#allocation5 + $0x15f8] ss:$12 sps:$4 sm:$0xff]   ;;  %v19586_v63 = vld [vmem:[#allocation5 + $0x235c] ss:$12 sps:$4 sm:$0xff]  }
 0x419   :  { %12706 = vmatprep.subr.bf16.mxu0 %v19511_v62  ;;  %v19551_v62 = vld [vmem:[#allocation5 + $0x22b4] ss:$12 sps:$4 sm:$0xff]  }
 0x41b   :  { %17502 = vmatpush3.bf16.msra.mxu1 %v19513_v12  ;;  %v19553_v12 = vld [vmem:[#allocation5 + $0x1538] ss:$12 sps:$4 sm:$0xff]  }
 0x41c   :  { %12707 = vmatpush1.bf16.msra.mxu0 %v19509_v22  ;;  %17503 = vmatprep.subr.bf16.mxu1 %v19517_v24  ;;  %v19549_v22 = vld [vmem:[#allocation5 + $0x22b0] ss:$12 sps:$4 sm:$0xff]   ;;  %v19554_v24 = vld [vmem:[#allocation5 + $0x22c8] ss:$12 sps:$4 sm:$0xff]  }
 0x41d   :  { %12708 = vmatprep.subr.bf16.mxu0 %v19516_v28  ;;  %v19556_v28 = vld [vmem:[#allocation5 + $0x22cc] ss:$12 sps:$4 sm:$0xff]  }
 0x41f   :  { %17504 = vmatpush3.bf16.msra.mxu1 %v19518_v36  ;;  %v19561_v36 = vld [vmem:[#allocation5 + $0x22e4] ss:$12 sps:$4 sm:$0xff]  }
 0x420   :  { %12709 = vmatpush1.bf16.msra.mxu0 %v19514_v30  ;;  %17505 = vmatprep.subr.bf16.mxu1 %v19522_v44  ;;  %v19558_v30 = vld [vmem:[#allocation5 + $0x1550] ss:$12 sps:$4 sm:$0xff]   ;;  %v19559_v44 = vld [vmem:[#allocation5 + $0x22e0] ss:$12 sps:$4 sm:$0xff]  }
 0x421   :  { %12710 = vmatprep.subr.bf16.mxu0 %v19521_v4  ;;  %v19562_v4 = vld [vmem:[#allocation5 + $0x1628] ss:$12 sps:$4 sm:$0xff]  }
 0x423   :  { %17506 = vmatpush3.bf16.msra.mxu1 %v19523_v3  ;;  %v19567_v3 = vld [vmem:[#allocation5 + $0x1640] ss:$12 sps:$4 sm:$0xff]  }
 0x424   :  { %12711 = vmatpush1.bf16.msra.mxu0 %v19519_v31  ;;  %17507 = vmatprep.subr.bf16.mxu1 %v19527_v42  ;;  %v19566_v31 = vld [vmem:[#allocation5 + $0x22fc] ss:$12 sps:$4 sm:$0xff]   ;;  %v19568_v42 = vld [vmem:[#allocation5 + $0x1580] ss:$12 sps:$4 sm:$0xff]  }
 0x425   :  { %12712 = vmatprep.subr.bf16.mxu0 %v19526_v46  ;;  %v17359_v32 = vpop.f32.mrb[28].mxu1  ;;  %v19564_v46 = vld [vmem:[#allocation5 + $0x22f8] ss:$12 sps:$4 sm:$0xff]  }
 0x426   :  { %v17360_v33 = vpop.f32.mrb[29].mxu1 }
 0x427   :  { %v17361_v38 = vadd.f32 %v17360_v33, %v17359_v32  ;;  %17508 = vmatpush3.bf16.msra.mxu1 %v19528_v10  ;;  %v17362_v50 = vpop.f32.mrb[30].mxu1  ;;  %v19572_v10 = vld [vmem:[#allocation5 + $0x1658] ss:$12 sps:$4 sm:$0xff]  }
 0x428   :  { %12713 = vmatpush1.bf16.msra.mxu0 %v19524_v45  ;;  %17509 = vmatprep.subr.bf16.mxu1 %v19532_v34  ;;  %v17363_v37 = vpop.f32.mrb[31].mxu1  ;;  %v19571_v45 = vld [vmem:[#allocation5 + $0x2314] ss:$12 sps:$4 sm:$0xff]   ;;  %v19569_v34 = vld [vmem:[#allocation5 + $0x2310] ss:$12 sps:$4 sm:$0xff]  }
 0x429   :  { %12714 = vmatprep.subr.bf16.mxu0 %v19531_v51  ;;  %v21065_v49 = vadd.f32 %v17361_v38, %v21060_v57  ;;  %v19546_v57 = vld [vmem:[#allocation5 + $0x229c] ss:$12 sps:$4 sm:$0xff]   ;;  %v19573_v32 = vld [vmem:[#allocation5 + $0x1598] ss:$12 sps:$4 sm:$0xff]  }
 0x42a   :  { %v19576_v38 = vld [vmem:[#allocation5 + $0x232c] ss:$12 sps:$4 sm:$0xff]   ;;  %v19577_v50 = vld [vmem:[#allocation5 + $0x1670] ss:$12 sps:$4 sm:$0xff]   ;;  %v19574_v37 = vld [vmem:[#allocation5 + $0x2328] ss:$12 sps:$4 sm:$0xff]  }
 0x42b   :  { %17510 = vmatpush3.bf16.msra.mxu1 %v19533_v9 }
 0x42c   :  { %12715 = vmatpush1.bf16.msra.mxu0 %v19529_v11  ;;  %17511 = vmatprep.subr.bf16.mxu1 %v19537_v29 }
 0x42d   :  { %12716 = vmatprep.subr.bf16.mxu0 %v19536_v39 }
 0x42f   :  { %17512 = vmatpush3.bf16.msra.mxu1 %v19538_v47  ;;  %v19581_v47 = vld [vmem:[#allocation5 + $0x2344] ss:$12 sps:$4 sm:$0xff]  }
 0x430   :  { %12717 = vmatpush1.bf16.msra.mxu0 %v19534_v41  ;;  %17519 = vmatprep.subr.bf16.mxu1 %v19542_v0  ;;  %v19578_v41 = vld [vmem:[#allocation5 + $0x15b0] ss:$12 sps:$4 sm:$0xff]   ;;  %v19583_v0 = vld [vmem:[#allocation5 + $0x1688] ss:$12 sps:$4 sm:$0xff]  }
 0x431   :  { %12727 = vmatprep.subr.bf16.mxu0 %v19541_v53  ;;  %v19582_v53 = vld [vmem:[#allocation5 + $0x1748] ss:$12 sps:$4 sm:$0xff]  }
 0x432   :  { %13813 = vmatmul.mubr.bf16.vlgmr.msra.gmra.mrb[56].mxu1 %v20946_v15  ;;  %v19557_v15 = vld [vmem:[#allocation5 + $0x1610] ss:$12 sps:$4 sm:$0xff]  }
 0x433   :  { %12719 = vmatmul.mubr.bf16.vlgmr.msra.gmra.mrb[0].mxu0 %v21067_v1  ;;  %17520 = vmatpush3.bf16.msra.mxu1 %v19543_v54  ;;  %v19584_v54 = vld [vmem:[#allocation5 + $0x2358] ss:$12 sps:$4 sm:$0xff]  }
 0x434   :  { %12728 = vmatpush1.bf16.msra.mxu0 %v19539_v18  ;;  %17521 = vmatprep.subr.bf16.mxu1 %v19547_v56  ;;  %v19587_v18 = vld [vmem:[#allocation5 + $0x1760] ss:$12 sps:$4 sm:$0xff]   ;;  %v19592_v56 = vld [vmem:[#allocation5 + $0x1778] ss:$12 sps:$4 sm:$0xff]  }
 0x435   :  { %12729 = vmatprep.subr.bf16.mxu0 %v19546_v57  ;;  %13852 = vmatprep.mubr.bf16.mxu1 %v20950_v25  ;;  %v19563_v25 = vld [vmem:[#allocation5 + $0x1568] ss:$12 sps:$4 sm:$0xff]  }
 0x436   :  { %12759 = vmatprep.mubr.bf16.mxu0 %v21069_v59  ;;  %v19591_v57 = vld [vmem:[#allocation5 + $0x2374] ss:$12 sps:$4 sm:$0xff]  }
 0x437   :  { %17522 = vmatpush3.bf16.msra.mxu1 %v19548_v61  ;;  %v19593_v61 = vld [vmem:[#allocation5 + $0x16b8] ss:$12 sps:$4 sm:$0xff]  }
 0x438   :  { %12730 = vmatpush1.bf16.msra.mxu0 %v19544_v26  ;;  %17523 = vmatprep.subr.bf16.mxu1 %v19552_v35  ;;  %v19589_v26 = vld [vmem:[#allocation5 + $0x2370] ss:$12 sps:$4 sm:$0xff]  }
 0x439   :  { %12731 = vmatprep.subr.bf16.mxu0 %v19551_v62  ;;  %v19596_v62 = vld [vmem:[#allocation5 + $0x238c] ss:$12 sps:$4 sm:$0xff]   ;;  %v19597_v35 = vld [vmem:[#allocation5 + $0x1790] ss:$12 sps:$4 sm:$0xff]  }
 0x43b   :  { %17524 = vmatpush3.bf16.msra.mxu1 %v19553_v12  ;;  %v19601_v12 = vld [vmem:[#allocation5 + $0x23a4] ss:$12 sps:$4 sm:$0xff]  }
 0x43c   :  { %12732 = vmatpush1.bf16.msra.mxu0 %v19549_v22  ;;  %17525 = vmatprep.subr.bf16.mxu1 %v19557_v15  ;;  %v19594_v22 = vld [vmem:[#allocation5 + $0x2388] ss:$12 sps:$4 sm:$0xff]   ;;  %v19599_v15 = vld [vmem:[#allocation5 + $0x23a0] ss:$12 sps:$4 sm:$0xff]  }
 0x43d   :  { %12733 = vmatprep.subr.bf16.mxu0 %v19556_v28  ;;  %v19602_v28 = vld [vmem:[#allocation5 + $0x17a8] ss:$12 sps:$4 sm:$0xff]  }
 0x43f   :  { %17526 = vmatpush3.bf16.msra.mxu1 %v19558_v30  ;;  %v19607_v30 = vld [vmem:[#allocation5 + $0x17c0] ss:$12 sps:$4 sm:$0xff]  }
 0x440   :  { %12734 = vmatpush1.bf16.msra.mxu0 %v19554_v24  ;;  %17527 = vmatprep.subr.bf16.mxu1 %v19562_v4  ;;  %v19603_v24 = vld [vmem:[#allocation5 + $0x16e8] ss:$12 sps:$4 sm:$0xff]   ;;  %v19608_v4 = vld [vmem:[#allocation5 + $0x1700] ss:$12 sps:$4 sm:$0xff]  }
 0x441   :  { %12735 = vmatprep.subr.bf16.mxu0 %v19561_v36  ;;  %v19604_v36 = vld [vmem:[#allocation5 + $0x23b8] ss:$12 sps:$4 sm:$0xff]  }
 0x443   :  { %17528 = vmatpush3.bf16.msra.mxu1 %v19563_v25  ;;  %v19612_v25 = vld [vmem:[#allocation5 + $0x17d8] ss:$12 sps:$4 sm:$0xff]  }
 0x444   :  { %12736 = vmatpush1.bf16.msra.mxu0 %v19559_v44  ;;  %17529 = vmatprep.subr.bf16.mxu1 %v19567_v3  ;;  %v19611_v44 = vld [vmem:[#allocation5 + $0x23d4] ss:$12 sps:$4 sm:$0xff]   ;;  %v19609_v3 = vld [vmem:[#allocation5 + $0x23d0] ss:$12 sps:$4 sm:$0xff]  }
 0x445   :  { %12737 = vmatprep.subr.bf16.mxu0 %v19566_v31  ;;  %v17381_v51 = vpop.f32.mrb[32].mxu1 }
 0x446   :  { %v17382_v11 = vpop.f32.mrb[33].mxu1 }
 0x447   :  { %v17383_v9 = vadd.f32 %v17382_v11, %v17381_v51  ;;  %17530 = vmatpush3.bf16.msra.mxu1 %v19568_v42  ;;  %v17384_v33 = vpop.f32.mrb[34].mxu1  ;;  %v19616_v51 = vld [vmem:[#allocation5 + $0x23ec] ss:$12 sps:$4 sm:$0xff]  }
 0x448   :  { %12738 = vmatpush1.bf16.msra.mxu0 %v19564_v46  ;;  %17531 = vmatprep.subr.bf16.mxu1 %v19572_v10  ;;  %v17385_v39 = vpop.f32.mrb[35].mxu1  ;;  %v19613_v46 = vld [vmem:[#allocation5 + $0x1718] ss:$12 sps:$4 sm:$0xff]   ;;  %v19618_v33 = vld [vmem:[#allocation5 + $0x1730] ss:$12 sps:$4 sm:$0xff]  }
 0x449   :  { %12739 = vmatprep.subr.bf16.mxu0 %v19571_v45  ;;  %v21076_v29 = vadd.f32 %v17383_v9, %v21065_v49  ;;  %v19588_v49 = vld [vmem:[#allocation5 + $0x16a0] ss:$12 sps:$4 sm:$0xff]   ;;  %v19614_v9 = vld [vmem:[#allocation5 + $0x23e8] ss:$12 sps:$4 sm:$0xff]  }
 0x44a   :  { %v19622_v39 = vld [vmem:[#allocation5 + $0x18c8] ss:$12 sps:$4 sm:$0xff]  }
 0x44b   :  { %17532 = vmatpush3.bf16.msra.mxu1 %v19573_v32 }
 0x44c   :  { %12740 = vmatpush1.bf16.msra.mxu0 %v19569_v34  ;;  %17533 = vmatprep.subr.bf16.mxu1 %v19577_v50  ;;  %v19617_v34 = vld [vmem:[#allocation5 + $0x17f0] ss:$12 sps:$4 sm:$0xff]  }
 0x44d   :  { %12741 = vmatprep.subr.bf16.mxu0 %v19576_v38  ;;  %v19621_v38 = vld [vmem:[#allocation5 + $0x2404] ss:$12 sps:$4 sm:$0xff]  }
 0x44e   :  { %v149_v50 = vld [vmem:[#allocation3 + $0x170] sm:$0xff] }
 0x44f   :  { %17534 = vmatpush3.bf16.msra.mxu1 %v19578_v41  ;;  %v21083_v41 = vpack.c.bf16 %v149_v50, %v149_v50  ;;  %v19666_v50 = vld [vmem:[#allocation5 + $0x24dc] ss:$12 sps:$4 sm:$0xff]  }
 0x450   :  { %12742 = vmatpush1.bf16.msra.mxu0 %v19574_v37  ;;  %17541 = vmatprep.subr.bf16.mxu1 %v19582_v53  ;;  %v152_v37 = vld [vmem:[#allocation3 + $0x188] sm:$0xff] }
 0x451   :  { %12743 = vmatprep.subr.bf16.mxu0 %v19581_v47  ;;  %v19619_v47 = vld [vmem:[#allocation5 + $0x2400] ss:$12 sps:$4 sm:$0xff]   ;;  %v19623_v53 = vld [vmem:[#allocation5 + $0x1808] ss:$12 sps:$4 sm:$0xff]  }
 0x452   :  { %13853 = vmatmul.mubr.bf16.vlgmr.msra.gmra.mrb[60].mxu1 %v20958_v2  ;;  %v19598_v2 = vld [vmem:[#allocation5 + $0x16d0] ss:$12 sps:$4 sm:$0xff]  }
 0x453   :  { %17542 = vmatpush3.bf16.msra.mxu1 %v19583_v0  ;;  %13892 = vmatprep.mubr.bf16.mxu1 %v20962_v17  ;;  %v19606_v17 = vld [vmem:[#allocation5 + $0x23bc] ss:$12 sps:$4 sm:$0xff]   ;;  %v19624_v0 = vld [vmem:[#allocation5 + $0x2418] ss:$12 sps:$4 sm:$0xff]  }
 0x454   :  { %12744 = vmatpush1.bf16.msra.mxu0 %v19579_v55  ;;  %17543 = vmatprep.subr.bf16.mxu1 %v19587_v18  ;;  %v19627_v55 = vld [vmem:[#allocation5 + $0x18e0] ss:$12 sps:$4 sm:$0xff]  }
 0x455   :  { %12745 = vmatprep.subr.bf16.mxu0 %v19586_v63  ;;  %v21085_v63 = vpack.c.bf16 %v152_v37, %v152_v37  ;;  %v19628_v18 = vld [vmem:[#allocation5 + $0x1820] ss:$12 sps:$4 sm:$0xff]   ;;  %v19664_v37 = vld [vmem:[#allocation5 + $0x24d8] ss:$12 sps:$4 sm:$0xff]  }
 0x457   :  { %17544 = vmatpush3.bf16.msra.mxu1 %v19588_v49  ;;  %v19632_v49 = vld [vmem:[#allocation5 + $0x18f8] ss:$12 sps:$4 sm:$0xff]  }
 0x458   :  { %12746 = vmatpush1.bf16.msra.mxu0 %v19584_v54  ;;  %17545 = vmatprep.subr.bf16.mxu1 %v19592_v56  ;;  %v19631_v54 = vld [vmem:[#allocation5 + $0x2434] ss:$12 sps:$4 sm:$0xff]   ;;  %v19633_v56 = vld [vmem:[#allocation5 + $0x1838] ss:$12 sps:$4 sm:$0xff]  }
 0x459   :  { %12747 = vmatprep.subr.bf16.mxu0 %v19591_v57  ;;  %v19629_v57 = vld [vmem:[#allocation5 + $0x2430] ss:$12 sps:$4 sm:$0xff]  }
 0x45b   :  { %17546 = vmatpush3.bf16.msra.mxu1 %v19593_v61  ;;  %v19634_v61 = vld [vmem:[#allocation5 + $0x2448] ss:$12 sps:$4 sm:$0xff]  }
 0x45c   :  { %12748 = vmatpush1.bf16.msra.mxu0 %v19589_v26  ;;  %17547 = vmatprep.subr.bf16.mxu1 %v19597_v35  ;;  %v19636_v26 = vld [vmem:[#allocation5 + $0x244c] ss:$12 sps:$4 sm:$0xff]   ;;  %v19641_v35 = vld [vmem:[#allocation5 + $0x2464] ss:$12 sps:$4 sm:$0xff]  }
 0x45d   :  { %12749 = vmatprep.subr.bf16.mxu0 %v19596_v62  ;;  %v19638_v62 = vld [vmem:[#allocation5 + $0x1850] ss:$12 sps:$4 sm:$0xff]  }
 0x45f   :  { %17548 = vmatpush3.bf16.msra.mxu1 %v19598_v2  ;;  %v19639_v2 = vld [vmem:[#allocation5 + $0x2460] ss:$12 sps:$4 sm:$0xff]  }
 0x460   :  { %12750 = vmatpush1.bf16.msra.mxu0 %v19594_v22  ;;  %17549 = vmatprep.subr.bf16.mxu1 %v19602_v28  ;;  %v19642_v22 = vld [vmem:[#allocation5 + $0x1928] ss:$12 sps:$4 sm:$0xff]   ;;  %v19647_v28 = vld [vmem:[#allocation5 + $0x1940] ss:$12 sps:$4 sm:$0xff]  }
 0x461   :  { %12751 = vmatprep.subr.bf16.mxu0 %v19601_v12  ;;  %v19646_v12 = vld [vmem:[#allocation5 + $0x247c] ss:$12 sps:$4 sm:$0xff]  }
 0x463   :  { %17550 = vmatpush3.bf16.msra.mxu1 %v19603_v24  ;;  %v19648_v24 = vld [vmem:[#allocation5 + $0x1880] ss:$12 sps:$4 sm:$0xff]  }
 0x464   :  { %12752 = vmatpush1.bf16.msra.mxu0 %v19599_v15  ;;  %17551 = vmatprep.subr.bf16.mxu1 %v19607_v30  ;;  %v19644_v15 = vld [vmem:[#allocation5 + $0x2478] ss:$12 sps:$4 sm:$0xff]  }
 0x465   :  { %12753 = vmatprep.subr.bf16.mxu0 %v19606_v17  ;;  %v17403_v31 = vpop.f32.mrb[36].mxu1  ;;  %v19651_v17 = vld [vmem:[#allocation5 + $0x2494] ss:$12 sps:$4 sm:$0xff]   ;;  %v19652_v30 = vld [vmem:[#allocation5 + $0x1958] ss:$12 sps:$4 sm:$0xff]  }
 0x466   :  { %v17404_v42 = vpop.f32.mrb[37].mxu1 }
 0x467   :  { %v17405_v45 = vadd.f32 %v17404_v42, %v17403_v31  ;;  %17552 = vmatpush3.bf16.msra.mxu1 %v19608_v4  ;;  %v17406_v10 = vpop.f32.mrb[38].mxu1  ;;  %v19649_v4 = vld [vmem:[#allocation5 + $0x2490] ss:$12 sps:$4 sm:$0xff]  }
 0x468   :  { %12754 = vmatpush1.bf16.msra.mxu0 %v19604_v36  ;;  %17553 = vmatprep.subr.bf16.mxu1 %v19612_v25  ;;  %v17407_v32 = vpop.f32.mrb[39].mxu1  ;;  %v19657_v42 = vld [vmem:[#allocation5 + $0x1970] ss:$12 sps:$4 sm:$0xff]  }
 0x469   :  { %12755 = vmatprep.subr.bf16.mxu0 %v19611_v44  ;;  %v21081_v11 = vadd.f32 %v17405_v45, %v21076_v29  ;;  %v19626_v29 = vld [vmem:[#allocation5 + $0x241c] ss:$12 sps:$4 sm:$0xff]   ;;  %v19653_v44 = vld [vmem:[#allocation5 + $0x1898] ss:$12 sps:$4 sm:$0xff]  }
 0x46a   :  { %v19661_v32 = vld [vmem:[#allocation5 + $0x24c4] ss:$12 sps:$4 sm:$0xff]  }
 0x46b   :  { %17554 = vmatpush3.bf16.msra.mxu1 %v19613_v46  ;;  %v19656_v46 = vld [vmem:[#allocation5 + $0x24ac] ss:$12 sps:$4 sm:$0xff]  }
 0x46c   :  { %12756 = vmatpush1.bf16.msra.mxu0 %v19609_v3  ;;  %17555 = vmatprep.subr.bf16.mxu1 %v19617_v34  ;;  %v19658_v34 = vld [vmem:[#allocation5 + $0x18b0] ss:$12 sps:$4 sm:$0xff]  }
 0x46d   :  { %12757 = vmatprep.subr.bf16.mxu0 %v19616_v51  ;;  %v19654_v51 = vld [vmem:[#allocation5 + $0x24a8] ss:$12 sps:$4 sm:$0xff]  }
 0x46f   :  { %17556 = vmatpush3.bf16.msra.mxu1 %v19618_v33  ;;  %v19659_v33 = vld [vmem:[#allocation5 + $0x24c0] ss:$12 sps:$4 sm:$0xff]  }
 0x470   :  { %12758 = vmatpush1.bf16.msra.mxu0 %v19614_v9  ;;  %17563 = vmatprep.subr.bf16.mxu1 %v19622_v39  ;;  %v19662_v9 = vld [vmem:[#allocation5 + $0x1a48] ss:$12 sps:$4 sm:$0xff]   ;;  %v19667_v39 = vld [vmem:[#allocation5 + $0x1a60] ss:$12 sps:$4 sm:$0xff]  }
 0x471   :  { %12768 = vmatprep.subr.bf16.mxu0 %v19621_v38  ;;  %v19663_v38 = vld [vmem:[#allocation5 + $0x1988] ss:$12 sps:$4 sm:$0xff]  }
 0x472   :  { %13893 = vmatmul.mubr.bf16.vlgmr.msra.gmra.mrb[64].mxu1 %v20970_v5  ;;  %v19637_v5 = vld [vmem:[#allocation5 + $0x1910] ss:$12 sps:$4 sm:$0xff]  }
 0x473   :  { %12760 = vmatmul.mubr.bf16.vlgmr.msra.gmra.mrb[0].mxu0 %v21083_v41  ;;  %17564 = vmatpush3.bf16.msra.mxu1 %v19623_v53  ;;  %v19672_v53 = vld [vmem:[#allocation5 + $0x1a78] ss:$12 sps:$4 sm:$0xff]  }
 0x474   :  { %12769 = vmatpush1.bf16.msra.mxu0 %v19619_v47  ;;  %17565 = vmatprep.subr.bf16.mxu1 %v19627_v55  ;;  %v19671_v47 = vld [vmem:[#allocation5 + $0x24f4] ss:$12 sps:$4 sm:$0xff]   ;;  %v19673_v55 = vld [vmem:[#allocation5 + $0x19b8] ss:$12 sps:$4 sm:$0xff]  }
 0x475   :  { %12770 = vmatprep.subr.bf16.mxu0 %v19626_v29  ;;  %13932 = vmatprep.mubr.bf16.mxu1 %v20972_v19  ;;  %v19643_v19 = vld [vmem:[#allocation5 + $0x1868] ss:$12 sps:$4 sm:$0xff]   ;;  %v19669_v29 = vld [vmem:[#allocation5 + $0x24f0] ss:$12 sps:$4 sm:$0xff]  }
 0x476   :  { %12800 = vmatprep.mubr.bf16.mxu0 %v21085_v63 }
 0x477   :  { %17566 = vmatpush3.bf16.msra.mxu1 %v19628_v18  ;;  %v19677_v18 = vld [vmem:[#allocation5 + $0x1a90] ss:$12 sps:$4 sm:$0xff]  }
 0x478   :  { %12771 = vmatpush1.bf16.msra.mxu0 %v19624_v0  ;;  %17567 = vmatprep.subr.bf16.mxu1 %v19632_v49  ;;  %v19676_v0 = vld [vmem:[#allocation5 + $0x250c] ss:$12 sps:$4 sm:$0xff]   ;;  %v19681_v49 = vld [vmem:[#allocation5 + $0x2524] ss:$12 sps:$4 sm:$0xff]  }
 0x479   :  { %12772 = vmatprep.subr.bf16.mxu0 %v19631_v54  ;;  %v19674_v54 = vld [vmem:[#allocation5 + $0x2508] ss:$12 sps:$4 sm:$0xff]  }
 0x47b   :  { %17568 = vmatpush3.bf16.msra.mxu1 %v19633_v56  ;;  %v19679_v56 = vld [vmem:[#allocation5 + $0x2520] ss:$12 sps:$4 sm:$0xff]  }
 0x47c   :  { %12773 = vmatpush1.bf16.msra.mxu0 %v19629_v57  ;;  %17569 = vmatprep.subr.bf16.mxu1 %v19637_v5  ;;  %v19682_v57 = vld [vmem:[#allocation5 + $0x1aa8] ss:$12 sps:$4 sm:$0xff]   ;;  %v19687_v5 = vld [vmem:[#allocation5 + $0x1ac0] ss:$12 sps:$4 sm:$0xff]  }
 0x47d   :  { %12774 = vmatprep.subr.bf16.mxu0 %v19636_v26  ;;  %v19683_v26 = vld [vmem:[#allocation5 + $0x19e8] ss:$12 sps:$4 sm:$0xff]  }
 0x47f   :  { %17570 = vmatpush3.bf16.msra.mxu1 %v19638_v62  ;;  %v19688_v62 = vld [vmem:[#allocation5 + $0x1a00] ss:$12 sps:$4 sm:$0xff]  }
 0x480   :  { %12775 = vmatpush1.bf16.msra.mxu0 %v19634_v61  ;;  %17571 = vmatprep.subr.bf16.mxu1 %v19642_v22  ;;  %v19684_v61 = vld [vmem:[#allocation5 + $0x2538] ss:$12 sps:$4 sm:$0xff]  }
 0x481   :  { %12776 = vmatprep.subr.bf16.mxu0 %v19641_v35  ;;  %v19691_v35 = vld [vmem:[#allocation5 + $0x2554] ss:$12 sps:$4 sm:$0xff]   ;;  %v19692_v22 = vld [vmem:[#allocation5 + $0x1ad8] ss:$12 sps:$4 sm:$0xff]  }
 0x483   :  { %17572 = vmatpush3.bf16.msra.mxu1 %v19643_v19  ;;  %v19689_v19 = vld [vmem:[#allocation5 + $0x2550] ss:$12 sps:$4 sm:$0xff]  }
 0x484   :  { %12777 = vmatpush1.bf16.msra.mxu0 %v19639_v2  ;;  %17573 = vmatprep.subr.bf16.mxu1 %v19647_v28 }
 0x485   :  { %12778 = vmatprep.subr.bf16.mxu0 %v19646_v12  ;;  %v17425_v36 = vpop.f32.mrb[40].mxu1  ;;  %v19693_v12 = vld [vmem:[#allocation5 + $0x1a18] ss:$12 sps:$4 sm:$0xff]  }
 0x486   :  { %v17426_v25 = vpop.f32.mrb[41].mxu1 }
 0x487   :  { %v17427_v31 = vadd.f32 %v17426_v25, %v17425_v36  ;;  %17574 = vmatpush3.bf16.msra.mxu1 %v19648_v24  ;;  %v17428_v3 = vpop.f32.mrb[42].mxu1  ;;  %v19698_v25 = vld [vmem:[#allocation5 + $0x1a30] ss:$12 sps:$4 sm:$0xff]  }
 0x488   :  { %12779 = vmatpush1.bf16.msra.mxu0 %v19644_v15  ;;  %17575 = vmatprep.subr.bf16.mxu1 %v19652_v30  ;;  %v17429_v45 = vpop.f32.mrb[43].mxu1  ;;  %v19697_v30 = vld [vmem:[#allocation5 + $0x1af0] ss:$12 sps:$4 sm:$0xff]   ;;  %v151_v3 = vld [vmem:[#allocation3 + $0x180] sm:$0xff] }
 0x489   :  { %12780 = vmatprep.subr.bf16.mxu0 %v19651_v17  ;;  %v21092_v10 = vadd.f32 %v17427_v31, %v21081_v11  ;;  %v19668_v11 = vld [vmem:[#allocation5 + $0x19a0] ss:$12 sps:$4 sm:$0xff]   ;;  %v19701_v31 = vld [vmem:[#allocation5 + $0x2584] ss:$12 sps:$4 sm:$0xff]   ;;  %v21099_v45 = vpack.c.bf16 %v151_v3, %v151_v3 }
 0x48a   :  { %v19696_v17 = vld [vmem:[#allocation5 + $0x256c] ss:$12 sps:$4 sm:$0xff]  }
 0x48b   :  { %17576 = vmatpush3.bf16.msra.mxu1 %v19653_v44  ;;  %v19694_v44 = vld [vmem:[#allocation5 + $0x2568] ss:$12 sps:$4 sm:$0xff]   ;;  %v19744_v3 = vld [vmem:[#allocation5 + $0x2658] ss:$12 sps:$4 sm:$0xff]  }
 0x48c   :  { %12781 = vmatpush1.bf16.msra.mxu0 %v19649_v4  ;;  %17577 = vmatprep.subr.bf16.mxu1 %v19657_v42  ;;  %v154_v42 = vld [vmem:[#allocation3 + $0x198] sm:$0xff] }
 0x48d   :  { %12782 = vmatprep.subr.bf16.mxu0 %v19656_v46  ;;  %v19702_v46 = vld [vmem:[#allocation5 + $0x1bc8] ss:$12 sps:$4 sm:$0xff]  }
 0x48f   :  { %17578 = vmatpush3.bf16.msra.mxu1 %v19658_v34  ;;  %v19703_v34 = vld [vmem:[#allocation5 + $0x1b08] ss:$12 sps:$4 sm:$0xff]  }
 0x490   :  { %12783 = vmatpush1.bf16.msra.mxu0 %v19654_v51  ;;  %17585 = vmatprep.subr.bf16.mxu1 %v19662_v9  ;;  %v19699_v51 = vld [vmem:[#allocation5 + $0x2580] ss:$12 sps:$4 sm:$0xff]   ;;  %v19704_v9 = vld [vmem:[#allocation5 + $0x2598] ss:$12 sps:$4 sm:$0xff]  }
 0x491   :  { %12784 = vmatprep.subr.bf16.mxu0 %v19661_v32  ;;  %v19707_v32 = vld [vmem:[#allocation5 + $0x1be0] ss:$12 sps:$4 sm:$0xff]  }
 0x492   :  { %13933 = vmatmul.mubr.bf16.vlgmr.msra.gmra.mrb[68].mxu1 %v20980_v6  ;;  %v19678_v6 = vld [vmem:[#allocation5 + $0x19d0] ss:$12 sps:$4 sm:$0xff]  }
 0x493   :  { %17586 = vmatpush3.bf16.msra.mxu1 %v19663_v38  ;;  %13972 = vmatprep.mubr.bf16.mxu1 %v20982_v21  ;;  %v19686_v21 = vld [vmem:[#allocation5 + $0x253c] ss:$12 sps:$4 sm:$0xff]   ;;  %v19708_v38 = vld [vmem:[#allocation5 + $0x1b20] ss:$12 sps:$4 sm:$0xff]  }
 0x494   :  { %12785 = vmatpush1.bf16.msra.mxu0 %v19659_v33  ;;  %17587 = vmatprep.subr.bf16.mxu1 %v19667_v39  ;;  %v21101_v33 = vpack.c.bf16 %v154_v42, %v154_v42  ;;  %v19712_v39 = vld [vmem:[#allocation5 + $0x1bf8] ss:$12 sps:$4 sm:$0xff]  }
 0x495   :  { %12786 = vmatprep.subr.bf16.mxu0 %v19666_v50  ;;  %v19711_v50 = vld [vmem:[#allocation5 + $0x25b4] ss:$12 sps:$4 sm:$0xff]   ;;  %v19752_v42 = vld [vmem:[#allocation5 + $0x1d78] ss:$12 sps:$4 sm:$0xff]  }
 0x497   :  { %17588 = vmatpush3.bf16.msra.mxu1 %v19668_v11  ;;  %v19713_v11 = vld [vmem:[#allocation5 + $0x1b38] ss:$12 sps:$4 sm:$0xff]  }
 0x498   :  { %12787 = vmatpush1.bf16.msra.mxu0 %v19664_v37  ;;  %17589 = vmatprep.subr.bf16.mxu1 %v19672_v53  ;;  %v19709_v37 = vld [vmem:[#allocation5 + $0x25b0] ss:$12 sps:$4 sm:$0xff]   ;;  %v19714_v53 = vld [vmem:[#allocation5 + $0x25c8] ss:$12 sps:$4 sm:$0xff]  }
 0x499   :  { %12788 = vmatprep.subr.bf16.mxu0 %v19671_v47  ;;  %v19716_v47 = vld [vmem:[#allocation5 + $0x25cc] ss:$12 sps:$4 sm:$0xff]  }
 0x49b   :  { %17590 = vmatpush3.bf16.msra.mxu1 %v19673_v55  ;;  %v19721_v55 = vld [vmem:[#allocation5 + $0x25e4] ss:$12 sps:$4 sm:$0xff]  }
 0x49c   :  { %12789 = vmatpush1.bf16.msra.mxu0 %v19669_v29  ;;  %17591 = vmatprep.subr.bf16.mxu1 %v19677_v18  ;;  %v19718_v29 = vld [vmem:[#allocation5 + $0x1b50] ss:$12 sps:$4 sm:$0xff]   ;;  %v19719_v18 = vld [vmem:[#allocation5 + $0x25e0] ss:$12 sps:$4 sm:$0xff]  }
 0x49d   :  { %12790 = vmatprep.subr.bf16.mxu0 %v19676_v0  ;;  %v19722_v0 = vld [vmem:[#allocation5 + $0x1c28] ss:$12 sps:$4 sm:$0xff]  }
 0x49f   :  { %17592 = vmatpush3.bf16.msra.mxu1 %v19678_v6  ;;  %v19727_v6 = vld [vmem:[#allocation5 + $0x1c40] ss:$12 sps:$4 sm:$0xff]  }
 0x4a0   :  { %12791 = vmatpush1.bf16.msra.mxu0 %v19674_v54  ;;  %17593 = vmatprep.subr.bf16.mxu1 %v19682_v57  ;;  %v19726_v54 = vld [vmem:[#allocation5 + $0x25fc] ss:$12 sps:$4 sm:$0xff]   ;;  %v19728_v57 = vld [vmem:[#allocation5 + $0x1b80] ss:$12 sps:$4 sm:$0xff]  }
 0x4a1   :  { %12792 = vmatprep.subr.bf16.mxu0 %v19681_v49  ;;  %v19724_v49 = vld [vmem:[#allocation5 + $0x25f8] ss:$12 sps:$4 sm:$0xff]  }
 0x4a3   :  { %17594 = vmatpush3.bf16.msra.mxu1 %v19683_v26  ;;  %v19732_v26 = vld [vmem:[#allocation5 + $0x1c58] ss:$12 sps:$4 sm:$0xff]  }
 0x4a4   :  { %12793 = vmatpush1.bf16.msra.mxu0 %v19679_v56  ;;  %17595 = vmatprep.subr.bf16.mxu1 %v19687_v5  ;;  %v19731_v56 = vld [vmem:[#allocation5 + $0x2614] ss:$12 sps:$4 sm:$0xff]   ;;  %v19729_v5 = vld [vmem:[#allocation5 + $0x2610] ss:$12 sps:$4 sm:$0xff]  }
 0x4a5   :  { %12794 = vmatprep.subr.bf16.mxu0 %v19686_v21  ;;  %v17447_v2 = vpop.f32.mrb[44].mxu1 }
 0x4a6   :  { %v17448_v28 = vpop.f32.mrb[45].mxu1 }
 0x4a7   :  { %v17449_v15 = vadd.f32 %v17448_v28, %v17447_v2  ;;  %17596 = vmatpush3.bf16.msra.mxu1 %v19688_v62  ;;  %v17450_v24 = vpop.f32.mrb[46].mxu1  ;;  %v19736_v2 = vld [vmem:[#allocation5 + $0x262c] ss:$12 sps:$4 sm:$0xff]  }
 0x4a8   :  { %12795 = vmatpush1.bf16.msra.mxu0 %v19684_v61  ;;  %17597 = vmatprep.subr.bf16.mxu1 %v19692_v22  ;;  %v17451_v36 = vpop.f32.mrb[47].mxu1  ;;  %v19733_v61 = vld [vmem:[#allocation5 + $0x1b98] ss:$12 sps:$4 sm:$0xff]   ;;  %v19738_v24 = vld [vmem:[#allocation5 + $0x1bb0] ss:$12 sps:$4 sm:$0xff]  }
 0x4a9   :  { %12796 = vmatprep.subr.bf16.mxu0 %v19691_v35  ;;  %v21097_v4 = vadd.f32 %v17449_v15, %v21092_v10  ;;  %v19706_v10 = vld [vmem:[#allocation5 + $0x259c] ss:$12 sps:$4 sm:$0xff]   ;;  %v19739_v36 = vld [vmem:[#allocation5 + $0x2640] ss:$12 sps:$4 sm:$0xff]  }
 0x4aa   :  { %v19734_v15 = vld [vmem:[#allocation5 + $0x2628] ss:$12 sps:$4 sm:$0xff]  }
 0x4ab   :  { %17598 = vmatpush3.bf16.msra.mxu1 %v19693_v12 }
 0x4ac   :  { %12797 = vmatpush1.bf16.msra.mxu0 %v19689_v19  ;;  %17599 = vmatprep.subr.bf16.mxu1 %v19697_v30  ;;  %v19737_v19 = vld [vmem:[#allocation5 + $0x1c70] ss:$12 sps:$4 sm:$0xff]   ;;  %v19742_v30 = vld [vmem:[#allocation5 + $0x1d48] ss:$12 sps:$4 sm:$0xff]  }
 0x4ad   :  { %12798 = vmatprep.subr.bf16.mxu0 %v19696_v17  ;;  %v19741_v17 = vld [vmem:[#allocation5 + $0x2644] ss:$12 sps:$4 sm:$0xff]  }
 0x4af   :  { %17600 = vmatpush3.bf16.msra.mxu1 %v19698_v25  ;;  %v19746_v25 = vld [vmem:[#allocation5 + $0x265c] ss:$12 sps:$4 sm:$0xff]  }
 0x4b0   :  { %12799 = vmatpush1.bf16.msra.mxu0 %v19694_v44  ;;  %17607 = vmatprep.subr.bf16.mxu1 %v19702_v46  ;;  %v19743_v44 = vld [vmem:[#allocation5 + $0x1c88] ss:$12 sps:$4 sm:$0xff]  }
 0x4b1   :  { %12809 = vmatprep.subr.bf16.mxu0 %v19701_v31  ;;  %v19747_v31 = vld [vmem:[#allocation5 + $0x1d60] ss:$12 sps:$4 sm:$0xff]  }
 0x4b2   :  { %13973 = vmatmul.mubr.bf16.vlgmr.msra.gmra.mrb[72].mxu1 %v20990_v60  ;;  %v19717_v60 = vld [vmem:[#allocation5 + $0x1c10] ss:$12 sps:$4 sm:$0xff]   ;;  %v19751_v46 = vld [vmem:[#allocation5 + $0x2674] ss:$12 sps:$4 sm:$0xff]  }
 0x4b3   :  { %12801 = vmatmul.mubr.bf16.vlgmr.msra.gmra.mrb[0].mxu0 %v21099_v45  ;;  %17608 = vmatpush3.bf16.msra.mxu1 %v19703_v34  ;;  %v19753_v34 = vld [vmem:[#allocation5 + $0x1cb8] ss:$12 sps:$4 sm:$0xff]  }
 0x4b4   :  { %12810 = vmatpush1.bf16.msra.mxu0 %v19699_v51  ;;  %17609 = vmatprep.subr.bf16.mxu1 %v19707_v32  ;;  %v19749_v51 = vld [vmem:[#allocation5 + $0x2670] ss:$12 sps:$4 sm:$0xff]  }
 0x4b5   :  { %12811 = vmatprep.subr.bf16.mxu0 %v19706_v10  ;;  %14012 = vmatprep.mubr.bf16.mxu1 %v20992_v13  ;;  %v19723_v13 = vld [vmem:[#allocation5 + $0x1b68] ss:$12 sps:$4 sm:$0xff]   ;;  %v19756_v10 = vld [vmem:[#allocation5 + $0x268c] ss:$12 sps:$4 sm:$0xff]   ;;  %v19757_v32 = vld [vmem:[#allocation5 + $0x1d90] ss:$12 sps:$4 sm:$0xff]  }
 0x4b6   :  { %12841 = vmatprep.mubr.bf16.mxu0 %v21101_v33 }
 0x4b7   :  { %17610 = vmatpush3.bf16.msra.mxu1 %v19708_v38  ;;  %v19761_v38 = vld [vmem:[#allocation5 + $0x26a4] ss:$12 sps:$4 sm:$0xff]  }
 0x4b8   :  { %12812 = vmatpush1.bf16.msra.mxu0 %v19704_v9  ;;  %17611 = vmatprep.subr.bf16.mxu1 %v19712_v39  ;;  %v19754_v9 = vld [vmem:[#allocation5 + $0x2688] ss:$12 sps:$4 sm:$0xff]   ;;  %v19759_v39 = vld [vmem:[#allocation5 + $0x26a0] ss:$12 sps:$4 sm:$0xff]  }
 0x4b9   :  { %12813 = vmatprep.subr.bf16.mxu0 %v19711_v50  ;;  %v19762_v50 = vld [vmem:[#allocation5 + $0x1da8] ss:$12 sps:$4 sm:$0xff]  }
 0x4bb   :  { %17612 = vmatpush3.bf16.msra.mxu1 %v19713_v11  ;;  %v19767_v11 = vld [vmem:[#allocation5 + $0x1dc0] ss:$12 sps:$4 sm:$0xff]  }
 0x4bc   :  { %12814 = vmatpush1.bf16.msra.mxu0 %v19709_v37  ;;  %17613 = vmatprep.subr.bf16.mxu1 %v19717_v60  ;;  %v19763_v37 = vld [vmem:[#allocation5 + $0x1ce8] ss:$12 sps:$4 sm:$0xff]   ;;  %v19768_v60 = vld [vmem:[#allocation5 + $0x1d00] ss:$12 sps:$4 sm:$0xff]  }
 0x4bd   :  { %12815 = vmatprep.subr.bf16.mxu0 %v19716_v47  ;;  %v19764_v47 = vld [vmem:[#allocation5 + $0x26b8] ss:$12 sps:$4 sm:$0xff]  }
 0x4bf   :  { %17614 = vmatpush3.bf16.msra.mxu1 %v19718_v29  ;;  %v19772_v29 = vld [vmem:[#allocation5 + $0x1dd8] ss:$12 sps:$4 sm:$0xff]  }
 0x4c0   :  { %12816 = vmatpush1.bf16.msra.mxu0 %v19714_v53  ;;  %17615 = vmatprep.subr.bf16.mxu1 %v19722_v0  ;;  %v19771_v53 = vld [vmem:[#allocation5 + $0x26d4] ss:$12 sps:$4 sm:$0xff]   ;;  %v19769_v0 = vld [vmem:[#allocation5 + $0x26d0] ss:$12 sps:$4 sm:$0xff]  }
 0x4c1   :  { %12817 = vmatprep.subr.bf16.mxu0 %v19721_v55 }
 0x4c3   :  { %17616 = vmatpush3.bf16.msra.mxu1 %v19723_v13 }
 0x4c4   :  { %12818 = vmatpush1.bf16.msra.mxu0 %v19719_v18  ;;  %17617 = vmatprep.subr.bf16.mxu1 %v19727_v6  ;;  %v19773_v18 = vld [vmem:[#allocation5 + $0x1d18] ss:$12 sps:$4 sm:$0xff]  }
 0x4c5   :  { %12819 = vmatprep.subr.bf16.mxu0 %v19726_v54  ;;  %v17469_v21 = vpop.f32.mrb[48].mxu1 }
 0x4c6   :  { %v17470_v62 = vpop.f32.mrb[49].mxu1 }
 0x4c7   :  { %v17471_v35 = vadd.f32 %v17470_v62, %v17469_v21  ;;  %17618 = vmatpush3.bf16.msra.mxu1 %v19728_v57  ;;  %v17472_v22 = vpop.f32.mrb[50].mxu1  ;;  %v19777_v57 = vld [vmem:[#allocation5 + $0x1df0] ss:$12 sps:$4 sm:$0xff]   ;;  %v19774_v21 = vld [vmem:[#allocation5 + $0x26e8] ss:$12 sps:$4 sm:$0xff]  }
 0x4c8   :  { %12820 = vmatpush1.bf16.msra.mxu0 %v19724_v49  ;;  %17619 = vmatprep.subr.bf16.mxu1 %v19732_v26  ;;  %v17473_v12 = vpop.f32.mrb[51].mxu1  ;;  %v19776_v49 = vld [vmem:[#allocation5 + $0x26ec] ss:$12 sps:$4 sm:$0xff]   ;;  %v153_v62 = vld [vmem:[#allocation3 + $0x190] sm:$0xff] }
 0x4c9   :  { %12821 = vmatprep.subr.bf16.mxu0 %v19731_v56  ;;  %v21108_v28 = vadd.f32 %v17471_v35, %v21097_v4  ;;  %v19748_v4 = vld [vmem:[#allocation5 + $0x1ca0] ss:$12 sps:$4 sm:$0xff]   ;;  %v19782_v35 = vld [vmem:[#allocation5 + $0x1ec8] ss:$12 sps:$4 sm:$0xff]  }
 0x4ca   :  { %v156_v22 = vld [vmem:[#allocation3 + $0x1a8] sm:$0xff] }
 0x4cb   :  { %17620 = vmatpush3.bf16.msra.mxu1 %v19733_v61  ;;  %v19781_v61 = vld [vmem:[#allocation5 + $0x2704] ss:$12 sps:$4 sm:$0xff]   ;;  %v19783_v12 = vld [vmem:[#allocation5 + $0x1e08] ss:$12 sps:$4 sm:$0xff]  }
 0x4cc   :  { %12822 = vmatpush1.bf16.msra.mxu0 %v19729_v5  ;;  %17621 = vmatprep.subr.bf16.mxu1 %v19737_v19  ;;  %v19778_v5 = vld [vmem:[#allocation5 + $0x1d30] ss:$12 sps:$4 sm:$0xff]   ;;  %v19779_v19 = vld [vmem:[#allocation5 + $0x2700] ss:$12 sps:$4 sm:$0xff]  }
 0x4cd   :  { %12823 = vmatprep.subr.bf16.mxu0 %v19736_v2  ;;  %v21115_v2 = vpack.c.bf16 %v153_v62, %v153_v62  ;;  %v19832_v62 = vld [vmem:[#allocation5 + $0x2078] ss:$12 sps:$4 sm:$0xff]  }
 0x4cf   :  { %17622 = vmatpush3.bf16.msra.mxu1 %v19738_v24  ;;  %v19784_v24 = vld [vmem:[#allocation5 + $0x2718] ss:$12 sps:$4 sm:$0xff]  }
 0x4d0   :  { %12824 = vmatpush1.bf16.msra.mxu0 %v19734_v15  ;;  %17629 = vmatprep.subr.bf16.mxu1 %v19742_v30  ;;  %v19787_v15 = vld [vmem:[#allocation5 + $0x1ee0] ss:$12 sps:$4 sm:$0xff]  }
 0x4d1   :  { %12825 = vmatprep.subr.bf16.mxu0 %v19741_v17  ;;  %v21117_v17 = vpack.c.bf16 %v156_v22, %v156_v22  ;;  %v19788_v30 = vld [vmem:[#allocation5 + $0x1e20] ss:$12 sps:$4 sm:$0xff]   ;;  %v19833_v22 = vld [vmem:[#allocation5 + $0x1fb8] ss:$12 sps:$4 sm:$0xff]  }
 0x4d2   :  { %14013 = vmatmul.mubr.bf16.vlgmr.msra.gmra.mrb[76].mxu1 %v21000_v48  ;;  %v19758_v48 = vld [vmem:[#allocation5 + $0x1cd0] ss:$12 sps:$4 sm:$0xff]  }
 0x4d3   :  { %17630 = vmatpush3.bf16.msra.mxu1 %v19743_v44  ;;  %14052 = vmatprep.mubr.bf16.mxu1 %v21002_v58  ;;  %v19766_v58 = vld [vmem:[#allocation5 + $0x26bc] ss:$12 sps:$4 sm:$0xff]   ;;  %v19792_v44 = vld [vmem:[#allocation5 + $0x1ef8] ss:$12 sps:$4 sm:$0xff]  }
 0x4d4   :  { %12826 = vmatpush1.bf16.msra.mxu0 %v19739_v36  ;;  %17631 = vmatprep.subr.bf16.mxu1 %v19747_v31  ;;  %v19791_v36 = vld [vmem:[#allocation5 + $0x2734] ss:$12 sps:$4 sm:$0xff]   ;;  %v19793_v31 = vld [vmem:[#allocation5 + $0x1e38] ss:$12 sps:$4 sm:$0xff]  }
 0x4d5   :  { %12827 = vmatprep.subr.bf16.mxu0 %v19746_v25  ;;  %v19789_v25 = vld [vmem:[#allocation5 + $0x2730] ss:$12 sps:$4 sm:$0xff]  }
 0x4d7   :  { %17632 = vmatpush3.bf16.msra.mxu1 %v19748_v4  ;;  %v19794_v4 = vld [vmem:[#allocation5 + $0x2748] ss:$12 sps:$4 sm:$0xff]  }
 0x4d8   :  { %12828 = vmatpush1.bf16.msra.mxu0 %v19744_v3  ;;  %17633 = vmatprep.subr.bf16.mxu1 %v19752_v42  ;;  %v19796_v3 = vld [vmem:[#allocation5 + $0x274c] ss:$12 sps:$4 sm:$0xff]   ;;  %v19801_v42 = vld [vmem:[#allocation5 + $0x2764] ss:$12 sps:$4 sm:$0xff]  }
 0x4d9   :  { %12829 = vmatprep.subr.bf16.mxu0 %v19751_v46  ;;  %v19798_v46 = vld [vmem:[#allocation5 + $0x1e50] ss:$12 sps:$4 sm:$0xff]  }
 0x4db   :  { %17634 = vmatpush3.bf16.msra.mxu1 %v19753_v34  ;;  %v19799_v34 = vld [vmem:[#allocation5 + $0x2760] ss:$12 sps:$4 sm:$0xff]  }
 0x4dc   :  { %12830 = vmatpush1.bf16.msra.mxu0 %v19749_v51  ;;  %17635 = vmatprep.subr.bf16.mxu1 %v19757_v32  ;;  %v19802_v51 = vld [vmem:[#allocation5 + $0x1f28] ss:$12 sps:$4 sm:$0xff]   ;;  %v19807_v32 = vld [vmem:[#allocation5 + $0x1f40] ss:$12 sps:$4 sm:$0xff]  }
 0x4dd   :  { %12831 = vmatprep.subr.bf16.mxu0 %v19756_v10  ;;  %v19806_v10 = vld [vmem:[#allocation5 + $0x277c] ss:$12 sps:$4 sm:$0xff]  }
 0x4df   :  { %17636 = vmatpush3.bf16.msra.mxu1 %v19758_v48  ;;  %v19808_v48 = vld [vmem:[#allocation5 + $0x1e80] ss:$12 sps:$4 sm:$0xff]  }
 0x4e0   :  { %12832 = vmatpush1.bf16.msra.mxu0 %v19754_v9  ;;  %17637 = vmatprep.subr.bf16.mxu1 %v19762_v50  ;;  %v19804_v9 = vld [vmem:[#allocation5 + $0x2778] ss:$12 sps:$4 sm:$0xff]  }
 0x4e1   :  { %12833 = vmatprep.subr.bf16.mxu0 %v19761_v38  ;;  %v19811_v38 = vld [vmem:[#allocation5 + $0x2794] ss:$12 sps:$4 sm:$0xff]   ;;  %v19812_v50 = vld [vmem:[#allocation5 + $0x1f58] ss:$12 sps:$4 sm:$0xff]  }
 0x4e3   :  { %17638 = vmatpush3.bf16.msra.mxu1 %v19763_v37  ;;  %v19809_v37 = vld [vmem:[#allocation5 + $0x2790] ss:$12 sps:$4 sm:$0xff]  }
 0x4e4   :  { %12834 = vmatpush1.bf16.msra.mxu0 %v19759_v39  ;;  %17639 = vmatprep.subr.bf16.mxu1 %v19767_v11 }
 0x4e5   :  { %12835 = vmatprep.subr.bf16.mxu0 %v19766_v58  ;;  %v17491_v55 = vpop.f32.mrb[52].mxu1  ;;  %v19813_v58 = vld [vmem:[#allocation5 + $0x1e98] ss:$12 sps:$4 sm:$0xff]  }
 0x4e6   :  { %v17492_v13 = vpop.f32.mrb[53].mxu1 }
 0x4e7   :  { %v17493_v54 = vadd.f32 %v17492_v13, %v17491_v55  ;;  %17640 = vmatpush3.bf16.msra.mxu1 %v19768_v60  ;;  %v17494_v6 = vpop.f32.mrb[54].mxu1  ;;  %v19818_v13 = vld [vmem:[#allocation5 + $0x1eb0] ss:$12 sps:$4 sm:$0xff]  }
 0x4e8   :  { %12836 = vmatpush1.bf16.msra.mxu0 %v19764_v47  ;;  %17641 = vmatprep.subr.bf16.mxu1 %v19772_v29  ;;  %v17495_v56 = vpop.f32.mrb[55].mxu1  ;;  %v19817_v29 = vld [vmem:[#allocation5 + $0x1f70] ss:$12 sps:$4 sm:$0xff]   ;;  %v19822_v6 = vld [vmem:[#allocation5 + $0x2048] ss:$12 sps:$4 sm:$0xff]  }
 0x4e9   :  { %12837 = vmatprep.subr.bf16.mxu0 %v19771_v53  ;;  %v21113_v26 = vadd.f32 %v17493_v54, %v21108_v28  ;;  %v19786_v28 = vld [vmem:[#allocation5 + $0x271c] ss:$12 sps:$4 sm:$0xff]   ;;  %v19816_v53 = vld [vmem:[#allocation5 + $0x27ac] ss:$12 sps:$4 sm:$0xff]   ;;  %v19821_v54 = vld [vmem:[#allocation5 + $0x27c4] ss:$12 sps:$4 sm:$0xff]  }
 0x4ea   :  { %v19826_v56 = vld [vmem:[#allocation5 + $0x27dc] ss:$12 sps:$4 sm:$0xff]  }
 0x4eb   :  { %17642 = vmatpush3.bf16.msra.mxu1 %v19773_v18  ;;  %v19814_v18 = vld [vmem:[#allocation5 + $0x27a8] ss:$12 sps:$4 sm:$0xff]  }
 0x4ec   :  { %12838 = vmatpush1.bf16.msra.mxu0 %v19769_v0  ;;  %17643 = vmatprep.subr.bf16.mxu1 %v19777_v57  ;;  %v19823_v57 = vld [vmem:[#allocation5 + $0x1f88] ss:$12 sps:$4 sm:$0xff]  }
 0x4ed   :  { %12839 = vmatprep.subr.bf16.mxu0 %v19776_v49  ;;  %v19819_v49 = vld [vmem:[#allocation5 + $0x27c0] ss:$12 sps:$4 sm:$0xff]  }
 0x4ef   :  { %17644 = vmatpush3.bf16.msra.mxu1 %v19778_v5  ;;  %v19824_v5 = vld [vmem:[#allocation5 + $0x27d8] ss:$12 sps:$4 sm:$0xff]  }
 0x4f0   :  { %12840 = vmatpush1.bf16.msra.mxu0 %v19774_v21  ;;  %17651 = vmatprep.subr.bf16.mxu1 %v19782_v35  ;;  %v19827_v21 = vld [vmem:[#allocation5 + $0x2060] ss:$12 sps:$4 sm:$0xff]   ;;  %v19829_v35 = vld [vmem:[#allocation5 + $0x27f0] ss:$12 sps:$4 sm:$0xff]  }
 0x4f1   :  { %12850 = vmatprep.subr.bf16.mxu0 %v19781_v61  ;;  %v19831_v61 = vld [vmem:[#allocation5 + $0x27f4] ss:$12 sps:$4 sm:$0xff]  }
 0x4f2   :  { %14053 = vmatmul.mubr.bf16.vlgmr.msra.gmra.mrb[80].mxu1 %v21014_v40  ;;  %v19797_v40 = vld [vmem:[#allocation5 + $0x1f10] ss:$12 sps:$4 sm:$0xff]  }
 0x4f3   :  { %12842 = vmatmul.mubr.bf16.vlgmr.msra.gmra.mrb[0].mxu0 %v21115_v2  ;;  %17652 = vmatpush3.bf16.msra.mxu1 %v19783_v12  ;;  %v19837_v12 = vld [vmem:[#allocation5 + $0x2090] ss:$12 sps:$4 sm:$0xff]  }
 0x4f4   :  { %12851 = vmatpush1.bf16.msra.mxu0 %v19779_v19  ;;  %17653 = vmatprep.subr.bf16.mxu1 %v19787_v15  ;;  %v19836_v19 = vld [vmem:[#allocation5 + $0x280c] ss:$12 sps:$4 sm:$0xff]   ;;  %v19841_v15 = vld [vmem:[#allocation5 + $0x2824] ss:$12 sps:$4 sm:$0xff]  }
 0x4f5   :  { %12852 = vmatprep.subr.bf16.mxu0 %v19786_v28  ;;  %14092 = vmatprep.mubr.bf16.mxu1 %v21016_v52  ;;  %v19803_v52 = vld [vmem:[#allocation5 + $0x1e68] ss:$12 sps:$4 sm:$0xff]  }
 0x4f6   :  { %12882 = vmatprep.mubr.bf16.mxu0 %v21117_v17  ;;  %v19834_v28 = vld [vmem:[#allocation5 + $0x2808] ss:$12 sps:$4 sm:$0xff]  }
 0x4f7   :  { %17654 = vmatpush3.bf16.msra.mxu1 %v19788_v30  ;;  %v19839_v30 = vld [vmem:[#allocation5 + $0x2820] ss:$12 sps:$4 sm:$0xff]  }
 0x4f8   :  { %12853 = vmatpush1.bf16.msra.mxu0 %v19784_v24  ;;  %17655 = vmatprep.subr.bf16.mxu1 %v19792_v44  ;;  %v19842_v24 = vld [vmem:[#allocation5 + $0x20a8] ss:$12 sps:$4 sm:$0xff]   ;;  %v19847_v44 = vld [vmem:[#allocation5 + $0x20c0] ss:$12 sps:$4 sm:$0xff]  }
 0x4f9   :  { %12854 = vmatprep.subr.bf16.mxu0 %v19791_v36  ;;  %v19843_v36 = vld [vmem:[#allocation5 + $0x1fe8] ss:$12 sps:$4 sm:$0xff]  }
 0x4fb   :  { %17656 = vmatpush3.bf16.msra.mxu1 %v19793_v31  ;;  %v19848_v31 = vld [vmem:[#allocation5 + $0x2000] ss:$12 sps:$4 sm:$0xff]  }
 0x4fc   :  { %12855 = vmatpush1.bf16.msra.mxu0 %v19789_v25  ;;  %17657 = vmatprep.subr.bf16.mxu1 %v19797_v40  ;;  %v19844_v25 = vld [vmem:[#allocation5 + $0x2838] ss:$12 sps:$4 sm:$0xff]  }
 0x4fd   :  { %12856 = vmatprep.subr.bf16.mxu0 %v19796_v3  ;;  %v19851_v3 = vld [vmem:[#allocation5 + $0x2854] ss:$12 sps:$4 sm:$0xff]   ;;  %v19852_v40 = vld [vmem:[#allocation5 + $0x20d8] ss:$12 sps:$4 sm:$0xff]  }
 0x4ff   :  { %17658 = vmatpush3.bf16.msra.mxu1 %v19798_v46  ;;  %v19849_v46 = vld [vmem:[#allocation5 + $0x2850] ss:$12 sps:$4 sm:$0xff]  }
 0x500   :  { %12857 = vmatpush1.bf16.msra.mxu0 %v19794_v4  ;;  %17659 = vmatprep.subr.bf16.mxu1 %v19802_v51 }
 0x501   :  { %12858 = vmatprep.subr.bf16.mxu0 %v19801_v42  ;;  %v19853_v42 = vld [vmem:[#allocation5 + $0x2018] ss:$12 sps:$4 sm:$0xff]  }
 0x503   :  { %17660 = vmatpush3.bf16.msra.mxu1 %v19803_v52 }
 0x504   :  { %12859 = vmatpush1.bf16.msra.mxu0 %v19799_v34  ;;  %17661 = vmatprep.subr.bf16.mxu1 %v19807_v32  ;;  %v19857_v32 = vld [vmem:[#allocation5 + $0x20f0] ss:$12 sps:$4 sm:$0xff]  }
 0x505   :  { %12860 = vmatprep.subr.bf16.mxu0 %v19806_v10  ;;  %v17513_v39 = vpop.f32.mrb[56].mxu1  ;;  %v19856_v10 = vld [vmem:[#allocation5 + $0x286c] ss:$12 sps:$4 sm:$0xff]  }
 0x506   :  { %v17514_v11 = vpop.f32.mrb[57].mxu1 }
 0x507   :  { %v17515_v47 = vadd.f32 %v17514_v11, %v17513_v39  ;;  %17662 = vmatpush3.bf16.msra.mxu1 %v19808_v48  ;;  %v17516_v60 = vpop.f32.mrb[58].mxu1  ;;  %v19861_v39 = vld [vmem:[#allocation5 + $0x2884] ss:$12 sps:$4 sm:$0xff]   ;;  %v158_v11 = vld [vmem:[#allocation3 + $0x1b8] sm:$0xff] }
 0x508   :  { %12861 = vmatpush1.bf16.msra.mxu0 %v19804_v9  ;;  %17663 = vmatprep.subr.bf16.mxu1 %v19812_v50  ;;  %v17517_v55 = vpop.f32.mrb[59].mxu1  ;;  %v19858_v50 = vld [vmem:[#allocation5 + $0x2030] ss:$12 sps:$4 sm:$0xff]   ;;  %v19859_v60 = vld [vmem:[#allocation5 + $0x2880] ss:$12 sps:$4 sm:$0xff]  }
 0x509   :  { %12862 = vmatprep.subr.bf16.mxu0 %v19811_v38  ;;  %v21124_v0 = vadd.f32 %v17515_v47, %v21113_v26  ;;  %v19828_v26 = vld [vmem:[#allocation5 + $0x1fa0] ss:$12 sps:$4 sm:$0xff]   ;;  %v19854_v38 = vld [vmem:[#allocation5 + $0x2868] ss:$12 sps:$4 sm:$0xff]  }
 0x50a   :  { %v19867_v55 = vld [vmem:[#allocation5 + $0x21e0] ss:$12 sps:$4 sm:$0xff]  }
 0x50b   :  { %17664 = vmatpush3.bf16.msra.mxu1 %v19813_v58  ;;  %v19862_v58 = vld [vmem:[#allocation5 + $0x21c8] ss:$12 sps:$4 sm:$0xff]  }
 0x50c   :  { %12863 = vmatpush1.bf16.msra.mxu0 %v19809_v37  ;;  %17665 = vmatprep.subr.bf16.mxu1 %v19817_v29  ;;  %v155_v37 = vld [vmem:[#allocation3 + $0x1a0] sm:$0xff]  ;;  %v19866_v29 = vld [vmem:[#allocation5 + $0x289c] ss:$12 sps:$4 sm:$0xff]  }
 0x50d   :  { %12864 = vmatprep.subr.bf16.mxu0 %v19816_v53  ;;  %v21131_v47 = vpack.c.bf16 %v155_v37, %v155_v37  ;;  %v19863_v53 = vld [vmem:[#allocation5 + $0x2108] ss:$12 sps:$4 sm:$0xff]   ;;  %v19913_v37 = vld [vmem:[#allocation5 + $0x22b8] ss:$12 sps:$4 sm:$0xff]  }
 0x50f   :  { %17666 = vmatpush3.bf16.msra.mxu1 %v19818_v13  ;;  %v19868_v13 = vld [vmem:[#allocation5 + $0x2120] ss:$12 sps:$4 sm:$0xff]  }
 0x510   :  { %12865 = vmatpush1.bf16.msra.mxu0 %v19814_v18  ;;  %17673 = vmatprep.subr.bf16.mxu1 %v19822_v6  ;;  %v21133_v18 = vpack.c.bf16 %v158_v11, %v158_v11  ;;  %v19872_v6 = vld [vmem:[#allocation5 + $0x21f8] ss:$12 sps:$4 sm:$0xff]   ;;  %v19917_v11 = vld [vmem:[#allocation5 + $0x2390] ss:$12 sps:$4 sm:$0xff]  }
 0x511   :  { %12866 = vmatprep.subr.bf16.mxu0 %v19821_v54  ;;  %v19871_v54 = vld [vmem:[#allocation5 + $0x28b4] ss:$12 sps:$4 sm:$0xff]  }
 0x512   :  { %14093 = vmatmul.mubr.bf16.vlgmr.msra.gmra.mrb[84].mxu1 %v21035_v7  ;;  %v19838_v7 = vld [vmem:[#allocation5 + $0x1fd0] ss:$12 sps:$4 sm:$0xff]  }
 0x513   :  { %17674 = vmatpush3.bf16.msra.mxu1 %v19823_v57  ;;  %14132 = vmatprep.mubr.bf16.mxu1 %v21037_v20  ;;  %v19846_v20 = vld [vmem:[#allocation5 + $0x283c] ss:$12 sps:$4 sm:$0xff]   ;;  %v19873_v57 = vld [vmem:[#allocation5 + $0x2138] ss:$12 sps:$4 sm:$0xff]  }
 0x514   :  { %12867 = vmatpush1.bf16.msra.mxu0 %v19819_v49  ;;  %17675 = vmatprep.subr.bf16.mxu1 %v19827_v21  ;;  %v19869_v49 = vld [vmem:[#allocation5 + $0x28b0] ss:$12 sps:$4 sm:$0xff]   ;;  %v19874_v21 = vld [vmem:[#allocation5 + $0x28c8] ss:$12 sps:$4 sm:$0xff]  }
 0x515   :  { %12868 = vmatprep.subr.bf16.mxu0 %v19826_v56  ;;  %v19876_v56 = vld [vmem:[#allocation5 + $0x28cc] ss:$12 sps:$4 sm:$0xff]  }
 0x517   :  { %17676 = vmatpush3.bf16.msra.mxu1 %v19828_v26  ;;  %v19881_v26 = vld [vmem:[#allocation5 + $0x28e4] ss:$12 sps:$4 sm:$0xff]  }
 0x518   :  { %12869 = vmatpush1.bf16.msra.mxu0 %v19824_v5  ;;  %17677 = vmatprep.subr.bf16.mxu1 %v19832_v62  ;;  %v19878_v5 = vld [vmem:[#allocation5 + $0x2150] ss:$12 sps:$4 sm:$0xff]   ;;  %v19879_v62 = vld [vmem:[#allocation5 + $0x28e0] ss:$12 sps:$4 sm:$0xff]  }
 0x519   :  { %12870 = vmatprep.subr.bf16.mxu0 %v19831_v61  ;;  %v19882_v61 = vld [vmem:[#allocation5 + $0x2228] ss:$12 sps:$4 sm:$0xff]  }
 0x51b   :  { %17678 = vmatpush3.bf16.msra.mxu1 %v19833_v22  ;;  %v19887_v22 = vld [vmem:[#allocation5 + $0x2240] ss:$12 sps:$4 sm:$0xff]  }
 0x51c   :  { %12871 = vmatpush1.bf16.msra.mxu0 %v19829_v35  ;;  %17679 = vmatprep.subr.bf16.mxu1 %v19837_v12  ;;  %v19886_v35 = vld [vmem:[#allocation5 + $0x28fc] ss:$12 sps:$4 sm:$0xff]   ;;  %v19888_v12 = vld [vmem:[#allocation5 + $0x2180] ss:$12 sps:$4 sm:$0xff]  }
 0x51d   :  { %12872 = vmatprep.subr.bf16.mxu0 %v19836_v19  ;;  %v19884_v19 = vld [vmem:[#allocation5 + $0x28f8] ss:$12 sps:$4 sm:$0xff]  }
 0x51f   :  { %17680 = vmatpush3.bf16.msra.mxu1 %v19838_v7  ;;  %v19892_v7 = vld [vmem:[#allocation5 + $0x2258] ss:$12 sps:$4 sm:$0xff]  }
 0x520   :  { %12873 = vmatpush1.bf16.msra.mxu0 %v19834_v28  ;;  %17681 = vmatprep.subr.bf16.mxu1 %v19842_v24  ;;  %v19891_v28 = vld [vmem:[#allocation5 + $0x2914] ss:$12 sps:$4 sm:$0xff]   ;;  %v19889_v24 = vld [vmem:[#allocation5 + $0x2910] ss:$12 sps:$4 sm:$0xff]  }
 0x521   :  { %12874 = vmatprep.subr.bf16.mxu0 %v19841_v15 }
 0x523   :  { %17682 = vmatpush3.bf16.msra.mxu1 %v19843_v36 }
 0x524   :  { %12875 = vmatpush1.bf16.msra.mxu0 %v19839_v30  ;;  %17683 = vmatprep.subr.bf16.mxu1 %v19847_v44  ;;  %v19893_v30 = vld [vmem:[#allocation5 + $0x2198] ss:$12 sps:$4 sm:$0xff]  }
 0x525   :  { %12876 = vmatprep.subr.bf16.mxu0 %v19846_v20  ;;  %v17535_v4 = vpop.f32.mrb[60].mxu1 }
 0x526   :  { %v17536_v51 = vpop.f32.mrb[61].mxu1 }
 0x527   :  { %v17537_v34 = vadd.f32 %v17536_v51, %v17535_v4  ;;  %17684 = vmatpush3.bf16.msra.mxu1 %v19848_v31  ;;  %v17538_v52 = vpop.f32.mrb[62].mxu1  ;;  %v19897_v31 = vld [vmem:[#allocation5 + $0x2270] ss:$12 sps:$4 sm:$0xff]   ;;  %v19894_v4 = vld [vmem:[#allocation5 + $0x2928] ss:$12 sps:$4 sm:$0xff]  }
 0x528   :  { %12877 = vmatpush1.bf16.msra.mxu0 %v19844_v25  ;;  %17685 = vmatprep.subr.bf16.mxu1 %v19852_v40  ;;  %v17539_v9 = vpop.f32.mrb[63].mxu1  ;;  %v19896_v25 = vld [vmem:[#allocation5 + $0x292c] ss:$12 sps:$4 sm:$0xff]   ;;  %v19902_v51 = vld [vmem:[#allocation5 + $0x2348] ss:$12 sps:$4 sm:$0xff]  }
 0x529   :  { %12878 = vmatprep.subr.bf16.mxu0 %v19851_v3  ;;  %v21129_v48 = vadd.f32 %v17537_v34, %v21124_v0  ;;  %v19864_v0 = vld [vmem:[#allocation5 + $0x2898] ss:$12 sps:$4 sm:$0xff]   ;;  %v19899_v34 = vld [vmem:[#allocation5 + $0x2940] ss:$12 sps:$4 sm:$0xff]   ;;  %v19903_v52 = vld [vmem:[#allocation5 + $0x2288] ss:$12 sps:$4 sm:$0xff]  }
 0x52a   :  { %v19904_v9 = vld [vmem:[#allocation5 + $0x2958] ss:$12 sps:$4 sm:$0xff]  }
 0x52b   :  { %17686 = vmatpush3.bf16.msra.mxu1 %v19853_v42  ;;  %v19901_v42 = vld [vmem:[#allocation5 + $0x2944] ss:$12 sps:$4 sm:$0xff]  }
 0x52c   :  { %12879 = vmatpush1.bf16.msra.mxu0 %v19849_v46  ;;  %17687 = vmatprep.subr.bf16.mxu1 %v19857_v32  ;;  %v19898_v46 = vld [vmem:[#allocation5 + $0x21b0] ss:$12 sps:$4 sm:$0xff]   ;;  %v19907_v32 = vld [vmem:[#allocation5 + $0x2360] ss:$12 sps:$4 sm:$0xff]  }
 0x52d   :  { %12880 = vmatprep.subr.bf16.mxu0 %v19856_v10  ;;  %v19906_v10 = vld [vmem:[#allocation5 + $0x295c] ss:$12 sps:$4 sm:$0xff]  }
 0x52f   :  { %17688 = vmatpush3.bf16.msra.mxu1 %v19858_v50  ;;  %v19912_v50 = vld [vmem:[#allocation5 + $0x2378] ss:$12 sps:$4 sm:$0xff]  }
 0x530   :  { %12881 = vmatpush1.bf16.msra.mxu0 %v19854_v38  ;;  %17695 = vmatprep.subr.bf16.mxu1 %v19862_v58  ;;  %v19911_v38 = vld [vmem:[#allocation5 + $0x2974] ss:$12 sps:$4 sm:$0xff]   ;;  %v19916_v58 = vld [vmem:[#allocation5 + $0x298c] ss:$12 sps:$4 sm:$0xff]  }
 0x531   :  { %12891 = vmatprep.subr.bf16.mxu0 %v19861_v39  ;;  %v19909_v39 = vld [vmem:[#allocation5 + $0x2970] ss:$12 sps:$4 sm:$0xff]  }
 0x532   :  { %14133 = vmatmul.mubr.bf16.vlgmr.msra.gmra.mrb[88].mxu1 %v21051_v14  ;;  %v19877_v14 = vld [vmem:[#allocation5 + $0x2210] ss:$12 sps:$4 sm:$0xff]  }
 0x533   :  { %12883 = vmatmul.mubr.bf16.vlgmr.msra.gmra.mrb[0].mxu0 %v21131_v47  ;;  %17696 = vmatpush3.bf16.msra.mxu1 %v19863_v53  ;;  %v19921_v53 = vld [vmem:[#allocation5 + $0x29a4] ss:$12 sps:$4 sm:$0xff]  }
 0x534   :  { %12892 = vmatpush1.bf16.msra.mxu0 %v19859_v60  ;;  %17697 = vmatprep.subr.bf16.mxu1 %v19867_v55  ;;  %v19914_v60 = vld [vmem:[#allocation5 + $0x2988] ss:$12 sps:$4 sm:$0xff]   ;;  %v19919_v55 = vld [vmem:[#allocation5 + $0x29a0] ss:$12 sps:$4 sm:$0xff]  }
 0x535   :  { %12893 = vmatprep.subr.bf16.mxu0 %v19866_v29  ;;  %14172 = vmatprep.mubr.bf16.mxu1 %v21053_v16  ;;  %v19883_v16 = vld [vmem:[#allocation5 + $0x2168] ss:$12 sps:$4 sm:$0xff]  }
 0x536   :  { %12923 = vmatprep.mubr.bf16.mxu0 %v21133_v18  ;;  %v19922_v29 = vld [vmem:[#allocation5 + $0x23a8] ss:$12 sps:$4 sm:$0xff]  }
 0x537   :  { %17698 = vmatpush3.bf16.msra.mxu1 %v19868_v13  ;;  %v19927_v13 = vld [vmem:[#allocation5 + $0x23c0] ss:$12 sps:$4 sm:$0xff]  }
 0x538   :  { %12894 = vmatpush1.bf16.msra.mxu0 %v19864_v0  ;;  %17699 = vmatprep.subr.bf16.mxu1 %v19872_v6  ;;  %v19923_v0 = vld [vmem:[#allocation5 + $0x22e8] ss:$12 sps:$4 sm:$0xff]   ;;  %v19928_v6 = vld [vmem:[#allocation5 + $0x2300] ss:$12 sps:$4 sm:$0xff]  }
 0x539   :  { %12895 = vmatprep.subr.bf16.mxu0 %v19871_v54  ;;  %v19924_v54 = vld [vmem:[#allocation5 + $0x29b8] ss:$12 sps:$4 sm:$0xff]  }
 0x53b   :  { %17700 = vmatpush3.bf16.msra.mxu1 %v19873_v57  ;;  %v19932_v57 = vld [vmem:[#allocation5 + $0x23d8] ss:$12 sps:$4 sm:$0xff]  }
 0x53c   :  { %12896 = vmatpush1.bf16.msra.mxu0 %v19869_v49  ;;  %17701 = vmatprep.subr.bf16.mxu1 %v19877_v14  ;;  %v19931_v49 = vld [vmem:[#allocation5 + $0x29d4] ss:$12 sps:$4 sm:$0xff]   ;;  %v19929_v14 = vld [vmem:[#allocation5 + $0x29d0] ss:$12 sps:$4 sm:$0xff]  }
 0x53d   :  { %12897 = vmatprep.subr.bf16.mxu0 %v19876_v56 }
 0x53f   :  { %17702 = vmatpush3.bf16.msra.mxu1 %v19878_v5 }
 0x540   :  { %12898 = vmatpush1.bf16.msra.mxu0 %v19874_v21  ;;  %17703 = vmatprep.subr.bf16.mxu1 %v19882_v61  ;;  %v19933_v21 = vld [vmem:[#allocation5 + $0x2318] ss:$12 sps:$4 sm:$0xff]  }
 0x541   :  { %12899 = vmatprep.subr.bf16.mxu0 %v19881_v26 }
 0x543   :  { %17704 = vmatpush3.bf16.msra.mxu1 %v19883_v16  ;;  %v19937_v16 = vld [vmem:[#allocation5 + $0x23f0] ss:$12 sps:$4 sm:$0xff]  }
 0x544   :  { %12900 = vmatpush1.bf16.msra.mxu0 %v19879_v62  ;;  %17705 = vmatprep.subr.bf16.mxu1 %v19887_v22  ;;  %v19936_v62 = vld [vmem:[#allocation5 + $0x29ec] ss:$12 sps:$4 sm:$0xff]  }
 0x545   :  { %12901 = vmatprep.subr.bf16.mxu0 %v19886_v35  ;;  %v17557_v15 = vpop.f32.mrb[64].mxu1 }
 0x546   :  { %v17558_v36 = vpop.f32.mrb[65].mxu1 }
 0x547   :  { %v17559_v20 = vadd.f32 %v17558_v36, %v17557_v15  ;;  %17706 = vmatpush3.bf16.msra.mxu1 %v19888_v12  ;;  %v17560_v44 = vpop.f32.mrb[66].mxu1  ;;  %v19938_v12 = vld [vmem:[#allocation5 + $0x2330] ss:$12 sps:$4 sm:$0xff]   ;;  %v19942_v15 = vld [vmem:[#allocation5 + $0x24c8] ss:$12 sps:$4 sm:$0xff]  }
 0x548   :  { %12902 = vmatpush1.bf16.msra.mxu0 %v19884_v19  ;;  %17707 = vmatprep.subr.bf16.mxu1 %v19892_v7  ;;  %v17561_v3 = vpop.f32.mrb[67].mxu1  ;;  %v19934_v19 = vld [vmem:[#allocation5 + $0x29e8] ss:$12 sps:$4 sm:$0xff]   ;;  %v19939_v36 = vld [vmem:[#allocation5 + $0x2a00] ss:$12 sps:$4 sm:$0xff]  }
 0x549   :  { %12903 = vmatprep.subr.bf16.mxu0 %v19891_v28  ;;  %v21140_v40 = vadd.f32 %v17559_v20, %v21129_v48  ;;  %v19908_v48 = vld [vmem:[#allocation5 + $0x22a0] ss:$12 sps:$4 sm:$0xff]   ;;  %v19941_v28 = vld [vmem:[#allocation5 + $0x2a04] ss:$12 sps:$4 sm:$0xff]   ;;  %v19943_v20 = vld [vmem:[#allocation5 + $0x2408] ss:$12 sps:$4 sm:$0xff]  }
 0x54a   :  { %v157_v7 = vld [vmem:[#allocation3 + $0x1b0] sm:$0xff]  ;;  %v19946_v44 = vld [vmem:[#allocation5 + $0x2a1c] ss:$12 sps:$4 sm:$0xff]  }
 0x54b   :  { %17708 = vmatpush3.bf16.msra.mxu1 %v19893_v30  ;;  %v21147_v30 = vpack.c.bf16 %v157_v7, %v157_v7  ;;  %v19997_v7 = vld [vmem:[#allocation5 + $0x2690] ss:$12 sps:$4 sm:$0xff]  }
 0x54c   :  { %12904 = vmatpush1.bf16.msra.mxu0 %v19889_v24  ;;  %17709 = vmatprep.subr.bf16.mxu1 %v19897_v31  ;;  %v160_v24 = vld [vmem:[#allocation3 + $0x1c8] sm:$0xff]  ;;  %v19944_v31 = vld [vmem:[#allocation5 + $0x2a18] ss:$12 sps:$4 sm:$0xff]  }
 0x54d   :  { %12905 = vmatprep.subr.bf16.mxu0 %v19896_v25  ;;  %v19947_v25 = vld [vmem:[#allocation5 + $0x24e0] ss:$12 sps:$4 sm:$0xff]   ;;  %v21149_v3 = vpack.c.bf16 %v160_v24, %v160_v24  ;;  %v20001_v24 = vld [vmem:[#allocation5 + $0x2b24] ss:$12 sps:$4 sm:$0xff]  }
 0x54f   :  { %17710 = vmatpush3.bf16.msra.mxu1 %v19898_v46  ;;  %v19952_v46 = vld [vmem:[#allocation5 + $0x24f8] ss:$12 sps:$4 sm:$0xff]  }
 0x550   :  { %12906 = vmatpush1.bf16.msra.mxu0 %v19894_v4  ;;  %17717 = vmatprep.subr.bf16.mxu1 %v19902_v51  ;;  %v19951_v4 = vld [vmem:[#allocation5 + $0x2a34] ss:$12 sps:$4 sm:$0xff]   ;;  %v19953_v51 = vld [vmem:[#allocation5 + $0x2438] ss:$12 sps:$4 sm:$0xff]  }
 0x551   :  { %12907 = vmatprep.subr.bf16.mxu0 %v19901_v42  ;;  %v19949_v42 = vld [vmem:[#allocation5 + $0x2a30] ss:$12 sps:$4 sm:$0xff]  }
 0x552   :  { %14173 = vmatmul.mubr.bf16.vlgmr.msra.gmra.mrb[92].mxu1 %v21067_v1  ;;  %v19918_v1 = vld [vmem:[#allocation5 + $0x22d0] ss:$12 sps:$4 sm:$0xff]  }
 0x553   :  { %17718 = vmatpush3.bf16.msra.mxu1 %v19903_v52  ;;  %14212 = vmatprep.mubr.bf16.mxu1 %v21069_v59  ;;  %v19926_v59 = vld [vmem:[#allocation5 + $0x29bc] ss:$12 sps:$4 sm:$0xff]  }
 0x554   :  { %12908 = vmatpush1.bf16.msra.mxu0 %v19899_v34  ;;  %17719 = vmatprep.subr.bf16.mxu1 %v19907_v32  ;;  %v19956_v34 = vld [vmem:[#allocation5 + $0x2a4c] ss:$12 sps:$4 sm:$0xff]   ;;  %v19954_v52 = vld [vmem:[#allocation5 + $0x2a48] ss:$12 sps:$4 sm:$0xff]   ;;  %v19961_v32 = vld [vmem:[#allocation5 + $0x2a64] ss:$12 sps:$4 sm:$0xff]  }
 0x555   :  { %12909 = vmatprep.subr.bf16.mxu0 %v19906_v10  ;;  %v19958_v10 = vld [vmem:[#allocation5 + $0x2450] ss:$12 sps:$4 sm:$0xff]  }
 0x557   :  { %17720 = vmatpush3.bf16.msra.mxu1 %v19908_v48  ;;  %v19963_v48 = vld [vmem:[#allocation5 + $0x2468] ss:$12 sps:$4 sm:$0xff]  }
 0x558   :  { %12910 = vmatpush1.bf16.msra.mxu0 %v19904_v9  ;;  %17721 = vmatprep.subr.bf16.mxu1 %v19912_v50  ;;  %v19962_v9 = vld [vmem:[#allocation5 + $0x2528] ss:$12 sps:$4 sm:$0xff]   ;;  %v19967_v50 = vld [vmem:[#allocation5 + $0x2540] ss:$12 sps:$4 sm:$0xff]  }
 0x559   :  { %12911 = vmatprep.subr.bf16.mxu0 %v19911_v38  ;;  %v19966_v38 = vld [vmem:[#allocation5 + $0x2a7c] ss:$12 sps:$4 sm:$0xff]  }
 0x55b   :  { %17722 = vmatpush3.bf16.msra.mxu1 %v19913_v37  ;;  %v19968_v37 = vld [vmem:[#allocation5 + $0x2480] ss:$12 sps:$4 sm:$0xff]  }
 0x55c   :  { %12912 = vmatpush1.bf16.msra.mxu0 %v19909_v39  ;;  %17723 = vmatprep.subr.bf16.mxu1 %v19917_v11  ;;  %v19964_v39 = vld [vmem:[#allocation5 + $0x2a78] ss:$12 sps:$4 sm:$0xff]  }
 0x55d   :  { %12913 = vmatprep.subr.bf16.mxu0 %v19916_v58  ;;  %v19971_v58 = vld [vmem:[#allocation5 + $0x2a94] ss:$12 sps:$4 sm:$0xff]   ;;  %v19972_v11 = vld [vmem:[#allocation5 + $0x2558] ss:$12 sps:$4 sm:$0xff]  }
 0x55f   :  { %17724 = vmatpush3.bf16.msra.mxu1 %v19918_v1 }
 0x560   :  { %12914 = vmatpush1.bf16.msra.mxu0 %v19914_v60  ;;  %17725 = vmatprep.subr.bf16.mxu1 %v19922_v29  ;;  %v19969_v29 = vld [vmem:[#allocation5 + $0x2a90] ss:$12 sps:$4 sm:$0xff]  }
 0x561   :  { %12915 = vmatprep.subr.bf16.mxu0 %v19921_v53 }
 0x563   :  { %17726 = vmatpush3.bf16.msra.mxu1 %v19923_v0 }
 0x564   :  { %12916 = vmatpush1.bf16.msra.mxu0 %v19919_v55  ;;  %17727 = vmatprep.subr.bf16.mxu1 %v19927_v13  ;;  %v19973_v55 = vld [vmem:[#allocation5 + $0x2498] ss:$12 sps:$4 sm:$0xff]   ;;  %v19977_v13 = vld [vmem:[#allocation5 + $0x2570] ss:$12 sps:$4 sm:$0xff]  }
 0x565   :  { %12917 = vmatprep.subr.bf16.mxu0 %v19926_v59  ;;  %v17579_v56 = vpop.f32.mrb[68].mxu1  ;;  %v19976_v59 = vld [vmem:[#allocation5 + $0x2aac] ss:$12 sps:$4 sm:$0xff]  }
 0x566   :  { %v17580_v5 = vpop.f32.mrb[69].mxu1 }
 0x567   :  { %v17581_v26 = vadd.f32 %v17580_v5, %v17579_v56  ;;  %17728 = vmatpush3.bf16.msra.mxu1 %v19928_v6  ;;  %v17582_v61 = vpop.f32.mrb[70].mxu1  ;;  %v19981_v56 = vld [vmem:[#allocation5 + $0x2ac4] ss:$12 sps:$4 sm:$0xff]   ;;  %v19983_v5 = vld [vmem:[#allocation5 + $0x2588] ss:$12 sps:$4 sm:$0xff]  }
 0x568   :  { %12918 = vmatpush1.bf16.msra.mxu0 %v19924_v54  ;;  %17729 = vmatprep.subr.bf16.mxu1 %v19932_v57  ;;  %v17583_v35 = vpop.f32.mrb[71].mxu1  ;;  %v19978_v57 = vld [vmem:[#allocation5 + $0x24b0] ss:$12 sps:$4 sm:$0xff]   ;;  %v19987_v61 = vld [vmem:[#allocation5 + $0x2660] ss:$12 sps:$4 sm:$0xff]  }
 0x569   :  { %12919 = vmatprep.subr.bf16.mxu0 %v19931_v49  ;;  %v21145_v22 = vadd.f32 %v17581_v26, %v21140_v40  ;;  %v19948_v40 = vld [vmem:[#allocation5 + $0x2420] ss:$12 sps:$4 sm:$0xff]   ;;  %v19974_v49 = vld [vmem:[#allocation5 + $0x2aa8] ss:$12 sps:$4 sm:$0xff]  }
 0x56a   :  { %v19986_v26 = vld [vmem:[#allocation5 + $0x2adc] ss:$12 sps:$4 sm:$0xff]   ;;  %v19991_v35 = vld [vmem:[#allocation5 + $0x2af4] ss:$12 sps:$4 sm:$0xff]  }
 0x56b   :  { %17730 = vmatpush3.bf16.msra.mxu1 %v19933_v21  ;;  %v19979_v21 = vld [vmem:[#allocation5 + $0x2ac0] ss:$12 sps:$4 sm:$0xff]  }
 0x56c   :  { %12920 = vmatpush1.bf16.msra.mxu0 %v19929_v14  ;;  %17731 = vmatprep.subr.bf16.mxu1 %v19937_v16  ;;  %v19982_v14 = vld [vmem:[#allocation5 + $0x2648] ss:$12 sps:$4 sm:$0xff]   ;;  %v19988_v16 = vld [vmem:[#allocation5 + $0x25a0] ss:$12 sps:$4 sm:$0xff]  }
 0x56d   :  { %12921 = vmatprep.subr.bf16.mxu0 %v19936_v62  ;;  %v19984_v62 = vld [vmem:[#allocation5 + $0x2ad8] ss:$12 sps:$4 sm:$0xff]  }
 0x56f   :  { %17732 = vmatpush3.bf16.msra.mxu1 %v19938_v12  ;;  %v19993_v12 = vld [vmem:[#allocation5 + $0x25b8] ss:$12 sps:$4 sm:$0xff]  }
 0x570   :  { %12922 = vmatpush1.bf16.msra.mxu0 %v19934_v19  ;;  %17739 = vmatprep.subr.bf16.mxu1 %v19942_v15  ;;  %v19989_v19 = vld [vmem:[#allocation5 + $0x2af0] ss:$12 sps:$4 sm:$0xff]  }
 0x571   :  { %12932 = vmatprep.subr.bf16.mxu0 %v19941_v28  ;;  %v19996_v28 = vld [vmem:[#allocation5 + $0x2b0c] ss:$12 sps:$4 sm:$0xff]   ;;  %v19998_v15 = vld [vmem:[#allocation5 + $0x25d0] ss:$12 sps:$4 sm:$0xff]  }
 0x572   :  { %14213 = vmatmul.mubr.bf16.vlgmr.msra.gmra.mrb[96].mxu1 %v21083_v41  ;;  %v19957_v41 = vld [vmem:[#allocation5 + $0x2510] ss:$12 sps:$4 sm:$0xff]  }
 0x573   :  { %12924 = vmatmul.mubr.bf16.vlgmr.msra.gmra.mrb[0].mxu0 %v21147_v30  ;;  %17740 = vmatpush3.bf16.msra.mxu1 %v19943_v20  ;;  %v19999_v20 = vld [vmem:[#allocation5 + $0x2b20] ss:$12 sps:$4 sm:$0xff]  }
 0x574   :  { %12933 = vmatpush1.bf16.msra.mxu0 %v19939_v36  ;;  %17741 = vmatprep.subr.bf16.mxu1 %v19947_v25  ;;  %v20002_v36 = vld [vmem:[#allocation5 + $0x26a8] ss:$12 sps:$4 sm:$0xff]   ;;  %v20007_v25 = vld [vmem:[#allocation5 + $0x26c0] ss:$12 sps:$4 sm:$0xff]  }
 0x575   :  { %12934 = vmatprep.subr.bf16.mxu0 %v19946_v44  ;;  %14252 = vmatprep.mubr.bf16.mxu1 %v21085_v63  ;;  %v19959_v63 = vld [vmem:[#allocation5 + $0x2a60] ss:$12 sps:$4 sm:$0xff]   ;;  %v20006_v44 = vld [vmem:[#allocation5 + $0x2b3c] ss:$12 sps:$4 sm:$0xff]  }
 0x576   :  { %12964 = vmatprep.mubr.bf16.mxu0 %v21149_v3 }
 0x577   :  { %17742 = vmatpush3.bf16.msra.mxu1 %v19948_v40  ;;  %v20008_v40 = vld [vmem:[#allocation5 + $0x2600] ss:$12 sps:$4 sm:$0xff]  }
 0x578   :  { %12935 = vmatpush1.bf16.msra.mxu0 %v19944_v31  ;;  %17743 = vmatprep.subr.bf16.mxu1 %v19952_v46  ;;  %v20004_v31 = vld [vmem:[#allocation5 + $0x2b38] ss:$12 sps:$4 sm:$0xff]  }
 0x579   :  { %12936 = vmatprep.subr.bf16.mxu0 %v19951_v4  ;;  %v20011_v4 = vld [vmem:[#allocation5 + $0x2b54] ss:$12 sps:$4 sm:$0xff]   ;;  %v20012_v46 = vld [vmem:[#allocation5 + $0x26d8] ss:$12 sps:$4 sm:$0xff]  }
 0x57b   :  { %17744 = vmatpush3.bf16.msra.mxu1 %v19953_v51 }
 0x57c   :  { %12937 = vmatpush1.bf16.msra.mxu0 %v19949_v42  ;;  %17745 = vmatprep.subr.bf16.mxu1 %v19957_v41  ;;  %v20009_v41 = vld [vmem:[#allocation5 + $0x2b50] ss:$12 sps:$4 sm:$0xff]  }
 0x57d   :  { %12938 = vmatprep.subr.bf16.mxu0 %v19956_v34 }
 0x57f   :  { %17746 = vmatpush3.bf16.msra.mxu1 %v19958_v10 }
 0x580   :  { %12939 = vmatpush1.bf16.msra.mxu0 %v19954_v52  ;;  %17747 = vmatprep.subr.bf16.mxu1 %v19962_v9  ;;  %v20013_v52 = vld [vmem:[#allocation5 + $0x2618] ss:$12 sps:$4 sm:$0xff]   ;;  %v20017_v9 = vld [vmem:[#allocation5 + $0x26f0] ss:$12 sps:$4 sm:$0xff]  }
 0x581   :  { %12940 = vmatprep.subr.bf16.mxu0 %v19961_v32  ;;  %v20016_v32 = vld [vmem:[#allocation5 + $0x2b6c] ss:$12 sps:$4 sm:$0xff]  }
 0x583   :  { %17748 = vmatpush3.bf16.msra.mxu1 %v19963_v48 }
 0x584   :  { %12941 = vmatpush1.bf16.msra.mxu0 %v19959_v63  ;;  %17749 = vmatprep.subr.bf16.mxu1 %v19967_v50  ;;  %v20018_v50 = vld [vmem:[#allocation5 + $0x2630] ss:$12 sps:$4 sm:$0xff]  }
 0x585   :  { %12942 = vmatprep.subr.bf16.mxu0 %v19966_v38  ;;  %v17601_v60 = vpop.f32.mrb[72].mxu1  ;;  %v20014_v38 = vld [vmem:[#allocation5 + $0x2b68] ss:$12 sps:$4 sm:$0xff]  }
 0x586   :  { %v17602_v1 = vpop.f32.mrb[73].mxu1 }
 0x587   :  { %v17603_v53 = vadd.f32 %v17602_v1, %v17601_v60  ;;  %17750 = vmatpush3.bf16.msra.mxu1 %v19968_v37  ;;  %v17604_v0 = vpop.f32.mrb[74].mxu1  ;;  %v20021_v37 = vld [vmem:[#allocation5 + $0x2b84] ss:$12 sps:$4 sm:$0xff]   ;;  %v162_v60 = vld [vmem:[#allocation3 + $0x1d8] sm:$0xff]  ;;  %v20019_v1 = vld [vmem:[#allocation5 + $0x2b80] ss:$12 sps:$4 sm:$0xff]  }
 0x588   :  { %12943 = vmatpush1.bf16.msra.mxu0 %v19964_v39  ;;  %17751 = vmatprep.subr.bf16.mxu1 %v19972_v11  ;;  %v17605_v54 = vpop.f32.mrb[75].mxu1  ;;  %v159_v39 = vld [vmem:[#allocation3 + $0x1c0] sm:$0xff]  ;;  %v21165_v0 = vpack.c.bf16 %v162_v60, %v162_v60 }
 0x589   :  { %12944 = vmatprep.subr.bf16.mxu0 %v19971_v58  ;;  %v21156_v6 = vadd.f32 %v17603_v53, %v21145_v22  ;;  %v19992_v22 = vld [vmem:[#allocation5 + $0x2678] ss:$12 sps:$4 sm:$0xff]   ;;  %v20022_v58 = vld [vmem:[#allocation5 + $0x27c8] ss:$12 sps:$4 sm:$0xff]   ;;  %v21163_v11 = vpack.c.bf16 %v159_v39, %v159_v39  ;;  %v20078_v39 = vld [vmem:[#allocation5 + $0x28d0] ss:$12 sps:$4 sm:$0xff]  }
 0x58a   :  { %v20023_v53 = vld [vmem:[#allocation5 + $0x2708] ss:$12 sps:$4 sm:$0xff]   ;;  %v20079_v60 = vld [vmem:[#allocation5 + $0x2ca0] ss:$12 sps:$4 sm:$0xff]  }
 0x58b   :  { %17752 = vmatpush3.bf16.msra.mxu1 %v19973_v55  ;;  %v20027_v55 = vld [vmem:[#allocation5 + $0x27e0] ss:$12 sps:$4 sm:$0xff]  }
 0x58c   :  { %12945 = vmatpush1.bf16.msra.mxu0 %v19969_v29  ;;  %17753 = vmatprep.subr.bf16.mxu1 %v19977_v13  ;;  %v20026_v29 = vld [vmem:[#allocation5 + $0x2b9c] ss:$12 sps:$4 sm:$0xff]   ;;  %v20028_v13 = vld [vmem:[#allocation5 + $0x2720] ss:$12 sps:$4 sm:$0xff]  }
 0x58d   :  { %12946 = vmatprep.subr.bf16.mxu0 %v19976_v59  ;;  %v20024_v59 = vld [vmem:[#allocation5 + $0x2b98] ss:$12 sps:$4 sm:$0xff]   ;;  %v20031_v54 = vld [vmem:[#allocation5 + $0x2bb4] ss:$12 sps:$4 sm:$0xff]  }
 0x58f   :  { %17754 = vmatpush3.bf16.msra.mxu1 %v19978_v57  ;;  %v20033_v57 = vld [vmem:[#allocation5 + $0x2738] ss:$12 sps:$4 sm:$0xff]  }
 0x590   :  { %12947 = vmatpush1.bf16.msra.mxu0 %v19974_v49  ;;  %17761 = vmatprep.subr.bf16.mxu1 %v19982_v14  ;;  %v20029_v49 = vld [vmem:[#allocation5 + $0x2bb0] ss:$12 sps:$4 sm:$0xff]   ;;  %v20034_v14 = vld [vmem:[#allocation5 + $0x2bc8] ss:$12 sps:$4 sm:$0xff]  }
 0x591   :  { %12948 = vmatprep.subr.bf16.mxu0 %v19981_v56  ;;  %v20037_v56 = vld [vmem:[#allocation5 + $0x2810] ss:$12 sps:$4 sm:$0xff]  }
 0x592   :  { %14253 = vmatmul.mubr.bf16.vlgmr.msra.gmra.mrb[100].mxu1 %v21099_v45  ;;  %v19994_v45 = vld [vmem:[#allocation5 + $0x2b08] ss:$12 sps:$4 sm:$0xff]  }
 0x593   :  { %17762 = vmatpush3.bf16.msra.mxu1 %v19983_v5  ;;  %14292 = vmatprep.mubr.bf16.mxu1 %v21101_v33  ;;  %v20003_v33 = vld [vmem:[#allocation5 + $0x25e8] ss:$12 sps:$4 sm:$0xff]   ;;  %v20041_v5 = vld [vmem:[#allocation5 + $0x2be4] ss:$12 sps:$4 sm:$0xff]  }
 0x594   :  { %12949 = vmatpush1.bf16.msra.mxu0 %v19979_v21  ;;  %17763 = vmatprep.subr.bf16.mxu1 %v19987_v61  ;;  %v20038_v21 = vld [vmem:[#allocation5 + $0x2750] ss:$12 sps:$4 sm:$0xff]   ;;  %v20043_v61 = vld [vmem:[#allocation5 + $0x2768] ss:$12 sps:$4 sm:$0xff]  }
 0x595   :  { %12950 = vmatprep.subr.bf16.mxu0 %v19986_v26  ;;  %v20042_v26 = vld [vmem:[#allocation5 + $0x2828] ss:$12 sps:$4 sm:$0xff]  }
 0x597   :  { %17764 = vmatpush3.bf16.msra.mxu1 %v19988_v16  ;;  %v20047_v16 = vld [vmem:[#allocation5 + $0x2840] ss:$12 sps:$4 sm:$0xff]  }
 0x598   :  { %12951 = vmatpush1.bf16.msra.mxu0 %v19984_v62  ;;  %17765 = vmatprep.subr.bf16.mxu1 %v19992_v22  ;;  %v20046_v62 = vld [vmem:[#allocation5 + $0x2bfc] ss:$12 sps:$4 sm:$0xff]   ;;  %v20048_v22 = vld [vmem:[#allocation5 + $0x2780] ss:$12 sps:$4 sm:$0xff]  }
 0x599   :  { %12952 = vmatprep.subr.bf16.mxu0 %v19991_v35  ;;  %v20044_v35 = vld [vmem:[#allocation5 + $0x2bf8] ss:$12 sps:$4 sm:$0xff]  }
 0x59b   :  { %17766 = vmatpush3.bf16.msra.mxu1 %v19993_v12  ;;  %v20052_v12 = vld [vmem:[#allocation5 + $0x2858] ss:$12 sps:$4 sm:$0xff]  }
 0x59c   :  { %12953 = vmatpush1.bf16.msra.mxu0 %v19989_v19  ;;  %17767 = vmatprep.subr.bf16.mxu1 %v19997_v7  ;;  %v20051_v19 = vld [vmem:[#allocation5 + $0x2c14] ss:$12 sps:$4 sm:$0xff]  }
 0x59d   :  { %12954 = vmatprep.subr.bf16.mxu0 %v19996_v28 }
 0x59f   :  { %17768 = vmatpush3.bf16.msra.mxu1 %v19998_v15  ;;  %v20049_v15 = vld [vmem:[#allocation5 + $0x2c10] ss:$12 sps:$4 sm:$0xff]  }
 0x5a0   :  { %12955 = vmatpush1.bf16.msra.mxu0 %v19994_v45  ;;  %17769 = vmatprep.subr.bf16.mxu1 %v20002_v36 }
 0x5a1   :  { %12956 = vmatprep.subr.bf16.mxu0 %v20001_v24  ;;  %v20053_v24 = vld [vmem:[#allocation5 + $0x2798] ss:$12 sps:$4 sm:$0xff]  }
 0x5a3   :  { %17770 = vmatpush3.bf16.msra.mxu1 %v20003_v33  ;;  %v20057_v33 = vld [vmem:[#allocation5 + $0x2870] ss:$12 sps:$4 sm:$0xff]  }
 0x5a4   :  { %12957 = vmatpush1.bf16.msra.mxu0 %v19999_v20  ;;  %17771 = vmatprep.subr.bf16.mxu1 %v20007_v25  ;;  %v20056_v20 = vld [vmem:[#allocation5 + $0x2c2c] ss:$12 sps:$4 sm:$0xff]  }
 0x5a5   :  { %12958 = vmatprep.subr.bf16.mxu0 %v20006_v44  ;;  %v17623_v42 = vpop.f32.mrb[76].mxu1 }
 0x5a6   :  { %v17624_v51 = vpop.f32.mrb[77].mxu1 }
 0x5a7   :  { %v17625_v34 = vadd.f32 %v17624_v51, %v17623_v42  ;;  %17772 = vmatpush3.bf16.msra.mxu1 %v20008_v40  ;;  %v17626_v10 = vpop.f32.mrb[78].mxu1  ;;  %v20058_v40 = vld [vmem:[#allocation5 + $0x27b0] ss:$12 sps:$4 sm:$0xff]   ;;  %v20059_v42 = vld [vmem:[#allocation5 + $0x2c40] ss:$12 sps:$4 sm:$0xff]  }
 0x5a8   :  { %12959 = vmatpush1.bf16.msra.mxu0 %v20004_v31  ;;  %17773 = vmatprep.subr.bf16.mxu1 %v20012_v46  ;;  %v17627_v63 = vpop.f32.mrb[79].mxu1  ;;  %v20054_v31 = vld [vmem:[#allocation5 + $0x2c28] ss:$12 sps:$4 sm:$0xff]   ;;  %v20068_v10 = vld [vmem:[#allocation5 + $0x28a0] ss:$12 sps:$4 sm:$0xff]  }
 0x5a9   :  { %12960 = vmatprep.subr.bf16.mxu0 %v20011_v4  ;;  %v21161_v48 = vadd.f32 %v17625_v34, %v21156_v6  ;;  %v20032_v6 = vld [vmem:[#allocation5 + $0x27f8] ss:$12 sps:$4 sm:$0xff]   ;;  %v20062_v46 = vld [vmem:[#allocation5 + $0x2948] ss:$12 sps:$4 sm:$0xff]   ;;  %v20069_v63 = vld [vmem:[#allocation5 + $0x2c70] ss:$12 sps:$4 sm:$0xff]  }
 0x5aa   :  { %v20061_v4 = vld [vmem:[#allocation5 + $0x2c44] ss:$12 sps:$4 sm:$0xff]   ;;  %v20063_v51 = vld [vmem:[#allocation5 + $0x2888] ss:$12 sps:$4 sm:$0xff]  }
 0x5ab   :  { %17774 = vmatpush3.bf16.msra.mxu1 %v20013_v52  ;;  %v20066_v34 = vld [vmem:[#allocation5 + $0x2c5c] ss:$12 sps:$4 sm:$0xff]   ;;  %v20064_v52 = vld [vmem:[#allocation5 + $0x2c58] ss:$12 sps:$4 sm:$0xff]  }
 0x5ac   :  { %12961 = vmatpush1.bf16.msra.mxu0 %v20009_v41  ;;  %17775 = vmatprep.subr.bf16.mxu1 %v20017_v9  ;;  %v20067_v41 = vld [vmem:[#allocation5 + $0x2960] ss:$12 sps:$4 sm:$0xff]   ;;  %v20072_v9 = vld [vmem:[#allocation5 + $0x2978] ss:$12 sps:$4 sm:$0xff]  }
 0x5ad   :  { %12962 = vmatprep.subr.bf16.mxu0 %v20016_v32  ;;  %v20071_v32 = vld [vmem:[#allocation5 + $0x2c74] ss:$12 sps:$4 sm:$0xff]  }
 0x5af   :  { %17776 = vmatpush3.bf16.msra.mxu1 %v20018_v50  ;;  %v20077_v50 = vld [vmem:[#allocation5 + $0x2990] ss:$12 sps:$4 sm:$0xff]  }
 0x5b0   :  { %12963 = vmatpush1.bf16.msra.mxu0 %v20014_v38  ;;  %17783 = vmatprep.subr.bf16.mxu1 %v20022_v58  ;;  %v20076_v38 = vld [vmem:[#allocation5 + $0x2c8c] ss:$12 sps:$4 sm:$0xff]   ;;  %v20082_v58 = vld [vmem:[#allocation5 + $0x29a8] ss:$12 sps:$4 sm:$0xff]  }
 0x5b1   :  { %12973 = vmatprep.subr.bf16.mxu0 %v20021_v37  ;;  %v20081_v37 = vld [vmem:[#allocation5 + $0x2ca4] ss:$12 sps:$4 sm:$0xff]  }
 0x5b2   :  { %14293 = vmatmul.mubr.bf16.vlgmr.msra.gmra.mrb[104].mxu1 %v21115_v2  ;;  %v20036_v2 = vld [vmem:[#allocation5 + $0x2bcc] ss:$12 sps:$4 sm:$0xff]  }
 0x5b3   :  { %12965 = vmatmul.mubr.bf16.vlgmr.msra.gmra.mrb[0].mxu0 %v21163_v11  ;;  %17784 = vmatpush3.bf16.msra.mxu1 %v20023_v53  ;;  %v20087_v53 = vld [vmem:[#allocation5 + $0x29c0] ss:$12 sps:$4 sm:$0xff]  }
 0x5b4   :  { %12974 = vmatpush1.bf16.msra.mxu0 %v20019_v1  ;;  %17785 = vmatprep.subr.bf16.mxu1 %v20027_v55  ;;  %v20086_v1 = vld [vmem:[#allocation5 + $0x2cbc] ss:$12 sps:$4 sm:$0xff]   ;;  %v20088_v55 = vld [vmem:[#allocation5 + $0x2900] ss:$12 sps:$4 sm:$0xff]  }
 0x5b5   :  { %12975 = vmatprep.subr.bf16.mxu0 %v20026_v29  ;;  %14332 = vmatprep.mubr.bf16.mxu1 %v21117_v17  ;;  %v20039_v17 = vld [vmem:[#allocation5 + $0x2be0] ss:$12 sps:$4 sm:$0xff]   ;;  %v20084_v29 = vld [vmem:[#allocation5 + $0x2cb8] ss:$12 sps:$4 sm:$0xff]  }
 0x5b6   :  { %13005 = vmatprep.mubr.bf16.mxu0 %v21165_v0 }
 0x5b7   :  { %17786 = vmatpush3.bf16.msra.mxu1 %v20028_v13  ;;  %v20092_v13 = vld [vmem:[#allocation5 + $0x29d8] ss:$12 sps:$4 sm:$0xff]  }
 0x5b8   :  { %12976 = vmatpush1.bf16.msra.mxu0 %v20024_v59  ;;  %17787 = vmatprep.subr.bf16.mxu1 %v20032_v6  ;;  %v20091_v59 = vld [vmem:[#allocation5 + $0x2cd4] ss:$12 sps:$4 sm:$0xff]  }
 0x5b9   :  { %12977 = vmatprep.subr.bf16.mxu0 %v20031_v54 }
 0x5bb   :  { %17788 = vmatpush3.bf16.msra.mxu1 %v20033_v57  ;;  %v20089_v57 = vld [vmem:[#allocation5 + $0x2cd0] ss:$12 sps:$4 sm:$0xff]  }
 0x5bc   :  { %12978 = vmatpush1.bf16.msra.mxu0 %v20029_v49  ;;  %17789 = vmatprep.subr.bf16.mxu1 %v20037_v56 }
 0x5bd   :  { %12979 = vmatprep.subr.bf16.mxu0 %v20036_v2  ;;  %v20093_v2 = vld [vmem:[#allocation5 + $0x2918] ss:$12 sps:$4 sm:$0xff]  }
 0x5bf   :  { %17790 = vmatpush3.bf16.msra.mxu1 %v20038_v21  ;;  %v20097_v21 = vld [vmem:[#allocation5 + $0x29f0] ss:$12 sps:$4 sm:$0xff]  }
 0x5c0   :  { %12980 = vmatpush1.bf16.msra.mxu0 %v20034_v14  ;;  %17791 = vmatprep.subr.bf16.mxu1 %v20042_v26  ;;  %v20096_v14 = vld [vmem:[#allocation5 + $0x2cec] ss:$12 sps:$4 sm:$0xff]  }
 0x5c1   :  { %12981 = vmatprep.subr.bf16.mxu0 %v20041_v5 }
 0x5c3   :  { %17792 = vmatpush3.bf16.msra.mxu1 %v20043_v61  ;;  %v20098_v61 = vld [vmem:[#allocation5 + $0x2930] ss:$12 sps:$4 sm:$0xff]  }
 0x5c4   :  { %12982 = vmatpush1.bf16.msra.mxu0 %v20039_v17  ;;  %17793 = vmatprep.subr.bf16.mxu1 %v20047_v16  ;;  %v20094_v17 = vld [vmem:[#allocation5 + $0x2ce8] ss:$12 sps:$4 sm:$0xff]   ;;  %v20101_v16 = vld [vmem:[#allocation5 + $0x2d04] ss:$12 sps:$4 sm:$0xff]  }
 0x5c5   :  { %12983 = vmatprep.subr.bf16.mxu0 %v20046_v62  ;;  %v17645_v28 = vpop.f32.mrb[80].mxu1  ;;  %v161_v62 = vld [vmem:[#allocation3 + $0x1d0] sm:$0xff] }
 0x5c6   :  { %v17646_v7 = vpop.f32.mrb[81].mxu1 }
 0x5c7   :  { %v17647_v45 = vadd.f32 %v17646_v7, %v17645_v28  ;;  %17794 = vmatpush3.bf16.msra.mxu1 %v20048_v22  ;;  %v17648_v36 = vpop.f32.mrb[82].mxu1  ;;  %v21179_v22 = vpack.c.bf16 %v161_v62, %v161_v62  ;;  %v20103_v28 = vld [vmem:[#allocation5 + $0x2a08] ss:$12 sps:$4 sm:$0xff]  }
 0x5c8   :  { %12984 = vmatpush1.bf16.msra.mxu0 %v20044_v35  ;;  %17795 = vmatprep.subr.bf16.mxu1 %v20052_v12  ;;  %v17649_v44 = vpop.f32.mrb[83].mxu1  ;;  %v20102_v35 = vld [vmem:[#allocation5 + $0x2ac8] ss:$12 sps:$4 sm:$0xff]   ;;  %v20099_v12 = vld [vmem:[#allocation5 + $0x2d00] ss:$12 sps:$4 sm:$0xff]  }
 0x5c9   :  { %12985 = vmatprep.subr.bf16.mxu0 %v20051_v19  ;;  %v21172_v25 = vadd.f32 %v17647_v45, %v21161_v48  ;;  %v20073_v48 = vld [vmem:[#allocation5 + $0x28b8] ss:$12 sps:$4 sm:$0xff]   ;;  %v164_v19 = vld [vmem:[#allocation3 + $0x1e8] sm:$0xff]  ;;  %v20109_v44 = vld [vmem:[#allocation5 + $0x2d30] ss:$12 sps:$4 sm:$0xff]  }
 0x5ca   :  { %v20106_v7 = vld [vmem:[#allocation5 + $0x2d1c] ss:$12 sps:$4 sm:$0xff]   ;;  %v20107_v45 = vld [vmem:[#allocation5 + $0x2ae0] ss:$12 sps:$4 sm:$0xff]  }
 0x5cb   :  { %17796 = vmatpush3.bf16.msra.mxu1 %v20053_v24  ;;  %v20104_v24 = vld [vmem:[#allocation5 + $0x2d18] ss:$12 sps:$4 sm:$0xff]   ;;  %v20108_v36 = vld [vmem:[#allocation5 + $0x2a20] ss:$12 sps:$4 sm:$0xff]   ;;  %v20162_v62 = vld [vmem:[#allocation5 + $0x2ca8] ss:$12 sps:$4 sm:$0xff]  }
 0x5cc   :  { %12986 = vmatpush1.bf16.msra.mxu0 %v20049_v15  ;;  %17797 = vmatprep.subr.bf16.mxu1 %v20057_v33  ;;  %v21181_v15 = vpack.c.bf16 %v164_v19, %v164_v19  ;;  %v20112_v33 = vld [vmem:[#allocation5 + $0x2af8] ss:$12 sps:$4 sm:$0xff]   ;;  %v20167_v19 = vld [vmem:[#allocation5 + $0x2cc0] ss:$12 sps:$4 sm:$0xff]  }
 0x5cd   :  { %12987 = vmatprep.subr.bf16.mxu0 %v20056_v20  ;;  %v20111_v20 = vld [vmem:[#allocation5 + $0x2d34] ss:$12 sps:$4 sm:$0xff]  }
 0x5cf   :  { %17798 = vmatpush3.bf16.msra.mxu1 %v20058_v40  ;;  %v20114_v40 = vld [vmem:[#allocation5 + $0x2d48] ss:$12 sps:$4 sm:$0xff]  }
 0x5d0   :  { %12988 = vmatpush1.bf16.msra.mxu0 %v20054_v31  ;;  %17805 = vmatprep.subr.bf16.mxu1 %v20062_v46  ;;  %v20117_v31 = vld [vmem:[#allocation5 + $0x2b10] ss:$12 sps:$4 sm:$0xff]  }
 0x5d1   :  { %12989 = vmatprep.subr.bf16.mxu0 %v20061_v4  ;;  %v20118_v4 = vld [vmem:[#allocation5 + $0x2a50] ss:$12 sps:$4 sm:$0xff]  }
 0x5d2   :  { %14333 = vmatmul.mubr.bf16.vlgmr.msra.gmra.mrb[108].mxu1 %v21131_v47  ;;  %v20074_v47 = vld [vmem:[#allocation5 + $0x2c88] ss:$12 sps:$4 sm:$0xff]   ;;  %v20121_v46 = vld [vmem:[#allocation5 + $0x2d64] ss:$12 sps:$4 sm:$0xff]  }
 0x5d3   :  { %17806 = vmatpush3.bf16.msra.mxu1 %v20063_v51  ;;  %14372 = vmatprep.mubr.bf16.mxu1 %v21133_v18  ;;  %v20083_v18 = vld [vmem:[#allocation5 + $0x28e8] ss:$12 sps:$4 sm:$0xff]  }
 0x5d4   :  { %12990 = vmatpush1.bf16.msra.mxu0 %v20059_v42  ;;  %17807 = vmatprep.subr.bf16.mxu1 %v20067_v41  ;;  %v20122_v42 = vld [vmem:[#allocation5 + $0x2b28] ss:$12 sps:$4 sm:$0xff]   ;;  %v20127_v41 = vld [vmem:[#allocation5 + $0x2b40] ss:$12 sps:$4 sm:$0xff]  }
 0x5d5   :  { %12991 = vmatprep.subr.bf16.mxu0 %v20066_v34  ;;  %v20123_v51 = vld [vmem:[#allocation5 + $0x2a68] ss:$12 sps:$4 sm:$0xff]  }
 0x5d6   :  { %v20126_v34 = vld [vmem:[#allocation5 + $0x2d7c] ss:$12 sps:$4 sm:$0xff]  }
 0x5d7   :  { %17808 = vmatpush3.bf16.msra.mxu1 %v20068_v10  ;;  %v20128_v10 = vld [vmem:[#allocation5 + $0x2a80] ss:$12 sps:$4 sm:$0xff]  }
 0x5d8   :  { %12992 = vmatpush1.bf16.msra.mxu0 %v20064_v52  ;;  %17809 = vmatprep.subr.bf16.mxu1 %v20072_v9  ;;  %v20124_v52 = vld [vmem:[#allocation5 + $0x2d78] ss:$12 sps:$4 sm:$0xff]  }
 0x5d9   :  { %12993 = vmatprep.subr.bf16.mxu0 %v20071_v32  ;;  %v20131_v32 = vld [vmem:[#allocation5 + $0x2d94] ss:$12 sps:$4 sm:$0xff]   ;;  %v20132_v9 = vld [vmem:[#allocation5 + $0x2b58] ss:$12 sps:$4 sm:$0xff]  }
 0x5db   :  { %17810 = vmatpush3.bf16.msra.mxu1 %v20073_v48 }
 0x5dc   :  { %12994 = vmatpush1.bf16.msra.mxu0 %v20069_v63  ;;  %17811 = vmatprep.subr.bf16.mxu1 %v20077_v50  ;;  %v20129_v50 = vld [vmem:[#allocation5 + $0x2d90] ss:$12 sps:$4 sm:$0xff]  }
 0x5dd   :  { %12995 = vmatprep.subr.bf16.mxu0 %v20076_v38 }
 0x5df   :  { %17812 = vmatpush3.bf16.msra.mxu1 %v20078_v39 }
 0x5e0   :  { %12996 = vmatpush1.bf16.msra.mxu0 %v20074_v47  ;;  %17813 = vmatprep.subr.bf16.mxu1 %v20082_v58  ;;  %v20133_v47 = vld [vmem:[#allocation5 + $0x2a98] ss:$12 sps:$4 sm:$0xff]   ;;  %v20137_v58 = vld [vmem:[#allocation5 + $0x2b70] ss:$12 sps:$4 sm:$0xff]  }
 0x5e1   :  { %12997 = vmatprep.subr.bf16.mxu0 %v20081_v37  ;;  %v20136_v37 = vld [vmem:[#allocation5 + $0x2dac] ss:$12 sps:$4 sm:$0xff]  }
 0x5e3   :  { %17814 = vmatpush3.bf16.msra.mxu1 %v20083_v18 }
 0x5e4   :  { %12998 = vmatpush1.bf16.msra.mxu0 %v20079_v60  ;;  %17815 = vmatprep.subr.bf16.mxu1 %v20087_v53  ;;  %v20138_v53 = vld [vmem:[#allocation5 + $0x2ab0] ss:$12 sps:$4 sm:$0xff]  }
 0x5e5   :  { %12999 = vmatprep.subr.bf16.mxu0 %v20086_v1  ;;  %v17667_v54 = vpop.f32.mrb[84].mxu1  ;;  %v20134_v1 = vld [vmem:[#allocation5 + $0x2da8] ss:$12 sps:$4 sm:$0xff]  }
 0x5e6   :  { %v17668_v6 = vpop.f32.mrb[85].mxu1 }
 0x5e7   :  { %v17669_v49 = vadd.f32 %v17668_v6, %v17667_v54  ;;  %17816 = vmatpush3.bf16.msra.mxu1 %v20088_v55  ;;  %v17670_v56 = vpop.f32.mrb[86].mxu1  ;;  %v20142_v55 = vld [vmem:[#allocation5 + $0x2c48] ss:$12 sps:$4 sm:$0xff]   ;;  %v20147_v6 = vld [vmem:[#allocation5 + $0x2c60] ss:$12 sps:$4 sm:$0xff]  }
 0x5e8   :  { %13000 = vmatpush1.bf16.msra.mxu0 %v20084_v29  ;;  %17817 = vmatprep.subr.bf16.mxu1 %v20092_v13  ;;  %v17671_v5 = vpop.f32.mrb[87].mxu1  ;;  %v20141_v29 = vld [vmem:[#allocation5 + $0x2dc4] ss:$12 sps:$4 sm:$0xff]   ;;  %v20143_v13 = vld [vmem:[#allocation5 + $0x2b88] ss:$12 sps:$4 sm:$0xff]  }
 0x5e9   :  { %13001 = vmatprep.subr.bf16.mxu0 %v20091_v59  ;;  %v21177_v26 = vadd.f32 %v17669_v49, %v21172_v25  ;;  %v20113_v25 = vld [vmem:[#allocation5 + $0x2a38] ss:$12 sps:$4 sm:$0xff]   ;;  %v20139_v59 = vld [vmem:[#allocation5 + $0x2dc0] ss:$12 sps:$4 sm:$0xff]   ;;  %v20146_v54 = vld [vmem:[#allocation5 + $0x2ddc] ss:$12 sps:$4 sm:$0xff]  }
 0x5ea   :  { %v20144_v49 = vld [vmem:[#allocation5 + $0x2dd8] ss:$12 sps:$4 sm:$0xff]  }
 0x5eb   :  { %17818 = vmatpush3.bf16.msra.mxu1 %v20093_v2  ;;  %v20151_v2 = vld [vmem:[#allocation5 + $0x2df4] ss:$12 sps:$4 sm:$0xff]   ;;  %v20152_v56 = vld [vmem:[#allocation5 + $0x2c78] ss:$12 sps:$4 sm:$0xff]  }
 0x5ec   :  { %13002 = vmatpush1.bf16.msra.mxu0 %v20089_v57  ;;  %17819 = vmatprep.subr.bf16.mxu1 %v20097_v21  ;;  %v20148_v57 = vld [vmem:[#allocation5 + $0x2ba0] ss:$12 sps:$4 sm:$0xff]   ;;  %v20153_v21 = vld [vmem:[#allocation5 + $0x2bb8] ss:$12 sps:$4 sm:$0xff]  }
 0x5ed   :  { %13003 = vmatprep.subr.bf16.mxu0 %v20096_v14  ;;  %v20149_v14 = vld [vmem:[#allocation5 + $0x2df0] ss:$12 sps:$4 sm:$0xff]   ;;  %v20156_v5 = vld [vmem:[#allocation5 + $0x2e0c] ss:$12 sps:$4 sm:$0xff]  }
 0x5ef   :  { %17820 = vmatpush3.bf16.msra.mxu1 %v20098_v61  ;;  %v20161_v61 = vld [vmem:[#allocation5 + $0x2e24] ss:$12 sps:$4 sm:$0xff]  }
 0x5f0   :  { %13004 = vmatpush1.bf16.msra.mxu0 %v20094_v17  ;;  %17827 = vmatprep.subr.bf16.mxu1 %v20102_v35  ;;  %v20158_v17 = vld [vmem:[#allocation5 + $0x2bd0] ss:$12 sps:$4 sm:$0xff]  }
 0x5f1   :  { %13014 = vmatprep.subr.bf16.mxu0 %v20101_v16  ;;  %v20159_v16 = vld [vmem:[#allocation5 + $0x2e20] ss:$12 sps:$4 sm:$0xff]   ;;  %v20166_v35 = vld [vmem:[#allocation5 + $0x2e3c] ss:$12 sps:$4 sm:$0xff]  }
 0x5f2   :  { %14373 = vmatmul.mubr.bf16.vlgmr.msra.gmra.mrb[112].mxu1 %v21147_v30  ;;  %v20116_v30 = vld [vmem:[#allocation5 + $0x2d4c] ss:$12 sps:$4 sm:$0xff]  }
 0x5f3   :  { %13006 = vmatmul.mubr.bf16.vlgmr.msra.gmra.mrb[0].mxu0 %v21179_v22  ;;  %17828 = vmatpush3.bf16.msra.mxu1 %v20103_v28  ;;  %v20168_v28 = vld [vmem:[#allocation5 + $0x2c00] ss:$12 sps:$4 sm:$0xff]  }
 0x5f4   :  { %13015 = vmatpush1.bf16.msra.mxu0 %v20099_v12  ;;  %17829 = vmatprep.subr.bf16.mxu1 %v20107_v45  ;;  %v20164_v12 = vld [vmem:[#allocation5 + $0x2e38] ss:$12 sps:$4 sm:$0xff]  }
 0x5f5   :  { %13016 = vmatprep.subr.bf16.mxu0 %v20106_v7  ;;  %14412 = vmatprep.mubr.bf16.mxu1 %v21149_v3  ;;  %v20119_v3 = vld [vmem:[#allocation5 + $0x2d60] ss:$12 sps:$4 sm:$0xff]   ;;  %v20172_v45 = vld [vmem:[#allocation5 + $0x2cd8] ss:$12 sps:$4 sm:$0xff]  }
 0x5f6   :  { %13046 = vmatprep.mubr.bf16.mxu0 %v21181_v15  ;;  %v20171_v7 = vld [vmem:[#allocation5 + $0x2e54] ss:$12 sps:$4 sm:$0xff]  }
 0x5f7   :  { %17830 = vmatpush3.bf16.msra.mxu1 %v20108_v36 }
 0x5f8   :  { %13017 = vmatpush1.bf16.msra.mxu0 %v20104_v24  ;;  %17831 = vmatprep.subr.bf16.mxu1 %v20112_v33  ;;  %v20169_v33 = vld [vmem:[#allocation5 + $0x2e50] ss:$12 sps:$4 sm:$0xff]  }
 0x5f9   :  { %13018 = vmatprep.subr.bf16.mxu0 %v20111_v20 }
 0x5fb   :  { %17832 = vmatpush3.bf16.msra.mxu1 %v20113_v25 }
 0x5fc   :  { %13019 = vmatpush1.bf16.msra.mxu0 %v20109_v44  ;;  %17833 = vmatprep.subr.bf16.mxu1 %v20117_v31  ;;  %v20173_v44 = vld [vmem:[#allocation5 + $0x2c18] ss:$12 sps:$4 sm:$0xff]   ;;  %v20177_v31 = vld [vmem:[#allocation5 + $0x2cf0] ss:$12 sps:$4 sm:$0xff]  }
 0x5fd   :  { %13020 = vmatprep.subr.bf16.mxu0 %v20116_v30  ;;  %v20176_v30 = vld [vmem:[#allocation5 + $0x2e6c] ss:$12 sps:$4 sm:$0xff]  }
 0x5ff   :  { %17834 = vmatpush3.bf16.msra.mxu1 %v20118_v4 }
 0x600   :  { %13021 = vmatpush1.bf16.msra.mxu0 %v20114_v40  ;;  %17835 = vmatprep.subr.bf16.mxu1 %v20122_v42  ;;  %v20178_v42 = vld [vmem:[#allocation5 + $0x2c30] ss:$12 sps:$4 sm:$0xff]  }
 0x601   :  { %13022 = vmatprep.subr.bf16.mxu0 %v20121_v46  ;;  %v20174_v46 = vld [vmem:[#allocation5 + $0x2e68] ss:$12 sps:$4 sm:$0xff]  }
 0x603   :  { %17836 = vmatpush3.bf16.msra.mxu1 %v20123_v51  ;;  %v20181_v51 = vld [vmem:[#allocation5 + $0x2e84] ss:$12 sps:$4 sm:$0xff]  }
 0x604   :  { %13023 = vmatpush1.bf16.msra.mxu0 %v20119_v3  ;;  %17837 = vmatprep.subr.bf16.mxu1 %v20127_v41  ;;  %v163_v3 = vld [vmem:[#allocation3 + $0x1e0] sm:$0xff] }
 0x605   :  { %13024 = vmatprep.subr.bf16.mxu0 %v20126_v34  ;;  %v17689_v63 = vpop.f32.mrb[88].mxu1  ;;  %v20182_v34 = vld [vmem:[#allocation5 + $0x2dc8] ss:$12 sps:$4 sm:$0xff]   ;;  %v21195_v41 = vpack.c.bf16 %v163_v3, %v163_v3  ;;  %v20239_v3 = vld [vmem:[#allocation5 + $0x2fa0] ss:$12 sps:$4 sm:$0xff]  }
 0x606   :  { %v17690_v48 = vpop.f32.mrb[89].mxu1 }
 0x607   :  { %v17691_v38 = vadd.f32 %v17690_v48, %v17689_v63  ;;  %17838 = vmatpush3.bf16.msra.mxu1 %v20128_v10  ;;  %v17692_v39 = vpop.f32.mrb[90].mxu1  ;;  %v20179_v10 = vld [vmem:[#allocation5 + $0x2e80] ss:$12 sps:$4 sm:$0xff]  }
 0x608   :  { %13025 = vmatpush1.bf16.msra.mxu0 %v20124_v52  ;;  %17839 = vmatprep.subr.bf16.mxu1 %v20132_v9  ;;  %v17693_v60 = vpop.f32.mrb[91].mxu1  ;;  %v166_v52 = vld [vmem:[#allocation3 + $0x1f8] sm:$0xff]  ;;  %v20187_v63 = vld [vmem:[#allocation5 + $0x2de0] ss:$12 sps:$4 sm:$0xff]  }
 0x609   :  { %13026 = vmatprep.subr.bf16.mxu0 %v20131_v32  ;;  %v21188_v18 = vadd.f32 %v17691_v38, %v21177_v26  ;;  %v20157_v26 = vld [vmem:[#allocation5 + $0x2c90] ss:$12 sps:$4 sm:$0xff]   ;;  %v20183_v32 = vld [vmem:[#allocation5 + $0x2d08] ss:$12 sps:$4 sm:$0xff]   ;;  %v21197_v48 = vpack.c.bf16 %v166_v52, %v166_v52  ;;  %v20184_v38 = vld [vmem:[#allocation5 + $0x2e98] ss:$12 sps:$4 sm:$0xff]  }
 0x60a   :  { %v20186_v9 = vld [vmem:[#allocation5 + $0x2e9c] ss:$12 sps:$4 sm:$0xff]   ;;  %v20192_v39 = vld [vmem:[#allocation5 + $0x2df8] ss:$12 sps:$4 sm:$0xff]  }
 0x60b   :  { %17840 = vmatpush3.bf16.msra.mxu1 %v20133_v47  ;;  %v20191_v47 = vld [vmem:[#allocation5 + $0x2eb4] ss:$12 sps:$4 sm:$0xff]   ;;  %v20197_v60 = vld [vmem:[#allocation5 + $0x2e10] ss:$12 sps:$4 sm:$0xff]   ;;  %v20244_v52 = vld [vmem:[#allocation5 + $0x2fb8] ss:$12 sps:$4 sm:$0xff]  }
 0x60c   :  { %13027 = vmatpush1.bf16.msra.mxu0 %v20129_v50  ;;  %17841 = vmatprep.subr.bf16.mxu1 %v20137_v58  ;;  %v20188_v50 = vld [vmem:[#allocation5 + $0x2d20] ss:$12 sps:$4 sm:$0xff]   ;;  %v20193_v58 = vld [vmem:[#allocation5 + $0x2d38] ss:$12 sps:$4 sm:$0xff]  }
 0x60d   :  { %13028 = vmatprep.subr.bf16.mxu0 %v20136_v37  ;;  %v20189_v37 = vld [vmem:[#allocation5 + $0x2eb0] ss:$12 sps:$4 sm:$0xff]  }
 0x60f   :  { %17842 = vmatpush3.bf16.msra.mxu1 %v20138_v53  ;;  %v20201_v53 = vld [vmem:[#allocation5 + $0x2ee4] ss:$12 sps:$4 sm:$0xff]  }
 0x610   :  { %13029 = vmatpush1.bf16.msra.mxu0 %v20134_v1  ;;  %17849 = vmatprep.subr.bf16.mxu1 %v20142_v55  ;;  %v20198_v1 = vld [vmem:[#allocation5 + $0x2d50] ss:$12 sps:$4 sm:$0xff]   ;;  %v20203_v55 = vld [vmem:[#allocation5 + $0x2d68] ss:$12 sps:$4 sm:$0xff]  }
 0x611   :  { %13030 = vmatprep.subr.bf16.mxu0 %v20141_v29  ;;  %v20202_v29 = vld [vmem:[#allocation5 + $0x2e28] ss:$12 sps:$4 sm:$0xff]  }
 0x612   :  { %14413 = vmatmul.mubr.bf16.vlgmr.msra.gmra.mrb[116].mxu1 %v21163_v11  ;;  %v20154_v11 = vld [vmem:[#allocation5 + $0x2e08] ss:$12 sps:$4 sm:$0xff]  }
 0x613   :  { %17850 = vmatpush3.bf16.msra.mxu1 %v20143_v13  ;;  %14452 = vmatprep.mubr.bf16.mxu1 %v21165_v0  ;;  %v20163_v0 = vld [vmem:[#allocation5 + $0x2be8] ss:$12 sps:$4 sm:$0xff]   ;;  %v20207_v13 = vld [vmem:[#allocation5 + $0x2e40] ss:$12 sps:$4 sm:$0xff]  }
 0x614   :  { %13031 = vmatpush1.bf16.msra.mxu0 %v20139_v59  ;;  %17851 = vmatprep.subr.bf16.mxu1 %v20147_v6  ;;  %v20206_v59 = vld [vmem:[#allocation5 + $0x2efc] ss:$12 sps:$4 sm:$0xff]   ;;  %v20208_v6 = vld [vmem:[#allocation5 + $0x2d80] ss:$12 sps:$4 sm:$0xff]  }
 0x615   :  { %13032 = vmatprep.subr.bf16.mxu0 %v20146_v54  ;;  %v20204_v54 = vld [vmem:[#allocation5 + $0x2ef8] ss:$12 sps:$4 sm:$0xff]  }
 0x617   :  { %17852 = vmatpush3.bf16.msra.mxu1 %v20148_v57  ;;  %v20212_v57 = vld [vmem:[#allocation5 + $0x2e58] ss:$12 sps:$4 sm:$0xff]  }
 0x618   :  { %13033 = vmatpush1.bf16.msra.mxu0 %v20144_v49  ;;  %17853 = vmatprep.subr.bf16.mxu1 %v20152_v56  ;;  %v20211_v49 = vld [vmem:[#allocation5 + $0x2f14] ss:$12 sps:$4 sm:$0xff]  }
 0x619   :  { %13034 = vmatprep.subr.bf16.mxu0 %v20151_v2 }
 0x61b   :  { %17854 = vmatpush3.bf16.msra.mxu1 %v20153_v21  ;;  %v20209_v21 = vld [vmem:[#allocation5 + $0x2f10] ss:$12 sps:$4 sm:$0xff]  }
 0x61c   :  { %13035 = vmatpush1.bf16.msra.mxu0 %v20149_v14  ;;  %17855 = vmatprep.subr.bf16.mxu1 %v20157_v26 }
 0x61d   :  { %13036 = vmatprep.subr.bf16.mxu0 %v20156_v5  ;;  %v20213_v5 = vld [vmem:[#allocation5 + $0x2d98] ss:$12 sps:$4 sm:$0xff]  }
 0x61f   :  { %17856 = vmatpush3.bf16.msra.mxu1 %v20158_v17  ;;  %v20217_v17 = vld [vmem:[#allocation5 + $0x2e70] ss:$12 sps:$4 sm:$0xff]  }
 0x620   :  { %13037 = vmatpush1.bf16.msra.mxu0 %v20154_v11  ;;  %17857 = vmatprep.subr.bf16.mxu1 %v20162_v62  ;;  %v20216_v11 = vld [vmem:[#allocation5 + $0x2f2c] ss:$12 sps:$4 sm:$0xff]  }
 0x621   :  { %13038 = vmatprep.subr.bf16.mxu0 %v20161_v61 }
 0x623   :  { %17858 = vmatpush3.bf16.msra.mxu1 %v20163_v0  ;;  %v20218_v0 = vld [vmem:[#allocation5 + $0x2db0] ss:$12 sps:$4 sm:$0xff]  }
 0x624   :  { %13039 = vmatpush1.bf16.msra.mxu0 %v20159_v16  ;;  %17859 = vmatprep.subr.bf16.mxu1 %v20167_v19  ;;  %v20214_v16 = vld [vmem:[#allocation5 + $0x2f28] ss:$12 sps:$4 sm:$0xff]  }
 0x625   :  { %13040 = vmatprep.subr.bf16.mxu0 %v20166_v35  ;;  %v17711_v24 = vpop.f32.mrb[92].mxu1  ;;  %v20221_v35 = vld [vmem:[#allocation5 + $0x2f44] ss:$12 sps:$4 sm:$0xff]   ;;  %v20222_v19 = vld [vmem:[#allocation5 + $0x2f48] ss:$12 sps:$4 sm:$0xff]  }
 0x626   :  { %v17712_v36 = vpop.f32.mrb[93].mxu1 }
 0x627   :  { %v17713_v20 = vadd.f32 %v17712_v36, %v17711_v24  ;;  %17860 = vmatpush3.bf16.msra.mxu1 %v20168_v28  ;;  %v17714_v25 = vpop.f32.mrb[94].mxu1  ;;  %v20223_v28 = vld [vmem:[#allocation5 + $0x2e88] ss:$12 sps:$4 sm:$0xff]   ;;  %v20224_v24 = vld [vmem:[#allocation5 + $0x2f58] ss:$12 sps:$4 sm:$0xff]  }
 0x628   :  { %13041 = vmatpush1.bf16.msra.mxu0 %v20164_v12  ;;  %17861 = vmatprep.subr.bf16.mxu1 %v20172_v45  ;;  %v17715_v40 = vpop.f32.mrb[95].mxu1  ;;  %v20219_v12 = vld [vmem:[#allocation5 + $0x2f40] ss:$12 sps:$4 sm:$0xff]   ;;  %v20233_v25 = vld [vmem:[#allocation5 + $0x2eb8] ss:$12 sps:$4 sm:$0xff]  }
 0x629   :  { %13042 = vmatprep.subr.bf16.mxu0 %v20171_v7  ;;  %v21193_v4 = vadd.f32 %v17713_v20, %v21188_v18  ;;  %v20194_v18 = vld [vmem:[#allocation5 + $0x2ec8] ss:$12 sps:$4 sm:$0xff]   ;;  %v20227_v45 = vld [vmem:[#allocation5 + $0x2f60] ss:$12 sps:$4 sm:$0xff]  }
 0x62a   :  { %v20226_v7 = vld [vmem:[#allocation5 + $0x2f5c] ss:$12 sps:$4 sm:$0xff]   ;;  %v20228_v36 = vld [vmem:[#allocation5 + $0x2ea0] ss:$12 sps:$4 sm:$0xff]  }
 0x62b   :  { %17862 = vmatpush3.bf16.msra.mxu1 %v20173_v44  ;;  %v20231_v20 = vld [vmem:[#allocation5 + $0x2f74] ss:$12 sps:$4 sm:$0xff]   ;;  %v20229_v44 = vld [vmem:[#allocation5 + $0x2f70] ss:$12 sps:$4 sm:$0xff]  }
 0x62c   :  { %13043 = vmatpush1.bf16.msra.mxu0 %v20169_v33  ;;  %17863 = vmatprep.subr.bf16.mxu1 %v20177_v31  ;;  %v20232_v33 = vld [vmem:[#allocation5 + $0x2f78] ss:$12 sps:$4 sm:$0xff]   ;;  %v20237_v31 = vld [vmem:[#allocation5 + $0x2f90] ss:$12 sps:$4 sm:$0xff]   ;;  %v20234_v40 = vld [vmem:[#allocation5 + $0x2f88] ss:$12 sps:$4 sm:$0xff]  }
 0x62d   :  { %13044 = vmatprep.subr.bf16.mxu0 %v20176_v30  ;;  %v20236_v30 = vld [vmem:[#allocation5 + $0x2f8c] ss:$12 sps:$4 sm:$0xff]  }
 0x62f   :  { %17864 = vmatpush3.bf16.msra.mxu1 %v20178_v42  ;;  %v20242_v42 = vld [vmem:[#allocation5 + $0x2fa8] ss:$12 sps:$4 sm:$0xff]  }
 0x630   :  { %13045 = vmatpush1.bf16.msra.mxu0 %v20174_v46  ;;  %17871 = vmatprep.subr.bf16.mxu1 %v20182_v34  ;;  %v20241_v46 = vld [vmem:[#allocation5 + $0x2fa4] ss:$12 sps:$4 sm:$0xff]   ;;  %v20246_v34 = vld [vmem:[#allocation5 + $0x2fbc] ss:$12 sps:$4 sm:$0xff]  }
 0x631   :  { %13055 = vmatprep.subr.bf16.mxu0 %v20181_v51  ;;  %v20243_v51 = vld [vmem:[#allocation5 + $0x2ee8] ss:$12 sps:$4 sm:$0xff]  }
 0x632   :  { %14453 = vmatmul.mubr.bf16.vlgmr.msra.gmra.mrb[120].mxu1 %v21179_v22  ;;  %v20196_v22 = vld [vmem:[#allocation5 + $0x2ecc] ss:$12 sps:$4 sm:$0xff]  }
 0x633   :  { %13047 = vmatmul.mubr.bf16.vlgmr.msra.gmra.mrb[0].mxu0 %v21195_v41  ;;  %17872 = vmatpush3.bf16.msra.mxu1 %v20183_v32  ;;  %v20251_v32 = vld [vmem:[#allocation5 + $0x2fd4] ss:$12 sps:$4 sm:$0xff]  }
 0x634   :  { %13056 = vmatpush1.bf16.msra.mxu0 %v20179_v10  ;;  %17873 = vmatprep.subr.bf16.mxu1 %v20187_v63  ;;  %v20248_v10 = vld [vmem:[#allocation5 + $0x2f00] ss:$12 sps:$4 sm:$0xff]  }
 0x635   :  { %13057 = vmatprep.subr.bf16.mxu0 %v20186_v9  ;;  %14492 = vmatprep.mubr.bf16.mxu1 %v21181_v15  ;;  %v20199_v15 = vld [vmem:[#allocation5 + $0x2ee0] ss:$12 sps:$4 sm:$0xff]   ;;  %v20252_v9 = vld [vmem:[#allocation5 + $0x2fd8] ss:$12 sps:$4 sm:$0xff]  }
 0x636   :  { %13087 = vmatprep.mubr.bf16.mxu0 %v21197_v48 }
 0x637   :  { %17874 = vmatpush3.bf16.msra.mxu1 %v20188_v50  ;;  %v20249_v50 = vld [vmem:[#allocation5 + $0x2fd0] ss:$12 sps:$4 sm:$0xff]  }
 0x638   :  { %13058 = vmatpush1.bf16.msra.mxu0 %v20184_v38  ;;  %17875 = vmatprep.subr.bf16.mxu1 %v20192_v39 }
 0x639   :  { %13059 = vmatprep.subr.bf16.mxu0 %v20191_v47  ;;  %v20253_v47 = vld [vmem:[#allocation5 + $0x2f18] ss:$12 sps:$4 sm:$0xff]  }
 0x63b   :  { %17876 = vmatpush3.bf16.msra.mxu1 %v20193_v58  ;;  %v20257_v58 = vld [vmem:[#allocation5 + $0x2ff0] ss:$12 sps:$4 sm:$0xff]  }
 0x63c   :  { %13060 = vmatpush1.bf16.msra.mxu0 %v20189_v37  ;;  %17877 = vmatprep.subr.bf16.mxu1 %v20197_v60  ;;  %v20256_v37 = vld [vmem:[#allocation5 + $0x2fec] ss:$12 sps:$4 sm:$0xff]  }
 0x63d   :  { %13061 = vmatprep.subr.bf16.mxu0 %v20196_v22 }
 0x63f   :  { %17878 = vmatpush3.bf16.msra.mxu1 %v20198_v1  ;;  %v20258_v1 = vld [vmem:[#allocation5 + $0x2f30] ss:$12 sps:$4 sm:$0xff]  }
 0x640   :  { %13062 = vmatpush1.bf16.msra.mxu0 %v20194_v18  ;;  %17879 = vmatprep.subr.bf16.mxu1 %v20202_v29  ;;  %v20254_v18 = vld [vmem:[#allocation5 + $0x2fe8] ss:$12 sps:$4 sm:$0xff]   ;;  %v20261_v29 = vld [vmem:[#allocation5 + $0x3004] ss:$12 sps:$4 sm:$0xff]  }
 0x641   :  { %13063 = vmatprep.subr.bf16.mxu0 %v20201_v53  ;;  %v165_v53 = vld [vmem:[#allocation3 + $0x1f0] sm:$0xff] }
 0x643   :  { %17880 = vmatpush3.bf16.msra.mxu1 %v20203_v55  ;;  %v237_v55 = vpack.c.bf16 %v165_v53, %v165_v53  ;;  %v20314_v53 = vld [vmem:[#allocation5 + $0x3108] ss:$12 sps:$4 sm:$0xff]  }
 0x644   :  { %13064 = vmatpush1.bf16.msra.mxu0 %v20199_v15  ;;  %17881 = vmatprep.subr.bf16.mxu1 %v20207_v13  ;;  %v20262_v15 = vld [vmem:[#allocation5 + $0x30c8] ss:$12 sps:$4 sm:$0xff]   ;;  %v20259_v13 = vld [vmem:[#allocation5 + $0x3000] ss:$12 sps:$4 sm:$0xff]  }
 0x645   :  { %13065 = vmatprep.subr.bf16.mxu0 %v20206_v59  ;;  %v17733_v2 = vpop.f32.mrb[96].mxu1  ;;  %v168_v59 = vld [vmem:[#allocation3 + $0x208] sm:$0xff] }
 0x646   :  { %v17734_v56 = vpop.f32.mrb[97].mxu1 }
 0x647   :  { %v17735_v14 = vadd.f32 %v17734_v56, %v17733_v2  ;;  %17882 = vmatpush3.bf16.msra.mxu1 %v20208_v6  ;;  %v17736_v26 = vpop.f32.mrb[98].mxu1  ;;  %v20266_v6 = vld [vmem:[#allocation5 + $0x301c] ss:$12 sps:$4 sm:$0xff]   ;;  %v20264_v2 = vld [vmem:[#allocation5 + $0x3018] ss:$12 sps:$4 sm:$0xff]  }
 0x648   :  { %13066 = vmatpush1.bf16.msra.mxu0 %v20204_v54  ;;  %17883 = vmatprep.subr.bf16.mxu1 %v20212_v57  ;;  %v17737_v61 = vpop.f32.mrb[99].mxu1  ;;  %v20263_v54 = vld [vmem:[#allocation5 + $0x3008] ss:$12 sps:$4 sm:$0xff]   ;;  %v240_v57 = vpack.c.bf16 %v168_v59, %v168_v59  ;;  %v20268_v56 = vld [vmem:[#allocation5 + $0x3020] ss:$12 sps:$4 sm:$0xff]  }
 0x649   :  { %13067 = vmatprep.subr.bf16.mxu0 %v20211_v49  ;;  %v21204_v62 = vadd.f32 %v17735_v14, %v21193_v4  ;;  %v20238_v4 = vld [vmem:[#allocation5 + $0x2ed0] ss:$12 sps:$4 sm:$0xff]   ;;  %v20267_v49 = vld [vmem:[#allocation5 + $0x30e0] ss:$12 sps:$4 sm:$0xff]   ;;  %v20273_v26 = vld [vmem:[#allocation5 + $0x3038] ss:$12 sps:$4 sm:$0xff]  }
 0x64a   :  { %v20271_v14 = vld [vmem:[#allocation5 + $0x3034] ss:$12 sps:$4 sm:$0xff]  }
 0x64b   :  { %17884 = vmatpush3.bf16.msra.mxu1 %v20213_v5  ;;  %v20269_v5 = vld [vmem:[#allocation5 + $0x3030] ss:$12 sps:$4 sm:$0xff]   ;;  %v20274_v61 = vld [vmem:[#allocation5 + $0x3048] ss:$12 sps:$4 sm:$0xff]   ;;  %v20319_v59 = vld [vmem:[#allocation5 + $0x3120] ss:$12 sps:$4 sm:$0xff]  }
 0x64c   :  { %13068 = vmatpush1.bf16.msra.mxu0 %v20209_v21  ;;  %17885 = vmatprep.subr.bf16.mxu1 %v20217_v17  ;;  %v20272_v21 = vld [vmem:[#allocation5 + $0x30f8] ss:$12 sps:$4 sm:$0xff]   ;;  %v20277_v17 = vld [vmem:[#allocation5 + $0x3110] ss:$12 sps:$4 sm:$0xff]  }
 0x64d   :  { %13069 = vmatprep.subr.bf16.mxu0 %v20216_v11  ;;  %v20276_v11 = vld [vmem:[#allocation5 + $0x304c] ss:$12 sps:$4 sm:$0xff]  }
 0x64f   :  { %17886 = vmatpush3.bf16.msra.mxu1 %v20218_v0  ;;  %v20282_v0 = vld [vmem:[#allocation5 + $0x3128] ss:$12 sps:$4 sm:$0xff]  }
 0x650   :  { %13070 = vmatpush1.bf16.msra.mxu0 %v20214_v16  ;;  %17893 = vmatprep.subr.bf16.mxu1 %v20222_v19  ;;  %v20281_v16 = vld [vmem:[#allocation5 + $0x3064] ss:$12 sps:$4 sm:$0xff]   ;;  %v20283_v19 = vld [vmem:[#allocation5 + $0x3068] ss:$12 sps:$4 sm:$0xff]  }
 0x651   :  { %13071 = vmatprep.subr.bf16.mxu0 %v20221_v35  ;;  %v20279_v35 = vld [vmem:[#allocation5 + $0x3060] ss:$12 sps:$4 sm:$0xff]  }
 0x652   :  { %14493 = vmatmul.mubr.bf16.vlgmr.msra.gmra.mrb[124].mxu1 %v21195_v41  ;;  %v20247_v41 = vld [vmem:[#allocation5 + $0x2fc0] ss:$12 sps:$4 sm:$0xff]  }
 0x653   :  { %17894 = vmatpush3.bf16.msra.mxu1 %v20223_v28  ;;  %14532 = vmatprep.mubr.bf16.mxu1 %v21197_v48  ;;  %v20287_v28 = vld [vmem:[#allocation5 + $0x3140] ss:$12 sps:$4 sm:$0xff]  }
 0x654   :  { %13072 = vmatpush1.bf16.msra.mxu0 %v20219_v12  ;;  %17895 = vmatprep.subr.bf16.mxu1 %v20227_v45  ;;  %v20286_v12 = vld [vmem:[#allocation5 + $0x307c] ss:$12 sps:$4 sm:$0xff]   ;;  %v20288_v45 = vld [vmem:[#allocation5 + $0x3080] ss:$12 sps:$4 sm:$0xff]  }
 0x655   :  { %13073 = vmatprep.subr.bf16.mxu0 %v20226_v7  ;;  %v20284_v7 = vld [vmem:[#allocation5 + $0x3078] ss:$12 sps:$4 sm:$0xff]  }
 0x657   :  { %17896 = vmatpush3.bf16.msra.mxu1 %v20228_v36  ;;  %v20292_v36 = vld [vmem:[#allocation5 + $0x3158] ss:$12 sps:$4 sm:$0xff]  }
 0x658   :  { %13074 = vmatpush1.bf16.msra.mxu0 %v20224_v24  ;;  %17897 = vmatprep.subr.bf16.mxu1 %v20232_v33  ;;  %v20291_v24 = vld [vmem:[#allocation5 + $0x3094] ss:$12 sps:$4 sm:$0xff]  }
 0x659   :  { %13075 = vmatprep.subr.bf16.mxu0 %v20231_v20 }
 0x65b   :  { %17898 = vmatpush3.bf16.msra.mxu1 %v20233_v25  ;;  %v20289_v25 = vld [vmem:[#allocation5 + $0x3090] ss:$12 sps:$4 sm:$0xff]  }
 0x65c   :  { %13076 = vmatpush1.bf16.msra.mxu0 %v20229_v44  ;;  %17899 = vmatprep.subr.bf16.mxu1 %v20237_v31 }
 0x65d   :  { %13077 = vmatprep.subr.bf16.mxu0 %v20236_v30  ;;  %v20293_v30 = vld [vmem:[#allocation5 + $0x3098] ss:$12 sps:$4 sm:$0xff]  }
 0x65f   :  { %17900 = vmatpush3.bf16.msra.mxu1 %v20238_v4  ;;  %v20297_v4 = vld [vmem:[#allocation5 + $0x3170] ss:$12 sps:$4 sm:$0xff]  }
 0x660   :  { %13078 = vmatpush1.bf16.msra.mxu0 %v20234_v40  ;;  %17901 = vmatprep.subr.bf16.mxu1 %v20242_v42  ;;  %v20296_v40 = vld [vmem:[#allocation5 + $0x30ac] ss:$12 sps:$4 sm:$0xff]  }
 0x661   :  { %13079 = vmatprep.subr.bf16.mxu0 %v20241_v46 }
 0x663   :  { %17902 = vmatpush3.bf16.msra.mxu1 %v20243_v51  ;;  %v20298_v51 = vld [vmem:[#allocation5 + $0x30b0] ss:$12 sps:$4 sm:$0xff]  }
 0x664   :  { %13080 = vmatpush1.bf16.msra.mxu0 %v20239_v3  ;;  %17903 = vmatprep.subr.bf16.mxu1 %v20247_v41  ;;  %v20294_v3 = vld [vmem:[#allocation5 + $0x30a8] ss:$12 sps:$4 sm:$0xff]   ;;  %v20301_v41 = vld [vmem:[#allocation5 + $0x30c4] ss:$12 sps:$4 sm:$0xff]  }
 0x665   :  { %13081 = vmatprep.subr.bf16.mxu0 %v20246_v34  ;;  %v17755_v63 = vpop.f32.mrb[100].mxu1  ;;  %v167_v34 = vld [vmem:[#allocation3 + $0x200] sm:$0xff] }
 0x666   :  { %v17756_v48 = vpop.f32.mrb[101].mxu1 }
 0x667   :  { %v17757_v38 = vadd.f32 %v17756_v48, %v17755_v63  ;;  %17904 = vmatpush3.bf16.msra.mxu1 %v20248_v10  ;;  %v17758_v39 = vpop.f32.mrb[102].mxu1  ;;  %v21214_v10 = vpack.c.bf16 %v167_v34, %v167_v34  ;;  %v20303_v63 = vld [vmem:[#allocation5 + $0x3188] ss:$12 sps:$4 sm:$0xff]  }
 0x668   :  { %13082 = vmatpush1.bf16.msra.mxu0 %v20244_v52  ;;  %17905 = vmatprep.subr.bf16.mxu1 %v20252_v9  ;;  %v17759_v22 = vpop.f32.mrb[103].mxu1  ;;  %v20302_v52 = vld [vmem:[#allocation5 + $0x3248] ss:$12 sps:$4 sm:$0xff]   ;;  %v20299_v9 = vld [vmem:[#allocation5 + $0x30c0] ss:$12 sps:$4 sm:$0xff]  }
 0x669   :  { %13083 = vmatprep.subr.bf16.mxu0 %v20251_v32  ;;  %v21209_v60 = vadd.f32 %v17757_v38, %v21204_v62  ;;  %v20278_v62 = vld [vmem:[#allocation5 + $0x3050] ss:$12 sps:$4 sm:$0xff]   ;;  %v20307_v38 = vld [vmem:[#allocation5 + $0x3260] ss:$12 sps:$4 sm:$0xff]   ;;  %v20354_v34 = vld [vmem:[#allocation5 + $0x31c8] ss:$12 sps:$4 sm:$0xff]  }
 0x66a   :  { %v170_v32 = vld [vmem:[#allocation3 + $0x218] sm:$0xff]  ;;  %v20308_v39 = vld [vmem:[#allocation5 + $0x31a0] ss:$12 sps:$4 sm:$0xff]  }
 0x66b   :  { %17906 = vmatpush3.bf16.msra.mxu1 %v20253_v47  ;;  %v20306_v48 = vld [vmem:[#allocation5 + $0x30dc] ss:$12 sps:$4 sm:$0xff]   ;;  %v20304_v47 = vld [vmem:[#allocation5 + $0x30d8] ss:$12 sps:$4 sm:$0xff]  }
 0x66c   :  { %13084 = vmatpush1.bf16.msra.mxu0 %v20249_v50  ;;  %17907 = vmatprep.subr.bf16.mxu1 %v20257_v58  ;;  %v21216_v50 = vpack.c.bf16 %v170_v32, %v170_v32  ;;  %v20312_v58 = vld [vmem:[#allocation5 + $0x3278] ss:$12 sps:$4 sm:$0xff]   ;;  %v20309_v22 = vld [vmem:[#allocation5 + $0x30f0] ss:$12 sps:$4 sm:$0xff]   ;;  %v20359_v32 = vld [vmem:[#allocation5 + $0x31e0] ss:$12 sps:$4 sm:$0xff]  }
 0x66d   :  { %13085 = vmatprep.subr.bf16.mxu0 %v20256_v37  ;;  %v20311_v37 = vld [vmem:[#allocation5 + $0x30f4] ss:$12 sps:$4 sm:$0xff]  }
 0x66f   :  { %17908 = vmatpush3.bf16.msra.mxu1 %v20258_v1  ;;  %v20317_v1 = vld [vmem:[#allocation5 + $0x3290] ss:$12 sps:$4 sm:$0xff]  }
 0x670   :  { %13086 = vmatpush1.bf16.msra.mxu0 %v20254_v18  ;;  %17915 = vmatprep.subr.bf16.mxu1 %v20262_v15  ;;  %v20316_v18 = vld [vmem:[#allocation5 + $0x310c] ss:$12 sps:$4 sm:$0xff]   ;;  %v20321_v15 = vld [vmem:[#allocation5 + $0x3124] ss:$12 sps:$4 sm:$0xff]  }
 0x671   :  { %13096 = vmatprep.subr.bf16.mxu0 %v20261_v29  ;;  %v20318_v29 = vld [vmem:[#allocation5 + $0x31d0] ss:$12 sps:$4 sm:$0xff]  }
 0x672   :  { %14533 = vmatmul.mubr.bf16.vlgmr.msra.gmra.mrb[128].mxu1 %v237_v55 }
 0x673   :  { %13088 = vmatmul.mubr.bf16.vlgmr.msra.gmra.mrb[0].mxu0 %v237_v55  ;;  %17916 = vmatpush3.bf16.msra.mxu1 %v20263_v54  ;;  %v20322_v55 = vld [vmem:[#allocation5 + $0x32a8] ss:$12 sps:$4 sm:$0xff]  }
 0x674   :  { %13097 = vmatpush1.bf16.msra.mxu0 %v20259_v13  ;;  %17917 = vmatprep.subr.bf16.mxu1 %v20267_v49  ;;  %v20323_v13 = vld [vmem:[#allocation5 + $0x31e8] ss:$12 sps:$4 sm:$0xff]   ;;  %v20324_v49 = vld [vmem:[#allocation5 + $0x3138] ss:$12 sps:$4 sm:$0xff]  }
 0x675   :  { %13098 = vmatprep.subr.bf16.mxu0 %v20266_v6  ;;  %14572 = vmatprep.mubr.bf16.mxu1 %v240_v57  ;;  %v20326_v54 = vld [vmem:[#allocation5 + $0x313c] ss:$12 sps:$4 sm:$0xff]   ;;  %v20327_v6 = vld [vmem:[#allocation5 + $0x32c0] ss:$12 sps:$4 sm:$0xff]  }
 0x676   :  { %13128 = vmatprep.mubr.bf16.mxu0 %v240_v57  ;;  %v20328_v57 = vld [vmem:[#allocation5 + $0x3200] ss:$12 sps:$4 sm:$0xff]  }
 0x677   :  { %17918 = vmatpush3.bf16.msra.mxu1 %v20268_v56  ;;  %v20332_v56 = vld [vmem:[#allocation5 + $0x32d8] ss:$12 sps:$4 sm:$0xff]  }
 0x678   :  { %13099 = vmatpush1.bf16.msra.mxu0 %v20264_v2  ;;  %17919 = vmatprep.subr.bf16.mxu1 %v20272_v21  ;;  %v20331_v2 = vld [vmem:[#allocation5 + $0x3154] ss:$12 sps:$4 sm:$0xff]  }
 0x679   :  { %13100 = vmatprep.subr.bf16.mxu0 %v20271_v14 }
 0x67b   :  { %17920 = vmatpush3.bf16.msra.mxu1 %v20273_v26  ;;  %v20329_v26 = vld [vmem:[#allocation5 + $0x3150] ss:$12 sps:$4 sm:$0xff]  }
 0x67c   :  { %13101 = vmatpush1.bf16.msra.mxu0 %v20269_v5  ;;  %17921 = vmatprep.subr.bf16.mxu1 %v20277_v17 }
 0x67d   :  { %13102 = vmatprep.subr.bf16.mxu0 %v20276_v11  ;;  %v20333_v11 = vld [vmem:[#allocation5 + $0x3218] ss:$12 sps:$4 sm:$0xff]  }
 0x67f   :  { %17922 = vmatpush3.bf16.msra.mxu1 %v20278_v62  ;;  %v20337_v62 = vld [vmem:[#allocation5 + $0x32f0] ss:$12 sps:$4 sm:$0xff]  }
 0x680   :  { %13103 = vmatpush1.bf16.msra.mxu0 %v20274_v61  ;;  %17923 = vmatprep.subr.bf16.mxu1 %v20282_v0  ;;  %v20336_v61 = vld [vmem:[#allocation5 + $0x316c] ss:$12 sps:$4 sm:$0xff]  }
 0x681   :  { %13104 = vmatprep.subr.bf16.mxu0 %v20281_v16 }
 0x683   :  { %17924 = vmatpush3.bf16.msra.mxu1 %v20283_v19  ;;  %v20338_v19 = vld [vmem:[#allocation5 + $0x3230] ss:$12 sps:$4 sm:$0xff]  }
 0x684   :  { %13105 = vmatpush1.bf16.msra.mxu0 %v20279_v35  ;;  %17925 = vmatprep.subr.bf16.mxu1 %v20287_v28  ;;  %v20334_v35 = vld [vmem:[#allocation5 + $0x3168] ss:$12 sps:$4 sm:$0xff]   ;;  %v20341_v28 = vld [vmem:[#allocation5 + $0x3184] ss:$12 sps:$4 sm:$0xff]  }
 0x685   :  { %13106 = vmatprep.subr.bf16.mxu0 %v20286_v12  ;;  %v17777_v20 = vpop.f32.mrb[104].mxu1  ;;  %v169_v12 = vld [vmem:[#allocation3 + $0x210] sm:$0xff] }
 0x686   :  { %v17778_v33 = vpop.f32.mrb[105].mxu1 }
 0x687   :  { %v17779_v44 = vadd.f32 %v17778_v33, %v17777_v20  ;;  %17926 = vmatpush3.bf16.msra.mxu1 %v20288_v45  ;;  %v17780_v31 = vpop.f32.mrb[106].mxu1  ;;  %v21223_v45 = vpack.c.bf16 %v169_v12, %v169_v12  ;;  %v20343_v20 = vld [vmem:[#allocation5 + $0x3308] ss:$12 sps:$4 sm:$0xff]  }
 0x688   :  { %13107 = vmatpush1.bf16.msra.mxu0 %v20284_v7  ;;  %17927 = vmatprep.subr.bf16.mxu1 %v20292_v36  ;;  %v17781_v46 = vpop.f32.mrb[107].mxu1  ;;  %v20342_v7 = vld [vmem:[#allocation5 + $0x33c8] ss:$12 sps:$4 sm:$0xff]   ;;  %v20339_v36 = vld [vmem:[#allocation5 + $0x3180] ss:$12 sps:$4 sm:$0xff]  }
 0x689   :  { %13108 = vmatprep.subr.bf16.mxu0 %v20291_v24  ;;  %v21212_v42 = vadd.f32 %v17779_v44, %v21209_v60  ;;  %v20313_v60 = vld [vmem:[#allocation5 + $0x31b8] ss:$12 sps:$4 sm:$0xff]   ;;  %v172_v24 = vld [vmem:[#allocation3 + $0x228] sm:$0xff]  ;;  %v20349_v46 = vld [vmem:[#allocation5 + $0x31b0] ss:$12 sps:$4 sm:$0xff]  }
 0x68a   :  { %v20346_v33 = vld [vmem:[#allocation5 + $0x319c] ss:$12 sps:$4 sm:$0xff]   ;;  %v20347_v44 = vld [vmem:[#allocation5 + $0x33e0] ss:$12 sps:$4 sm:$0xff]  }
 0x68b   :  { %17928 = vmatpush3.bf16.msra.mxu1 %v20293_v30  ;;  %v20344_v30 = vld [vmem:[#allocation5 + $0x3198] ss:$12 sps:$4 sm:$0xff]   ;;  %v20348_v31 = vld [vmem:[#allocation5 + $0x3320] ss:$12 sps:$4 sm:$0xff]   ;;  %v20394_v12 = vld [vmem:[#allocation5 + $0x3288] ss:$12 sps:$4 sm:$0xff]  }
 0x68c   :  { %13109 = vmatpush1.bf16.msra.mxu0 %v20289_v25  ;;  %17929 = vmatprep.subr.bf16.mxu1 %v20297_v4  ;;  %v21225_v25 = vpack.c.bf16 %v172_v24, %v172_v24  ;;  %v20352_v4 = vld [vmem:[#allocation5 + $0x33f8] ss:$12 sps:$4 sm:$0xff]   ;;  %v20402_v24 = vld [vmem:[#allocation5 + $0x35a8] ss:$12 sps:$4 sm:$0xff]  }
 0x68d   :  { %13110 = vmatprep.subr.bf16.mxu0 %v20296_v40  ;;  %v20351_v40 = vld [vmem:[#allocation5 + $0x31b4] ss:$12 sps:$4 sm:$0xff]  }
 0x68f   :  { %17930 = vmatpush3.bf16.msra.mxu1 %v20298_v51  ;;  %v20357_v51 = vld [vmem:[#allocation5 + $0x3410] ss:$12 sps:$4 sm:$0xff]  }
 0x690   :  { %13111 = vmatpush1.bf16.msra.mxu0 %v20294_v3  ;;  %17937 = vmatprep.subr.bf16.mxu1 %v20302_v52  ;;  %v20356_v3 = vld [vmem:[#allocation5 + $0x31cc] ss:$12 sps:$4 sm:$0xff]   ;;  %v20361_v52 = vld [vmem:[#allocation5 + $0x31e4] ss:$12 sps:$4 sm:$0xff]  }
 0x691   :  { %13112 = vmatprep.subr.bf16.mxu0 %v20301_v41  ;;  %v20358_v41 = vld [vmem:[#allocation5 + $0x3350] ss:$12 sps:$4 sm:$0xff]  }
 0x692   :  { %14573 = vmatmul.mubr.bf16.vlgmr.msra.gmra.mrb[132].mxu1 %v21214_v10 }
 0x693   :  { %17938 = vmatpush3.bf16.msra.mxu1 %v20303_v63  ;;  %14612 = vmatprep.mubr.bf16.mxu1 %v21216_v50  ;;  %v20366_v63 = vld [vmem:[#allocation5 + $0x31fc] ss:$12 sps:$4 sm:$0xff]  }
 0x694   :  { %13113 = vmatpush1.bf16.msra.mxu0 %v20299_v9  ;;  %17939 = vmatprep.subr.bf16.mxu1 %v20307_v38  ;;  %v20363_v9 = vld [vmem:[#allocation5 + $0x3368] ss:$12 sps:$4 sm:$0xff]   ;;  %v20364_v38 = vld [vmem:[#allocation5 + $0x31f8] ss:$12 sps:$4 sm:$0xff]  }
 0x695   :  { %13114 = vmatprep.subr.bf16.mxu0 %v20306_v48  ;;  %v20367_v48 = vld [vmem:[#allocation5 + $0x3440] ss:$12 sps:$4 sm:$0xff]  }
 0x697   :  { %17940 = vmatpush3.bf16.msra.mxu1 %v20308_v39  ;;  %v20372_v39 = vld [vmem:[#allocation5 + $0x3458] ss:$12 sps:$4 sm:$0xff]  }
 0x698   :  { %13115 = vmatpush1.bf16.msra.mxu0 %v20304_v47  ;;  %17941 = vmatprep.subr.bf16.mxu1 %v20312_v58  ;;  %v20371_v47 = vld [vmem:[#allocation5 + $0x3214] ss:$12 sps:$4 sm:$0xff]  }
 0x699   :  { %13116 = vmatprep.subr.bf16.mxu0 %v20311_v37 }
 0x69b   :  { %17942 = vmatpush3.bf16.msra.mxu1 %v20313_v60  ;;  %v20369_v60 = vld [vmem:[#allocation5 + $0x3210] ss:$12 sps:$4 sm:$0xff]  }
 0x69c   :  { %13117 = vmatpush1.bf16.msra.mxu0 %v20309_v22  ;;  %17943 = vmatprep.subr.bf16.mxu1 %v20317_v1 }
 0x69d   :  { %13118 = vmatprep.subr.bf16.mxu0 %v20316_v18  ;;  %v20373_v18 = vld [vmem:[#allocation5 + $0x3398] ss:$12 sps:$4 sm:$0xff]  }
 0x69f   :  { %17944 = vmatpush3.bf16.msra.mxu1 %v20318_v29  ;;  %v20377_v29 = vld [vmem:[#allocation5 + $0x3470] ss:$12 sps:$4 sm:$0xff]  }
 0x6a0   :  { %13119 = vmatpush1.bf16.msra.mxu0 %v20314_v53  ;;  %17945 = vmatprep.subr.bf16.mxu1 %v20322_v55  ;;  %v20376_v53 = vld [vmem:[#allocation5 + $0x322c] ss:$12 sps:$4 sm:$0xff]  }
 0x6a1   :  { %13120 = vmatprep.subr.bf16.mxu0 %v20321_v15 }
 0x6a3   :  { %17946 = vmatpush3.bf16.msra.mxu1 %v20323_v13  ;;  %v20378_v13 = vld [vmem:[#allocation5 + $0x33b0] ss:$12 sps:$4 sm:$0xff]  }
 0x6a4   :  { %13121 = vmatpush1.bf16.msra.mxu0 %v20319_v59  ;;  %17947 = vmatprep.subr.bf16.mxu1 %v20327_v6  ;;  %v20374_v59 = vld [vmem:[#allocation5 + $0x3228] ss:$12 sps:$4 sm:$0xff]   ;;  %v20381_v6 = vld [vmem:[#allocation5 + $0x3244] ss:$12 sps:$4 sm:$0xff]  }
 0x6a5   :  { %13122 = vmatprep.subr.bf16.mxu0 %v20326_v54  ;;  %v17799_v14 = vpop.f32.mrb[108].mxu1  ;;  %v171_v54 = vld [vmem:[#allocation3 + $0x220] sm:$0xff] }
 0x6a6   :  { %v17800_v21 = vpop.f32.mrb[109].mxu1 }
 0x6a7   :  { %v17801_v5 = vadd.f32 %v17800_v21, %v17799_v14  ;;  %17948 = vmatpush3.bf16.msra.mxu1 %v20328_v57  ;;  %v17802_v17 = vpop.f32.mrb[110].mxu1  ;;  %v21234_v57 = vpack.c.bf16 %v171_v54, %v171_v54  ;;  %v20383_v14 = vld [vmem:[#allocation5 + $0x3488] ss:$12 sps:$4 sm:$0xff]   ;;  %v20437_v54 = vld [vmem:[#allocation5 + $0x3390] ss:$12 sps:$4 sm:$0xff]  }
 0x6a8   :  { %13123 = vmatpush1.bf16.msra.mxu0 %v20324_v49  ;;  %17949 = vmatprep.subr.bf16.mxu1 %v20332_v56  ;;  %v17803_v16 = vpop.f32.mrb[111].mxu1  ;;  %v20382_v49 = vld [vmem:[#allocation5 + $0x3548] ss:$12 sps:$4 sm:$0xff]   ;;  %v20379_v56 = vld [vmem:[#allocation5 + $0x3240] ss:$12 sps:$4 sm:$0xff]  }
 0x6a9   :  { %13124 = vmatprep.subr.bf16.mxu0 %v20331_v2  ;;  %v21221_v0 = vadd.f32 %v17801_v5, %v21212_v42  ;;  %v20353_v42 = vld [vmem:[#allocation5 + $0x3338] ss:$12 sps:$4 sm:$0xff]   ;;  %v20386_v21 = vld [vmem:[#allocation5 + $0x325c] ss:$12 sps:$4 sm:$0xff]   ;;  %v20387_v5 = vld [vmem:[#allocation5 + $0x3560] ss:$12 sps:$4 sm:$0xff]  }
 0x6aa   :  { %v174_v2 = vld [vmem:[#allocation3 + $0x238] sm:$0xff]  ;;  %v20388_v17 = vld [vmem:[#allocation5 + $0x34a0] ss:$12 sps:$4 sm:$0xff]  }
 0x6ab   :  { %17950 = vmatpush3.bf16.msra.mxu1 %v20333_v11  ;;  %v20384_v11 = vld [vmem:[#allocation5 + $0x3258] ss:$12 sps:$4 sm:$0xff]   ;;  %v20389_v16 = vld [vmem:[#allocation5 + $0x3270] ss:$12 sps:$4 sm:$0xff]  }
 0x6ac   :  { %13125 = vmatpush1.bf16.msra.mxu0 %v20329_v26  ;;  %17951 = vmatprep.subr.bf16.mxu1 %v20337_v62  ;;  %v21236_v26 = vpack.c.bf16 %v174_v2, %v174_v2  ;;  %v20392_v62 = vld [vmem:[#allocation5 + $0x3578] ss:$12 sps:$4 sm:$0xff]  }
 0x6ad   :  { %13126 = vmatprep.subr.bf16.mxu0 %v20336_v61  ;;  %v20391_v61 = vld [vmem:[#allocation5 + $0x3274] ss:$12 sps:$4 sm:$0xff]  }
 0x6af   :  { %17952 = vmatpush3.bf16.msra.mxu1 %v20338_v19  ;;  %v20397_v19 = vld [vmem:[#allocation5 + $0x3590] ss:$12 sps:$4 sm:$0xff]  }
 0x6b0   :  { %13127 = vmatpush1.bf16.msra.mxu0 %v20334_v35  ;;  %17959 = vmatprep.subr.bf16.mxu1 %v20342_v7  ;;  %v20396_v35 = vld [vmem:[#allocation5 + $0x328c] ss:$12 sps:$4 sm:$0xff]   ;;  %v20401_v7 = vld [vmem:[#allocation5 + $0x32a4] ss:$12 sps:$4 sm:$0xff]  }
 0x6b1   :  { %13137 = vmatprep.subr.bf16.mxu0 %v20341_v28  ;;  %v20398_v28 = vld [vmem:[#allocation5 + $0x34d0] ss:$12 sps:$4 sm:$0xff]  }
 0x6b2   :  { %14613 = vmatmul.mubr.bf16.vlgmr.msra.gmra.mrb[136].mxu1 %v21223_v45 }
 0x6b3   :  { %13129 = vmatmul.mubr.bf16.vlgmr.msra.gmra.mrb[0].mxu0 %v21214_v10  ;;  %17960 = vmatpush3.bf16.msra.mxu1 %v20343_v20  ;;  %v20362_v10 = vld [vmem:[#allocation5 + $0x3428] ss:$12 sps:$4 sm:$0xff]  }
 0x6b4   :  { %13138 = vmatpush1.bf16.msra.mxu0 %v20339_v36  ;;  %17961 = vmatprep.subr.bf16.mxu1 %v20347_v44  ;;  %v20399_v36 = vld [vmem:[#allocation5 + $0x32a0] ss:$12 sps:$4 sm:$0xff]   ;;  %v20403_v20 = vld [vmem:[#allocation5 + $0x34e8] ss:$12 sps:$4 sm:$0xff]  }
 0x6b5   :  { %13139 = vmatprep.subr.bf16.mxu0 %v20346_v33  ;;  %14652 = vmatprep.mubr.bf16.mxu1 %v21225_v25  ;;  %v20406_v33 = vld [vmem:[#allocation5 + $0x32bc] ss:$12 sps:$4 sm:$0xff]   ;;  %v20407_v44 = vld [vmem:[#allocation5 + $0x35c0] ss:$12 sps:$4 sm:$0xff]  }
 0x6b6   :  { %13169 = vmatprep.mubr.bf16.mxu0 %v21216_v50  ;;  %v20368_v50 = vld [vmem:[#allocation5 + $0x3380] ss:$12 sps:$4 sm:$0xff]  }
 0x6b7   :  { %17962 = vmatpush3.bf16.msra.mxu1 %v20348_v31  ;;  %v20408_v31 = vld [vmem:[#allocation5 + $0x3500] ss:$12 sps:$4 sm:$0xff]  }
 0x6b8   :  { %13140 = vmatpush1.bf16.msra.mxu0 %v20344_v30  ;;  %17963 = vmatprep.subr.bf16.mxu1 %v20352_v4  ;;  %v20404_v30 = vld [vmem:[#allocation5 + $0x32b8] ss:$12 sps:$4 sm:$0xff]  }
 0x6b9   :  { %13141 = vmatprep.subr.bf16.mxu0 %v20351_v40  ;;  %v20411_v40 = vld [vmem:[#allocation5 + $0x32d4] ss:$12 sps:$4 sm:$0xff]   ;;  %v20412_v4 = vld [vmem:[#allocation5 + $0x35d8] ss:$12 sps:$4 sm:$0xff]  }
 0x6bb   :  { %17964 = vmatpush3.bf16.msra.mxu1 %v20353_v42 }
 0x6bc   :  { %13142 = vmatpush1.bf16.msra.mxu0 %v20349_v46  ;;  %17965 = vmatprep.subr.bf16.mxu1 %v20357_v51  ;;  %v20409_v51 = vld [vmem:[#allocation5 + $0x32d0] ss:$12 sps:$4 sm:$0xff]  }
 0x6bd   :  { %13143 = vmatprep.subr.bf16.mxu0 %v20356_v3 }
 0x6bf   :  { %17966 = vmatpush3.bf16.msra.mxu1 %v20358_v41 }
 0x6c0   :  { %13144 = vmatpush1.bf16.msra.mxu0 %v20354_v34  ;;  %17967 = vmatprep.subr.bf16.mxu1 %v20362_v10  ;;  %v20413_v34 = vld [vmem:[#allocation5 + $0x3518] ss:$12 sps:$4 sm:$0xff]   ;;  %v20417_v10 = vld [vmem:[#allocation5 + $0x35f0] ss:$12 sps:$4 sm:$0xff]  }
 0x6c1   :  { %13145 = vmatprep.subr.bf16.mxu0 %v20361_v52  ;;  %v20416_v52 = vld [vmem:[#allocation5 + $0x32ec] ss:$12 sps:$4 sm:$0xff]  }
 0x6c3   :  { %17968 = vmatpush3.bf16.msra.mxu1 %v20363_v9 }
 0x6c4   :  { %13146 = vmatpush1.bf16.msra.mxu0 %v20359_v32  ;;  %17969 = vmatprep.subr.bf16.mxu1 %v20367_v48  ;;  %v20418_v48 = vld [vmem:[#allocation5 + $0x3530] ss:$12 sps:$4 sm:$0xff]  }
 0x6c5   :  { %13147 = vmatprep.subr.bf16.mxu0 %v20366_v63  ;;  %v17821_v37 = vpop.f32.mrb[112].mxu1  ;;  %v20414_v63 = vld [vmem:[#allocation5 + $0x32e8] ss:$12 sps:$4 sm:$0xff]  }
 0x6c6   :  { %v17822_v58 = vpop.f32.mrb[113].mxu1 }
 0x6c7   :  { %v17823_v22 = vadd.f32 %v17822_v58, %v17821_v37  ;;  %17970 = vmatpush3.bf16.msra.mxu1 %v20368_v50  ;;  %v17824_v1 = vpop.f32.mrb[114].mxu1  ;;  %v20421_v50 = vld [vmem:[#allocation5 + $0x3304] ss:$12 sps:$4 sm:$0xff]   ;;  %v20424_v37 = vld [vmem:[#allocation5 + $0x331c] ss:$12 sps:$4 sm:$0xff]  }
 0x6c8   :  { %13148 = vmatpush1.bf16.msra.mxu0 %v20364_v38  ;;  %17971 = vmatprep.subr.bf16.mxu1 %v20372_v39  ;;  %v17825_v15 = vpop.f32.mrb[115].mxu1  ;;  %v173_v38 = vld [vmem:[#allocation3 + $0x230] sm:$0xff]  ;;  %v20419_v39 = vld [vmem:[#allocation5 + $0x3300] ss:$12 sps:$4 sm:$0xff]   ;;  %v20422_v58 = vld [vmem:[#allocation5 + $0x3318] ss:$12 sps:$4 sm:$0xff]  }
 0x6c9   :  { %13149 = vmatprep.subr.bf16.mxu0 %v20371_v47  ;;  %v21232_v55 = vadd.f32 %v17823_v22, %v21221_v0  ;;  %v20393_v0 = vld [vmem:[#allocation5 + $0x34b8] ss:$12 sps:$4 sm:$0xff]   ;;  %v21241_v47 = vpack.c.bf16 %v173_v38, %v173_v38  ;;  %v20427_v22 = vld [vmem:[#allocation5 + $0x3334] ss:$12 sps:$4 sm:$0xff]   ;;  %v20436_v15 = vld [vmem:[#allocation5 + $0x337c] ss:$12 sps:$4 sm:$0xff]  }
 0x6ca   :  { %v20428_v1 = vld [vmem:[#allocation5 + $0x3348] ss:$12 sps:$4 sm:$0xff]  }
 0x6cb   :  { %17972 = vmatpush3.bf16.msra.mxu1 %v20373_v18  ;;  %v20430_v18 = vld [vmem:[#allocation5 + $0x334c] ss:$12 sps:$4 sm:$0xff]  }
 0x6cc   :  { %13150 = vmatpush1.bf16.msra.mxu0 %v20369_v60  ;;  %17973 = vmatprep.subr.bf16.mxu1 %v20377_v29  ;;  %v20425_v60 = vld [vmem:[#allocation5 + $0x3330] ss:$12 sps:$4 sm:$0xff]   ;;  %v20431_v29 = vld [vmem:[#allocation5 + $0x3360] ss:$12 sps:$4 sm:$0xff]  }
 0x6cd   :  { %13151 = vmatprep.subr.bf16.mxu0 %v20376_v53  ;;  %v20433_v53 = vld [vmem:[#allocation5 + $0x3364] ss:$12 sps:$4 sm:$0xff]  }
 0x6cf   :  { %17974 = vmatpush3.bf16.msra.mxu1 %v20378_v13 }
 0x6d0   :  { %13152 = vmatpush1.bf16.msra.mxu0 %v20374_v59  ;;  %17981 = vmatprep.subr.bf16.mxu1 %v20382_v49  ;;  %v20442_v49 = vld [vmem:[#allocation5 + $0x33ac] ss:$12 sps:$4 sm:$0xff]  }
 0x6d1   :  { %13153 = vmatprep.subr.bf16.mxu0 %v20381_v6 }
 0x6d2   :  { %14653 = vmatmul.mubr.bf16.vlgmr.msra.gmra.mrb[140].mxu1 %v21234_v57 }
 0x6d3   :  { %17982 = vmatpush3.bf16.msra.mxu1 %v20383_v14  ;;  %14692 = vmatprep.mubr.bf16.mxu1 %v21236_v26  ;;  %v20440_v14 = vld [vmem:[#allocation5 + $0x33a8] ss:$12 sps:$4 sm:$0xff]  }
 0x6d4   :  { %13154 = vmatpush1.bf16.msra.mxu0 %v20379_v56  ;;  %17983 = vmatprep.subr.bf16.mxu1 %v20387_v5  ;;  %v20443_v5 = vld [vmem:[#allocation5 + $0x33c0] ss:$12 sps:$4 sm:$0xff]  }
 0x6d5   :  { %13155 = vmatprep.subr.bf16.mxu0 %v20386_v21  ;;  %v20445_v21 = vld [vmem:[#allocation5 + $0x33c4] ss:$12 sps:$4 sm:$0xff]  }
 0x6d7   :  { %17984 = vmatpush3.bf16.msra.mxu1 %v20388_v17  ;;  %v20446_v17 = vld [vmem:[#allocation5 + $0x33d8] ss:$12 sps:$4 sm:$0xff]  }
 0x6d8   :  { %13156 = vmatpush1.bf16.msra.mxu0 %v20384_v11  ;;  %17985 = vmatprep.subr.bf16.mxu1 %v20392_v62  ;;  %v20448_v11 = vld [vmem:[#allocation5 + $0x33dc] ss:$12 sps:$4 sm:$0xff]  }
 0x6d9   :  { %13157 = vmatprep.subr.bf16.mxu0 %v20391_v61  ;;  %v20451_v61 = vld [vmem:[#allocation5 + $0x33f4] ss:$12 sps:$4 sm:$0xff]   ;;  %v20449_v62 = vld [vmem:[#allocation5 + $0x33f0] ss:$12 sps:$4 sm:$0xff]  }
 0x6db   :  { %17986 = vmatpush3.bf16.msra.mxu1 %v20393_v0  ;;  %v20452_v0 = vld [vmem:[#allocation5 + $0x3408] ss:$12 sps:$4 sm:$0xff]  }
 0x6dc   :  { %13158 = vmatpush1.bf16.msra.mxu0 %v20389_v16  ;;  %17987 = vmatprep.subr.bf16.mxu1 %v20397_v19  ;;  %v20454_v16 = vld [vmem:[#allocation5 + $0x340c] ss:$12 sps:$4 sm:$0xff]  }
 0x6dd   :  { %13159 = vmatprep.subr.bf16.mxu0 %v20396_v35  ;;  %v20457_v35 = vld [vmem:[#allocation5 + $0x3424] ss:$12 sps:$4 sm:$0xff]   ;;  %v20455_v19 = vld [vmem:[#allocation5 + $0x3420] ss:$12 sps:$4 sm:$0xff]  }
 0x6df   :  { %17988 = vmatpush3.bf16.msra.mxu1 %v20398_v28  ;;  %v20458_v28 = vld [vmem:[#allocation5 + $0x3438] ss:$12 sps:$4 sm:$0xff]  }
 0x6e0   :  { %13160 = vmatpush1.bf16.msra.mxu0 %v20394_v12  ;;  %17989 = vmatprep.subr.bf16.mxu1 %v20402_v24  ;;  %v20460_v12 = vld [vmem:[#allocation5 + $0x343c] ss:$12 sps:$4 sm:$0xff]  }
 0x6e1   :  { %13161 = vmatprep.subr.bf16.mxu0 %v20401_v7  ;;  %v20463_v7 = vld [vmem:[#allocation5 + $0x3454] ss:$12 sps:$4 sm:$0xff]  }
 0x6e3   :  { %17990 = vmatpush3.bf16.msra.mxu1 %v20403_v20 }
 0x6e4   :  { %13162 = vmatpush1.bf16.msra.mxu0 %v20399_v36  ;;  %17991 = vmatprep.subr.bf16.mxu1 %v20407_v44 }
 0x6e5   :  { %13163 = vmatprep.subr.bf16.mxu0 %v20406_v33  ;;  %v17843_v46 = vpop.f32.mrb[116].mxu1  ;;  %v20461_v33 = vld [vmem:[#allocation5 + $0x3450] ss:$12 sps:$4 sm:$0xff]  }
 0x6e6   :  { %v17844_v42 = vpop.f32.mrb[117].mxu1 }
 0x6e7   :  { %v17845_v3 = vadd.f32 %v17844_v42, %v17843_v46  ;;  %17992 = vmatpush3.bf16.msra.mxu1 %v20408_v31  ;;  %v17846_v41 = vpop.f32.mrb[118].mxu1  ;;  %v20469_v46 = vld [vmem:[#allocation5 + $0x3484] ss:$12 sps:$4 sm:$0xff]   ;;  %v20467_v42 = vld [vmem:[#allocation5 + $0x3480] ss:$12 sps:$4 sm:$0xff]  }
 0x6e8   :  { %13164 = vmatpush1.bf16.msra.mxu0 %v20404_v30  ;;  %17993 = vmatprep.subr.bf16.mxu1 %v20412_v4  ;;  %v17847_v32 = vpop.f32.mrb[119].mxu1  ;;  %v20466_v30 = vld [vmem:[#allocation5 + $0x346c] ss:$12 sps:$4 sm:$0xff]   ;;  %v20464_v4 = vld [vmem:[#allocation5 + $0x3468] ss:$12 sps:$4 sm:$0xff]  }
 0x6e9   :  { %13165 = vmatprep.subr.bf16.mxu0 %v20411_v40  ;;  %v14415_v9 = vadd.f32 %v17845_v3, %v21232_v55  ;;  %v20439_v55 = vld [vmem:[#allocation5 + $0x3394] ss:$12 sps:$4 sm:$0xff]   ;;  %v20472_v3 = vld [vmem:[#allocation5 + $0x349c] ss:$12 sps:$4 sm:$0xff]   ;;  %v20481_v32 = vld [vmem:[#allocation5 + $0x34e4] ss:$12 sps:$4 sm:$0xff]  }
 0x6ea   :  { %v20473_v41 = vld [vmem:[#allocation5 + $0x34b0] ss:$12 sps:$4 sm:$0xff]  }
 0x6eb   :  { %17994 = vmatpush3.bf16.msra.mxu1 %v20413_v34  ;;  %v20475_v34 = vld [vmem:[#allocation5 + $0x34b4] ss:$12 sps:$4 sm:$0xff]  }
 0x6ec   :  { %13166 = vmatpush1.bf16.msra.mxu0 %v20409_v51  ;;  %17995 = vmatprep.subr.bf16.mxu1 %v20417_v10  ;;  %v20470_v51 = vld [vmem:[#allocation5 + $0x3498] ss:$12 sps:$4 sm:$0xff]   ;;  %v20476_v10 = vld [vmem:[#allocation5 + $0x34c8] ss:$12 sps:$4 sm:$0xff]  }
 0x6ed   :  { %13167 = vmatprep.subr.bf16.mxu0 %v20416_v52  ;;  %v20478_v52 = vld [vmem:[#allocation5 + $0x34cc] ss:$12 sps:$4 sm:$0xff]  }
 0x6ef   :  { %17996 = vmatpush3.bf16.msra.mxu1 %v20418_v48  ;;  %v20487_v48 = vld [vmem:[#allocation5 + $0x3514] ss:$12 sps:$4 sm:$0xff]  }
 0x6f0   :  { %13168 = vmatpush1.bf16.msra.mxu0 %v20414_v63  ;;  %v20484_v63 = vld [vmem:[#allocation5 + $0x34fc] ss:$12 sps:$4 sm:$0xff]  }
 0x6f1   :  { %13178 = vmatprep.subr.bf16.mxu0 %v20421_v50 }
 0x6f2   :  { %14693 = vmatmul.mubr.bf16.vlgmr.msra.gmra.mrb[144].mxu1 %v21241_v47 }
 0x6f3   :  { %13170 = vmatmul.mubr.bf16.vlgmr.msra.gmra.mrb[0].mxu0 %v21223_v45  ;;  %v20434_v45 = vld [vmem:[#allocation5 + $0x3378] ss:$12 sps:$4 sm:$0xff]  }
 0x6f4   :  { %13179 = vmatpush1.bf16.msra.mxu0 %v20419_v39  ;;  %13210 = vmatprep.mubr.bf16.mxu0 %v21225_v25  ;;  %v20485_v39 = vld [vmem:[#allocation5 + $0x3510] ss:$12 sps:$4 sm:$0xff]  }
 0x6f5   :  { %13180 = vmatprep.subr.bf16.mxu0 %v20424_v37 }
 0x6f8   :  { %13181 = vmatpush1.bf16.msra.mxu0 %v20422_v58  ;;  %v20490_v58 = vld [vmem:[#allocation5 + $0x352c] ss:$12 sps:$4 sm:$0xff]  }
 0x6f9   :  { %13182 = vmatprep.subr.bf16.mxu0 %v20427_v22 }
 0x6fc   :  { %13183 = vmatpush1.bf16.msra.mxu0 %v20425_v60 }
 0x6fd   :  { %13184 = vmatprep.subr.bf16.mxu0 %v20430_v18  ;;  %v20488_v18 = vld [vmem:[#allocation5 + $0x3528] ss:$12 sps:$4 sm:$0xff]  }
 0x700   :  { %13185 = vmatpush1.bf16.msra.mxu0 %v20428_v1  ;;  %v20493_v1 = vld [vmem:[#allocation5 + $0x3544] ss:$12 sps:$4 sm:$0xff]  }
 0x701   :  { %13186 = vmatprep.subr.bf16.mxu0 %v20433_v53  ;;  %v20515_v53 = vld [vmem:[#allocation8] ss:$12 sps:$4 sm:$0xff]  }
 0x704   :  { %13187 = vmatpush1.bf16.msra.mxu0 %v20431_v29  ;;  %v20517_v29 = vld [vmem:[#allocation8 + $0x4] ss:$12 sps:$4 sm:$0xff]  }
 0x705   :  { %13188 = vmatprep.subr.bf16.mxu0 %v20436_v15  ;;  %v17865_v59 = vpop.f32.mrb[120].mxu1  ;;  %v20520_v15 = vld [vmem:[#allocation8 + $0x1c] ss:$12 sps:$4 sm:$0xff]   ;;  %15203 = vmatprep.subr.bf16.mxu1 %v20517_v29  ;;  %v20559_v29 = vld [vmem:[#allocation8 + $0x154] ss:$12 sps:$4 sm:$0xff]  }
 0x706   :  { %v17866_v25 = vpop.f32.mrb[121].mxu1  ;;  %15204 = vmatpush1.bf16.msra.mxu1 %v20515_v53 }
 0x707   :  { %v17867_v13 = vadd.f32 %v17866_v25, %v17865_v59  ;;  %v17868_v6 = vpop.f32.mrb[122].mxu1  ;;  %v20518_v59 = vld [vmem:[#allocation8 + $0x18] ss:$12 sps:$4 sm:$0xff]   ;;  %15205 = vmatprep.subr.bf16.mxu1 %v20520_v15  ;;  %v20523_v25 = vld [vmem:[#allocation8 + $0x34] ss:$12 sps:$4 sm:$0xff]  }
 0x708   :  { %13189 = vmatpush1.bf16.msra.mxu0 %v20434_v45  ;;  %v17869_v2 = vpop.f32.mrb[123].mxu1  ;;  %v20491_v45 = vld [vmem:[#allocation5 + $0x3540] ss:$12 sps:$4 sm:$0xff]  }
 0x709   :  { %13190 = vmatprep.subr.bf16.mxu0 %v20439_v55  ;;  %v14455_v56 = vadd.f32 %v17867_v13, %v14415_v9  ;;  %v20479_v9 = vld [vmem:[#allocation5 + $0x34e0] ss:$12 sps:$4 sm:$0xff]   ;;  %v20496_v55 = vld [vmem:[#allocation5 + $0x355c] ss:$12 sps:$4 sm:$0xff]   ;;  %v20494_v13 = vld [vmem:[#allocation5 + $0x3558] ss:$12 sps:$4 sm:$0xff]  }
 0x70a   :  { %15206 = vmatpush1.bf16.msra.mxu1 %v20518_v59  ;;  %v20521_v6 = vld [vmem:[#allocation8 + $0x30] ss:$12 sps:$4 sm:$0xff]   ;;  %v20497_v2 = vld [vmem:[#allocation5 + $0x3570] ss:$12 sps:$4 sm:$0xff]  }
 0x70b   :  { %15207 = vmatprep.subr.bf16.mxu1 %v20523_v25  ;;  %v20557_v15 = vld [vmem:[#allocation8 + $0x150] ss:$12 sps:$4 sm:$0xff]   ;;  %v20562_v25 = vld [vmem:[#allocation8 + $0x16c] ss:$12 sps:$4 sm:$0xff]  }
 0x70c   :  { %13191 = vmatpush1.bf16.msra.mxu0 %v20437_v54  ;;  %v20499_v54 = vld [vmem:[#allocation5 + $0x3574] ss:$12 sps:$4 sm:$0xff]  }
 0x70d   :  { %13192 = vmatprep.subr.bf16.mxu0 %v20442_v49  ;;  %v20526_v49 = vld [vmem:[#allocation8 + $0x4c] ss:$12 sps:$4 sm:$0xff]  }
 0x70e   :  { %15208 = vmatpush1.bf16.msra.mxu1 %v20521_v6 }
 0x70f   :  { %15209 = vmatprep.subr.bf16.mxu1 %v20526_v49 }
 0x710   :  { %13193 = vmatpush1.bf16.msra.mxu0 %v20440_v14  ;;  %v20524_v14 = vld [vmem:[#allocation8 + $0x48] ss:$12 sps:$4 sm:$0xff]  }
 0x711   :  { %13194 = vmatprep.subr.bf16.mxu0 %v20445_v21  ;;  %v20529_v21 = vld [vmem:[#allocation8 + $0x64] ss:$12 sps:$4 sm:$0xff]  }
 0x712   :  { %15210 = vmatpush1.bf16.msra.mxu1 %v20524_v14  ;;  %v21256_v14 = vsub.s32 1, %v21022_v8 }
 0x713   :  { %15211 = vmatprep.subr.bf16.mxu1 %v20529_v21  ;;  %v20611_v21 = vld [vmem:[#allocation7] sm:$0x7] }
 0x714   :  { %13195 = vmatpush1.bf16.msra.mxu0 %v20443_v5  ;;  %v20500_v5 = vld [vmem:[#allocation5 + $0x3588] ss:$12 sps:$4 sm:$0xff]  }
 0x715   :  { %13196 = vmatprep.subr.bf16.mxu0 %v20448_v11  ;;  %v20505_v11 = vld [vmem:[#allocation5 + $0x35a4] ss:$12 sps:$4 sm:$0xff]  }
 0x718   :  { %13197 = vmatpush1.bf16.msra.mxu0 %v20446_v17  ;;  %v20527_v17 = vld [vmem:[#allocation8 + $0x60] ss:$12 sps:$4 sm:$0xff]  }
 0x719   :  { %13198 = vmatprep.subr.bf16.mxu0 %v20451_v61  ;;  %v20532_v61 = vld [vmem:[#allocation8 + $0x7c] ss:$12 sps:$4 sm:$0xff]   ;;  %15212 = vmatpush1.bf16.msra.mxu1 %v20527_v17 }
 0x71a   :  { %15213 = vmatprep.subr.bf16.mxu1 %v20532_v61 }
 0x71c   :  { %13199 = vmatpush1.bf16.msra.mxu0 %v20449_v62  ;;  %v20503_v62 = vld [vmem:[#allocation5 + $0x35a0] ss:$12 sps:$4 sm:$0xff]  }
 0x71d   :  { %13200 = vmatprep.subr.bf16.mxu0 %v20454_v16  ;;  %v20508_v16 = vld [vmem:[#allocation5 + $0x35bc] ss:$12 sps:$4 sm:$0xff]  }
 0x720   :  { %13201 = vmatpush1.bf16.msra.mxu0 %v20452_v0  ;;  %v20530_v0 = vld [vmem:[#allocation8 + $0x78] ss:$12 sps:$4 sm:$0xff]  }
 0x721   :  { %13202 = vmatprep.subr.bf16.mxu0 %v20457_v35  ;;  %v20535_v35 = vld [vmem:[#allocation8 + $0x94] ss:$12 sps:$4 sm:$0xff]   ;;  %15214 = vmatpush1.bf16.msra.mxu1 %v20530_v0 }
 0x722   :  { %15215 = vmatprep.subr.bf16.mxu1 %v20535_v35 }
 0x724   :  { %13203 = vmatpush1.bf16.msra.mxu0 %v20455_v19  ;;  %v20506_v19 = vld [vmem:[#allocation5 + $0x35b8] ss:$12 sps:$4 sm:$0xff]  }
 0x725   :  { %13204 = vmatprep.subr.bf16.mxu0 %v20460_v12  ;;  %v17887_v24 = vpop.f32.mrb[124].mxu1  ;;  %v20511_v12 = vld [vmem:[#allocation5 + $0x35d4] ss:$12 sps:$4 sm:$0xff]  }
 0x726   :  { %v17888_v36 = vpop.f32.mrb[125].mxu1 }
 0x727   :  { %v17889_v20 = vadd.f32 %v17888_v36, %v17887_v24  ;;  %v17890_v44 = vpop.f32.mrb[126].mxu1  ;;  %v20538_v24 = vld [vmem:[#allocation8 + $0xac] ss:$12 sps:$4 sm:$0xff]  }
 0x728   :  { %13205 = vmatpush1.bf16.msra.mxu0 %v20458_v28  ;;  %v17891_v31 = vpop.f32.mrb[127].mxu1  ;;  %v20533_v28 = vld [vmem:[#allocation8 + $0x90] ss:$12 sps:$4 sm:$0xff]  }
 0x729   :  { %13206 = vmatprep.subr.bf16.mxu0 %v20463_v7  ;;  %v14495_v40 = vadd.f32 %v17889_v20, %v14455_v56  ;;  %v20502_v56 = vld [vmem:[#allocation5 + $0x358c] ss:$12 sps:$4 sm:$0xff]   ;;  %15216 = vmatpush1.bf16.msra.mxu1 %v20533_v28 }
 0x72a   :  { %15217 = vmatprep.subr.bf16.mxu1 %v20538_v24 }
 0x72c   :  { %13207 = vmatpush1.bf16.msra.mxu0 %v20461_v33  ;;  %v20509_v33 = vld [vmem:[#allocation5 + $0x35d0] ss:$12 sps:$4 sm:$0xff]  }
 0x72d   :  { %13208 = vmatprep.subr.bf16.mxu0 %v20466_v30  ;;  %v20514_v30 = vld [vmem:[#allocation5 + $0x35ec] ss:$12 sps:$4 sm:$0xff]  }
 0x730   :  { %13209 = vmatpush1.bf16.msra.mxu0 %v20464_v4 }
 0x731   :  { %13219 = vmatprep.subr.bf16.mxu0 %v20469_v46  ;;  %v20541_v46 = vld [vmem:[#allocation8 + $0xc4] ss:$12 sps:$4 sm:$0xff]  }
 0x733   :  { %13211 = vmatmul.mubr.bf16.vlgmr.msra.gmra.mrb[0].mxu0 %v21234_v57  ;;  %v20482_v57 = vld [vmem:[#allocation5 + $0x34f8] ss:$12 sps:$4 sm:$0xff]  }
 0x734   :  { %13220 = vmatpush1.bf16.msra.mxu0 %v20467_v42  ;;  %13251 = vmatprep.mubr.bf16.mxu0 %v21236_v26  ;;  %v20512_v42 = vld [vmem:[#allocation5 + $0x35e8] ss:$12 sps:$4 sm:$0xff]  }
 0x735   :  { %13221 = vmatprep.subr.bf16.mxu0 %v20472_v3  ;;  %v20539_v3 = vld [vmem:[#allocation8 + $0xc0] ss:$12 sps:$4 sm:$0xff]  }
 0x738   :  { %13222 = vmatpush1.bf16.msra.mxu0 %v20470_v51  ;;  %v20544_v51 = vld [vmem:[#allocation8 + $0xdc] ss:$12 sps:$4 sm:$0xff]  }
 0x739   :  { %13223 = vmatprep.subr.bf16.mxu0 %v20475_v34  ;;  %v20542_v34 = vld [vmem:[#allocation8 + $0xd8] ss:$12 sps:$4 sm:$0xff]  }
 0x73c   :  { %13224 = vmatpush1.bf16.msra.mxu0 %v20473_v41  ;;  %v20547_v41 = vld [vmem:[#allocation8 + $0xf4] ss:$12 sps:$4 sm:$0xff]  }
 0x73d   :  { %13225 = vmatprep.subr.bf16.mxu0 %v20478_v52  ;;  %v20545_v52 = vld [vmem:[#allocation8 + $0xf0] ss:$12 sps:$4 sm:$0xff]  }
 0x740   :  { %13226 = vmatpush1.bf16.msra.mxu0 %v20476_v10  ;;  %v20550_v10 = vld [vmem:[#allocation8 + $0x10c] ss:$12 sps:$4 sm:$0xff]  }
 0x741   :  { %13227 = vmatprep.subr.bf16.mxu0 %v20481_v32  ;;  %v20548_v32 = vld [vmem:[#allocation8 + $0x108] ss:$12 sps:$4 sm:$0xff]  }
 0x744   :  { %13228 = vmatpush1.bf16.msra.mxu0 %v20479_v9  ;;  %v20553_v9 = vld [vmem:[#allocation8 + $0x124] ss:$12 sps:$4 sm:$0xff]  }
 0x745   :  { %13229 = vmatprep.subr.bf16.mxu0 %v20484_v63  ;;  %v17909_v38 = vpop.f32.mrb[128].mxu1  ;;  %v20551_v63 = vld [vmem:[#allocation8 + $0x120] ss:$12 sps:$4 sm:$0xff]  }
 0x746   :  { %v17910_v26 = vpop.f32.mrb[129].mxu1 }
 0x747   :  { %v17911_v50 = vadd.f32 %v17910_v26, %v17909_v38  ;;  %v17912_v37 = vpop.f32.mrb[130].mxu1 }
 0x748   :  { %13230 = vmatpush1.bf16.msra.mxu0 %v20482_v57  ;;  %v17913_v22 = vpop.f32.mrb[131].mxu1  ;;  %v20556_v57 = vld [vmem:[#allocation8 + $0x13c] ss:$12 sps:$4 sm:$0xff]  }
 0x749   :  { %13231 = vmatprep.subr.bf16.mxu0 %v20487_v48  ;;  %v21248_v60 = vadd.f32 %v17911_v50, %v14495_v40  ;;  %v20536_v40 = vld [vmem:[#allocation8 + $0xa8] ss:$12 sps:$4 sm:$0xff]   ;;  %v20554_v48 = vld [vmem:[#allocation8 + $0x138] ss:$12 sps:$4 sm:$0xff]  }
 0x74a   :  { %15218 = vmatpush1.bf16.msra.mxu1 %v20536_v40  ;;  %v20577_v40 = vld [vmem:[#allocation8 + $0x1e4] ss:$12 sps:$4 sm:$0xff]  }
 0x74b   :  { %15219 = vmatprep.subr.bf16.mxu1 %v20541_v46  ;;  %v20580_v46 = vld [vmem:[#allocation8 + $0x1fc] ss:$12 sps:$4 sm:$0xff]  }
 0x74c   :  { %13232 = vmatpush1.bf16.msra.mxu0 %v20485_v39 }
 0x74d   :  { %13233 = vmatprep.subr.bf16.mxu0 %v20490_v58 }
 0x74e   :  { %15220 = vmatpush1.bf16.msra.mxu1 %v20539_v3  ;;  %v20583_v3 = vld [vmem:[#allocation8 + $0x214] ss:$12 sps:$4 sm:$0xff]  }
 0x74f   :  { %15221 = vmatprep.subr.bf16.mxu1 %v20544_v51  ;;  %v20581_v51 = vld [vmem:[#allocation8 + $0x210] ss:$12 sps:$4 sm:$0xff]  }
 0x750   :  { %13234 = vmatpush1.bf16.msra.mxu0 %v20488_v18 }
 0x751   :  { %13235 = vmatprep.subr.bf16.mxu0 %v20493_v1 }
 0x752   :  { %15222 = vmatpush1.bf16.msra.mxu1 %v20542_v34  ;;  %v20586_v34 = vld [vmem:[#allocation8 + $0x22c] ss:$12 sps:$4 sm:$0xff]  }
 0x753   :  { %15223 = vmatprep.subr.bf16.mxu1 %v20547_v41  ;;  %v20584_v41 = vld [vmem:[#allocation8 + $0x228] ss:$12 sps:$4 sm:$0xff]  }
 0x754   :  { %13236 = vmatpush1.bf16.msra.mxu0 %v20491_v45 }
 0x755   :  { %13237 = vmatprep.subr.bf16.mxu0 %v20496_v55 }
 0x756   :  { %15224 = vmatpush1.bf16.msra.mxu1 %v20545_v52 }
 0x757   :  { %15225 = vmatprep.subr.bf16.mxu1 %v20550_v10  ;;  %v20587_v10 = vld [vmem:[#allocation8 + $0xc8] ss:$12 sps:$4 sm:$0xff]  }
 0x758   :  { %13238 = vmatpush1.bf16.msra.mxu0 %v20494_v13 }
 0x759   :  { %13239 = vmatprep.subr.bf16.mxu0 %v20499_v54  ;;  %v20560_v54 = vld [vmem:[#allocation8 + $0x168] ss:$12 sps:$4 sm:$0xff]  }
 0x75a   :  { %15226 = vmatpush1.bf16.msra.mxu1 %v20548_v32  ;;  %v20588_v32 = vld [vmem:[#allocation8 + $0x8] ss:$12 sps:$4 sm:$0xff]  }
 0x75b   :  { %15227 = vmatprep.subr.bf16.mxu1 %v20553_v9 }
 0x75c   :  { %13240 = vmatpush1.bf16.msra.mxu0 %v20497_v2  ;;  %v20565_v2 = vld [vmem:[#allocation8 + $0x184] ss:$12 sps:$4 sm:$0xff]  }
 0x75d   :  { %13241 = vmatprep.subr.bf16.mxu0 %v20502_v56  ;;  %v21253_v56 = vsub.s32 0, %v21022_v8  ;;  %v20563_v8 = vld [vmem:[#allocation8 + $0x180] ss:$12 sps:$4 sm:$0xff]  }
 0x75e   :  { %15228 = vmatpush1.bf16.msra.mxu1 %v20551_v63  ;;  %v20589_v63 = vld [vmem:[#allocation8 + $0xe0] ss:$12 sps:$4 sm:$0xff]  }
 0x75f   :  { %15229 = vmatprep.subr.bf16.mxu1 %v20556_v57  ;;  %v20590_v57 = vld [vmem:[#allocation8 + $0x20] ss:$12 sps:$4 sm:$0xff]  }
 0x760   :  { %13242 = vmatpush1.bf16.msra.mxu0 %v20500_v5  ;;  %v2556_v5 = vrot.slane %v20611_v21, %v21253_v56 }
 0x761   :  { %13243 = vmatprep.subr.bf16.mxu0 %v20505_v11  ;;  %v2560_v11 = vrot.slane %v20611_v21, %v21256_v14 }
 0x762   :  { %15230 = vmatpush1.bf16.msra.mxu1 %v20554_v48  ;;  %v18054_v17 = vadd.f32 %v21008_v43, %v2556_v5  ;;  %v20566_v43 = vld [vmem:[#allocation8 + $0x198] ss:$12 sps:$4 sm:$0xff]  }
 0x763   :  { %15231 = vmatprep.subr.bf16.mxu1 %v20559_v29  ;;  %v18056_v61 = vadd.f32 %v21010_v23, %v2560_v11  ;;  %v20571_v23 = vld [vmem:[#allocation8 + $0x1b4] ss:$12 sps:$4 sm:$0xff]   ;;  %v20591_v48 = vld [vmem:[#allocation8 + $0xf8] ss:$12 sps:$4 sm:$0xff]   ;;  %v20761_v29 = vmov 0.0  }
 0x764   :  { %13244 = vmatpush1.bf16.msra.mxu0 %v20503_v62 }
 0x765   :  { %13245 = vmatprep.subr.bf16.mxu0 %v20508_v16  ;;  %v17931_v7 = vpop.f32.mrb[132].mxu1 }
 0x766   :  { %v17932_v36 = vpop.f32.mrb[133].mxu1  ;;  %15232 = vmatpush1.bf16.msra.mxu1 %v20557_v15  ;;  %v20604_v15 = vld [vmem:[#allocation8 + $0x1a0] ss:$12 sps:$4 sm:$0xff]  }
 0x767   :  { %v17933_v20 = vadd.f32 %v17932_v36, %v17931_v7  ;;  %v17934_v44 = vpop.f32.mrb[134].mxu1  ;;  %15233 = vmatprep.subr.bf16.mxu1 %v20562_v25  ;;  %v20608_v25 = vld [vmem:[#allocation8 + $0x200] ss:$12 sps:$4 sm:$0xff]  }
 0x768   :  { %13246 = vmatpush1.bf16.msra.mxu0 %v20506_v19  ;;  %v17935_v31 = vpop.f32.mrb[135].mxu1  ;;  %v20569_v44 = vld [vmem:[#allocation8 + $0x1b0] ss:$12 sps:$4 sm:$0xff]  }
 0x769   :  { %13247 = vmatprep.subr.bf16.mxu0 %v20511_v12  ;;  %v14575_v4 = vadd.f32 %v17933_v20, %v21248_v60  ;;  %v20568_v20 = vld [vmem:[#allocation8 + $0x19c] ss:$12 sps:$4 sm:$0xff]  }
 0x76a   :  { %15234 = vmatpush1.bf16.msra.mxu1 %v20560_v54  ;;  %v20572_v31 = vld [vmem:[#allocation8 + $0x1c8] ss:$12 sps:$4 sm:$0xff]   ;;  %v20610_v54 = vld [vmem:[#allocation8 + $0x230] ss:$12 sps:$4 sm:$0xff]  }
 0x76b   :  { %15244 = vmatprep.subr.bf16.mxu1 %v20565_v2  ;;  %v15368_v2 = vld [vmem:[#allocation11] sm:$0x7] }
 0x76c   :  { %13248 = vmatpush1.bf16.msra.mxu0 %v20509_v33  ;;  %v20760_v33 = vmov 0  }
 0x76d   :  { %13249 = vmatprep.subr.bf16.mxu0 %v20514_v30  ;;  %v20574_v30 = vld [vmem:[#allocation8 + $0x1cc] ss:$12 sps:$4 sm:$0xff]  }
 0x770   :  { %13250 = vmatpush1.bf16.msra.mxu0 %v20512_v42  ;;  %v20578_v42 = vld [vmem:[#allocation8 + $0x1f8] ss:$12 sps:$4 sm:$0xff]  }
 0x773   :  { %13252 = vmatmul.mubr.bf16.vlgmr.msra.gmra.mrb[0].mxu0 %v21241_v47 }
 0x785   :  { %v17953_v38 = vpop.f32.mrb[136].mxu1 }
 0x786   :  { %v17954_v26 = vpop.f32.mrb[137].mxu1 }
 0x787   :  { %v17955_v50 = vadd.f32 %v17954_v26, %v17953_v38  ;;  %v17956_v47 = vpop.f32.mrb[138].mxu1  ;;  %v20592_v38 = vld [vmem:[#allocation8 + $0x38] ss:$12 sps:$4 sm:$0xff]   ;;  %v20593_v26 = vld [vmem:[#allocation8 + $0x110] ss:$12 sps:$4 sm:$0xff]  }
 0x788   :  { %v17957_v39 = vpop.f32.mrb[139].mxu1  ;;  %v20595_v47 = vld [vmem:[#allocation8 + $0x128] ss:$12 sps:$4 sm:$0xff]  }
 0x789   :  { %v14615_v37 = vadd.f32 %v17955_v50, %v14575_v4  ;;  %v20575_v4 = vld [vmem:[#allocation8 + $0x1e0] ss:$12 sps:$4 sm:$0xff]   ;;  %v20594_v50 = vld [vmem:[#allocation8 + $0x50] ss:$12 sps:$4 sm:$0xff]   ;;  %v20596_v39 = vld [vmem:[#allocation8 + $0x68] ss:$12 sps:$4 sm:$0xff]  }
 0x7a5   :  { %v17975_v58 = vpop.f32.mrb[140].mxu1 }
 0x7a6   :  { %v17976_v22 = vpop.f32.mrb[141].mxu1 }
 0x7a7   :  { %v17977_v60 = vadd.f32 %v17976_v22, %v17975_v58  ;;  %v17978_v18 = vpop.f32.mrb[142].mxu1  ;;  %v20598_v58 = vld [vmem:[#allocation8 + $0x80] ss:$12 sps:$4 sm:$0xff]   ;;  %v20599_v22 = vld [vmem:[#allocation8 + $0x158] ss:$12 sps:$4 sm:$0xff]  }
 0x7a8   :  { %v17979_v1 = vpop.f32.mrb[143].mxu1  ;;  %v20601_v18 = vld [vmem:[#allocation8 + $0x170] ss:$12 sps:$4 sm:$0xff]  }
 0x7a9   :  { %v14655_v53 = vadd.f32 %v17977_v60, %v14615_v37  ;;  %v20597_v37 = vld [vmem:[#allocation8 + $0x140] ss:$12 sps:$4 sm:$0xff]   ;;  %v20600_v60 = vld [vmem:[#allocation8 + $0x98] ss:$12 sps:$4 sm:$0xff]   ;;  %v20602_v1 = vld [vmem:[#allocation8 + $0xb0] ss:$12 sps:$4 sm:$0xff]  }
 0x7c5   :  { %v17997_v45 = vpop.f32.mrb[144].mxu1 }
 0x7c6   :  { %v17998_v55 = vpop.f32.mrb[145].mxu1 }
 0x7c7   :  { %v17999_v59 = vadd.f32 %v17998_v55, %v17997_v45  ;;  %v18000_v13 = vpop.f32.mrb[146].mxu1  ;;  %v20605_v45 = vld [vmem:[#allocation8 + $0x1b8] ss:$12 sps:$4 sm:$0xff]   ;;  %v20606_v55 = vld [vmem:[#allocation8 + $0x1d0] ss:$12 sps:$4 sm:$0xff]  }
 0x7c8   :  { %v18001_v6 = vpop.f32.mrb[147].mxu1  ;;  %v20609_v13 = vld [vmem:[#allocation8 + $0x218] ss:$12 sps:$4 sm:$0xff]  }
 0x7c9   :  { %v14695_v49 = vadd.f32 %v17999_v59, %v14655_v53  ;;  %v20603_v53 = vld [vmem:[#allocation8 + $0x188] ss:$12 sps:$4 sm:$0xff]   ;;  %v14802_v6 = vld [vmem:[#allocation10] sm:$0x7] }
 0x7ca   :  { %v20607_v59 = vld [vmem:[#allocation8 + $0x1e8] ss:$12 sps:$4 sm:$0xff]   ;;  %v14811_v21 = vrot.slane %v14802_v6, %v21256_v14 }
 0x7cb   :  { %v14702_v52 = vmax.f32 %v14695_v49, 0.0  ;;  %v14807_v49 = vrot.slane %v14802_v6, %v21253_v56 }
 0x7cd   :  { %v14705_v9 = vpack.c.bf16 %v14702_v52, %v14702_v52 }
 0x846   :  { %v13253_v62 = vpop.f32.mrb[0].mxu0 }
 0x847   :  { %v18055_v16 = vadd.f32 %v18054_v17, %v13253_v62  ;;  %v13255_v0 = vpop.f32.mrb[1].mxu0  ;;  %v15373_v17 = vrot.slane %v15368_v2, %v21253_v56 }
 0x848   :  { %v18057_v35 = vadd.f32 %v18056_v61, %v13255_v0  ;;  %v13257_v19 = vpop.f32.mrb[2].mxu0 }
 0x849   :  { %v14700_v12 = vmax.f32 %v18055_v16, 0.0  ;;  %v13258_v28 = vpop.f32.mrb[3].mxu0  ;;  %v15377_v16 = vrot.slane %v15368_v2, %v21256_v14  ;;  %v15381_v14 = vrot.slane %v15368_v2, %v21025_v27 }
 0x84a   :  { %v14701_v7 = vmax.f32 %v18057_v35, 0.0 }
 0x84b   :  { %v21262_v36 = vpack.c.bf16 %v14700_v12, %v14700_v12 }
 0x84c   :  { %v14704_v24 = vpack.c.bf16 %v14701_v7, %v14701_v7 }
 0x84e   :  { %15235 = vmatprep.mubr.bf16.mxu1 %v14704_v24 }
 0x84f   :  { %15236 = vmatmul.mubr.bf16.vlgmr.msra.gmra.mrb[148].mxu1 %v21262_v36 }
 0x850   :  { %15245 = vmatpush1.bf16.msra.mxu1 %v20563_v8  ;;  %15276 = vmatprep.mubr.bf16.mxu1 %v20760_v33 }
 0x851   :  { %15246 = vmatprep.subr.bf16.mxu1 %v20568_v20 }
 0x854   :  { %15247 = vmatpush1.bf16.msra.mxu1 %v20566_v43 }
 0x855   :  { %15248 = vmatprep.subr.bf16.mxu1 %v20571_v23  ;;  %v14815_v23 = vrot.slane %v14802_v6, %v21025_v27 }
 0x858   :  { %15249 = vmatpush1.bf16.msra.mxu1 %v20569_v44 }
 0x859   :  { %15250 = vmatprep.subr.bf16.mxu1 %v20574_v30 }
 0x85c   :  { %15251 = vmatpush1.bf16.msra.mxu1 %v20572_v31 }
 0x85d   :  { %15252 = vmatprep.subr.bf16.mxu1 %v20577_v40 }
 0x860   :  { %15253 = vmatpush1.bf16.msra.mxu1 %v20575_v4 }
 0x861   :  { %15254 = vmatprep.subr.bf16.mxu1 %v20580_v46 }
 0x864   :  { %15255 = vmatpush1.bf16.msra.mxu1 %v20578_v42 }
 0x865   :  { %15256 = vmatprep.subr.bf16.mxu1 %v20583_v3 }
 0x868   :  { %15257 = vmatpush1.bf16.msra.mxu1 %v20581_v51  ;;  %v17210_v51 = vld [vmem:[#allocation2] ss:$0 sm:$0xff] }
 0x869   :  { %15258 = vmatprep.subr.bf16.mxu1 %v20586_v34 }
 0x86c   :  { %15259 = vmatpush1.bf16.msra.mxu1 %v20584_v41 }
 0x86d   :  { %18003 = vmatprep.subr.bf16.mxu1 %v20587_v10 }
 0x86f   :  { %15277 = vmatmul.mubr.bf16.vlgmr.msra.gmra.mrb[148].mxu1 %v14705_v9 }
 0x870   :  { %18004 = vmatpush3.bf16.msra.mxu1 %v20588_v32  ;;  %15317 = vmatprep.mubr.bf16.mxu1 %v14704_v24 }
 0x871   :  { %18005 = vmatprep.subr.bf16.mxu1 %v20589_v63 }
 0x874   :  { %18006 = vmatpush3.bf16.msra.mxu1 %v20590_v57 }
 0x875   :  { %18007 = vmatprep.subr.bf16.mxu1 %v20591_v48 }
 0x878   :  { %18008 = vmatpush3.bf16.msra.mxu1 %v20592_v38 }
 0x879   :  { %18009 = vmatprep.subr.bf16.mxu1 %v20593_v26 }
 0x87c   :  { %18010 = vmatpush3.bf16.msra.mxu1 %v20594_v50 }
 0x87d   :  { %18011 = vmatprep.subr.bf16.mxu1 %v20595_v47 }
 0x880   :  { %18012 = vmatpush3.bf16.msra.mxu1 %v20596_v39 }
 0x881   :  { %18013 = vmatprep.subr.bf16.mxu1 %v20597_v37 }
 0x884   :  { %18014 = vmatpush3.bf16.msra.mxu1 %v20598_v58 }
 0x885   :  { %18015 = vmatprep.subr.bf16.mxu1 %v20599_v22 }
 0x888   :  { %18016 = vmatpush3.bf16.msra.mxu1 %v20600_v60 }
 0x889   :  { %18017 = vmatprep.subr.bf16.mxu1 %v20601_v18 }
 0x88c   :  { %18018 = vmatpush3.bf16.msra.mxu1 %v20602_v1 }
 0x88d   :  { %18034 = vmatprep.subr.bf16.mxu1 %v20761_v29 }
 0x88f   :  { %15318 = vmatmul.mubr.bf16.vlgmr.msra.gmra.mrb[152].mxu1 %v21262_v36 }
 0x890   :  { %18035 = vmatpush3.bf16.msra.mxu1 %v20603_v53  ;;  %18050 = vmatprep.mubr.msk.bf16.mxu1 %vm20762_vm0, %v20761_v29 }
 0x891   :  { %18036 = vmatprep.subr.bf16.mxu1 %v20761_v29 }
 0x894   :  { %18037 = vmatpush3.bf16.msra.mxu1 %v20604_v15 }
 0x895   :  { %18038 = vmatprep.subr.bf16.mxu1 %v20761_v29 }
 0x898   :  { %18039 = vmatpush3.bf16.msra.mxu1 %v20605_v45 }
 0x899   :  { %18040 = vmatprep.subr.bf16.mxu1 %v20761_v29 }
 0x89c   :  { %18041 = vmatpush3.bf16.msra.mxu1 %v20606_v55 }
 0x89d   :  { %18042 = vmatprep.subr.bf16.mxu1 %v20761_v29 }
 0x8a0   :  { %18043 = vmatpush3.bf16.msra.mxu1 %v20607_v59 }
 0x8a1   :  { %18044 = vmatprep.subr.bf16.mxu1 %v20761_v29 }
 0x8a4   :  { %18045 = vmatpush3.bf16.msra.mxu1 %v20608_v25 }
 0x8a5   :  { %18046 = vmatprep.subr.bf16.mxu1 %v20761_v29 }
 0x8a8   :  { %18047 = vmatpush3.bf16.msra.mxu1 %v20609_v13 }
 0x8a9   :  { %18048 = vmatprep.subr.bf16.mxu1 %v20761_v29 }
 0x8ac   :  { %18049 = vmatpush3.bf16.msra.mxu1 %v20610_v54 }
 0x8af   :  { %18051 = vmatmul.mubr.bf16.vlgmr.msra.gmra.mrb[156].mxu1 %v14705_v9 }
 0x942   :  { %v15278_v5 = vpop.f32.mrb[148].mxu1 }
 0x943   :  { %v18058_v11 = vadd.f32 %v15278_v5, %v14807_v49  ;;  %v15280_v61 = vpop.f32.mrb[149].mxu1 }
 0x944   :  { %v18059_v62 = vadd.f32 %v15280_v61, %v14811_v21  ;;  %v15282_v0 = vpop.f32.mrb[150].mxu1 }
 0x945   :  { %v15365_v35 = vmax.f32 %v18058_v11, 0.0  ;;  %v15283_v19 = vpop.f32.mrb[151].mxu1 }
 0x946   :  { %v15366_v12 = vmax.f32 %v18059_v62, 0.0 }
 0x947   :  { %v15385_v28 = vmul.f32 %v15373_v17, %v15365_v35 }
 0x948   :  { %v15386_v7 = vmul.f32 %v15377_v16, %v15366_v12 }
 0x94a   :  { %v15388_v24 = vadd.f32 %v15386_v7, %v15385_v28 }
 0x962   :  { %v18019_v8 = vpop.f32.mrb[152].mxu1 }
 0x963   :  { %v18020_v36 = vpop.f32.mrb[153].mxu1 }
 0x964   :  { %v18021_v20 = vadd.f32 %v18020_v36, %v18019_v8  ;;  %v18022_v43 = vpop.f32.mrb[154].mxu1 }
 0x965   :  { %v18023_v33 = vpop.f32.mrb[155].mxu1 }
 0x966   :  { %v15320_v44 = vadd.f32 %v18021_v20, %v14815_v23 }
 0x982   :  { %v15359_v56 = vpop.f32.mrb[156].mxu1 }
 0x983   :  { %v15360_v30 = vadd.f32 %v15359_v56, %v15320_v44  ;;  %v18052_v31 = vpop.f32.mrb[157].mxu1 }
 0x984   :  { %v15362_v40 = vpop.f32.mrb[158].mxu1 }
 0x985   :  { %v15367_v4 = vmax.f32 %v15360_v30, 0.0  ;;  %v18053_v46 = vpop.f32.mrb[159].mxu1 }
 0x987   :  { %v15387_v42 = vmul.f32 %v15381_v14, %v15367_v4 }
 0x989   :  { %v15389_v3 = vadd.f32 %v15388_v24, %v15387_v42 }
 0x98b   :  { %15390 = vadd.xlane.f32.xlu0 %v15389_v3 }
 0xa18   :  { %v15391_v34 = vpop.xlane.xlu0 %15390 }
 0xa19   :  { %v15399_v41 = vadd.f32 %v17210_v51, %v15391_v34 }
 0xa1b   :  { %15401 = vst.msk [vmem:[%s21282_s7] sm:$0xff] %vm15400_vm1, %v15399_v41 }
 0xa1c   :  { %15406 = vsyncpa [#allocation4], 1 }
 0xa1d   :  { %15407 = vsyncpa [#allocation6], 1 }
 0xa1e   :  { %15408 = vsyncpa [#allocation9], 1 }
 0xa1f   :  { %15409 = vsyncpa [#allocation12], 1 }

</bundles_post_ra>
